<compile_context>
chip_gen: v6e
topology: v6e:2x2x1
jax: 0.10.0
libtpu: 0.0.40
codegen_flags: <defaults>
</compile_context>

<pallas_src>
import functools
import math

import jax
import jax.numpy as jnp
from jax.experimental import pallas as pl
from jax.experimental.pallas import tpu as pltpu

HEAD_ROWS = 8  # start/end head rows padded 2 -> 8 sublanes (lane-dense output)


# ------------------------------ Pallas kernel -------------------------------

def _bert_mrc_kernel(x_ref, m_ref, emb_g_ref, emb_b_ref,
                     wqkv_ref, bqkv_ref, wo_ref, bo_ref,
                     ln1_g_ref, ln1_b_ref, w1_ref, b1_ref,
                     w2_ref, b2_ref, ln2_g_ref, ln2_b_ref,
                     hw_ref, hb_ref, o_ref, x_vmem, *,
                     num_heads, eps):
    """One encoder layer for one batch tile; grid = (batch_tiles, layers)."""
    layer = pl.program_id(1)
    Bt, S, H = x_ref.shape
    M = Bt * S
    nH = num_heads
    Dh = H // nH

    def layernorm(y, g, b):
        mu = jnp.mean(y, axis=-1, keepdims=True)
        cen = y - mu
        var = jnp.mean(cen * cen, axis=-1, keepdims=True)
        return cen * jax.lax.rsqrt(var + eps) * g + b

    def mm(a_f32, w_bf16):
        # bf16 x bf16 MXU matmul with f32 accumulation.
        return jnp.dot(a_f32.astype(jnp.bfloat16), w_bf16,
                       preferred_element_type=jnp.float32)

    # First layer step: embedding LayerNorm into the VMEM activation carry.
    @pl.when(layer == 0)
    def _():
        x0 = x_ref[...].reshape(M, H)
        x_vmem[...] = layernorm(x0, emb_g_ref[...], emb_b_ref[...])

    x = x_vmem[...]                                               # (M, H) f32

    # ---- self-attention: fused QKV projection (M = Bt*S rows fill the MXU) --
    qkv = mm(x, wqkv_ref[0]) + bqkv_ref[0]                        # (M, 3H) f32

    def to_head_batch(mat):
        # (M, H) f32 -> (nH*Bt, S, Dh); batch index g = h*Bt + b.
        return jnp.concatenate(
            [mat[:, h * Dh:(h + 1) * Dh].reshape(Bt, S, Dh) for h in range(nH)],
            axis=0)

    # Cast once per tensor after the head re-batching (f32 reshapes are
    # sublane-tile aligned; bf16 only feeds the MXU).
    q_g = to_head_batch(qkv[:, 0 * H:1 * H]).astype(jnp.bfloat16)
    k_g = to_head_batch(qkv[:, 1 * H:2 * H]).astype(jnp.bfloat16)
    v_g = to_head_batch(qkv[:, 2 * H:3 * H]).astype(jnp.bfloat16)
    mask_g = jnp.tile(m_ref[...], (nH, 1, 1))                     # (nH*Bt, 1, S)

    # 1/sqrt(Dh) is folded into the Q weights/bias at pack time.
    scores = jnp.einsum("gqd,gkd->gqk", q_g, k_g,
                        preferred_element_type=jnp.float32) + mask_g
    scores = scores - jnp.max(scores, axis=-1, keepdims=True)     # f32 softmax
    p = jnp.exp(scores)                                           # unnormalized
    denom = jnp.sum(p, axis=-1, keepdims=True)                    # (nH*Bt, S, 1)
    ctx_g = jnp.einsum("gqk,gkd->gqd", p.astype(jnp.bfloat16), v_g,
                       preferred_element_type=jnp.float32)
    ctx_g = ctx_g * pl.reciprocal(denom, approx=True)             # flash rescale

    # Merge heads back to (M, H) and do ONE output projection against Wo.
    ctx = jnp.concatenate(
        [ctx_g[h * Bt:(h + 1) * Bt].reshape(M, Dh) for h in range(nH)], axis=-1)
    attn = mm(ctx, wo_ref[0]) + bo_ref[0]                         # (M, H) f32
    x = layernorm(attn + x, ln1_g_ref[0], ln1_b_ref[0])

    # ---- feed-forward ----
    hid = mm(x, w1_ref[0]) + b1_ref[0]                            # (M, I) f32
    # TODO(synk): HF BERT's default act is erf-based gelu; tanh approx used here.
    cg = math.sqrt(2.0 / math.pi)
    hid = 0.5 * hid * (1.0 + jnp.tanh(cg * (hid + 0.044715 * hid * hid * hid)))
    ff = mm(hid, w2_ref[0]) + b2_ref[0]                           # (M, H) f32
    x = layernorm(ff + x, ln2_g_ref[0], ln2_b_ref[0])

    x_vmem[...] = x                                               # carry to next layer

    # Last layer step: start/end heads, emitted transposed (8 sublanes, M lanes).
    @pl.when(layer == pl.num_programs(1) - 1)
    def _():
        logits_t = jnp.dot(hw_ref[...], x.T.astype(jnp.bfloat16),
                           preferred_element_type=jnp.float32)    # (8, M)
        o_ref[...] = logits_t + hb_ref[...]


# ------------------------------ Model config --------------------------------

class Config:
    vocab_size = 100
    hidden_size = 32
    num_layers = 2
    num_heads = 4
    intermediate_size = 64
    max_position = 64
    type_vocab = 2
    initializer_range = 0.02
    ln_eps = 1e-12


def init_params(key, cfg):
    std = cfg.initializer_range
    H, I = cfg.hidden_size, cfg.intermediate_size
    keys = iter(jax.random.split(key, 8 + 8 * cfg.num_layers))

    def normal(k, shape):
        return std * jax.random.normal(k, shape, dtype=jnp.float32)

    params = {
        "word_emb": normal(next(keys), (cfg.vocab_size, H)),
        "pos_emb": normal(next(keys), (cfg.max_position, H)),
        "type_emb": normal(next(keys), (cfg.type_vocab, H)),
        "emb_ln_g": jnp.ones((H,), jnp.float32),
        "emb_ln_b": jnp.zeros((H,), jnp.float32),
        "layers": [],
    }
    for _ in range(cfg.num_layers):
        params["layers"].append({
            "wq": normal(next(keys), (H, H)), "bq": jnp.zeros((H,), jnp.float32),
            "wk": normal(next(keys), (H, H)), "bk": jnp.zeros((H,), jnp.float32),
            "wv": normal(next(keys), (H, H)), "bv": jnp.zeros((H,), jnp.float32),
            "wo": normal(next(keys), (H, H)), "bo": jnp.zeros((H,), jnp.float32),
            "ln1_g": jnp.ones((H,), jnp.float32), "ln1_b": jnp.zeros((H,), jnp.float32),
            "w1": normal(next(keys), (H, I)), "b1": jnp.zeros((I,), jnp.float32),
            "w2": normal(next(keys), (I, H)), "b2": jnp.zeros((H,), jnp.float32),
            "ln2_g": jnp.ones((H,), jnp.float32), "ln2_b": jnp.zeros((H,), jnp.float32),
        })
    # start/end heads: nn.Linear(hidden, 1) x2 -> stored as (H, 2):
    # column 0 = start head, column 1 = end head (weights ~ N(0, std), bias 0).
    params["head_w"] = normal(next(keys), (H, 2))
    params["head_b"] = jnp.zeros((2,), jnp.float32)
    return params


def pack_params(params, cfg):
    """Stack per-layer weights, fuse QKV (scale folded into Q), cast matmul
    weights to bf16, and lay the 2-row head out as (8, H) sublane padding."""
    H = cfg.hidden_size
    Dh = H // cfg.num_heads
    ls = params["layers"]
    scale = 1.0 / math.sqrt(Dh)

    def stack(name):
        return jnp.stack([lyr[name] for lyr in ls])

    # Fold the 1/sqrt(Dh) attention scale into the Q weights and bias.
    wqkv = jnp.stack([jnp.concatenate([l["wq"] * scale, l["wk"], l["wv"]], axis=1)
                      for l in ls])                                   # (L, H, 3H)
    bqkv = jnp.stack([jnp.concatenate([l["bq"] * scale, l["bk"], l["bv"]])[None, :]
                      for l in ls])                                   # (L, 1, 3H)
    head_w = jnp.zeros((HEAD_ROWS, H), jnp.float32).at[:2, :].set(params["head_w"].T)
    head_b = jnp.zeros((HEAD_ROWS, 1), jnp.float32).at[:2, 0].set(params["head_b"])

    return {
        "word_emb": params["word_emb"],
        "pos_emb": params["pos_emb"],
        "type_emb": params["type_emb"],
        "emb_ln_g": params["emb_ln_g"][None, :],
        "emb_ln_b": params["emb_ln_b"][None, :],
        "wqkv": wqkv.astype(jnp.bfloat16),
        "bqkv": bqkv,
        "wo": stack("wo").astype(jnp.bfloat16),                       # unsplit Wo
        "bo": stack("bo")[:, None, :],
        "ln1_g": stack("ln1_g")[:, None, :], "ln1_b": stack("ln1_b")[:, None, :],
        "w1": stack("w1").astype(jnp.bfloat16), "b1": stack("b1")[:, None, :],
        "w2": stack("w2").astype(jnp.bfloat16), "b2": stack("b2")[:, None, :],
        "ln2_g": stack("ln2_g")[:, None, :], "ln2_b": stack("ln2_b")[:, None, :],
        "head_w": head_w.astype(jnp.bfloat16),
        "head_b": head_b,
    }


# ------------------------------ Forward pass --------------------------------

_PER_LAYER = ("wqkv", "bqkv", "wo", "bo", "ln1_g", "ln1_b",
              "w1", "b1", "w2", "b2", "ln2_g", "ln2_b")
_WEIGHT_ORDER = ("emb_ln_g", "emb_ln_b") + _PER_LAYER + ("head_w", "head_b")


def _pick_batch_tile(batch, seq, target_rows=128):
    """Batch tile so each grid step sees ~target_rows matmul rows, while keeping
    >= 2 grid steps on the batch axis when possible (v7x has 2 TensorCores)."""
    bt = max(1, min(batch, max(1, target_rows // seq)))
    while bt > 1 and (batch % bt != 0 or batch // bt < 2):
        bt -= 1
    return bt


def bert_mrc_forward(packed, cfg, input_ids, attention_mask, token_type_ids,
                     batch_tile=None):
    B, S = input_ids.shape
    H = cfg.hidden_size
    if batch_tile is None:
        batch_tile = _pick_batch_tile(B, S)
    assert B % batch_tile == 0
    n_tiles = B // batch_tile
    M = batch_tile * S

    # Embedding gathers stay in JAX glue.
    x = (packed["word_emb"][input_ids]
         + packed["pos_emb"][:S][None, :, :]
         + packed["type_emb"][token_type_ids]).astype(jnp.float32)    # (B, S, H)
    # Additive attention mask, unreplicated across heads: (B, 1, S).
    add_mask = ((1.0 - attention_mask.astype(jnp.float32)) * -10000.0)[:, None, :]

    def const_spec(arr):            # resident weights (constant block index)
        zeros = (0,) * arr.ndim
        return pl.BlockSpec(arr.shape, lambda b, l: zeros)

    def layer_spec(arr):            # streamed per layer (double-buffered DMA)
        trailing = (0,) * (arr.ndim - 1)
        return pl.BlockSpec((1,) + arr.shape[1:], lambda b, l: (l,) + trailing)

    weights = [packed[k] for k in _WEIGHT_ORDER]
    weight_specs = [layer_spec(packed[k]) if k in _PER_LAYER else const_spec(packed[k])
                    for k in _WEIGHT_ORDER]

    kernel = functools.partial(_bert_mrc_kernel,
                               num_heads=cfg.num_heads, eps=cfg.ln_eps)

    logits_t = pl.pallas_call(
        kernel,
        grid=(n_tiles, cfg.num_layers),
        out_shape=jax.ShapeDtypeStruct((HEAD_ROWS, B * S), jnp.float32),
        in_specs=[pl.BlockSpec((batch_tile, S, H), lambda b, l: (b, 0, 0)),
                  pl.BlockSpec((batch_tile, 1, S), lambda b, l: (b, 0, 0))]
                 + weight_specs,
        # Output block index is constant across the layer axis -> resident
        # accumulator, written back once per batch tile (lane-dense (8, M)).
        out_specs=pl.BlockSpec((HEAD_ROWS, M), lambda b, l: (0, b)),
        scratch_shapes=[pltpu.VMEM((M, H), jnp.float32)],     # activation carry
        compiler_params=pltpu.CompilerParams(
            dimension_semantics=("parallel", "arbitrary")),
    )(x, add_mask, *weights)

    start_logits = logits_t[0].reshape(B, S)                         # (B, S)
    end_logits = logits_t[1].reshape(B, S)                           # (B, S)
    return start_logits, end_logits


# ---------------------------------- Main ------------------------------------

if __name__ == "__main__":
    cfg = Config()
    # Batch sized so each of the 2 parallel grid steps sees 16*8 = 128 rows.
    B, S = 32, 8

    key = jax.random.PRNGKey(0)
    k_param, k_ids, k_type = jax.random.split(key, 3)

    params = init_params(k_param, cfg)
    packed = pack_params(params, cfg)

    input_ids = jax.random.randint(k_ids, (B, S), 0, cfg.vocab_size,
                                   dtype=jnp.int32)
    # Second half of the batch has its last two tokens padded.
    attention_mask = jnp.ones((B, S), jnp.int32).at[B // 2:, S - 2:].set(0)
    token_type_ids = jax.random.randint(k_type, (B, S), 0, cfg.type_vocab,
                                        dtype=jnp.int32)

    fwd = jax.jit(lambda pk, ii, am, tt: bert_mrc_forward(pk, cfg, ii, am, tt))
    start_logits, end_logits = fwd(packed, input_ids, attention_mask,
                                   token_type_ids)
    jax.block_until_ready((start_logits, end_logits))

    assert start_logits.shape == (B, S) and end_logits.shape == (B, S)
    assert start_logits.dtype == jnp.float32 and end_logits.dtype == jnp.float32
    assert bool(jnp.all(jnp.isfinite(start_logits))) and bool(jnp.all(jnp.isfinite(end_logits)))
    print("KERNEL_OK")
</pallas_src>

<mosaic_0001>
module attributes {stable_mosaic.version = 11 : i64} {
  func.func @_bert_mrc_kernel(%arg0: i32, %arg1: i32, %arg2: memref<16x8x32xf32, #tpu.memory_space<vmem>>, %arg3: memref<16x1x8xf32, #tpu.memory_space<vmem>>, %arg4: memref<1x32xf32, #tpu.memory_space<vmem>>, %arg5: memref<1x32xf32, #tpu.memory_space<vmem>>, %arg6: memref<1x32x96xbf16, #tpu.memory_space<vmem>>, %arg7: memref<1x1x96xf32, #tpu.memory_space<vmem>>, %arg8: memref<1x32x32xbf16, #tpu.memory_space<vmem>>, %arg9: memref<1x1x32xf32, #tpu.memory_space<vmem>>, %arg10: memref<1x1x32xf32, #tpu.memory_space<vmem>>, %arg11: memref<1x1x32xf32, #tpu.memory_space<vmem>>, %arg12: memref<1x32x64xbf16, #tpu.memory_space<vmem>>, %arg13: memref<1x1x64xf32, #tpu.memory_space<vmem>>, %arg14: memref<1x64x32xbf16, #tpu.memory_space<vmem>>, %arg15: memref<1x1x32xf32, #tpu.memory_space<vmem>>, %arg16: memref<1x1x32xf32, #tpu.memory_space<vmem>>, %arg17: memref<1x1x32xf32, #tpu.memory_space<vmem>>, %arg18: memref<8x32xbf16, #tpu.memory_space<vmem>>, %arg19: memref<8x1xf32, #tpu.memory_space<vmem>>, %arg20: memref<8x128xf32, #tpu.memory_space<vmem>>, %arg21: memref<128x32xf32, #tpu.memory_space<vmem>>) attributes {dimension_semantics = [#tpu.dimension_semantics<parallel>, #tpu.dimension_semantics<arbitrary>], iteration_bounds = array<i64: 2, 2>, scalar_prefetch = 0 : i64, scratch_operands = 1 : i64, tpu.core_type = #tpu.core_type<tc>, window_params = [{transform_indices = @transform_0, window_bounds = array<i64: 16, 8, 32>}, {transform_indices = @transform_1, window_bounds = array<i64: 16, 1, 8>}, {pipeline_mode = #tpu.pipeline_mode<synchronous>, transform_indices = @transform_2, window_bounds = array<i64: 1, 32>}, {pipeline_mode = #tpu.pipeline_mode<synchronous>, transform_indices = @transform_3, window_bounds = array<i64: 1, 32>}, {transform_indices = @transform_4, window_bounds = array<i64: 1, 32, 96>}, {transform_indices = @transform_5, window_bounds = array<i64: 1, 1, 96>}, {transform_indices = @transform_6, window_bounds = array<i64: 1, 32, 32>}, {transform_indices = @transform_7, window_bounds = array<i64: 1, 1, 32>}, {transform_indices = @transform_8, window_bounds = array<i64: 1, 1, 32>}, {transform_indices = @transform_9, window_bounds = array<i64: 1, 1, 32>}, {transform_indices = @transform_10, window_bounds = array<i64: 1, 32, 64>}, {transform_indices = @transform_11, window_bounds = array<i64: 1, 1, 64>}, {transform_indices = @transform_12, window_bounds = array<i64: 1, 64, 32>}, {transform_indices = @transform_13, window_bounds = array<i64: 1, 1, 32>}, {transform_indices = @transform_14, window_bounds = array<i64: 1, 1, 32>}, {transform_indices = @transform_15, window_bounds = array<i64: 1, 1, 32>}, {pipeline_mode = #tpu.pipeline_mode<synchronous>, transform_indices = @transform_16, window_bounds = array<i64: 8, 32>}, {pipeline_mode = #tpu.pipeline_mode<synchronous>, transform_indices = @transform_17, window_bounds = array<i64: 8, 1>}, {transform_indices = @transform_18, window_bounds = array<i64: 8, 128>}]} {
    %c0_i32 = arith.constant 0 : i32
    %0 = arith.cmpi eq, %arg1, %c0_i32 : i32
    %1 = arith.extui %0 : i1 to i32
    %c0_i32_0 = arith.constant 0 : i32
    %2 = arith.cmpi ne, %1, %c0_i32_0 : i32
    scf.if %2 {
      %c0_65 = arith.constant 0 : index
      %c0_66 = arith.constant 0 : index
      %c0_67 = arith.constant 0 : index
      %162 = vector.load %arg2[%c0_65, %c0_66, %c0_67] : memref<16x8x32xf32, #tpu.memory_space<vmem>>, vector<16x8x32xf32>
      %163 = vector.shape_cast %162 : vector<16x8x32xf32> to vector<128x32xf32>
      %c0_68 = arith.constant 0 : index
      %c0_69 = arith.constant 0 : index
      %164 = vector.load %arg4[%c0_68, %c0_69] : memref<1x32xf32, #tpu.memory_space<vmem>>, vector<1x32xf32>
      %c0_70 = arith.constant 0 : index
      %c0_71 = arith.constant 0 : index
      %165 = vector.load %arg5[%c0_70, %c0_71] : memref<1x32xf32, #tpu.memory_space<vmem>>, vector<1x32xf32>
      %cst_72 = arith.constant dense<0.000000e+00> : vector<128xf32>
      %166 = vector.multi_reduction <add>, %163, %cst_72 [1] : vector<128x32xf32> to vector<128xf32>
      %167 = vector.shape_cast %166 : vector<128xf32> to vector<128x1xf32>
      %cst_73 = arith.constant 3.200000e+01 : f32
      %168 = vector.broadcast %cst_73 : f32 to vector<128x1xf32>
      %169 = arith.divf %167, %168 : vector<128x1xf32>
      %170 = vector.broadcast %169 : vector<128x1xf32> to vector<128x32xf32>
      %171 = arith.subf %163, %170 : vector<128x32xf32>
      %172 = arith.mulf %171, %171 : vector<128x32xf32>
      %cst_74 = arith.constant dense<0.000000e+00> : vector<128xf32>
      %173 = vector.multi_reduction <add>, %172, %cst_74 [1] : vector<128x32xf32> to vector<128xf32>
      %174 = vector.shape_cast %173 : vector<128xf32> to vector<128x1xf32>
      %cst_75 = arith.constant 3.200000e+01 : f32
      %175 = vector.broadcast %cst_75 : f32 to vector<128x1xf32>
      %176 = arith.divf %174, %175 : vector<128x1xf32>
      %cst_76 = arith.constant 9.99999996E-13 : f32
      %177 = vector.broadcast %cst_76 : f32 to vector<128x1xf32>
      %178 = arith.addf %176, %177 : vector<128x1xf32>
      %179 = math.rsqrt %178 : vector<128x1xf32>
      %180 = vector.broadcast %179 : vector<128x1xf32> to vector<128x32xf32>
      %181 = arith.mulf %171, %180 : vector<128x32xf32>
      %182 = vector.broadcast %164 : vector<1x32xf32> to vector<128x32xf32>
      %183 = arith.mulf %181, %182 : vector<128x32xf32>
      %184 = vector.broadcast %165 : vector<1x32xf32> to vector<128x32xf32>
      %185 = arith.addf %183, %184 : vector<128x32xf32>
      %c0_77 = arith.constant 0 : index
      %c0_78 = arith.constant 0 : index
      %186 = vector.load %arg21[%c0_77, %c0_78] : memref<128x32xf32, #tpu.memory_space<vmem>>, vector<128x32xf32>
      tpu.vector_store %arg21[%c0_77, %c0_78], %185 {strides = array<i32>} : memref<128x32xf32, #tpu.memory_space<vmem>>, vector<128x32xf32>,
    } else {
    }
    %c0 = arith.constant 0 : index
    %c0_1 = arith.constant 0 : index
    %3 = vector.load %arg21[%c0, %c0_1] : memref<128x32xf32, #tpu.memory_space<vmem>>, vector<128x32xf32>
    %c0_2 = arith.constant 0 : index
    %c0_3 = arith.constant 0 : index
    %c0_4 = arith.constant 0 : index
    %4 = vector.load %arg6[%c0_2, %c0_3, %c0_4] : memref<1x32x96xbf16, #tpu.memory_space<vmem>>, vector<1x32x96xbf16>
    %5 = vector.shape_cast %4 : vector<1x32x96xbf16> to vector<32x96xbf16>
    %6 = arith.truncf %3 : vector<128x32xf32> to vector<128x32xbf16>
    %cst = arith.constant dense<0.000000e+00> : vector<128x96xf32>
    %7 = tpu.matmul %6, %5, %cst {dimension_numbers = #tpu.dot_dimension_numbers<[1], [0], [0], [1], [0, 0, 1, 1], [], []>} : vector<128x32xbf16>, vector<32x96xbf16>, vector<128x96xf32> -> vector<128x96xf32>
    %c0_5 = arith.constant 0 : index
    %c0_6 = arith.constant 0 : index
    %c0_7 = arith.constant 0 : index
    %8 = vector.load %arg7[%c0_5, %c0_6, %c0_7] : memref<1x1x96xf32, #tpu.memory_space<vmem>>, vector<1x1x96xf32>
    %9 = vector.shape_cast %8 : vector<1x1x96xf32> to vector<1x96xf32>
    %10 = vector.broadcast %9 : vector<1x96xf32> to vector<128x96xf32>
    %11 = arith.addf %7, %10 : vector<128x96xf32>
    %12 = vector.extract_strided_slice %11 {offsets = [0, 0], sizes = [128, 32], strides = [1, 1]} : vector<128x96xf32> to vector<128x32xf32>
    %13 = vector.extract_strided_slice %12 {offsets = [0, 0], sizes = [128, 8], strides = [1, 1]} : vector<128x32xf32> to vector<128x8xf32>
    %14 = vector.shape_cast %13 : vector<128x8xf32> to vector<16x8x8xf32>
    %15 = vector.extract_strided_slice %12 {offsets = [0, 8], sizes = [128, 8], strides = [1, 1]} : vector<128x32xf32> to vector<128x8xf32>
    %16 = vector.shape_cast %15 : vector<128x8xf32> to vector<16x8x8xf32>
    %17 = vector.extract_strided_slice %12 {offsets = [0, 16], sizes = [128, 8], strides = [1, 1]} : vector<128x32xf32> to vector<128x8xf32>
    %18 = vector.shape_cast %17 : vector<128x8xf32> to vector<16x8x8xf32>
    %19 = vector.extract_strided_slice %12 {offsets = [0, 24], sizes = [128, 8], strides = [1, 1]} : vector<128x32xf32> to vector<128x8xf32>
    %20 = vector.shape_cast %19 : vector<128x8xf32> to vector<16x8x8xf32>
    %21 = tpu.concatenate %14, %16, %18, %20 in 0 : vector<16x8x8xf32>, vector<16x8x8xf32>, vector<16x8x8xf32>, vector<16x8x8xf32> -> vector<64x8x8xf32>
    %22 = arith.truncf %21 : vector<64x8x8xf32> to vector<64x8x8xbf16>
    %23 = vector.extract_strided_slice %11 {offsets = [0, 32], sizes = [128, 32], strides = [1, 1]} : vector<128x96xf32> to vector<128x32xf32>
    %24 = vector.extract_strided_slice %23 {offsets = [0, 0], sizes = [128, 8], strides = [1, 1]} : vector<128x32xf32> to vector<128x8xf32>
    %25 = vector.shape_cast %24 : vector<128x8xf32> to vector<16x8x8xf32>
    %26 = vector.extract_strided_slice %23 {offsets = [0, 8], sizes = [128, 8], strides = [1, 1]} : vector<128x32xf32> to vector<128x8xf32>
    %27 = vector.shape_cast %26 : vector<128x8xf32> to vector<16x8x8xf32>
    %28 = vector.extract_strided_slice %23 {offsets = [0, 16], sizes = [128, 8], strides = [1, 1]} : vector<128x32xf32> to vector<128x8xf32>
    %29 = vector.shape_cast %28 : vector<128x8xf32> to vector<16x8x8xf32>
    %30 = vector.extract_strided_slice %23 {offsets = [0, 24], sizes = [128, 8], strides = [1, 1]} : vector<128x32xf32> to vector<128x8xf32>
    %31 = vector.shape_cast %30 : vector<128x8xf32> to vector<16x8x8xf32>
    %32 = tpu.concatenate %25, %27, %29, %31 in 0 : vector<16x8x8xf32>, vector<16x8x8xf32>, vector<16x8x8xf32>, vector<16x8x8xf32> -> vector<64x8x8xf32>
    %33 = arith.truncf %32 : vector<64x8x8xf32> to vector<64x8x8xbf16>
    %34 = vector.extract_strided_slice %11 {offsets = [0, 64], sizes = [128, 32], strides = [1, 1]} : vector<128x96xf32> to vector<128x32xf32>
    %35 = vector.extract_strided_slice %34 {offsets = [0, 0], sizes = [128, 8], strides = [1, 1]} : vector<128x32xf32> to vector<128x8xf32>
    %36 = vector.shape_cast %35 : vector<128x8xf32> to vector<16x8x8xf32>
    %37 = vector.extract_strided_slice %34 {offsets = [0, 8], sizes = [128, 8], strides = [1, 1]} : vector<128x32xf32> to vector<128x8xf32>
    %38 = vector.shape_cast %37 : vector<128x8xf32> to vector<16x8x8xf32>
    %39 = vector.extract_strided_slice %34 {offsets = [0, 16], sizes = [128, 8], strides = [1, 1]} : vector<128x32xf32> to vector<128x8xf32>
    %40 = vector.shape_cast %39 : vector<128x8xf32> to vector<16x8x8xf32>
    %41 = vector.extract_strided_slice %34 {offsets = [0, 24], sizes = [128, 8], strides = [1, 1]} : vector<128x32xf32> to vector<128x8xf32>
    %42 = vector.shape_cast %41 : vector<128x8xf32> to vector<16x8x8xf32>
    %43 = tpu.concatenate %36, %38, %40, %42 in 0 : vector<16x8x8xf32>, vector<16x8x8xf32>, vector<16x8x8xf32>, vector<16x8x8xf32> -> vector<64x8x8xf32>
    %44 = arith.truncf %43 : vector<64x8x8xf32> to vector<64x8x8xbf16>
    %c0_8 = arith.constant 0 : index
    %c0_9 = arith.constant 0 : index
    %c0_10 = arith.constant 0 : index
    %45 = vector.load %arg3[%c0_8, %c0_9, %c0_10] : memref<16x1x8xf32, #tpu.memory_space<vmem>>, vector<16x1x8xf32>
    %46 = tpu.concatenate %45, %45, %45, %45 in 0 : vector<16x1x8xf32>, vector<16x1x8xf32>, vector<16x1x8xf32>, vector<16x1x8xf32> -> vector<64x1x8xf32>
    "tpu.trace_start"() <{level = 10 : i32, message = "gqd,gkd->gqk"}> : () -> ()
    %cst_11 = arith.constant dense<0.000000e+00> : vector<64x8x8xf32>
    %47 = tpu.matmul %22, %33, %cst_11 {dimension_numbers = #tpu.dot_dimension_numbers<[2], [2], [1], [1], [0, 0, 0, 1, 1, 1], [0], [0]>} : vector<64x8x8xbf16>, vector<64x8x8xbf16>, vector<64x8x8xf32> -> vector<64x8x8xf32>
    "tpu.trace_stop"() : () -> ()
    %48 = vector.broadcast %46 : vector<64x1x8xf32> to vector<64x8x8xf32>
    %49 = arith.addf %47, %48 : vector<64x8x8xf32>
    %cst_12 = arith.constant dense<0xFF800000> : vector<64x8xf32>
    %50 = vector.multi_reduction <maximumf>, %49, %cst_12 [2] : vector<64x8x8xf32> to vector<64x8xf32>
    %51 = vector.shape_cast %50 : vector<64x8xf32> to vector<64x8x1xf32>
    %52 = vector.broadcast %51 : vector<64x8x1xf32> to vector<64x8x8xf32>
    %53 = arith.subf %49, %52 : vector<64x8x8xf32>
    %54 = math.exp %53 : vector<64x8x8xf32>
    %cst_13 = arith.constant dense<0.000000e+00> : vector<64x8xf32>
    %55 = vector.multi_reduction <add>, %54, %cst_13 [2] : vector<64x8x8xf32> to vector<64x8xf32>
    %56 = vector.shape_cast %55 : vector<64x8xf32> to vector<64x8x1xf32>
    %57 = arith.truncf %54 : vector<64x8x8xf32> to vector<64x8x8xbf16>
    "tpu.trace_start"() <{level = 10 : i32, message = "gqk,gkd->gqd"}> : () -> ()
    %cst_14 = arith.constant dense<0.000000e+00> : vector<64x8x8xf32>
    %58 = tpu.matmul %57, %44, %cst_14 {dimension_numbers = #tpu.dot_dimension_numbers<[2], [1], [1], [2], [0, 0, 0, 1, 1, 2], [0], [0]>} : vector<64x8x8xbf16>, vector<64x8x8xbf16>, vector<64x8x8xf32> -> vector<64x8x8xf32>
    "tpu.trace_stop"() : () -> ()
    %59 = tpu.reciprocal %56 {approx = true} : vector<64x8x1xf32> -> vector<64x8x1xf32>
    %60 = vector.broadcast %59 : vector<64x8x1xf32> to vector<64x8x8xf32>
    %61 = arith.mulf %58, %60 : vector<64x8x8xf32>
    %62 = vector.extract_strided_slice %61 {offsets = [0, 0, 0], sizes = [16, 8, 8], strides = [1, 1, 1]} : vector<64x8x8xf32> to vector<16x8x8xf32>
    %63 = vector.shape_cast %62 : vector<16x8x8xf32> to vector<128x8xf32>
    %64 = vector.extract_strided_slice %61 {offsets = [16, 0, 0], sizes = [16, 8, 8], strides = [1, 1, 1]} : vector<64x8x8xf32> to vector<16x8x8xf32>
    %65 = vector.shape_cast %64 : vector<16x8x8xf32> to vector<128x8xf32>
    %66 = vector.extract_strided_slice %61 {offsets = [32, 0, 0], sizes = [16, 8, 8], strides = [1, 1, 1]} : vector<64x8x8xf32> to vector<16x8x8xf32>
    %67 = vector.shape_cast %66 : vector<16x8x8xf32> to vector<128x8xf32>
    %68 = vector.extract_strided_slice %61 {offsets = [48, 0, 0], sizes = [16, 8, 8], strides = [1, 1, 1]} : vector<64x8x8xf32> to vector<16x8x8xf32>
    %69 = vector.shape_cast %68 : vector<16x8x8xf32> to vector<128x8xf32>
    %70 = tpu.concatenate %63, %65, %67, %69 in 1 : vector<128x8xf32>, vector<128x8xf32>, vector<128x8xf32>, vector<128x8xf32> -> vector<128x32xf32>
    %c0_15 = arith.constant 0 : index
    %c0_16 = arith.constant 0 : index
    %c0_17 = arith.constant 0 : index
    %71 = vector.load %arg8[%c0_15, %c0_16, %c0_17] : memref<1x32x32xbf16, #tpu.memory_space<vmem>>, vector<1x32x32xbf16>
    %72 = vector.shape_cast %71 : vector<1x32x32xbf16> to vector<32x32xbf16>
    %73 = arith.truncf %70 : vector<128x32xf32> to vector<128x32xbf16>
    %cst_18 = arith.constant dense<0.000000e+00> : vector<128x32xf32>
    %74 = tpu.matmul %73, %72, %cst_18 {dimension_numbers = #tpu.dot_dimension_numbers<[1], [0], [0], [1], [0, 0, 1, 1], [], []>} : vector<128x32xbf16>, vector<32x32xbf16>, vector<128x32xf32> -> vector<128x32xf32>
    %c0_19 = arith.constant 0 : index
    %c0_20 = arith.constant 0 : index
    %c0_21 = arith.constant 0 : index
    %75 = vector.load %arg9[%c0_19, %c0_20, %c0_21] : memref<1x1x32xf32, #tpu.memory_space<vmem>>, vector<1x1x32xf32>
    %76 = vector.shape_cast %75 : vector<1x1x32xf32> to vector<1x32xf32>
    %77 = vector.broadcast %76 : vector<1x32xf32> to vector<128x32xf32>
    %78 = arith.addf %74, %77 : vector<128x32xf32>
    %79 = arith.addf %78, %3 : vector<128x32xf32>
    %c0_22 = arith.constant 0 : index
    %c0_23 = arith.constant 0 : index
    %c0_24 = arith.constant 0 : index
    %80 = vector.load %arg10[%c0_22, %c0_23, %c0_24] : memref<1x1x32xf32, #tpu.memory_space<vmem>>, vector<1x1x32xf32>
    %81 = vector.shape_cast %80 : vector<1x1x32xf32> to vector<1x32xf32>
    %c0_25 = arith.constant 0 : index
    %c0_26 = arith.constant 0 : index
    %c0_27 = arith.constant 0 : index
    %82 = vector.load %arg11[%c0_25, %c0_26, %c0_27] : memref<1x1x32xf32, #tpu.memory_space<vmem>>, vector<1x1x32xf32>
    %83 = vector.shape_cast %82 : vector<1x1x32xf32> to vector<1x32xf32>
    %cst_28 = arith.constant dense<0.000000e+00> : vector<128xf32>
    %84 = vector.multi_reduction <add>, %79, %cst_28 [1] : vector<128x32xf32> to vector<128xf32>
    %85 = vector.shape_cast %84 : vector<128xf32> to vector<128x1xf32>
    %cst_29 = arith.constant 3.200000e+01 : f32
    %86 = vector.broadcast %cst_29 : f32 to vector<128x1xf32>
    %87 = arith.divf %85, %86 : vector<128x1xf32>
    %88 = vector.broadcast %87 : vector<128x1xf32> to vector<128x32xf32>
    %89 = arith.subf %79, %88 : vector<128x32xf32>
    %90 = arith.mulf %89, %89 : vector<128x32xf32>
    %cst_30 = arith.constant dense<0.000000e+00> : vector<128xf32>
    %91 = vector.multi_reduction <add>, %90, %cst_30 [1] : vector<128x32xf32> to vector<128xf32>
    %92 = vector.shape_cast %91 : vector<128xf32> to vector<128x1xf32>
    %cst_31 = arith.constant 3.200000e+01 : f32
    %93 = vector.broadcast %cst_31 : f32 to vector<128x1xf32>
    %94 = arith.divf %92, %93 : vector<128x1xf32>
    %cst_32 = arith.constant 9.99999996E-13 : f32
    %95 = vector.broadcast %cst_32 : f32 to vector<128x1xf32>
    %96 = arith.addf %94, %95 : vector<128x1xf32>
    %97 = math.rsqrt %96 : vector<128x1xf32>
    %98 = vector.broadcast %97 : vector<128x1xf32> to vector<128x32xf32>
    %99 = arith.mulf %89, %98 : vector<128x32xf32>
    %100 = vector.broadcast %81 : vector<1x32xf32> to vector<128x32xf32>
    %101 = arith.mulf %99, %100 : vector<128x32xf32>
    %102 = vector.broadcast %83 : vector<1x32xf32> to vector<128x32xf32>
    %103 = arith.addf %101, %102 : vector<128x32xf32>
    %c0_33 = arith.constant 0 : index
    %c0_34 = arith.constant 0 : index
    %c0_35 = arith.constant 0 : index
    %104 = vector.load %arg12[%c0_33, %c0_34, %c0_35] : memref<1x32x64xbf16, #tpu.memory_space<vmem>>, vector<1x32x64xbf16>
    %105 = vector.shape_cast %104 : vector<1x32x64xbf16> to vector<32x64xbf16>
    %106 = arith.truncf %103 : vector<128x32xf32> to vector<128x32xbf16>
    %cst_36 = arith.constant dense<0.000000e+00> : vector<128x64xf32>
    %107 = tpu.matmul %106, %105, %cst_36 {dimension_numbers = #tpu.dot_dimension_numbers<[1], [0], [0], [1], [0, 0, 1, 1], [], []>} : vector<128x32xbf16>, vector<32x64xbf16>, vector<128x64xf32> -> vector<128x64xf32>
    %c0_37 = arith.constant 0 : index
    %c0_38 = arith.constant 0 : index
    %c0_39 = arith.constant 0 : index
    %108 = vector.load %arg13[%c0_37, %c0_38, %c0_39] : memref<1x1x64xf32, #tpu.memory_space<vmem>>, vector<1x1x64xf32>
    %109 = vector.shape_cast %108 : vector<1x1x64xf32> to vector<1x64xf32>
    %110 = vector.broadcast %109 : vector<1x64xf32> to vector<128x64xf32>
    %111 = arith.addf %107, %110 : vector<128x64xf32>
    %cst_40 = arith.constant 5.000000e-01 : f32
    %112 = vector.broadcast %cst_40 : f32 to vector<128x64xf32>
    %113 = arith.mulf %112, %111 : vector<128x64xf32>
    %cst_41 = arith.constant 4.471500e-02 : f32
    %114 = vector.broadcast %cst_41 : f32 to vector<128x64xf32>
    %115 = arith.mulf %114, %111 : vector<128x64xf32>
    %116 = arith.mulf %115, %111 : vector<128x64xf32>
    %117 = arith.mulf %116, %111 : vector<128x64xf32>
    %118 = arith.addf %111, %117 : vector<128x64xf32>
    %cst_42 = arith.constant 0.797884583 : f32
    %119 = vector.broadcast %cst_42 : f32 to vector<128x64xf32>
    %120 = arith.mulf %119, %118 : vector<128x64xf32>
    %121 = math.tanh %120 : vector<128x64xf32>
    %cst_43 = arith.constant 1.000000e+00 : f32
    %122 = vector.broadcast %cst_43 : f32 to vector<128x64xf32>
    %123 = arith.addf %122, %121 : vector<128x64xf32>
    %124 = arith.mulf %113, %123 : vector<128x64xf32>
    %c0_44 = arith.constant 0 : index
    %c0_45 = arith.constant 0 : index
    %c0_46 = arith.constant 0 : index
    %125 = vector.load %arg14[%c0_44, %c0_45, %c0_46] : memref<1x64x32xbf16, #tpu.memory_space<vmem>>, vector<1x64x32xbf16>
    %126 = vector.shape_cast %125 : vector<1x64x32xbf16> to vector<64x32xbf16>
    %127 = arith.truncf %124 : vector<128x64xf32> to vector<128x64xbf16>
    %cst_47 = arith.constant dense<0.000000e+00> : vector<128x32xf32>
    %128 = tpu.matmul %127, %126, %cst_47 {dimension_numbers = #tpu.dot_dimension_numbers<[1], [0], [0], [1], [0, 0, 1, 1], [], []>} : vector<128x64xbf16>, vector<64x32xbf16>, vector<128x32xf32> -> vector<128x32xf32>
    %c0_48 = arith.constant 0 : index
    %c0_49 = arith.constant 0 : index
    %c0_50 = arith.constant 0 : index
    %129 = vector.load %arg15[%c0_48, %c0_49, %c0_50] : memref<1x1x32xf32, #tpu.memory_space<vmem>>, vector<1x1x32xf32>
    %130 = vector.shape_cast %129 : vector<1x1x32xf32> to vector<1x32xf32>
    %131 = vector.broadcast %130 : vector<1x32xf32> to vector<128x32xf32>
    %132 = arith.addf %128, %131 : vector<128x32xf32>
    %133 = arith.addf %132, %103 : vector<128x32xf32>
    %c0_51 = arith.constant 0 : index
    %c0_52 = arith.constant 0 : index
    %c0_53 = arith.constant 0 : index
    %134 = vector.load %arg16[%c0_51, %c0_52, %c0_53] : memref<1x1x32xf32, #tpu.memory_space<vmem>>, vector<1x1x32xf32>
    %135 = vector.shape_cast %134 : vector<1x1x32xf32> to vector<1x32xf32>
    %c0_54 = arith.constant 0 : index
    %c0_55 = arith.constant 0 : index
    %c0_56 = arith.constant 0 : index
    %136 = vector.load %arg17[%c0_54, %c0_55, %c0_56] : memref<1x1x32xf32, #tpu.memory_space<vmem>>, vector<1x1x32xf32>
    %137 = vector.shape_cast %136 : vector<1x1x32xf32> to vector<1x32xf32>
    %cst_57 = arith.constant dense<0.000000e+00> : vector<128xf32>
    %138 = vector.multi_reduction <add>, %133, %cst_57 [1] : vector<128x32xf32> to vector<128xf32>
    %139 = vector.shape_cast %138 : vector<128xf32> to vector<128x1xf32>
    %cst_58 = arith.constant 3.200000e+01 : f32
    %140 = vector.broadcast %cst_58 : f32 to vector<128x1xf32>
    %141 = arith.divf %139, %140 : vector<128x1xf32>
    %142 = vector.broadcast %141 : vector<128x1xf32> to vector<128x32xf32>
    %143 = arith.subf %133, %142 : vector<128x32xf32>
    %144 = arith.mulf %143, %143 : vector<128x32xf32>
    %cst_59 = arith.constant dense<0.000000e+00> : vector<128xf32>
    %145 = vector.multi_reduction <add>, %144, %cst_59 [1] : vector<128x32xf32> to vector<128xf32>
    %146 = vector.shape_cast %145 : vector<128xf32> to vector<128x1xf32>
    %cst_60 = arith.constant 3.200000e+01 : f32
    %147 = vector.broadcast %cst_60 : f32 to vector<128x1xf32>
    %148 = arith.divf %146, %147 : vector<128x1xf32>
    %cst_61 = arith.constant 9.99999996E-13 : f32
    %149 = vector.broadcast %cst_61 : f32 to vector<128x1xf32>
    %150 = arith.addf %148, %149 : vector<128x1xf32>
    %151 = math.rsqrt %150 : vector<128x1xf32>
    %152 = vector.broadcast %151 : vector<128x1xf32> to vector<128x32xf32>
    %153 = arith.mulf %143, %152 : vector<128x32xf32>
    %154 = vector.broadcast %135 : vector<1x32xf32> to vector<128x32xf32>
    %155 = arith.mulf %153, %154 : vector<128x32xf32>
    %156 = vector.broadcast %137 : vector<1x32xf32> to vector<128x32xf32>
    %157 = arith.addf %155, %156 : vector<128x32xf32>
    %c0_62 = arith.constant 0 : index
    %c0_63 = arith.constant 0 : index
    %158 = vector.load %arg21[%c0_62, %c0_63] : memref<128x32xf32, #tpu.memory_space<vmem>>, vector<128x32xf32>
    tpu.vector_store %arg21[%c0_62, %c0_63], %157 {strides = array<i32>} : memref<128x32xf32, #tpu.memory_space<vmem>>, vector<128x32xf32>,
    %c1_i32 = arith.constant 1 : i32
    %159 = arith.cmpi eq, %arg1, %c1_i32 : i32
    %160 = arith.extui %159 : i1 to i32
    %c0_i32_64 = arith.constant 0 : i32
    %161 = arith.cmpi ne, %160, %c0_i32_64 : i32
    scf.if %161 {
      %c0_65 = arith.constant 0 : index
      %c0_66 = arith.constant 0 : index
      %162 = vector.load %arg18[%c0_65, %c0_66] : memref<8x32xbf16, #tpu.memory_space<vmem>>, vector<8x32xbf16>
      %163 = tpu.transpose %157, [1, 0] : vector<128x32xf32> -> vector<32x128xf32>
      %164 = arith.truncf %163 : vector<32x128xf32> to vector<32x128xbf16>
      %cst_67 = arith.constant dense<0.000000e+00> : vector<8x128xf32>
      %165 = tpu.matmul %162, %164, %cst_67 {dimension_numbers = #tpu.dot_dimension_numbers<[1], [0], [0], [1], [0, 0, 1, 1], [], []>} : vector<8x32xbf16>, vector<32x128xbf16>, vector<8x128xf32> -> vector<8x128xf32>
      %c0_68 = arith.constant 0 : index
      %c0_69 = arith.constant 0 : index
      %166 = vector.load %arg19[%c0_68, %c0_69] : memref<8x1xf32, #tpu.memory_space<vmem>>, vector<8x1xf32>
      %167 = vector.broadcast %166 : vector<8x1xf32> to vector<8x128xf32>
      %168 = arith.addf %165, %167 : vector<8x128xf32>
      %c0_70 = arith.constant 0 : index
      %c0_71 = arith.constant 0 : index
      %169 = vector.load %arg20[%c0_70, %c0_71] : memref<8x128xf32, #tpu.memory_space<vmem>>, vector<8x128xf32>
      tpu.vector_store %arg20[%c0_70, %c0_71], %168 {strides = array<i32>} : memref<8x128xf32, #tpu.memory_space<vmem>>, vector<8x128xf32>,
    } else {
    }
    return
  }
  func.func @transform_0(%arg0: i32, %arg1: i32) -> (i32, i32, i32) {
    %c0_i32 = arith.constant 0 : i32
    %c0_i32_0 = arith.constant 0 : i32
    %c0_i32_1 = arith.constant 0 : i32
    return %arg0, %c0_i32, %c0_i32_0 : i32, i32, i32
  }
  func.func @transform_1(%arg0: i32, %arg1: i32) -> (i32, i32, i32) {
    %c0_i32 = arith.constant 0 : i32
    %c0_i32_0 = arith.constant 0 : i32
    %c0_i32_1 = arith.constant 0 : i32
    return %arg0, %c0_i32, %c0_i32_0 : i32, i32, i32
  }
  func.func @transform_2(%arg0: i32, %arg1: i32) -> (i32, i32) {
    %c0_i32 = arith.constant 0 : i32
    %c0_i32_0 = arith.constant 0 : i32
    %c0_i32_1 = arith.constant 0 : i32
    return %c0_i32, %c0_i32_0 : i32, i32
  }
  func.func @transform_3(%arg0: i32, %arg1: i32) -> (i32, i32) {
    %c0_i32 = arith.constant 0 : i32
    %c0_i32_0 = arith.constant 0 : i32
    %c0_i32_1 = arith.constant 0 : i32
    return %c0_i32, %c0_i32_0 : i32, i32
  }
  func.func @transform_4(%arg0: i32, %arg1: i32) -> (i32, i32, i32) {
    %c0_i32 = arith.constant 0 : i32
    %c0_i32_0 = arith.constant 0 : i32
    %c0_i32_1 = arith.constant 0 : i32
    return %arg1, %c0_i32, %c0_i32_0 : i32, i32, i32
  }
  func.func @transform_5(%arg0: i32, %arg1: i32) -> (i32, i32, i32) {
    %c0_i32 = arith.constant 0 : i32
    %c0_i32_0 = arith.constant 0 : i32
    %c0_i32_1 = arith.constant 0 : i32
    return %arg1, %c0_i32, %c0_i32_0 : i32, i32, i32
  }
  func.func @transform_6(%arg0: i32, %arg1: i32) -> (i32, i32, i32) {
    %c0_i32 = arith.constant 0 : i32
    %c0_i32_0 = arith.constant 0 : i32
    %c0_i32_1 = arith.constant 0 : i32
    return %arg1, %c0_i32, %c0_i32_0 : i32, i32, i32
  }
  func.func @transform_7(%arg0: i32, %arg1: i32) -> (i32, i32, i32) {
    %c0_i32 = arith.constant 0 : i32
    %c0_i32_0 = arith.constant 0 : i32
    %c0_i32_1 = arith.constant 0 : i32
    return %arg1, %c0_i32, %c0_i32_0 : i32, i32, i32
  }
  func.func @transform_8(%arg0: i32, %arg1: i32) -> (i32, i32, i32) {
    %c0_i32 = arith.constant 0 : i32
    %c0_i32_0 = arith.constant 0 : i32
    %c0_i32_1 = arith.constant 0 : i32
    return %arg1, %c0_i32, %c0_i32_0 : i32, i32, i32
  }
  func.func @transform_9(%arg0: i32, %arg1: i32) -> (i32, i32, i32) {
    %c0_i32 = arith.constant 0 : i32
    %c0_i32_0 = arith.constant 0 : i32
    %c0_i32_1 = arith.constant 0 : i32
    return %arg1, %c0_i32, %c0_i32_0 : i32, i32, i32
  }
  func.func @transform_10(%arg0: i32, %arg1: i32) -> (i32, i32, i32) {
    %c0_i32 = arith.constant 0 : i32
    %c0_i32_0 = arith.constant 0 : i32
    %c0_i32_1 = arith.constant 0 : i32
    return %arg1, %c0_i32, %c0_i32_0 : i32, i32, i32
  }
  func.func @transform_11(%arg0: i32, %arg1: i32) -> (i32, i32, i32) {
    %c0_i32 = arith.constant 0 : i32
    %c0_i32_0 = arith.constant 0 : i32
    %c0_i32_1 = arith.constant 0 : i32
    return %arg1, %c0_i32, %c0_i32_0 : i32, i32, i32
  }
  func.func @transform_12(%arg0: i32, %arg1: i32) -> (i32, i32, i32) {
    %c0_i32 = arith.constant 0 : i32
    %c0_i32_0 = arith.constant 0 : i32
    %c0_i32_1 = arith.constant 0 : i32
    return %arg1, %c0_i32, %c0_i32_0 : i32, i32, i32
  }
  func.func @transform_13(%arg0: i32, %arg1: i32) -> (i32, i32, i32) {
    %c0_i32 = arith.constant 0 : i32
    %c0_i32_0 = arith.constant 0 : i32
    %c0_i32_1 = arith.constant 0 : i32
    return %arg1, %c0_i32, %c0_i32_0 : i32, i32, i32
  }
  func.func @transform_14(%arg0: i32, %arg1: i32) -> (i32, i32, i32) {
    %c0_i32 = arith.constant 0 : i32
    %c0_i32_0 = arith.constant 0 : i32
    %c0_i32_1 = arith.constant 0 : i32
    return %arg1, %c0_i32, %c0_i32_0 : i32, i32, i32
  }
  func.func @transform_15(%arg0: i32, %arg1: i32) -> (i32, i32, i32) {
    %c0_i32 = arith.constant 0 : i32
    %c0_i32_0 = arith.constant 0 : i32
    %c0_i32_1 = arith.constant 0 : i32
    return %arg1, %c0_i32, %c0_i32_0 : i32, i32, i32
  }
  func.func @transform_16(%arg0: i32, %arg1: i32) -> (i32, i32) {
    %c0_i32 = arith.constant 0 : i32
    %c0_i32_0 = arith.constant 0 : i32
    %c0_i32_1 = arith.constant 0 : i32
    return %c0_i32, %c0_i32_0 : i32, i32
  }
  func.func @transform_17(%arg0: i32, %arg1: i32) -> (i32, i32) {
    %c0_i32 = arith.constant 0 : i32
    %c0_i32_0 = arith.constant 0 : i32
    %c0_i32_1 = arith.constant 0 : i32
    return %c0_i32, %c0_i32_0 : i32, i32
  }
  func.func @transform_18(%arg0: i32, %arg1: i32) -> (i32, i32) {
    %c0_i32 = arith.constant 0 : i32
    %c0_i32_0 = arith.constant 0 : i32
    return %c0_i32, %arg0 : i32, i32
  }
}

</mosaic_0001>

<bundles_post_ra>
// kernel: squeeze.2
= control target key start
LH: loop header
LB: loop body
LE: loop exit
PB: predicated region body
PF: predicated region fallthrough
CT: control target
= control target key end

     0   :  { %s131_s8 = smov 104   ;;  %s132_s9 = smov 112   ;;  %vm8_vm0 = vcmask 64512   ;;  %s222_s0 = inlined_call_operand.vmem [shape: f32[256], index: 0, kind: input, shape index: {}]   ;;  %s223_s1 = inlined_call_operand.vmem [shape: f32[32,8], index: 1, kind: output, shape index: {}]  }
   0x1   :  { %v5_v0 = vld [vmem:[%s222_s0] sm:$0x3]  ;;  %s130_s0 = smov 120   ;;  %s133_s10 = smov 96  }
   0x2   :  { %6 = vst [vmem:[#allocation0] sm:$0x3] %v5_v0  ;;  %s134_s11 = smov 88   ;;  %s135_s12 = smov 80  }
   0x3   :  { %s136_s13 = smov 72   ;;  %s137_s14 = smov 64  }
   0x4   :  { %s138_s17 = smov 56   ;;  %s139_s18 = smov 48  }
   0x5   :  { %s140_s19 = smov 40   ;;  %s141_s20 = smov 32  }
   0x6   :  { %s142_s21 = smov 24   ;;  %s143_s22 = smov 16  }
   0x7   :  { %s144_s23 = smov 8  }
   0x9   :  { %v10_v1 = vld [vmem:[#allocation0] sm:$0x3]  }
   0xa   :  { %v22_v2 = vld [vmem:[#allocation0] sm:$0x3]   ;;  %11 = vrot.lane.b32.xlu0 %v10_v1, %s130_s0 }
   0xb   :  { %23 = vrot.lane.b32.xlu1 %v22_v2, %s131_s8  ;;  %v16_v3 = vld [vmem:[#allocation0] sm:$0x3]  }
   0xc   :  { %v28_v4 = vld [vmem:[#allocation0] sm:$0x3]  }
   0xd   :  { %v34_v5 = vld [vmem:[#allocation0] sm:$0x3]  }
   0xe   :  { %17 = vrot.lane.b32.xlu0 %v16_v3, %s132_s9  ;;  %v40_v6 = vld [vmem:[#allocation0] sm:$0x3]  }
   0xf   :  { %29 = vrot.lane.b32.xlu1 %v28_v4, %s133_s10  ;;  %v46_v7 = vld [vmem:[#allocation0] sm:$0x3]  }
  0x10   :  { %v52_v8 = vld [vmem:[#allocation0] sm:$0x3]  }
  0x11   :  { %v58_v9 = vld [vmem:[#allocation0] sm:$0x3]  }
  0x12   :  { %35 = vrot.lane.b32.xlu0 %v34_v5, %s134_s11  ;;  %v64_v10 = vld [vmem:[#allocation0] sm:$0x3]  }
  0x13   :  { %41 = vrot.lane.b32.xlu1 %v40_v6, %s135_s12  ;;  %v7_v11 = vld [vmem:[#allocation0] sm:$0x3]  }
  0x14   :  { %9 = vst.msk [vmem:[%s223_s1] ss:$16 sm:$0x3] %vm8_vm0, %v7_v11   ;;  %v70_v12 = vld [vmem:[#allocation0] sm:$0x3]  }
  0x15   :  { %v76_v13 = vld [vmem:[#allocation0] sm:$0x3]  }
  0x16   :  { %47 = vrot.lane.b32.xlu0 %v46_v7, %s136_s13  ;;  %v82_v14 = vld [vmem:[#allocation0] sm:$0x3]  }
  0x17   :  { %53 = vrot.lane.b32.xlu1 %v52_v8, %s137_s14  ;;  %v88_v15 = vld [vmem:[#allocation0] sm:$0x3]  }
  0x18   :  { %v94_v16 = vld [vmem:[#allocation0] sm:$0x3]  }
  0x1a   :  { %59 = vrot.lane.b32.xlu0 %v58_v9, %s138_s17 }
  0x1b   :  { %65 = vrot.lane.b32.xlu1 %v64_v10, %s139_s18 }
  0x1e   :  { %71 = vrot.lane.b32.xlu0 %v70_v12, %s140_s19 }
  0x1f   :  { %77 = vrot.lane.b32.xlu1 %v76_v13, %s141_s20 }
  0x22   :  { %83 = vrot.lane.b32.xlu0 %v82_v14, %s142_s21 }
  0x23   :  { %89 = vrot.lane.b32.xlu1 %v88_v15, %s143_s22 }
  0x26   :  { %95 = vrot.lane.b32.xlu0 %v94_v16, %s144_s23 }
  0x7c   :  { %v12_v17 = vpop.permute.xlu0 %11  }
  0x7d   :  { %v24_v18 = vpop.permute.xlu1 %23   ;;  %100 = vst.msk [vmem:[%s223_s1 + $0x1] ss:$16 sm:$0x3] %vm8_vm0, %v12_v17  }
  0x7e   :  { %102 = vst.msk [vmem:[%s223_s1 + $0x3] ss:$16 sm:$0x3] %vm8_vm0, %v24_v18  }
  0x80   :  { %v18_v19 = vpop.permute.xlu0 %17  }
  0x81   :  { %v30_v20 = vpop.permute.xlu1 %29   ;;  %101 = vst.msk [vmem:[%s223_s1 + $0x2] ss:$16 sm:$0x3] %vm8_vm0, %v18_v19  }
  0x82   :  { %103 = vst.msk [vmem:[%s223_s1 + $0x4] ss:$16 sm:$0x3] %vm8_vm0, %v30_v20  }
  0x84   :  { %v36_v21 = vpop.permute.xlu0 %35  }
  0x85   :  { %v42_v22 = vpop.permute.xlu1 %41   ;;  %104 = vst.msk [vmem:[%s223_s1 + $0x5] ss:$16 sm:$0x3] %vm8_vm0, %v36_v21  }
  0x86   :  { %105 = vst.msk [vmem:[%s223_s1 + $0x6] ss:$16 sm:$0x3] %vm8_vm0, %v42_v22  }
  0x88   :  { %v48_v23 = vpop.permute.xlu0 %47  }
  0x89   :  { %v54_v24 = vpop.permute.xlu1 %53   ;;  %106 = vst.msk [vmem:[%s223_s1 + $0x7] ss:$16 sm:$0x3] %vm8_vm0, %v48_v23  }
  0x8a   :  { %107 = vst.msk [vmem:[%s223_s1 + $0x8] ss:$16 sm:$0x3] %vm8_vm0, %v54_v24  }
  0x8c   :  { %v60_v25 = vpop.permute.xlu0 %59  }
  0x8d   :  { %v66_v26 = vpop.permute.xlu1 %65   ;;  %108 = vst.msk [vmem:[%s223_s1 + $0x9] ss:$16 sm:$0x3] %vm8_vm0, %v60_v25  }
  0x8e   :  { %109 = vst.msk [vmem:[%s223_s1 + $0xa] ss:$16 sm:$0x3] %vm8_vm0, %v66_v26  }
  0x90   :  { %v72_v27 = vpop.permute.xlu0 %71  }
  0x91   :  { %v78_v28 = vpop.permute.xlu1 %77   ;;  %110 = vst.msk [vmem:[%s223_s1 + $0xb] ss:$16 sm:$0x3] %vm8_vm0, %v72_v27  }
  0x92   :  { %111 = vst.msk [vmem:[%s223_s1 + $0xc] ss:$16 sm:$0x3] %vm8_vm0, %v78_v28  }
  0x94   :  { %v84_v29 = vpop.permute.xlu0 %83  }
  0x95   :  { %v90_v30 = vpop.permute.xlu1 %89   ;;  %112 = vst.msk [vmem:[%s223_s1 + $0xd] ss:$16 sm:$0x3] %vm8_vm0, %v84_v29  }
  0x96   :  { %113 = vst.msk [vmem:[%s223_s1 + $0xe] ss:$16 sm:$0x3] %vm8_vm0, %v90_v30  }
  0x98   :  { %v96_v31 = vpop.permute.xlu0 %95  }
  0x99   :  { %114 = vst.msk [vmem:[%s223_s1 + $0xf] ss:$16 sm:$0x3] %vm8_vm0, %v96_v31  }

// kernel: _lambda_.1
= control target key start
LH: loop header
LB: loop body
LE: loop exit
PB: predicated region body
PF: predicated region fallthrough
CT: control target
= control target key end

     0   :  { %s12532_s27 = smov 0   ;;  %s12534_s28 = smov 0   ;;  %s16319_s0 = inlined_call_operand.vmem [shape: f32[32,8,32], index: 0, kind: input, shape index: {}]   ;;  %s16320_s1 = inlined_call_operand.vmem [shape: f32[32,1,8], index: 1, kind: input, shape index: {}]   ;;  %s16321_s2 = inlined_call_operand.vmem [shape: f32[1,32], index: 2, kind: input, shape index: {}]   ;;  %s16322_s3 = inlined_call_operand.vmem [shape: f32[1,32], index: 3, kind: input, shape index: {}]   ;;  %s16323_s4 = inlined_call_operand.vmem [shape: bf16[2,32,96], index: 4, kind: input, shape index: {}]   ;;  %s16324_s5 = inlined_call_operand.vmem [shape: f32[2,1,96], index: 5, kind: input, shape index: {}]   ;;  %s16325_s6 = inlined_call_operand.vmem [shape: bf16[2,32,32], index: 6, kind: input, shape index: {}]   ;;  %s16326_s7 = inlined_call_operand.vmem [shape: f32[2,1,32], index: 7, kind: input, shape index: {}]   ;;  %s16327_s8 = inlined_call_operand.vmem [shape: f32[2,1,32], index: 8, kind: input, shape index: {}]   ;;  %s16328_s9 = inlined_call_operand.vmem [shape: f32[2,1,32], index: 9, kind: input, shape index: {}]   ;;  %s16329_s10 = inlined_call_operand.vmem [shape: bf16[2,32,64], index: 10, kind: input, shape index: {}]   ;;  %s16330_s11 = inlined_call_operand.vmem [shape: f32[2,1,64], index: 11, kind: input, shape index: {}]   ;;  %s16331_s12 = inlined_call_operand.vmem [shape: bf16[2,64,32], index: 12, kind: input, shape index: {}]   ;;  %s16332_s13 = inlined_call_operand.vmem [shape: f32[2,1,32], index: 13, kind: input, shape index: {}]   ;;  %s16333_s14 = inlined_call_operand.vmem [shape: f32[2,1,32], index: 14, kind: input, shape index: {}]   ;;  %s16334_s15 = inlined_call_operand.vmem [shape: f32[2,1,32], index: 15, kind: input, shape index: {}]   ;;  %s16335_s16 = inlined_call_operand.vmem [shape: bf16[8,32], index: 16, kind: input, shape index: {}]   ;;  %s16336_s17 = inlined_call_operand.vmem [shape: f32[8,1], index: 17, kind: input, shape index: {}]   ;;  %s16337_s18 = inlined_call_operand.vmem [shape: f32[8,256], index: 18, kind: output, shape index: {}]  }
   0x1   :  { %16416 = sst [smem:[#allocation99_spill]] %s16319_s0  ;;  %s12536_s29 = smov 0  }
   0x2   :  { %16417 = sst [smem:[#allocation100_spill]] %s16320_s1  ;;  %s12538_s30 = smov 0  }
   0x3   :  { %16418 = sst [smem:[#allocation101_spill]] %s16321_s2  ;;  %s12540_s0 = smov 0  }
   0x4   :  { %16419 = sst [smem:[#allocation102_spill]] %s16322_s3 }
   0x5   :  { %16420 = sst [smem:[#allocation103_spill]] %s16323_s4 }
   0x6   :  { %16421 = sst [smem:[#allocation104_spill]] %s16324_s5 }
   0x7   :  { %16422 = sst [smem:[#allocation105_spill]] %s16325_s6 }
   0x8   :  { %16423 = sst [smem:[#allocation106_spill]] %s16329_s10 }
   0x9   :  { %16424 = sst [smem:[#allocation107_spill]] %s16334_s15 }
   0xa   :  { %16425 = sst [smem:[#allocation108_spill]] %s16335_s16 }
   0xb   :  { %16426 = sst [smem:[#allocation109_spill]] %s16336_s17 }
   0xc   :  { %16427 = sst [smem:[#allocation110_spill]] %s16337_s18 }
   0xd LB: > { %16428 = sst [smem:[#allocation3_spill]] %s12406_s27  ;;  %s37_s19 = sadd.s32 1, %s12414_s29  ;;  %s12422_s0 = sphi %s12540_s0, %s28_s0   ;;  %s12418_s30 = sphi %s12538_s30, %s16742_s30   ;;  %s12414_s29 = sphi %s12536_s29, %s16741_s29   ;;  %s12410_s28 = sphi %s12534_s28, %s16740_s28   ;;  %s12406_s27 = sphi %s12532_s27, %s16739_s27  }
   0xe   : > { %16429 = sst [smem:[#allocation4_spill]] %s12414_s29  ;;  %s40_s1 = sadd.s32 1, %s12418_s30 }
   0xf   : > { %16430 = sst [smem:[#allocation5_spill]] %s12418_s30  ;;  %p38_p0 = scmp.ge.s32.totalorder %s37_s19, 2 }
  0x10   : > { %16431 = sst [smem:[#allocation6_spill]] %s12422_s0  ;;  %p10277_p1 = scmp.ge.s32.totalorder %s12422_s0, 1 }
  0x11   : > { %p639_p2 = scmp.lt.s32.totalorder %s12422_s0, 5  ;;  %s16744_s19 = smov (%p38_p0, %s37_s19), 0 }
  0x12   : > { %16432 = sst [smem:[#allocation7_spill]] %s16744_s19  ;;  %s16746_s1 = smov (!%p38_p0, %s40_s1), %s12418_s30 }
  0x13   : > { %p640_p3 = pnand %p10277_p1, %p639_p2  ;;  %p42_p4 = scmp.ge.s32.totalorder %s16746_s1, 2 }
  0x15   : > { %s16748_s1 = smov (%p42_p4, %s16746_s1), 0  ;;  %643 = sbr.rel (%p640_p3) target bundleno = 4269 (0x10ad), region = 92 }
  0x16   : > { %16433 = sst [smem:[#allocation8_spill]] %s16748_s1 }
  0x1a   : > { %s10278_s20 = sshll.u32 %s12410_s28, 4  ;;  %p751_p5 = scmp.lt.s32.totalorder %s12406_s27, 1 }
  0x1b   : > { %p741_p6 = scmp.lt.s32.totalorder %s10278_s20, 31  ;;  %p795_p7 = scmp.lt.s32.totalorder %s12410_s28, 1 }
  0x1c   : > { %s12570_s21 = scalar_select %p751_p5, %s12406_s27, 1 }
  0x1d   : > { %s16750_s20 = smov (!%p741_p6, %s10278_s20), 31  ;;  %s16435_s19 = sld [smem:[#allocation100_spill]] }
  0x1e   : > { %s10491_s22 = sshll.u32 %s12570_s21, 4  ;;  %s10279_s25 = sshll.u32 %s16750_s20, 3 }
  0x1f   : > { %s16436_s16 = sld [smem:[#allocation99_spill]]  ;;  %s791_s3 = scalar_lea.vmem %s16333_s14, %s12570_s21 }
  0x20   : > { %s16437_s4 = sld [smem:[#allocation103_spill]]  ;;  %s16752_s28 = smov (!%p795_p7, %s12410_s28), 1 }
  0x21   : > { %s16438_s6 = sld [smem:[#allocation105_spill]]  ;;  %s10289_s2 = sshll.u32 %s16752_s28, 3 }
  0x22   : > { %s16439_s10 = sld [smem:[#allocation106_spill]] }
  0x23   : > { %s12580_s30 = scalar_lea.vmem %s16435_s19, %s16750_s20  ;;  %s16441_s5 = sld [smem:[#allocation110_spill]] }
  0x24   : > { %s16442_s19 = sld [smem:[#allocation3_spill]] }
  0x25   : > { %s12585_s17 = scalar_lea.vmem %s16436_s16, %s10279_s25  ;;  %s16440_s25 = sld [smem:[#allocation107_spill]] }
  0x26   : > { %s12590_s18 = scalar_lea.vmem %s16437_s4, %s10491_s22 }
  0x27   : > { %s12595_s24 = scalar_lea.vmem %s16438_s6, %s10491_s22  ;;  %s10494_s6 = sshll.u32 %s12570_s21, 5 }
  0x28   : > { %s12612_s26 = scalar_lea.vmem %s16439_s10, %s10491_s22  ;;  %s12626_s29 = scalar_lea.vmem %s16331_s12, %s10494_s6 }
  0x29   : > { %s12642_s15 = scalar_lea.vmem %s16441_s5, %s10289_s2 }
  0x2a   : > { %p10290_p8 = scmp.ne.s32.totalorder %s16442_s19, 0 }
  0x2b   : > { %s794_s10 = scalar_lea.vmem %s16440_s25, %s12570_s21  ;;  %s16444_s25 = sld [smem:[#allocation102_spill]] (!%p10290_p8) }
  0x2c   : > { %803 = sbr.rel (%p10290_p8) target bundleno = 391 (0x187), region = 96 }
  0x31   : > { %v804_v0 = vld [vmem:[%s12585_s17] sm:$0xff]  ;;  %vm822_vm0 = vcmask 261120   ;;  %v806_v1 = vld [vmem:[%s12585_s17 + $0x10] sm:$0xff]  ;;  %v805_v2 = vld [vmem:[%s12585_s17 + $0x8] sm:$0xff] }
  0x32   : > { %v823_v3 = vsel %vm822_vm0, %v804_v0, 0.0  ;;  %v829_v4 = vsel %vm822_vm0, %v806_v1, 0.0  ;;  %v807_v5 = vld [vmem:[%s12585_s17 + $0x18] sm:$0xff]  ;;  %v826_v6 = vsel %vm822_vm0, %v805_v2, 0.0  ;;  %v808_v8 = vld [vmem:[%s12585_s17 + $0x20] sm:$0xff]  ;;  %v809_v9 = vld [vmem:[%s12585_s17 + $0x28] sm:$0xff] }
  0x33   : > { %824 = vadd.xlane.f32.xlu0 %v823_v3  ;;  %830 = vadd.xlane.f32.xlu1 %v829_v4  ;;  %v832_v7 = vsel %vm822_vm0, %v807_v5, 0.0  ;;  %v835_v10 = vsel %vm822_vm0, %v808_v8, 0.0  ;;  %v838_v11 = vsel %vm822_vm0, %v809_v9, 0.0  ;;  %v12658_v12 = vld [vmem:[%s12585_s17 + $0x30] sm:$0xff]  ;;  %v12661_v13 = vld [vmem:[%s12585_s17 + $0x38] sm:$0xff]  ;;  %v12668_v16 = vld [vmem:[%s12585_s17 + $0x40] sm:$0xff] }
  0x34   : > { %v841_v14 = vsel %vm822_vm0, %v12658_v12, 0.0  ;;  %v844_v15 = vsel %vm822_vm0, %v12661_v13, 0.0  ;;  %v12671_v17 = vld [vmem:[%s12585_s17 + $0x48] sm:$0xff]  ;;  %v847_v18 = vsel %vm822_vm0, %v12668_v16, 0.0  ;;  %v12678_v20 = vld [vmem:[%s12585_s17 + $0x50] sm:$0xff]  ;;  %v12681_v21 = vld [vmem:[%s12585_s17 + $0x58] sm:$0xff] }
  0x35   : > { %v850_v19 = vsel %vm822_vm0, %v12671_v17, 0.0  ;;  %v853_v22 = vsel %vm822_vm0, %v12678_v20, 0.0  ;;  %v856_v23 = vsel %vm822_vm0, %v12681_v21, 0.0  ;;  %v12688_v24 = vld [vmem:[%s12585_s17 + $0x60] sm:$0xff]  ;;  %v12691_v25 = vld [vmem:[%s12585_s17 + $0x68] sm:$0xff]  ;;  %v12698_v28 = vld [vmem:[%s12585_s17 + $0x70] sm:$0xff] }
  0x36   : > { %v859_v26 = vsel %vm822_vm0, %v12688_v24, 0.0  ;;  %v862_v27 = vsel %vm822_vm0, %v12691_v25, 0.0  ;;  %v12701_v29 = vld [vmem:[%s12585_s17 + $0x78] sm:$0xff]  ;;  %v865_v30 = vsel %vm822_vm0, %v12698_v28, 0.0  ;;  %s16443_s17 = sld [smem:[#allocation101_spill]] }
  0x37   : > { %827 = vadd.xlane.f32.xlu0 %v826_v6  ;;  %833 = vadd.xlane.f32.xlu1 %v832_v7  ;;  %v868_v31 = vsel %vm822_vm0, %v12701_v29, 0.0 }
  0x3b   : > { %836 = vadd.xlane.f32.xlu0 %v835_v10  ;;  %839 = vadd.xlane.f32.xlu1 %v838_v11 }
  0x3f   : > { %842 = vadd.xlane.f32.xlu0 %v841_v14  ;;  %845 = vadd.xlane.f32.xlu1 %v844_v15 }
  0x43   : > { %848 = vadd.xlane.f32.xlu0 %v847_v18  ;;  %851 = vadd.xlane.f32.xlu1 %v850_v19 }
  0x47   : > { %854 = vadd.xlane.f32.xlu0 %v853_v22  ;;  %857 = vadd.xlane.f32.xlu1 %v856_v23 }
  0x4b   : > { %860 = vadd.xlane.f32.xlu0 %v859_v26  ;;  %863 = vadd.xlane.f32.xlu1 %v862_v27 }
  0x4f   : > { %866 = vadd.xlane.f32.xlu0 %v865_v30  ;;  %869 = vadd.xlane.f32.xlu1 %v868_v31 }
  0xbc   : > { %v825_v32 = vpop.xlane.xlu0 %824  ;;  %v831_v33 = vpop.xlane.xlu1 %830 }
  0xbd   : > { %v872_v34 = vmul.f32 0.03125, %v825_v32  ;;  %v874_v35 = vmul.f32 0.03125, %v831_v33 }
  0xbf   : > { %v12707_v36 = vsub.f32 %v804_v0, %v872_v34  ;;  %v12709_v37 = vsub.f32 %v806_v1, %v874_v35 }
  0xc0   : > { %v828_v38 = vpop.xlane.xlu0 %827  ;;  %v834_v39 = vpop.xlane.xlu1 %833 }
  0xc1   : > { %v873_v40 = vmul.f32 0.03125, %v828_v38  ;;  %v875_v41 = vmul.f32 0.03125, %v834_v39  ;;  %v904_v42 = vmul.f32 %v12707_v36, %v12707_v36  ;;  %v906_v43 = vmul.f32 %v12709_v37, %v12709_v37 }
  0xc3   : > { %v12715_v44 = vsub.f32 %v805_v2, %v873_v40  ;;  %v12717_v45 = vsub.f32 %v807_v5, %v875_v41  ;;  %v920_v46 = vsel %vm822_vm0, %v904_v42, 0.0  ;;  %v926_v49 = vsel %vm822_vm0, %v906_v43, 0.0 }
  0xc4   : > { %921 = vadd.xlane.f32.xlu0 %v920_v46  ;;  %v837_v47 = vpop.xlane.xlu0 %836  ;;  %v840_v48 = vpop.xlane.xlu1 %839 }
  0xc5   : > { %v876_v50 = vmul.f32 0.03125, %v837_v47  ;;  %v877_v51 = vmul.f32 0.03125, %v840_v48  ;;  %v905_v52 = vmul.f32 %v12715_v44, %v12715_v44  ;;  %v907_v53 = vmul.f32 %v12717_v45, %v12717_v45 }
  0xc7   : > { %v12725_v54 = vsub.f32 %v808_v8, %v876_v50  ;;  %v12727_v55 = vsub.f32 %v809_v9, %v877_v51  ;;  %v923_v56 = vsel %vm822_vm0, %v905_v52, 0.0  ;;  %v929_v59 = vsel %vm822_vm0, %v907_v53, 0.0 }
  0xc8   : > { %927 = vadd.xlane.f32.xlu0 %v926_v49  ;;  %924 = vadd.xlane.f32.xlu1 %v923_v56  ;;  %v843_v57 = vpop.xlane.xlu0 %842  ;;  %v846_v58 = vpop.xlane.xlu1 %845 }
  0xc9   : > { %v878_v60 = vmul.f32 0.03125, %v843_v57  ;;  %v879_v61 = vmul.f32 0.03125, %v846_v58  ;;  %v908_v62 = vmul.f32 %v12725_v54, %v12725_v54  ;;  %v909_v63 = vmul.f32 %v12727_v55, %v12727_v55 }
  0xcb   : > { %v12736_v0 = vsub.f32 %v12658_v12, %v878_v60  ;;  %v12739_v1 = vsub.f32 %v12661_v13, %v879_v61  ;;  %v932_v2 = vsel %vm822_vm0, %v908_v62, 0.0  ;;  %v935_v5 = vsel %vm822_vm0, %v909_v63, 0.0 }
  0xcc   : > { %930 = vadd.xlane.f32.xlu1 %v929_v59  ;;  %933 = vadd.xlane.f32.xlu0 %v932_v2  ;;  %v849_v3 = vpop.xlane.xlu0 %848  ;;  %v852_v4 = vpop.xlane.xlu1 %851 }
  0xcd   : > { %v880_v6 = vmul.f32 0.03125, %v849_v3  ;;  %v881_v7 = vmul.f32 0.03125, %v852_v4  ;;  %v910_v8 = vmul.f32 %v12736_v0, %v12736_v0  ;;  %v911_v9 = vmul.f32 %v12739_v1, %v12739_v1 }
  0xcf   : > { %v12748_v10 = vsub.f32 %v12668_v16, %v880_v6  ;;  %v12751_v11 = vsub.f32 %v12671_v17, %v881_v7  ;;  %v938_v12 = vsel %vm822_vm0, %v910_v8, 0.0  ;;  %v941_v15 = vsel %vm822_vm0, %v911_v9, 0.0 }
  0xd0   : > { %936 = vadd.xlane.f32.xlu1 %v935_v5  ;;  %939 = vadd.xlane.f32.xlu0 %v938_v12  ;;  %v855_v13 = vpop.xlane.xlu0 %854  ;;  %v858_v14 = vpop.xlane.xlu1 %857 }
  0xd1   : > { %v882_v18 = vmul.f32 0.03125, %v855_v13  ;;  %v883_v19 = vmul.f32 0.03125, %v858_v14  ;;  %v912_v22 = vmul.f32 %v12748_v10, %v12748_v10  ;;  %v913_v16 = vmul.f32 %v12751_v11, %v12751_v11 }
  0xd3   : > { %v12760_v23 = vsub.f32 %v12678_v20, %v882_v18  ;;  %v12763_v17 = vsub.f32 %v12681_v21, %v883_v19  ;;  %v944_v26 = vsel %vm822_vm0, %v912_v22, 0.0  ;;  %v947_v31 = vsel %vm822_vm0, %v913_v16, 0.0 }
  0xd4   : > { %942 = vadd.xlane.f32.xlu1 %v941_v15  ;;  %945 = vadd.xlane.f32.xlu0 %v944_v26  ;;  %v861_v27 = vpop.xlane.xlu0 %860  ;;  %v864_v30 = vpop.xlane.xlu1 %863  ;;  %v12800_v26 = vld [vmem:[%s16443_s17] ss:$0 sm:$0xff] }
  0xd5   : > { %v884_v32 = vmul.f32 0.03125, %v861_v27  ;;  %v885_v33 = vmul.f32 0.03125, %v864_v30  ;;  %v914_v34 = vmul.f32 %v12760_v23, %v12760_v23  ;;  %v915_v20 = vmul.f32 %v12763_v17, %v12763_v17 }
  0xd7   : > { %v12772_v35 = vsub.f32 %v12688_v24, %v884_v32  ;;  %v12775_v21 = vsub.f32 %v12691_v25, %v885_v33  ;;  %v950_v38 = vsel %vm822_vm0, %v914_v34, 0.0  ;;  %v953_v41 = vsel %vm822_vm0, %v915_v20, 0.0  ;;  %v12806_v32 = vld [vmem:[%s16444_s25] ss:$0 sm:$0xff] }
  0xd8   : > { %948 = vadd.xlane.f32.xlu1 %v947_v31  ;;  %951 = vadd.xlane.f32.xlu0 %v950_v38  ;;  %v867_v39 = vpop.xlane.xlu0 %866  ;;  %v870_v40 = vpop.xlane.xlu1 %869 }
  0xd9   : > { %v886_v42 = vmul.f32 0.03125, %v867_v39  ;;  %v887_v43 = vmul.f32 0.03125, %v870_v40  ;;  %v916_v46 = vmul.f32 %v12772_v35, %v12772_v35  ;;  %v917_v24 = vmul.f32 %v12775_v21, %v12775_v21 }
  0xdb   : > { %v12784_v47 = vsub.f32 %v12698_v28, %v886_v42  ;;  %v12787_v25 = vsub.f32 %v12701_v29, %v887_v43  ;;  %v956_v48 = vsel %vm822_vm0, %v916_v46, 0.0  ;;  %v959_v49 = vsel %vm822_vm0, %v917_v24, 0.0 }
  0xdc   : > { %954 = vadd.xlane.f32.xlu1 %v953_v41  ;;  %957 = vadd.xlane.f32.xlu0 %v956_v48 }
  0xdd   : > { %v918_v50 = vmul.f32 %v12784_v47, %v12784_v47  ;;  %v919_v51 = vmul.f32 %v12787_v25, %v12787_v25 }
  0xdf   : > { %v962_v52 = vsel %vm822_vm0, %v918_v50, 0.0  ;;  %v965_v28 = vsel %vm822_vm0, %v919_v51, 0.0 }
  0xe0   : > { %960 = vadd.xlane.f32.xlu1 %v959_v49  ;;  %963 = vadd.xlane.f32.xlu0 %v962_v52 }
  0xe4   : > { %966 = vadd.xlane.f32.xlu1 %v965_v28 }
 0x14d   : > { %v922_v29 = vpop.xlane.xlu0 %921 }
 0x14e   : > { %v968_v53 = vmul.f32 0.03125, %v922_v29 }
 0x150   : > { %v984_v56 = vadd.f32 1e-12, %v968_v53 }
 0x151   : > { %v925_v57 = vpop.xlane.xlu1 %924  ;;  %v928_v58 = vpop.xlane.xlu0 %927 }
 0x152   : > { %11713 = vrsqrt.f32 %v984_v56  ;;  %v969_v59 = vmul.f32 0.03125, %v925_v57  ;;  %v970_v60 = vmul.f32 0.03125, %v928_v58 }
 0x154   : > { %v985_v61 = vadd.f32 1e-12, %v969_v59  ;;  %v986_v62 = vadd.f32 1e-12, %v970_v60 }
 0x155   : > { %v931_v63 = vpop.xlane.xlu1 %930  ;;  %v934_v2 = vpop.xlane.xlu0 %933 }
 0x156   : > { %11715 = vrsqrt.f32 %v985_v61  ;;  %v971_v3 = vmul.f32 0.03125, %v931_v63  ;;  %v972_v4 = vmul.f32 0.03125, %v934_v2 }
 0x157   : > { %11717 = vrsqrt.f32 %v986_v62 }
 0x158   : > { %v987_v5 = vadd.f32 1e-12, %v971_v3  ;;  %v988_v6 = vadd.f32 1e-12, %v972_v4 }
 0x159   : > { %v937_v7 = vpop.xlane.xlu1 %936  ;;  %v940_v8 = vpop.xlane.xlu0 %939 }
 0x15a   : > { %11719 = vrsqrt.f32 %v987_v5  ;;  %v973_v9 = vmul.f32 0.03125, %v937_v7  ;;  %v974_v12 = vmul.f32 0.03125, %v940_v8 }
 0x15b   : > { %11721 = vrsqrt.f32 %v988_v6 }
 0x15c   : > { %v989_v13 = vadd.f32 1e-12, %v973_v9  ;;  %v990_v14 = vadd.f32 1e-12, %v974_v12 }
 0x15d   : > { %v943_v15 = vpop.xlane.xlu1 %942  ;;  %v946_v18 = vpop.xlane.xlu0 %945 }
 0x15e   : > { %11723 = vrsqrt.f32 %v989_v13  ;;  %v975_v19 = vmul.f32 0.03125, %v943_v15  ;;  %v976_v22 = vmul.f32 0.03125, %v946_v18 }
 0x15f   : > { %v11714_v16 = vpop.eup %11713  ;;  %11725 = vrsqrt.f32 %v990_v14 }
 0x160   : > { %v1016_v27 = vmul.f32 %v11714_v16, %v12707_v36  ;;  %v991_v30 = vadd.f32 1e-12, %v975_v19  ;;  %v992_v31 = vadd.f32 1e-12, %v976_v22 }
 0x161   : > { %v949_v33 = vpop.xlane.xlu1 %948  ;;  %v952_v34 = vpop.xlane.xlu0 %951 }
 0x162   : > { %v1038_v20 = vmul.f32 %v12800_v26, %v1016_v27  ;;  %11727 = vrsqrt.f32 %v991_v30  ;;  %v977_v38 = vmul.f32 0.03125, %v949_v33  ;;  %v978_v39 = vmul.f32 0.03125, %v952_v34 }
 0x163   : > { %v11716_v40 = vpop.eup %11715  ;;  %11729 = vrsqrt.f32 %v992_v31 }
 0x164   : > { %v11718_v41 = vpop.eup %11717  ;;  %v1060_v42 = vadd.f32 %v12806_v32, %v1038_v20  ;;  %v1017_v36 = vmul.f32 %v11716_v40, %v12715_v44  ;;  %v993_v43 = vadd.f32 1e-12, %v977_v38  ;;  %v994_v46 = vadd.f32 1e-12, %v978_v39 }
 0x165   : > { %v1018_v24 = vmul.f32 %v11718_v41, %v12709_v37  ;;  %v955_v48 = vpop.xlane.xlu1 %954  ;;  %v958_v49 = vpop.xlane.xlu0 %957 }
 0x166   : > { %1076 = vst.msk [vmem:[#allocation2] sm:$0xff] %vm822_vm0, %v1060_v42  ;;  %v1039_v50 = vmul.f32 %v12800_v26, %v1017_v36  ;;  %11731 = vrsqrt.f32 %v993_v43  ;;  %v979_v51 = vmul.f32 0.03125, %v955_v48  ;;  %v980_v52 = vmul.f32 0.03125, %v958_v49 }
 0x167   : > { %v11720_v28 = vpop.eup %11719  ;;  %v1040_v29 = vmul.f32 %v12800_v26, %v1018_v24  ;;  %11733 = vrsqrt.f32 %v994_v46 }
 0x168   : > { %v11722_v53 = vpop.eup %11721  ;;  %v1061_v44 = vadd.f32 %v12806_v32, %v1039_v50  ;;  %v1019_v56 = vmul.f32 %v11720_v28, %v12717_v45  ;;  %v995_v57 = vadd.f32 1e-12, %v979_v51  ;;  %v996_v37 = vadd.f32 1e-12, %v980_v52 }
 0x169   : > { %v1062_v58 = vadd.f32 %v12806_v32, %v1040_v29  ;;  %v1020_v59 = vmul.f32 %v11722_v53, %v12725_v54  ;;  %v961_v60 = vpop.xlane.xlu1 %960  ;;  %v964_v61 = vpop.xlane.xlu0 %963 }
 0x16a   : > { %1077 = vst.msk [vmem:[#allocation2 + $0x8] sm:$0xff] %vm822_vm0, %v1061_v44  ;;  %v1041_v62 = vmul.f32 %v12800_v26, %v1019_v56  ;;  %11735 = vrsqrt.f32 %v995_v57  ;;  %v981_v63 = vmul.f32 0.03125, %v961_v60  ;;  %v982_v2 = vmul.f32 0.03125, %v964_v61 }
 0x16b   : > { %v11724_v3 = vpop.eup %11723  ;;  %1078 = vst.msk [vmem:[#allocation2 + $0x10] sm:$0xff] %vm822_vm0, %v1062_v58  ;;  %v1042_v45 = vmul.f32 %v12800_v26, %v1020_v59  ;;  %11737 = vrsqrt.f32 %v996_v37 }
 0x16c   : > { %v11726_v4 = vpop.eup %11725  ;;  %v1063_v5 = vadd.f32 %v12806_v32, %v1041_v62  ;;  %v1021_v54 = vmul.f32 %v11724_v3, %v12727_v55  ;;  %v997_v6 = vadd.f32 1e-12, %v981_v63  ;;  %v998_v7 = vadd.f32 1e-12, %v982_v2 }
 0x16d   : > { %v1064_v8 = vadd.f32 %v12806_v32, %v1042_v45  ;;  %v1022_v9 = vmul.f32 %v11726_v4, %v12736_v0  ;;  %v967_v12 = vpop.xlane.xlu1 %966 }
 0x16e   : > { %1079 = vst.msk [vmem:[#allocation2 + $0x18] sm:$0xff] %vm822_vm0, %v1063_v5  ;;  %v1043_v13 = vmul.f32 %v12800_v26, %v1021_v54  ;;  %11739 = vrsqrt.f32 %v997_v6  ;;  %v983_v14 = vmul.f32 0.03125, %v967_v12 }
 0x16f   : > { %v11728_v15 = vpop.eup %11727  ;;  %1080 = vst.msk [vmem:[#allocation2 + $0x20] sm:$0xff] %vm822_vm0, %v1064_v8  ;;  %v1044_v18 = vmul.f32 %v12800_v26, %v1022_v9  ;;  %11741 = vrsqrt.f32 %v998_v7 }
 0x170   : > { %v11730_v55 = vpop.eup %11729  ;;  %v1065_v19 = vadd.f32 %v12806_v32, %v1043_v13  ;;  %v1023_v22 = vmul.f32 %v11728_v15, %v12739_v1  ;;  %v999_v16 = vadd.f32 1e-12, %v983_v14 }
 0x171   : > { %v1066_v0 = vadd.f32 %v12806_v32, %v1044_v18  ;;  %v1024_v27 = vmul.f32 %v11730_v55, %v12748_v10 }
 0x172   : > { %1081 = vst.msk [vmem:[#allocation2 + $0x28] sm:$0xff] %vm822_vm0, %v1065_v19  ;;  %v1045_v30 = vmul.f32 %v12800_v26, %v1023_v22  ;;  %11743 = vrsqrt.f32 %v999_v16 }
 0x173   : > { %v11732_v31 = vpop.eup %11731  ;;  %1082 = vst.msk [vmem:[#allocation2 + $0x30] sm:$0xff] %vm822_vm0, %v1066_v0  ;;  %v1046_v33 = vmul.f32 %v12800_v26, %v1024_v27 }
 0x174   : > { %v11734_v34 = vpop.eup %11733  ;;  %v1067_v20 = vadd.f32 %v12806_v32, %v1045_v30  ;;  %v1025_v1 = vmul.f32 %v11732_v31, %v12751_v11 }
 0x175   : > { %v1068_v38 = vadd.f32 %v12806_v32, %v1046_v33  ;;  %v1026_v39 = vmul.f32 %v11734_v34, %v12760_v23 }
 0x176   : > { %1083 = vst.msk [vmem:[#allocation2 + $0x38] sm:$0xff] %vm822_vm0, %v1067_v20  ;;  %v1047_v10 = vmul.f32 %v12800_v26, %v1025_v1 }
 0x177   : > { %v11736_v40 = vpop.eup %11735  ;;  %1084 = vst.msk [vmem:[#allocation2 + $0x40] sm:$0xff] %vm822_vm0, %v1068_v38  ;;  %v1048_v41 = vmul.f32 %v12800_v26, %v1026_v39 }
 0x178   : > { %v11738_v42 = vpop.eup %11737  ;;  %v1069_v36 = vadd.f32 %v12806_v32, %v1047_v10  ;;  %v1027_v43 = vmul.f32 %v11736_v40, %v12763_v17 }
 0x179   : > { %v1070_v11 = vadd.f32 %v12806_v32, %v1048_v41  ;;  %v1028_v46 = vmul.f32 %v11738_v42, %v12772_v35 }
 0x17a   : > { %1085 = vst.msk [vmem:[#allocation2 + $0x48] sm:$0xff] %vm822_vm0, %v1069_v36  ;;  %v1049_v23 = vmul.f32 %v12800_v26, %v1027_v43 }
 0x17b   : > { %v11740_v24 = vpop.eup %11739  ;;  %1086 = vst.msk [vmem:[#allocation2 + $0x50] sm:$0xff] %vm822_vm0, %v1070_v11  ;;  %v1050_v48 = vmul.f32 %v12800_v26, %v1028_v46 }
 0x17c   : > { %v11742_v49 = vpop.eup %11741  ;;  %v1071_v50 = vadd.f32 %v12806_v32, %v1049_v23  ;;  %v1029_v51 = vmul.f32 %v11740_v24, %v12775_v21 }
 0x17d   : > { %v1072_v17 = vadd.f32 %v12806_v32, %v1050_v48  ;;  %v1030_v52 = vmul.f32 %v11742_v49, %v12784_v47 }
 0x17e   : > { %1087 = vst.msk [vmem:[#allocation2 + $0x58] sm:$0xff] %vm822_vm0, %v1071_v50  ;;  %v1051_v35 = vmul.f32 %v12800_v26, %v1029_v51 }
 0x17f   : > { %v11744_v28 = vpop.eup %11743  ;;  %1088 = vst.msk [vmem:[#allocation2 + $0x60] sm:$0xff] %vm822_vm0, %v1072_v17  ;;  %v1052_v29 = vmul.f32 %v12800_v26, %v1030_v52 }
 0x180   : > { %v1073_v53 = vadd.f32 %v12806_v32, %v1051_v35  ;;  %v1031_v44 = vmul.f32 %v11744_v28, %v12787_v25 }
 0x181   : > { %v1074_v56 = vadd.f32 %v12806_v32, %v1052_v29 }
 0x182   : > { %1089 = vst.msk [vmem:[#allocation2 + $0x68] sm:$0xff] %vm822_vm0, %v1073_v53  ;;  %v1053_v21 = vmul.f32 %v12800_v26, %v1031_v44 }
 0x183   : > { %1090 = vst.msk [vmem:[#allocation2 + $0x70] sm:$0xff] %vm822_vm0, %v1074_v56 }
 0x184   : > { %v1075_v47 = vadd.f32 %v12806_v32, %v1053_v21 }
 0x186   : > { %1091 = vst.msk [vmem:[#allocation2 + $0x78] sm:$0xff] %vm822_vm0, %v1075_v47 }
 0x187 PF: > { %v11985_v57 = vld [vmem:[%s12590_s18 + $0x8] sm:$0xff]   ;;  %v11986_v37 = vld [vmem:[%s12590_s18] sm:$0xff]   ;;  %vm1139_vm1 = vcmask 261120   ;;  %v1094_v61 = vld [vmem:[#allocation2 + $0x10] sm:$0xff]  ;;  %v16342_v55 = vmov 0.0   ;;  %s16445_s20 = sld [smem:[#allocation104_spill]]  ;;  %s16729_s17 = scalar_lea.vmem %s16326_s7, %s12570_s21 }
 0x188   : > { %10796 = vmatprep.subr.bf16.mxu0 %v11985_v57  ;;  %11656 = vmatprep.subr.bf16.mxu1 %v11985_v57  ;;  %v1092_v25 = vld [vmem:[#allocation2] sm:$0xff]  ;;  %v1093_v58 = vld [vmem:[#allocation2 + $0x8] sm:$0xff]  ;;  %v1095_v62 = vld [vmem:[#allocation2 + $0x18] sm:$0xff]  ;;  %vm12425_vm2 = vmmov 0   ;;  %s12426_s0 = smov 96   ;;  %s12427_s22 = smov 64  }
 0x189   : > { %v1100_v59 = vld [vmem:[#allocation2 + $0x40] sm:$0xff]  ;;  %10797 = vmatpush3.bf16.msra.mxu0 %v11985_v57  ;;  %11658 = vmatpush3.bf16.msra.mxu1 %v11985_v57  ;;  %v1112_v26 = vpack.c.bf16 %v1093_v58, %v1092_v25  ;;  %v1101_v60 = vld [vmem:[#allocation2 + $0x48] sm:$0xff]  ;;  %v1102_v63 = vld [vmem:[#allocation2 + $0x50] sm:$0xff]  ;;  %v1113_v4 = vpack.c.bf16 %v1095_v62, %v1094_v61  ;;  %s12428_s27 = smov 120   ;;  %s12429_s2 = smov 112   ;;  %vm1600_vm3 = vcmask 64512  }
 0x18a   : > { %10798 = vmatprep.subr.bf16.mxu0 %v11986_v37  ;;  %11657 = vmatprep.subr.bf16.mxu1 %v11986_v37  ;;  %v1116_v32 = vpack.c.bf16 %v1101_v60, %v1100_v59  ;;  %v1103_v2 = vld [vmem:[#allocation2 + $0x58] sm:$0xff]  ;;  %v1096_v3 = vld [vmem:[#allocation2 + $0x20] sm:$0xff]  ;;  %v1097_v45 = vld [vmem:[#allocation2 + $0x28] sm:$0xff]  ;;  %s12430_s23 = smov 104   ;;  %vm5379_vm4 = vcmask 1043456   ;;  %s12432_s5 = smov 16  }
 0x18b   : > { %10800 = vmatprep.mubr.msk.bf16.mxu0 %vm1139_vm1, %v1112_v26  ;;  %v1117_v5 = vpack.c.bf16 %v1103_v2, %v1102_v63  ;;  %v1104_v54 = vld [vmem:[#allocation2 + $0x60] sm:$0xff]  ;;  %v1105_v6 = vld [vmem:[#allocation2 + $0x68] sm:$0xff]  ;;  %v1114_v7 = vpack.c.bf16 %v1097_v45, %v1096_v3  ;;  %v1098_v9 = vld [vmem:[#allocation2 + $0x30] sm:$0xff]  ;;  %vm8783_vm5 = vcmask 130048   ;;  %vm8800_vm6 = vcmask 195584   ;;  %s16730_s19 = scalar_lea.vmem %s16327_s8, %s12570_s21  ;;  %s16731_s1 = scalar_lea.vmem %s16328_s9, %s12570_s21 }
 0x18c   : > { %10808 = vmatprep.mubr.msk.bf16.mxu1 %vm1139_vm1, %v1116_v32  ;;  %v1118_v8 = vpack.c.bf16 %v1105_v6, %v1104_v54  ;;  %v1099_v12 = vld [vmem:[#allocation2 + $0x38] sm:$0xff]  ;;  %v1106_v13 = vld [vmem:[#allocation2 + $0x70] sm:$0xff]  ;;  %vm9583_vm7 = vcmask 523264  }
 0x18d   : > { %10799 = vmatpush3.bf16.msra.mxu0 %v11986_v37  ;;  %11659 = vmatpush3.bf16.msra.mxu1 %v11986_v37  ;;  %v1107_v14 = vld [vmem:[#allocation2 + $0x78] sm:$0xff]  ;;  %v1115_v15 = vpack.c.bf16 %v1099_v12, %v1098_v9  ;;  %s16446_s16 = scalar_lea.vmem %s16445_s20, %s12570_s21 }
 0x18e   : > { %v1119_v18 = vpack.c.bf16 %v1107_v14, %v1106_v13  ;;  %10816 = vmatprep.subr.bf16.mxu1 %v16342_v55  ;;  %10840 = vmatprep.subr.bf16.mxu0 %v16342_v55  ;;  %v12888_v19 = vld [vmem:[%s16446_s16] ss:$0 sm:$0xff]  ;;  %s16732_s16 = scalar_lea.vmem %s16330_s11, %s12570_s21 }
 0x190   : > { %10801 = vmatmul.mubr.msk.bf16.vlgmr.msra.gmra.mxu0 %vm1139_vm1, %v1113_v4  ;;  %10809 = vmatmul.mubr.msk.bf16.vlgmr.msra.gmra.mxu1 %vm1139_vm1, %v1117_v5 }
 0x191   : > { %10804 = vmatprep.mubr.msk.bf16.mxu0 %vm1139_vm1, %v1114_v7  ;;  %10812 = vmatprep.mubr.msk.bf16.mxu1 %vm1139_vm1, %v1118_v8 }
 0x198   : > { %10805 = vmatmul.mubr.msk.bf16.gmra.mxu0 %vm1139_vm1, %v1115_v15  ;;  %10813 = vmatmul.mubr.msk.bf16.gmra.mxu1 %vm1139_vm1, %v1119_v18 }
 0x199   : > { %10818 = vmatprep.mubr.msk.bf16.mxu1 %vm12425_vm2, %v16342_v55  ;;  %10842 = vmatprep.mubr.msk.bf16.mxu0 %vm12425_vm2, %v16342_v55 }
 0x250   : > { %v10802_v22 = vpop.f32.mrf.mxu0  ;;  %v10810_v16 = vpop.f32.mrf.mxu1 }
 0x251   : > { %v1207_v0 = vadd.f32 %v10802_v22, %v12888_v19  ;;  %v1239_v27 = vadd.f32 %v10810_v16, %v12888_v19 }
 0x252   : > { %v1198_v30 = vpop.f32.mrf.mxu0  ;;  %v1230_v31 = vpop.f32.mrf.mxu1 }
 0x253   : > { %v1199_v33 = vadd.f32 %v12888_v19, %v1198_v30  ;;  %v12897_v34 = vpack.c.bf16 %v1207_v0, %v1207_v0  ;;  %v1231_v20 = vadd.f32 %v12888_v19, %v1230_v31  ;;  %v12904_v38 = vpack.c.bf16 %v1239_v27, %v1239_v27 }
 0x254   : > { %v10803_v39 = vpop.f32.mrf.mxu0  ;;  %v10811_v10 = vpop.f32.mrf.mxu1 }
 0x255   : > { %1697 = vrot.lane.b32.xlu1 %v12897_v34, %s12426_s0  ;;  %v12902_v1 = vpack.c.bf16 %v1199_v33, %v1199_v33  ;;  %v1210_v40 = vadd.f32 %v10803_v39, %v12888_v19  ;;  %v12911_v41 = vpack.c.bf16 %v1231_v20, %v1231_v20  ;;  %v1242_v11 = vadd.f32 %v10811_v10, %v12888_v19 }
 0x256   : > { %v1233_v42 = vpop.f32.mrf.mxu1  ;;  %v1201_v23 = vpop.f32.mrf.mxu0 }
 0x257   : > { %1598 = vrot.lane.b32.xlu0 %v12902_v1, %s12426_s0  ;;  %v1234_v36 = vadd.f32 %v12888_v19, %v1233_v42  ;;  %v12918_v43 = vpack.c.bf16 %v1210_v40, %v1210_v40  ;;  %v11745_v24 = vpack.i.bf16 %v1210_v40, %v1207_v0  ;;  %v1202_v48 = vadd.f32 %v12888_v19, %v1201_v23 }
 0x258   : > { %v12928_v49 = vpack.c.bf16 %v1242_v11, %v1242_v11  ;;  %v11750_v50 = vpack.i.bf16 %v1242_v11, %v1239_v27  ;;  %v10806_v52 = vpop.f32.mrf.mxu0  ;;  %v10814_v29 = vpop.f32.mrf.mxu1 }
 0x259   : > { %2089 = vrot.lane.b32.xlu1 %v12904_v38, %s12426_s0  ;;  %v11780_v46 = vpack.i.bf16 %v1234_v36, %v1231_v20  ;;  %v11785_v51 = vpack.i.bf16 %v1202_v48, %v1199_v33  ;;  %v12949_v17 = vpack.c.bf16 %v1202_v48, %v1202_v48  ;;  %v1223_v35 = vadd.f32 %v10806_v52, %v12888_v19 }
 0x25a   : > { %v1214_v28 = vpop.f32.mrf.mxu0  ;;  %v12958_v44 = vpack.c.bf16 %v1234_v36, %v1234_v36  ;;  %v1255_v56 = vadd.f32 %v10814_v29, %v12888_v19  ;;  %v1246_v57 = vpop.f32.mrf.mxu1 }
 0x25b   : > { %1991 = vrot.lane.b32.xlu0 %v12911_v41, %s12426_s0  ;;  %v1215_v53 = vadd.f32 %v12888_v19, %v1214_v28  ;;  %v12963_v21 = vpack.c.bf16 %v1223_v35, %v1223_v35  ;;  %v1247_v37 = vadd.f32 %v12888_v19, %v1246_v57 }
 0x25c   : > { %v10807_v47 = vpop.f32.mrf.mxu0  ;;  %v12972_v58 = vpack.c.bf16 %v1255_v56, %v1255_v56  ;;  %v10815_v61 = vpop.f32.mrf.mxu1 }
 0x25d   : > { %5471 = vrot.lane.b32.xlu1 %v12897_v34, %s12427_s22  ;;  %v12968_v25 = vpack.c.bf16 %v1215_v53, %v1215_v53  ;;  %v12976_v26 = vpack.c.bf16 %v1247_v37, %v1247_v37  ;;  %v1226_v62 = vadd.f32 %v10807_v47, %v12888_v19  ;;  %v1258_v2 = vadd.f32 %v10815_v61, %v12888_v19 }
 0x25e   : > { %v1217_v59 = vpop.f32.mrf.mxu0  ;;  %v1249_v63 = vpop.f32.mrf.mxu1 }
 0x25f   : > { %1746 = vrot.lane.b32.xlu0 %v12918_v43, %s12426_s0  ;;  %v1218_v60 = vadd.f32 %v12888_v19, %v1217_v59  ;;  %v11805_v3 = vpack.i.bf16 %v1226_v62, %v1223_v35  ;;  %v1250_v45 = vadd.f32 %v12888_v19, %v1249_v63  ;;  %v12990_v4 = vpack.c.bf16 %v1226_v62, %v1226_v62 }
 0x260   : > { %v11810_v5 = vpack.i.bf16 %v1258_v2, %v1255_v56  ;;  %v12997_v6 = vpack.c.bf16 %v1258_v2, %v1258_v2 }
 0x261   : > { %5855 = vrot.lane.b32.xlu1 %v12904_v38, %s12427_s22  ;;  %v11835_v32 = vpack.i.bf16 %v1218_v60, %v1215_v53  ;;  %v11840_v54 = vpack.i.bf16 %v1250_v45, %v1247_v37  ;;  %v13014_v7 = vpack.c.bf16 %v1218_v60, %v1218_v60  ;;  %v13020_v8 = vpack.c.bf16 %v1250_v45, %v1250_v45 }
 0x263   : > { %11781 = vrot.lane.b32.xlu0 %v11780_v46, %s12428_s27 }
 0x265   : > { %11746 = vrot.lane.b32.xlu1 %v11745_v24, %s12428_s27 }
 0x267   : > { %2138 = vrot.lane.b32.xlu0 %v12928_v49, %s12426_s0 }
 0x269   : > { %11751 = vrot.lane.b32.xlu1 %v11750_v50, %s12428_s27 }
 0x26b   : > { %11786 = vrot.lane.b32.xlu0 %v11785_v51, %s12429_s2 }
 0x26d   : > { %11756 = vrot.lane.b32.xlu1 %v11745_v24, %s12429_s2 }
 0x26f   : > { %11791 = vrot.lane.b32.xlu0 %v11780_v46, %s12429_s2 }
 0x271   : > { %11761 = vrot.lane.b32.xlu1 %v11750_v50, %s12429_s2 }
 0x273   : > { %11796 = vrot.lane.b32.xlu0 %v11785_v51, %s12430_s23 }
 0x275   : > { %11766 = vrot.lane.b32.xlu1 %v11745_v24, %s12430_s23 }
 0x277   : > { %11801 = vrot.lane.b32.xlu0 %v11780_v46, %s12430_s23 }
 0x279   : > { %11771 = vrot.lane.b32.xlu1 %v11750_v50, %s12430_s23 }
 0x27b   : > { %5519 = vrot.lane.b32.xlu0 %v12918_v43, %s12427_s22 }
 0x27d   : > { %5374 = vrot.lane.b32.xlu1 %v12902_v1, %s12427_s22 }
 0x27f   : > { %5903 = vrot.lane.b32.xlu0 %v12928_v49, %s12427_s22 }
 0x281   : > { %5759 = vrot.lane.b32.xlu1 %v12911_v41, %s12427_s22 }
 0x283   : > { %1648 = vrot.lane.b32.xlu0 %v12949_v17, %s12426_s0 }
 0x285   : > { %11776 = vrot.lane.b32.xlu1 %v11785_v51, %s12428_s27 }
 0x287   : > { %5423 = vrot.lane.b32.xlu0 %v12949_v17, %s12427_s22 }
 0x289   : > { %2040 = vrot.lane.b32.xlu1 %v12958_v44, %s12426_s0 }
 0x28b   : > { %5807 = vrot.lane.b32.xlu0 %v12958_v44, %s12427_s22 }
 0x28d   : > { %1893 = vrot.lane.b32.xlu1 %v12963_v21, %s12426_s0 }
 0x28f   : > { %1795 = vrot.lane.b32.xlu0 %v12968_v25, %s12426_s0 }
 0x291   : > { %2285 = vrot.lane.b32.xlu1 %v12972_v58, %s12426_s0 }
 0x293   : > { %2187 = vrot.lane.b32.xlu0 %v12976_v26, %s12426_s0 }
 0x295   : > { %5663 = vrot.lane.b32.xlu1 %v12963_v21, %s12427_s22 }
 0x297   : > { %11836 = vrot.lane.b32.xlu0 %v11835_v32, %s12428_s27 }
 0x299   : > { %11806 = vrot.lane.b32.xlu1 %v11805_v3, %s12428_s27 }
 0x29b   : > { %1942 = vrot.lane.b32.xlu0 %v12990_v4, %s12426_s0 }
 0x29d   : > { %11811 = vrot.lane.b32.xlu1 %v11810_v5, %s12428_s27 }
 0x29f   : > { %11841 = vrot.lane.b32.xlu0 %v11840_v54, %s12428_s27  ;;  %s16733_s27 = scalar_lea.vmem %s16332_s13, %s12570_s21 }
 0x2a1   : > { %11816 = vrot.lane.b32.xlu1 %v11805_v3, %s12429_s2 }
 0x2a3   : > { %2334 = vrot.lane.b32.xlu0 %v12997_v6, %s12426_s0 }
 0x2a5   : > { %11821 = vrot.lane.b32.xlu1 %v11810_v5, %s12429_s2 }
 0x2a7   : > { %11846 = vrot.lane.b32.xlu0 %v11835_v32, %s12429_s2 }
 0x2a9   : > { %11826 = vrot.lane.b32.xlu1 %v11805_v3, %s12430_s23 }
 0x2ab   : > { %11851 = vrot.lane.b32.xlu0 %v11840_v54, %s12429_s2 }
 0x2ad   : > { %11831 = vrot.lane.b32.xlu1 %v11810_v5, %s12430_s23 }
 0x2af   : > { %11856 = vrot.lane.b32.xlu0 %v11835_v32, %s12430_s23 }
 0x2b1   : > { %5567 = vrot.lane.b32.xlu1 %v12968_v25, %s12427_s22 }
 0x2b3   : > { %11861 = vrot.lane.b32.xlu0 %v11840_v54, %s12430_s23 }
 0x2b5   : > { %5951 = vrot.lane.b32.xlu1 %v12976_v26, %s12427_s22 }
 0x2b7   : > { %5711 = vrot.lane.b32.xlu0 %v12990_v4, %s12427_s22 }
 0x2b9   : > { %1844 = vrot.lane.b32.xlu1 %v13014_v7, %s12426_s0 }
 0x2bb   : > { %5615 = vrot.lane.b32.xlu0 %v13014_v7, %s12427_s22 }
 0x2bd   : > { %2236 = vrot.lane.b32.xlu1 %v13020_v8, %s12426_s0 }
 0x2bf   : > { %5999 = vrot.lane.b32.xlu0 %v13020_v8, %s12427_s22 }
 0x2c1   : > { %6047 = vrot.lane.b32.xlu1 %v12972_v58, %s12427_s22 }
 0x2c7   : > { %v13028_v9 = vpop.permute.xlu1 %1697 }
 0x2c9   : > { %v1599_v12 = vpop.permute.xlu0 %1598 }
 0x2ca   : > { %v1605_v13 = vsel %vm1600_vm3, %v1599_v12, 0 }
 0x2cb   : > { %v13031_v14 = vpop.permute.xlu1 %2089  ;;  %10817 = vmatpush3.bf16.xpose.msra.mxu1 %v1605_v13 }
 0x2cc   : > { %10822 = vmatprep.subr.bf16.mxu1 %v16342_v55 }
 0x2cd   : > { %v13034_v15 = vpop.permute.xlu0 %1991 }
 0x2cf   : > { %v13036_v18 = vpop.permute.xlu1 %5471 }
 0x2d0   : > { %16447 = vst [vmem:[#allocation9_spill] sm:$0xff] %v13036_v18 }
 0x2d1   : > { %v13038_v19 = vpop.permute.xlu0 %1746 }
 0x2d2   : > { %10819 = vmatmul.mubr.msk.bf16.vlgmr.msra.gmra.mxu1 %vm1600_vm3, %v12902_v1 }
 0x2d3   : > { %v13042_v22 = vpop.permute.xlu1 %5855  ;;  %10824 = vmatprep.mubr.msk.bf16.mxu1 %vm12425_vm2, %v16342_v55 }
 0x2d4   : > { %16448 = vst [vmem:[#allocation10_spill] sm:$0xff] %v13042_v22 }
 0x2d5   : > { %v11782_v16 = vpop.permute.xlu0 %11781 }
 0x2d6   : > { %v11784_v5 = vunpack.i.h.bf16 %v11782_v16  ;;  %v11783_v54 = vunpack.i.l.bf16 %v11782_v16 }
 0x2d7   : > { %v13046_v0 = vpop.permute.xlu1 %11746 }
 0x2d8   : > { %v11748_v27 = vunpack.i.l.bf16 %v13046_v0 }
 0x2d9   : > { %v13049_v30 = vpop.permute.xlu0 %2138 }
 0x2da   : > { %v13051_v31 = vpack.c.bf16 %v11748_v27, %v11748_v27 }
 0x2db   : > { %v13053_v33 = vpop.permute.xlu1 %11751 }
 0x2dc   : > { %16449 = vst [vmem:[#allocation11_spill] sm:$0xff] %v13051_v31  ;;  %v11753_v20 = vunpack.i.l.bf16 %v13053_v33  ;;  %2481 = vrot.lane.b32.xlu1 %v13051_v31, %s12426_s0 }
 0x2dd   : > { %v13058_v1 = vpop.permute.xlu0 %11786 }
 0x2de   : > { %v13060_v39 = vpack.c.bf16 %v11753_v20, %v11753_v20  ;;  %v11789_v20 = vunpack.i.h.bf16 %v13058_v1  ;;  %v11788_v16 = vunpack.i.l.bf16 %v13058_v1 }
 0x2df   : > { %v13062_v10 = vpop.permute.xlu1 %11756 }
 0x2e0   : > { %16450 = vst [vmem:[#allocation12_spill] sm:$0xff] %v13060_v39  ;;  %v11758_v40 = vunpack.i.l.bf16 %v13062_v10  ;;  %2873 = vrot.lane.b32.xlu1 %v13060_v39, %s12426_s0  ;;  %v13140_v1 = vpack.c.bf16 %v11789_v20, %v11789_v20 }
 0x2e1   : > { %v13067_v42 = vpop.permute.xlu0 %11791 }
 0x2e2   : > { %v13069_v36 = vpack.c.bf16 %v11758_v40, %v11758_v40 }
 0x2e3   : > { %v13071_v11 = vpop.permute.xlu1 %11761 }
 0x2e4   : > { %v11763_v46 = vunpack.i.l.bf16 %v13071_v11  ;;  %3265 = vrot.lane.b32.xlu1 %v13069_v36, %s12426_s0 }
 0x2e5   : > { %v13076_v23 = vpop.permute.xlu0 %11796 }
 0x2e6   : > { %v13078_v24 = vpack.c.bf16 %v11763_v46, %v11763_v46  ;;  %v1703_v46 = vsel %vm1600_vm3, %v13028_v9, 0 }
 0x2e7   : > { %v11767_v48 = vpop.permute.xlu1 %11766 }
 0x2e8   : > { %16451 = vst [vmem:[#allocation13_spill] sm:$0xff] %v13078_v24  ;;  %v11769_v50 = vunpack.i.h.bf16 %v11767_v48  ;;  %v11768_v51 = vunpack.i.l.bf16 %v11767_v48  ;;  %3657 = vrot.lane.b32.xlu1 %v13078_v24, %s12426_s0  ;;  %v13130_v48 = vpack.c.bf16 %v11784_v5, %v11784_v5 }
 0x2e9   : > { %v13082_v52 = vpop.permute.xlu0 %11801 }
 0x2ea   : > { %v13084_v35 = vpack.c.bf16 %v11769_v50, %v11769_v50  ;;  %v13086_v28 = vpack.c.bf16 %v11768_v51, %v11768_v51  ;;  %16462 = vst [vmem:[#allocation24_spill] sm:$0xff] %v13130_v48  ;;  %v13132_v50 = vpack.c.bf16 %v11783_v54, %v11783_v54 }
 0x2eb   : > { %v11772_v29 = vpop.permute.xlu1 %11771 }
 0x2ec   : > { %16452 = vst [vmem:[#allocation14_spill] sm:$0xff] %v13084_v35  ;;  %16453 = vst [vmem:[#allocation15_spill] sm:$0xff] %v13086_v28  ;;  %v11774_v53 = vunpack.i.h.bf16 %v11772_v29  ;;  %v11773_v56 = vunpack.i.l.bf16 %v11772_v29  ;;  %4098 = vrot.lane.b32.xlu1 %v13084_v35, %s12426_s0  ;;  %4049 = vrot.lane.b32.xlu0 %v13086_v28, %s12426_s0  ;;  %v11793_v29 = vunpack.i.l.bf16 %v13067_v42 }
 0x2ed   : > { %v13092_v47 = vpop.permute.xlu0 %5519  ;;  %16463 = vst [vmem:[#allocation25_spill] sm:$0xff] %v13132_v50 }
 0x2ee   : > { %16454 = vst [vmem:[#allocation16_spill] sm:$0xff] %v13092_v47  ;;  %v13094_v57 = vpack.c.bf16 %v11774_v53, %v11774_v53  ;;  %v13096_v37 = vpack.c.bf16 %v11773_v56, %v11773_v56  ;;  %v13146_v56 = vpack.c.bf16 %v11788_v16, %v11788_v16 }
 0x2ef   : > { %v13098_v59 = vpop.permute.xlu1 %5374 }
 0x2f0   : > { %16455 = vst [vmem:[#allocation17_spill] sm:$0xff] %v13094_v57  ;;  %16456 = vst [vmem:[#allocation18_spill] sm:$0xff] %v13096_v37  ;;  %4490 = vrot.lane.b32.xlu1 %v13094_v57, %s12426_s0  ;;  %4441 = vrot.lane.b32.xlu0 %v13096_v37, %s12426_s0 }
 0x2f1   : > { %16457 = vst [vmem:[#allocation19_spill] sm:$0xff] %v13098_v59  ;;  %v13104_v60 = vpop.permute.xlu0 %5903 }
 0x2f2   : > { %16458 = vst [vmem:[#allocation20_spill] sm:$0xff] %v13104_v60  ;;  %v16473_v60 = vmov 0.0  }
 0x2f3   : > { %v13106_v61 = vpop.permute.xlu1 %5759 }
 0x2f4   : > { %16459 = vst [vmem:[#allocation21_spill] sm:$0xff] %v13106_v61 }
 0x2f5   : > { %v1649_v62 = vpop.permute.xlu0 %1648 }
 0x2f6   : > { %v1654_v32 = vsel %vm1600_vm3, %v1649_v62, 0 }
 0x2f7   : > { %v11777_v63 = vpop.permute.xlu1 %11776  ;;  %10823 = vmatpush3.bf16.xpose.msra.mxu1 %v1654_v32  ;;  %v11799_v32 = vunpack.i.h.bf16 %v13076_v23 }
 0x2f8   : > { %v11779_v2 = vunpack.i.h.bf16 %v11777_v63  ;;  %v11778_v3 = vunpack.i.l.bf16 %v11777_v63  ;;  %10828 = vmatprep.subr.bf16.mxu1 %v16342_v55  ;;  %v11798_v63 = vunpack.i.l.bf16 %v13076_v23  ;;  %v11803_v23 = vunpack.i.l.bf16 %v13082_v52 }
 0x2f9   : > { %v13110_v45 = vpop.permute.xlu0 %5423 }
 0x2fa   : > { %16460 = vst [vmem:[#allocation22_spill] sm:$0xff] %v13110_v45  ;;  %v13112_v12 = vpack.c.bf16 %v11779_v2, %v11779_v2  ;;  %v13114_v13 = vpack.c.bf16 %v11778_v3, %v11778_v3  ;;  %v13163_v3 = vpack.c.bf16 %v11793_v29, %v11793_v29 }
 0x2fb   : > { %v13116_v27 = vpop.permute.xlu1 %2040 }
 0x2fc   : > { %2432 = vrot.lane.b32.xlu1 %v13112_v12, %s12426_s0  ;;  %2383 = vrot.lane.b32.xlu0 %v13114_v13, %s12426_s0 }
 0x2fd   : > { %v13123_v40 = vpop.permute.xlu0 %5807 }
 0x2fe   : > { %16461 = vst [vmem:[#allocation23_spill] sm:$0xff] %v13123_v40  ;;  %10825 = vmatmul.mubr.msk.bf16.vlgmr.msra.gmra.mxu1 %vm1600_vm3, %v12949_v17  ;;  %v11794_v17 = vunpack.i.h.bf16 %v13067_v42  ;;  %v1752_v42 = vsel %vm1600_vm3, %v13038_v19, 0  ;;  %v13175_v19 = vpack.c.bf16 %v11799_v32, %v11799_v32 }
 0x2ff   : > { %v1894_v51 = vpop.permute.xlu1 %1893  ;;  %10829 = vmatpush3.bf16.xpose.msra.mxu1 %v1703_v46  ;;  %10830 = vmatprep.mubr.msk.bf16.mxu1 %vm12425_vm2, %v16342_v55  ;;  %v13183_v46 = vpack.c.bf16 %v11798_v63, %v11798_v63 }
 0x300   : > { %2824 = vrot.lane.b32.xlu1 %v13130_v48, %s12426_s0  ;;  %2775 = vrot.lane.b32.xlu0 %v13132_v50, %s12426_s0  ;;  %v13161_v2 = vpack.c.bf16 %v11794_v17, %v11794_v17  ;;  %16465 = vst [vmem:[#allocation27_spill] sm:$0xff] %v13175_v19  ;;  %v1899_v20 = vsel %vm1600_vm3, %v1894_v51, 0  ;;  %v13202_v17 = vpack.c.bf16 %v11803_v23, %v11803_v23 }
 0x301   : > { %v1796_v9 = vpop.permute.xlu0 %1795  ;;  %10834 = vmatprep.subr.bf16.mxu1 %v16342_v55  ;;  %16466 = vst [vmem:[#allocation28_spill] sm:$0xff] %v13183_v46 }
 0x302   : > { %v1801_v53 = vsel %vm1600_vm3, %v1796_v9, 0  ;;  %16468 = vst [vmem:[#allocation30_spill] sm:$0xff] %v13202_v17 }
 0x303   : > { %v13148_v62 = vpop.permute.xlu1 %2285  ;;  %10841 = vmatpush3.bf16.xpose.msra.mxu0 %v1801_v53 }
 0x304   : > { %3216 = vrot.lane.b32.xlu1 %v13140_v1, %s12426_s0  ;;  %3167 = vrot.lane.b32.xlu0 %v13146_v56, %s12426_s0 }
 0x305   : > { %10852 = vmatprep.subr.bf16.mxu0 %v16342_v55  ;;  %v13169_v54 = vpop.permute.xlu0 %2187 }
 0x306   : > { %10831 = vmatmul.mubr.msk.bf16.vlgmr.msra.gmra.mxu1 %vm1600_vm3, %v12897_v34  ;;  %v11804_v34 = vunpack.i.h.bf16 %v13082_v52  ;;  %v11749_v52 = vunpack.i.h.bf16 %v13046_v0  ;;  %v1997_v0 = vsel %vm1600_vm3, %v13034_v15, 0 }
 0x307   : > { %v13165_v5 = vpop.permute.xlu1 %5663  ;;  %10835 = vmatpush3.bf16.xpose.msra.mxu1 %v1752_v42  ;;  %10836 = vmatprep.mubr.msk.bf16.mxu1 %vm12425_vm2, %v16342_v55 }
 0x308   : > { %16464 = vst [vmem:[#allocation26_spill] sm:$0xff] %v13165_v5  ;;  %3608 = vrot.lane.b32.xlu1 %v13161_v2, %s12426_s0  ;;  %3559 = vrot.lane.b32.xlu0 %v13163_v3, %s12426_s0  ;;  %v13200_v9 = vpack.c.bf16 %v11804_v34, %v11804_v34  ;;  %v13220_v42 = vpack.c.bf16 %v11749_v52, %v11749_v52  ;;  %v2095_v52 = vsel %vm1600_vm3, %v13031_v14, 0  ;;  %v2291_v5 = vsel %vm1600_vm3, %v13148_v62, 0 }
 0x309   : > { %10846 = vmatprep.subr.bf16.mxu1 %v16342_v55  ;;  %v13195_v51 = vpop.permute.xlu0 %11836 }
 0x30a   : > { %10843 = vmatmul.mubr.msk.bf16.vlgmr.msra.gmra.mxu0 %vm1600_vm3, %v12968_v25  ;;  %16467 = vst [vmem:[#allocation29_spill] sm:$0xff] %v13200_v9  ;;  %16470 = vst [vmem:[#allocation32_spill] sm:$0xff] %v13220_v42 }
 0x30b   : > { %v13185_v16 = vpop.permute.xlu1 %11806  ;;  %10853 = vmatpush3.bf16.xpose.msra.mxu0 %v1899_v20  ;;  %10854 = vmatprep.mubr.msk.bf16.mxu0 %vm12425_vm2, %v16342_v55 }
 0x30c   : > { %4000 = vrot.lane.b32.xlu1 %v13175_v19, %s12426_s0  ;;  %3951 = vrot.lane.b32.xlu0 %v13183_v46, %s12426_s0  ;;  %v11808_v25 = vunpack.i.l.bf16 %v13185_v16 }
 0x30d   : > { %10864 = vmatprep.subr.bf16.mxu0 %v16342_v55  ;;  %v13226_v34 = vpop.permute.xlu0 %1942 }
 0x30e   : > { %10837 = vmatmul.mubr.msk.bf16.vlgmr.msra.gmra.mxu1 %vm1600_vm3, %v12918_v43  ;;  %v11754_v43 = vunpack.i.h.bf16 %v13053_v33  ;;  %v13218_v32 = vpack.c.bf16 %v11808_v25, %v11808_v25  ;;  %v11764_v25 = vunpack.i.h.bf16 %v13071_v11 }
 0x30f   : > { %v13204_v29 = vpop.permute.xlu1 %11811  ;;  %10848 = vmatprep.mubr.msk.bf16.mxu1 %vm12425_vm2, %v16342_v55 }
 0x310   : > { %4392 = vrot.lane.b32.xlu1 %v13200_v9, %s12426_s0  ;;  %4343 = vrot.lane.b32.xlu0 %v13202_v17, %s12426_s0  ;;  %v11813_v53 = vunpack.i.l.bf16 %v13204_v29  ;;  %16469 = vst [vmem:[#allocation31_spill] sm:$0xff] %v13218_v32  ;;  %v13237_v23 = vpack.c.bf16 %v11754_v43, %v11754_v43 }
 0x312   : > { %10855 = vmatmul.mubr.msk.bf16.vlgmr.msra.gmra.mxu0 %vm1600_vm3, %v12963_v21  ;;  %v11759_v21 = vunpack.i.h.bf16 %v13062_v10  ;;  %v13235_v33 = vpack.c.bf16 %v11813_v53, %v11813_v53  ;;  %v13248_v10 = vpop.permute.xlu0 %11841 }
 0x313   : > { %v13222_v63 = vpop.permute.xlu1 %11816  ;;  %10865 = vmatpush3.bf16.xpose.msra.mxu0 %v1997_v0  ;;  %10866 = vmatprep.mubr.msk.bf16.mxu0 %vm12425_vm2, %v16342_v55  ;;  %v11843_v47 = vunpack.i.l.bf16 %v13248_v10 }
 0x314   : > { %2677 = vrot.lane.b32.xlu1 %v13218_v32, %s12426_s0  ;;  %2530 = vrot.lane.b32.xlu0 %v13220_v42, %s12426_s0  ;;  %v11818_v15 = vunpack.i.l.bf16 %v13222_v63  ;;  %v13255_v53 = vpack.c.bf16 %v11759_v21, %v11759_v21 }
 0x315   : > { %10876 = vmatprep.subr.bf16.mxu0 %v16342_v55 }
 0x316   : > { %v13253_v43 = vpack.c.bf16 %v11818_v15, %v11818_v15  ;;  %16472 = vst [vmem:[#allocation34_spill] sm:$0xff] %v13255_v53  ;;  %v13268_v15 = vpop.permute.xlu0 %2334 }
 0x317   : > { %v13239_v20 = vpop.permute.xlu1 %11821 }
 0x318   : > { %3069 = vrot.lane.b32.xlu1 %v13235_v33, %s12426_s0  ;;  %2922 = vrot.lane.b32.xlu0 %v13237_v23, %s12426_s0  ;;  %v11823_v0 = vunpack.i.l.bf16 %v13239_v20  ;;  %16471 = vst [vmem:[#allocation33_spill] sm:$0xff] %v13253_v43 }
 0x31a   : > { %10867 = vmatmul.mubr.msk.bf16.vlgmr.msra.gmra.mxu0 %vm1600_vm3, %v12911_v41  ;;  %v13264_v11 = vpack.c.bf16 %v11823_v0, %v11823_v0  ;;  %v13266_v41 = vpack.c.bf16 %v11764_v25, %v11764_v25 }
 0x31b   : > { %v11827_v55 = vpop.permute.xlu1 %11826  ;;  %10877 = vmatpush3.bf16.xpose.msra.mxu0 %v2095_v52  ;;  %10878 = vmatprep.mubr.msk.bf16.mxu0 %vm12425_vm2, %v16473_v60  ;;  %v2193_v52 = vsel %vm1600_vm3, %v13169_v54, 0  ;;  %v11847_v54 = vpop.permute.xlu0 %11846 }
 0x31c   : > { %3461 = vrot.lane.b32.xlu1 %v13253_v43, %s12426_s0  ;;  %3314 = vrot.lane.b32.xlu0 %v13255_v53, %s12426_s0  ;;  %v11828_v14 = vunpack.i.l.bf16 %v11827_v55  ;;  %16474 = vst [vmem:[#allocation35_spill] sm:$0xff] %v13264_v11  ;;  %16475 = vst [vmem:[#allocation36_spill] sm:$0xff] %v13266_v41  ;;  %v11829_v40 = vunpack.i.h.bf16 %v11827_v55  ;;  %v11838_v55 = vunpack.i.l.bf16 %v13195_v51 }
 0x31d   : > { %10888 = vmatprep.subr.bf16.mxu0 %v16473_v60 }
 0x31e   : > { %v13278_v0 = vpack.c.bf16 %v11828_v14, %v11828_v14  ;;  %v13290_v14 = vpack.c.bf16 %v11829_v40, %v11829_v40  ;;  %v13308_v40 = vpack.c.bf16 %v11838_v55, %v11838_v55  ;;  %v11849_v55 = vunpack.i.h.bf16 %v11847_v54 }
 0x31f   : > { %v11832_v21 = vpop.permute.xlu1 %11831 }
 0x320   : > { %3853 = vrot.lane.b32.xlu1 %v13264_v11, %s12426_s0  ;;  %3706 = vrot.lane.b32.xlu0 %v13266_v41, %s12426_s0  ;;  %v11833_v22 = vunpack.i.l.bf16 %v11832_v21  ;;  %16476 = vst [vmem:[#allocation37_spill] sm:$0xff] %v13278_v0  ;;  %16478 = vst [vmem:[#allocation39_spill] sm:$0xff] %v13290_v14 }
 0x321   : > { %16482 = vst [vmem:[#allocation43_spill] sm:$0xff] %v13308_v40 }
 0x322   : > { %10879 = vmatmul.mubr.msk.bf16.vlgmr.msra.gmra.mxu0 %vm1600_vm3, %v12904_v38  ;;  %v11834_v38 = vunpack.i.h.bf16 %v11832_v21  ;;  %v13292_v61 = vpack.c.bf16 %v11833_v22, %v11833_v22 }
 0x323   : > { %v13280_v25 = vpop.permute.xlu1 %5567  ;;  %10889 = vmatpush3.bf16.xpose.msra.mxu0 %v2193_v52  ;;  %10890 = vmatprep.mubr.msk.bf16.mxu0 %vm12425_vm2, %v16473_v60 }
 0x324   : > { %16477 = vst [vmem:[#allocation38_spill] sm:$0xff] %v13280_v25  ;;  %6143 = vrot.lane.b32.xlu1 %v13114_v13, %s12427_s22  ;;  %4245 = vrot.lane.b32.xlu0 %v13278_v0, %s12426_s0  ;;  %16479 = vst [vmem:[#allocation40_spill] sm:$0xff] %v13292_v61  ;;  %v11839_v25 = vunpack.i.h.bf16 %v13195_v51  ;;  %v13306_v22 = vpack.c.bf16 %v11834_v38, %v11834_v38  ;;  %v11848_v51 = vunpack.i.l.bf16 %v11847_v54 }
 0x325   : > { %10900 = vmatprep.subr.bf16.mxu0 %v16473_v60 }
 0x326   : > { %16481 = vst [vmem:[#allocation42_spill] sm:$0xff] %v13306_v22  ;;  %v13319_v62 = vpack.c.bf16 %v11839_v25, %v11839_v25  ;;  %v13332_v25 = vpack.c.bf16 %v11848_v51, %v11848_v51 }
 0x327   : > { %v13294_v52 = vpop.permute.xlu1 %5951 }
 0x328   : > { %16480 = vst [vmem:[#allocation41_spill] sm:$0xff] %v13294_v52  ;;  %4294 = vrot.lane.b32.xlu1 %v13290_v14, %s12426_s0  ;;  %4637 = vrot.lane.b32.xlu0 %v13292_v61, %s12426_s0  ;;  %v11852_v52 = vpop.permute.xlu0 %11851  ;;  %16483 = vst [vmem:[#allocation44_spill] sm:$0xff] %v13319_v62 }
 0x329   : > { %16485 = vst [vmem:[#allocation46_spill] sm:$0xff] %v13332_v25  ;;  %v11854_v54 = vunpack.i.h.bf16 %v11852_v52 }
 0x32a   : > { %10891 = vmatmul.mubr.msk.bf16.vlgmr.msra.gmra.mxu0 %vm1600_vm3, %v12976_v26  ;;  %v11844_v26 = vunpack.i.h.bf16 %v13248_v10  ;;  %v11853_v10 = vunpack.i.l.bf16 %v11852_v52 }
 0x32b   : > { %v1845_v21 = vpop.permute.xlu1 %1844  ;;  %10901 = vmatpush3.bf16.xpose.msra.mxu0 %v2291_v5  ;;  %10902 = vmatprep.mubr.msk.bf16.mxu0 %vm12425_vm2, %v16473_v60  ;;  %v13321_v5 = vpack.c.bf16 %v11843_v47, %v11843_v47  ;;  %v1948_v47 = vsel %vm1600_vm3, %v13226_v34, 0 }
 0x32c   : > { %v1850_v45 = vsel %vm1600_vm3, %v1845_v21, 0  ;;  %4686 = vrot.lane.b32.xlu1 %v13306_v22, %s12426_s0  ;;  %2579 = vrot.lane.b32.xlu0 %v13308_v40, %s12426_s0  ;;  %v11857_v38 = vpop.permute.xlu0 %11856  ;;  %v13349_v34 = vpack.c.bf16 %v11853_v10, %v11853_v10 }
 0x32d   : > { %10847 = vmatpush3.bf16.xpose.msra.mxu1 %v1850_v45  ;;  %10912 = vmatprep.subr.bf16.mxu0 %v16473_v60  ;;  %16484 = vst [vmem:[#allocation45_spill] sm:$0xff] %v13321_v5  ;;  %v13330_v45 = vpack.c.bf16 %v11844_v26, %v11844_v26  ;;  %v11858_v21 = vunpack.i.l.bf16 %v11857_v38  ;;  %v11859_v51 = vunpack.i.h.bf16 %v11857_v38 }
 0x32e   : > { %10858 = vmatprep.subr.bf16.mxu1 %v16473_v60  ;;  %16486 = vst [vmem:[#allocation47_spill] sm:$0xff] %v13349_v34 }
 0x32f   : > { %v13357_v52 = vpack.c.bf16 %v11858_v21, %v11858_v21  ;;  %v13367_v10 = vpack.c.bf16 %v11859_v51, %v11859_v51  ;;  %v11814_v21 = vunpack.i.h.bf16 %v13204_v29  ;;  %v2144_v51 = vsel %vm1600_vm3, %v13049_v30, 0 }
 0x330   : > { %2628 = vrot.lane.b32.xlu1 %v13319_v62, %s12426_s0  ;;  %2971 = vrot.lane.b32.xlu0 %v13321_v5, %s12426_s0  ;;  %v11862_v26 = vpop.permute.xlu0 %11861 }
 0x331   : > { %16488 = vst [vmem:[#allocation49_spill] sm:$0xff] %v13357_v52  ;;  %16489 = vst [vmem:[#allocation50_spill] sm:$0xff] %v13367_v10  ;;  %v13396_v29 = vpack.c.bf16 %v11814_v21, %v11814_v21 }
 0x332   : > { %10903 = vmatmul.mubr.msk.bf16.vlgmr.msra.gmra.mxu0 %vm1600_vm3, %v12972_v58  ;;  %v13344_v58 = vpack.c.bf16 %v11849_v55, %v11849_v55  ;;  %v11863_v55 = vunpack.i.l.bf16 %v11862_v26 }
 0x333   : > { %10914 = vmatprep.mubr.msk.bf16.mxu0 %vm12425_vm2, %v16473_v60 }
 0x334   : > { %10849 = vmatmul.mubr.msk.bf16.vlgmr.msra.gmra.mxu1 %vm1600_vm3, %v13014_v7  ;;  %3020 = vrot.lane.b32.xlu1 %v13330_v45, %s12426_s0  ;;  %v13355_v7 = vpack.c.bf16 %v11854_v54, %v11854_v54  ;;  %v11864_v54 = vunpack.i.h.bf16 %v11862_v26  ;;  %v13373_v38 = vpack.c.bf16 %v11863_v55, %v11863_v55  ;;  %v11824_v55 = vunpack.i.h.bf16 %v13239_v20  ;;  %v13421_v21 = vpop.permute.xlu0 %5711 }
 0x335   : > { %3363 = vrot.lane.b32.xlu0 %v13332_v25, %s12426_s0  ;;  %10859 = vmatpush3.bf16.xpose.msra.mxu1 %v1948_v47  ;;  %v2046_v47 = vsel %vm1600_vm3, %v13116_v27, 0  ;;  %v11809_v27 = vunpack.i.h.bf16 %v13185_v16  ;;  %v11819_v16 = vunpack.i.h.bf16 %v13222_v63  ;;  %16495 = vst [vmem:[#allocation56_spill] sm:$0xff] %v13421_v21 }
 0x336   : > { %10860 = vmatprep.mubr.msk.bf16.mxu1 %vm12425_vm2, %v16473_v60  ;;  %10870 = vmatprep.subr.bf16.mxu1 %v16473_v60  ;;  %16487 = vst [vmem:[#allocation48_spill] sm:$0xff] %v13355_v7  ;;  %16490 = vst [vmem:[#allocation51_spill] sm:$0xff] %v13373_v38 }
 0x337   : > { %v13382_v26 = vpack.c.bf16 %v11809_v27, %v11809_v27  ;;  %v13402_v30 = vpack.c.bf16 %v11819_v16, %v11819_v16  ;;  %v13413_v27 = vpack.c.bf16 %v11824_v55, %v11824_v55 }
 0x338   : > { %3412 = vrot.lane.b32.xlu1 %v13344_v58, %s12426_s0 }
 0x339   : > { %3755 = vrot.lane.b32.xlu0 %v13349_v34, %s12426_s0  ;;  %16492 = vst [vmem:[#allocation53_spill] sm:$0xff] %v13382_v26  ;;  %16494 = vst [vmem:[#allocation55_spill] sm:$0xff] %v13413_v27 }
 0x33c   : > { %10861 = vmatmul.mubr.msk.bf16.vlgmr.msra.gmra.mxu1 %vm1600_vm3, %v12990_v4  ;;  %3804 = vrot.lane.b32.xlu1 %v13355_v7, %s12426_s0  ;;  %v13379_v4 = vpack.c.bf16 %v11864_v54, %v11864_v54 }
 0x33d   : > { %4147 = vrot.lane.b32.xlu0 %v13357_v52, %s12426_s0  ;;  %10871 = vmatpush3.bf16.xpose.msra.mxu1 %v2046_v47  ;;  %v2237_v47 = vpop.permute.xlu1 %2236 }
 0x33e   : > { %10872 = vmatprep.mubr.msk.bf16.mxu1 %vm12425_vm2, %v16473_v60  ;;  %10882 = vmatprep.subr.bf16.mxu1 %v16473_v60  ;;  %16491 = vst [vmem:[#allocation52_spill] sm:$0xff] %v13379_v4  ;;  %v2242_v54 = vsel %vm1600_vm3, %v2237_v47, 0 }
 0x340   : > { %4196 = vrot.lane.b32.xlu1 %v13367_v10, %s12426_s0 }
 0x341   : > { %4539 = vrot.lane.b32.xlu0 %v13373_v38, %s12426_s0 }
 0x344   : > { %10873 = vmatmul.mubr.msk.bf16.vlgmr.msra.gmra.mxu1 %vm1600_vm3, %v12958_v44  ;;  %4588 = vrot.lane.b32.xlu1 %v13379_v4, %s12426_s0  ;;  %v13400_v44 = vpop.permute.xlu1 %6047 }
 0x345   : > { %2726 = vrot.lane.b32.xlu0 %v13382_v26, %s12426_s0  ;;  %10883 = vmatpush3.bf16.xpose.msra.mxu1 %v2144_v51  ;;  %16493 = vst [vmem:[#allocation54_spill] sm:$0xff] %v13400_v44 }
 0x346   : > { %10884 = vmatprep.mubr.msk.bf16.mxu1 %vm12425_vm2, %v16473_v60  ;;  %10894 = vmatprep.subr.bf16.mxu1 %v16473_v60 }
 0x349   : > { %3118 = vrot.lane.b32.xlu0 %v13396_v29, %s12426_s0 }
 0x34c   : > { %10885 = vmatmul.mubr.msk.bf16.vlgmr.msra.gmra.mxu1 %vm1600_vm3, %v12928_v49  ;;  %v2340_v49 = vsel %vm1600_vm3, %v13268_v15, 0  ;;  %v13434_v15 = vpop.permute.xlu0 %5615 }
 0x34d   : > { %3510 = vrot.lane.b32.xlu0 %v13402_v30, %s12426_s0  ;;  %10895 = vmatpush3.bf16.xpose.msra.mxu1 %v2242_v54  ;;  %16496 = vst [vmem:[#allocation57_spill] sm:$0xff] %v13434_v15 }
 0x34e   : > { %v2482_v63 = vpop.permute.xlu1 %2481  ;;  %10896 = vmatprep.mubr.msk.bf16.mxu1 %vm12425_vm2, %v16473_v60  ;;  %10906 = vmatprep.subr.bf16.mxu1 %v16473_v60 }
 0x34f   : > { %v2487_v61 = vsel %vm1600_vm3, %v2482_v63, 0 }
 0x350   : > { %v13442_v47 = vpop.permute.xlu0 %5999 }
 0x351   : > { %3902 = vrot.lane.b32.xlu0 %v13413_v27, %s12426_s0  ;;  %16497 = vst [vmem:[#allocation58_spill] sm:$0xff] %v13442_v47 }
 0x352   : > { %v13417_v20 = vpop.permute.xlu1 %2873 }
 0x354   : > { %10897 = vmatmul.mubr.msk.bf16.vlgmr.msra.gmra.mxu1 %vm1600_vm3, %v13020_v8 }
 0x355   : > { %6095 = vrot.lane.b32.xlu0 %v12997_v6, %s12427_s22  ;;  %10907 = vmatpush3.bf16.xpose.msra.mxu1 %v2340_v49 }
 0x356   : > { %10908 = vmatprep.mubr.msk.bf16.mxu1 %vm12425_vm2, %v16473_v60  ;;  %10918 = vmatprep.subr.bf16.mxu1 %v16473_v60  ;;  %v13430_v51 = vpop.permute.xlu1 %3265 }
 0x359   : > { %6191 = vrot.lane.b32.xlu0 %v13112_v12, %s12427_s22 }
 0x35a   : > { %v13440_v8 = vpop.permute.xlu1 %3657 }
 0x35c   : > { %10909 = vmatmul.mubr.msk.bf16.vlgmr.msra.gmra.mxu1 %vm1600_vm3, %v12997_v6 }
 0x35d   : > { %10920 = vmatprep.mubr.msk.bf16.mxu1 %vm12425_vm2, %v16473_v60 }
 0x35e   : > { %v13444_v16 = vpop.permute.xlu1 %4098  ;;  %v13446_v55 = vpop.permute.xlu0 %4049 }
 0x362   : > { %v13448_v54 = vpop.permute.xlu1 %4490  ;;  %v13450_v49 = vpop.permute.xlu0 %4441 }
 0x363   : > { %16498 = vst [vmem:[#allocation59_spill] sm:$0xff] %v13448_v54  ;;  %16499 = vst [vmem:[#allocation60_spill] sm:$0xff] %v13450_v49  ;;  %v13503_v54 = vld [vmem:[%s12580_s30] ss:$0 sm:$0xff] }
 0x364   : > { %16502 = vst [vmem:[#allocation63_spill] sm:$0xff] %v13503_v54 }
 0x36e   : > { %v2433_v21 = vpop.permute.xlu1 %2432  ;;  %v2384_v44 = vpop.permute.xlu0 %2383 }
 0x36f   : > { %v2438_v15 = vsel %vm1600_vm3, %v2433_v21, 0  ;;  %v2389_v6 = vsel %vm1600_vm3, %v2384_v44, 0 }
 0x370   : > { %10913 = vmatpush3.bf16.xpose.msra.mxu0 %v2389_v6  ;;  %10919 = vmatpush3.bf16.xpose.msra.mxu1 %v2438_v15 }
 0x371   : > { %10924 = vmatprep.subr.bf16.mxu0 %v16473_v60  ;;  %10930 = vmatprep.subr.bf16.mxu1 %v16473_v60 }
 0x372   : > { %v13456_v47 = vpop.permute.xlu1 %2824  ;;  %v13458_v22 = vpop.permute.xlu0 %2775 }
 0x376   : > { %v13460_v18 = vpop.permute.xlu1 %3216  ;;  %v13462_v4 = vpop.permute.xlu0 %3167 }
 0x377   : > { %10915 = vmatmul.mubr.msk.bf16.vlgmr.msra.gmra.mxu0 %vm1600_vm3, %v13114_v13  ;;  %10921 = vmatmul.mubr.msk.bf16.vlgmr.msra.gmra.mxu1 %vm1600_vm3, %v13112_v12 }
 0x378   : > { %10925 = vmatpush3.bf16.xpose.msra.mxu0 %v2487_v61  ;;  %10926 = vmatprep.mubr.msk.bf16.mxu0 %vm12425_vm2, %v16473_v60 }
 0x379   : > { %10932 = vmatprep.mubr.msk.bf16.mxu1 %vm12425_vm2, %v16473_v60  ;;  %10936 = vmatprep.subr.bf16.mxu0 %v16473_v60 }
 0x37a   : > { %v13474_v44 = vpop.permute.xlu1 %3608  ;;  %v13476_v21 = vpop.permute.xlu0 %3559 }
 0x37e   : > { %v13478_v63 = vpop.permute.xlu1 %4000  ;;  %v13480_v13 = vpop.permute.xlu0 %3951 }
 0x37f   : > { %10927 = vmatmul.mubr.msk.bf16.vlgmr.msra.gmra.mxu0 %vm1600_vm3, %v13051_v31 }
 0x380   : > { %10938 = vmatprep.mubr.msk.bf16.mxu0 %vm12425_vm2, %v16473_v60 }
 0x382   : > { %v13486_v61 = vpop.permute.xlu1 %4392  ;;  %v13488_v12 = vpop.permute.xlu0 %4343 }
 0x383   : > { %16500 = vst [vmem:[#allocation61_spill] sm:$0xff] %v13486_v61  ;;  %16501 = vst [vmem:[#allocation62_spill] sm:$0xff] %v13488_v12 }
 0x386   : > { %v2678_v15 = vpop.permute.xlu1 %2677  ;;  %v2531_v6 = vpop.permute.xlu0 %2530 }
 0x387   : > { %v2536_v59 = vsel %vm1600_vm3, %v2531_v6, 0 }
 0x388   : > { %10931 = vmatpush3.bf16.xpose.msra.mxu1 %v2536_v59 }
 0x389   : > { %10942 = vmatprep.subr.bf16.mxu1 %v16473_v60 }
 0x38a   : > { %v13492_v57 = vpop.permute.xlu1 %3069  ;;  %v13494_v38 = vpop.permute.xlu0 %2922 }
 0x38e   : > { %v13496_v9 = vpop.permute.xlu1 %3461  ;;  %v13498_v31 = vpop.permute.xlu0 %3314 }
 0x38f   : > { %10933 = vmatmul.mubr.msk.bf16.vlgmr.msra.gmra.mxu1 %vm1600_vm3, %v13220_v42 }
 0x390   : > { %10944 = vmatprep.mubr.msk.bf16.mxu1 %vm12425_vm2, %v16473_v60 }
 0x392   : > { %v1641_v6 = vpop.f32.mrf.mxu1  ;;  %v13507_v59 = vpop.permute.xlu1 %3853 }
 0x393   : > { %v13510_v37 = vadd.f32 %v13503_v54, %v1641_v6  ;;  %v13512_v14 = vpop.permute.xlu0 %3706 }
 0x394   : > { %v10820_v61 = vpop.f32.mrf.mxu1 }
 0x395   : > { %v4734_v17 = vsel %vm1600_vm3, %v13510_v37, -inf }
 0x396   : > { %v1644_v49 = vpop.f32.mrf.mxu1  ;;  %v13516_v10 = vpop.permute.xlu1 %6143  ;;  %4735 = vmax.xlane.f32.xlu0 %v4734_v17 }
 0x397   : > { %16503 = vst [vmem:[#allocation64_spill] sm:$0xff] %v13516_v10  ;;  %v13518_v42 = vpop.permute.xlu0 %4245 }
 0x398   : > { %v10821_v0 = vpop.f32.mrf.mxu1 }
 0x399   : > { %v2683_v0 = vsel %vm1600_vm3, %v2678_v15, 0  ;;  %v2781_v15 = vsel %vm1600_vm3, %v13458_v22, 0  ;;  %v13565_v22 = vld [vmem:[%s12580_s30 + $0x1] ss:$0 sm:$0xff] }
 0x39a   : > { %v13520_v12 = vpop.permute.xlu1 %4294 }
 0x39b   : > { %v13522_v35 = vpop.permute.xlu0 %4637 }
 0x39e   : > { %v13524_v52 = vpop.permute.xlu1 %4686 }
 0x39f   : > { %v2580_v6 = vpop.permute.xlu0 %2579 }
 0x3a0   : > { %v2585_v54 = vsel %vm1600_vm3, %v2580_v6, 0 }
 0x3a1   : > { %10937 = vmatpush3.bf16.xpose.msra.mxu0 %v2585_v54 }
 0x3a2   : > { %v2629_v61 = vpop.permute.xlu1 %2628  ;;  %10948 = vmatprep.subr.bf16.mxu0 %v16473_v60 }
 0x3a3   : > { %v2634_v49 = vsel %vm1600_vm3, %v2629_v61, 0  ;;  %v2972_v10 = vpop.permute.xlu0 %2971 }
 0x3a4   : > { %10943 = vmatpush3.bf16.xpose.msra.mxu1 %v2634_v49 }
 0x3a5   : > { %10954 = vmatprep.subr.bf16.mxu1 %v16473_v60 }
 0x3a7   : > { %v13530_v17 = vpop.permute.xlu0 %3363 }
 0x3a8   : > { %10939 = vmatmul.mubr.msk.bf16.vlgmr.msra.gmra.mxu0 %vm1600_vm3, %v13308_v40  ;;  %v13629_v40 = vld [vmem:[%s12580_s30 + $0x6] ss:$0 sm:$0xff] }
 0x3a9   : > { %10949 = vmatpush3.bf16.xpose.msra.mxu0 %v2683_v0  ;;  %10950 = vmatprep.mubr.msk.bf16.mxu0 %vm12425_vm2, %v16473_v60  ;;  %v2879_v0 = vsel %vm1600_vm3, %v13417_v20, 0 }
 0x3aa   : > { %10960 = vmatprep.subr.bf16.mxu0 %v16473_v60 }
 0x3ab   : > { %v13538_v54 = vpop.permute.xlu0 %3755  ;;  %10945 = vmatmul.mubr.msk.bf16.vlgmr.msra.gmra.mxu1 %vm1600_vm3, %v13319_v62 }
 0x3ac   : > { %10956 = vmatprep.mubr.msk.bf16.mxu1 %vm12425_vm2, %v16473_v60 }
 0x3af   : > { %v13544_v6 = vpop.permute.xlu0 %4147 }
 0x3b0   : > { %10951 = vmatmul.mubr.msk.bf16.vlgmr.msra.gmra.mxu0 %vm1600_vm3, %v13218_v32 }
 0x3b1   : > { %10961 = vmatpush3.bf16.xpose.msra.mxu0 %v2781_v15  ;;  %10962 = vmatprep.mubr.msk.bf16.mxu0 %vm12425_vm2, %v16473_v60 }
 0x3b2   : > { %10972 = vmatprep.subr.bf16.mxu0 %v16473_v60 }
 0x3b3   : > { %v13553_v61 = vpop.permute.xlu0 %4539 }
 0x3b7   : > { %v2727_v49 = vpop.permute.xlu0 %2726 }
 0x3b8   : > { %v2732_v62 = vsel %vm1600_vm3, %v2727_v49, 0  ;;  %10963 = vmatmul.mubr.msk.bf16.vlgmr.msra.gmra.mxu0 %vm1600_vm3, %v13132_v50  ;;  %v2830_v49 = vsel %vm1600_vm3, %v13456_v47, 0  ;;  %v13585_v47 = vld [vmem:[%s12580_s30 + $0x2] ss:$0 sm:$0xff] }
 0x3b9   : > { %10955 = vmatpush3.bf16.xpose.msra.mxu1 %v2732_v62  ;;  %10973 = vmatpush3.bf16.xpose.msra.mxu0 %v2879_v0  ;;  %v2977_v62 = vsel %vm1600_vm3, %v2972_v10, 0 }
 0x3ba   : > { %10974 = vmatprep.mubr.msk.bf16.mxu0 %vm12425_vm2, %v16473_v60  ;;  %10966 = vmatprep.subr.bf16.mxu1 %v16473_v60 }
 0x3bb   : > { %10984 = vmatprep.subr.bf16.mxu0 %v16473_v60 }
 0x3be   : > { %v1690_v15 = vpop.f32.mrf.mxu1 }
 0x3bf   : > { %v13568_v20 = vadd.f32 %v13565_v22, %v1690_v15 }
 0x3c0   : > { %10957 = vmatmul.mubr.msk.bf16.vlgmr.msra.gmra.mxu1 %vm1600_vm3, %v13382_v26  ;;  %10975 = vmatmul.mubr.msk.bf16.vlgmr.msra.gmra.mxu0 %vm1600_vm3, %v13060_v39  ;;  %v10826_v0 = vpop.f32.mrf.mxu1  ;;  %v3173_v26 = vsel %vm1600_vm3, %v13462_v4, 0 }
 0x3c1   : > { %10967 = vmatpush3.bf16.xpose.msra.mxu1 %v2830_v49  ;;  %10985 = vmatpush3.bf16.xpose.msra.mxu0 %v2977_v62  ;;  %v4737_v50 = vsel %vm1600_vm3, %v13568_v20, -inf  ;;  %v2928_v0 = vsel %vm1600_vm3, %v13494_v38, 0 }
 0x3c2   : > { %v1693_v15 = vpop.f32.mrf.mxu1  ;;  %4738 = vmax.xlane.f32.xlu1 %v4737_v50  ;;  %10968 = vmatprep.mubr.msk.bf16.mxu1 %vm12425_vm2, %v16473_v60  ;;  %v3075_v50 = vsel %vm1600_vm3, %v13492_v57, 0 }
 0x3c3   : > { %10986 = vmatprep.mubr.msk.bf16.mxu0 %vm12425_vm2, %v16473_v60  ;;  %10978 = vmatprep.subr.bf16.mxu1 %v16473_v60 }
 0x3c4   : > { %v10827_v10 = vpop.f32.mrf.mxu1  ;;  %10996 = vmatprep.subr.bf16.mxu0 %v16473_v60 }
 0x3c5   : > { %v13600_v10 = vld [vmem:[%s12580_s30 + $0x4] ss:$0 sm:$0xff] }
 0x3c6   : > { %v1739_v49 = vpop.f32.mrf.mxu1 }
 0x3c7   : > { %v13589_v62 = vadd.f32 %v13585_v47, %v1739_v49 }
 0x3c8   : > { %10969 = vmatmul.mubr.msk.bf16.vlgmr.msra.gmra.mxu1 %vm1600_vm3, %v13130_v48  ;;  %10987 = vmatmul.mubr.msk.bf16.vlgmr.msra.gmra.mxu0 %vm1600_vm3, %v13321_v5  ;;  %v10832_v15 = vpop.f32.mrf.mxu1 }
 0x3c9   : > { %10979 = vmatpush3.bf16.xpose.msra.mxu1 %v2928_v0  ;;  %10997 = vmatpush3.bf16.xpose.msra.mxu0 %v3075_v50  ;;  %v4740_v49 = vsel %vm1600_vm3, %v13589_v62, -inf  ;;  %v13613_v0 = vld [vmem:[%s12580_s30 + $0x3] ss:$0 sm:$0xff] }
 0x3ca   : > { %v1742_v39 = vpop.f32.mrf.mxu1  ;;  %v1837_v57 = vpop.f32.mrf.mxu0  ;;  %4741 = vmax.xlane.f32.xlu0 %v4740_v49  ;;  %10980 = vmatprep.mubr.msk.bf16.mxu1 %vm12425_vm2, %v16473_v60 }
 0x3cb   : > { %v13607_v38 = vadd.f32 %v13600_v10, %v1837_v57  ;;  %10998 = vmatprep.mubr.msk.bf16.mxu0 %vm12425_vm2, %v16473_v60  ;;  %10990 = vmatprep.subr.bf16.mxu1 %v16473_v60  ;;  %v3021_v39 = vpop.permute.xlu1 %3020 }
 0x3cc   : > { %v10833_v15 = vpop.f32.mrf.mxu1  ;;  %v10844_v50 = vpop.f32.mrf.mxu0  ;;  %11008 = vmatprep.subr.bf16.mxu0 %v16473_v60 }
 0x3cd   : > { %v4746_v49 = vsel %vm1600_vm3, %v13607_v38, -inf  ;;  %v3026_v15 = vsel %vm1600_vm3, %v3021_v39, 0  ;;  %v3119_v39 = vpop.permute.xlu0 %3118 }
 0x3ce   : > { %v1788_v5 = vpop.f32.mrf.mxu1  ;;  %v1840_v48 = vpop.f32.mrf.mxu0  ;;  %4747 = vmax.xlane.f32.xlu1 %v4746_v49 }
 0x3cf   : > { %v13619_v57 = vadd.f32 %v13613_v0, %v1788_v5 }
 0x3d0   : > { %10981 = vmatmul.mubr.msk.bf16.vlgmr.msra.gmra.mxu1 %vm1600_vm3, %v13237_v23  ;;  %10999 = vmatmul.mubr.msk.bf16.vlgmr.msra.gmra.mxu0 %vm1600_vm3, %v13235_v33  ;;  %v10838_v50 = vpop.f32.mrf.mxu1  ;;  %v10845_v32 = vpop.f32.mrf.mxu0 }
 0x3d1   : > { %10991 = vmatpush3.bf16.xpose.msra.mxu1 %v3026_v15  ;;  %11009 = vmatpush3.bf16.xpose.msra.mxu0 %v3173_v26  ;;  %v4743_v48 = vsel %vm1600_vm3, %v13619_v57, -inf }
 0x3d2   : > { %v1791_v5 = vpop.f32.mrf.mxu1  ;;  %v1935_v49 = vpop.f32.mrf.mxu0  ;;  %4744 = vmax.xlane.f32.xlu0 %v4743_v48  ;;  %10992 = vmatprep.mubr.msk.bf16.mxu1 %vm12425_vm2, %v16473_v60  ;;  %v3271_v48 = vsel %vm1600_vm3, %v13430_v51, 0 }
 0x3d3   : > { %v13636_v4 = vadd.f32 %v13629_v40, %v1935_v49  ;;  %11010 = vmatprep.mubr.msk.bf16.mxu0 %vm12425_vm2, %v16473_v60  ;;  %11002 = vmatprep.subr.bf16.mxu1 %v16473_v60  ;;  %v3124_v5 = vsel %vm1600_vm3, %v3119_v39, 0 }
 0x3d4   : > { %v10839_v32 = vpop.f32.mrf.mxu1  ;;  %v10856_v26 = vpop.f32.mrf.mxu0  ;;  %11020 = vmatprep.subr.bf16.mxu0 %v16473_v60 }
 0x3d5   : > { %v4752_v15 = vsel %vm1600_vm3, %v13636_v4, -inf  ;;  %v13652_v32 = vld [vmem:[%s12580_s30 + $0x8] ss:$0 sm:$0xff] }
 0x3d6   : > { %v1938_v50 = vpop.f32.mrf.mxu0  ;;  %4753 = vmax.xlane.f32.xlu1 %v4752_v15 }
 0x3d8   : > { %10993 = vmatmul.mubr.msk.bf16.vlgmr.msra.gmra.mxu1 %vm1600_vm3, %v13330_v45  ;;  %11011 = vmatmul.mubr.msk.bf16.vlgmr.msra.gmra.mxu0 %vm1600_vm3, %v13146_v56  ;;  %v10857_v49 = vpop.f32.mrf.mxu0 }
 0x3d9   : > { %11003 = vmatpush3.bf16.xpose.msra.mxu1 %v3124_v5  ;;  %11021 = vmatpush3.bf16.xpose.msra.mxu0 %v3271_v48  ;;  %v3222_v48 = vsel %vm1600_vm3, %v13460_v18, 0  ;;  %v3369_v5 = vsel %vm1600_vm3, %v13530_v17, 0 }
 0x3da   : > { %v2033_v26 = vpop.f32.mrf.mxu0  ;;  %11004 = vmatprep.mubr.msk.bf16.mxu1 %vm12425_vm2, %v16473_v60  ;;  %11022 = vmatprep.mubr.msk.bf16.mxu0 %vm12425_vm2, %v16473_v60 }
 0x3db   : > { %v13659_v51 = vadd.f32 %v13652_v32, %v2033_v26  ;;  %11014 = vmatprep.subr.bf16.mxu1 %v16473_v60  ;;  %11032 = vmatprep.subr.bf16.mxu0 %v16473_v60  ;;  %v13674_v26 = vld [vmem:[%s12580_s30 + $0xa] ss:$0 sm:$0xff] }
 0x3dc   : > { %v10868_v39 = vpop.f32.mrf.mxu0 }
 0x3dd   : > { %v4758_v15 = vsel %vm1600_vm3, %v13659_v51, -inf }
 0x3de   : > { %v2036_v50 = vpop.f32.mrf.mxu0  ;;  %4759 = vmax.xlane.f32.xlu1 %v4758_v15 }
 0x3e0   : > { %11005 = vmatmul.mubr.msk.bf16.vlgmr.msra.gmra.mxu1 %vm1600_vm3, %v13396_v29  ;;  %11023 = vmatmul.mubr.msk.bf16.vlgmr.msra.gmra.mxu0 %vm1600_vm3, %v13069_v36  ;;  %v10869_v49 = vpop.f32.mrf.mxu0 }
 0x3e1   : > { %11015 = vmatpush3.bf16.xpose.msra.mxu1 %v3222_v48  ;;  %11033 = vmatpush3.bf16.xpose.msra.mxu0 %v3369_v5  ;;  %v3467_v48 = vsel %vm1600_vm3, %v13496_v9, 0  ;;  %v3320_v5 = vsel %vm1600_vm3, %v13498_v31, 0 }
 0x3e2   : > { %v2131_v39 = vpop.f32.mrf.mxu0  ;;  %11016 = vmatprep.mubr.msk.bf16.mxu1 %vm12425_vm2, %v16473_v60  ;;  %11034 = vmatprep.mubr.msk.bf16.mxu0 %vm12425_vm2, %v16473_v60 }
 0x3e3   : > { %v13681_v18 = vadd.f32 %v13674_v26, %v2131_v39  ;;  %11026 = vmatprep.subr.bf16.mxu1 %v16473_v60  ;;  %11044 = vmatprep.subr.bf16.mxu0 %v16473_v60  ;;  %v10316_v39 = vld [vmem:[%s12580_s30 + $0xc] ss:$0 sm:$0xff] }
 0x3e4   : > { %v10880_v17 = vpop.f32.mrf.mxu0 }
 0x3e5   : > { %v4764_v15 = vsel %vm1600_vm3, %v13681_v18, -inf }
 0x3e6   : > { %v2134_v50 = vpop.f32.mrf.mxu0  ;;  %4765 = vmax.xlane.f32.xlu1 %v4764_v15  ;;  %v3413_v15 = vpop.permute.xlu1 %3412 }
 0x3e8   : > { %11017 = vmatmul.mubr.msk.bf16.vlgmr.msra.gmra.mxu1 %vm1600_vm3, %v13140_v1  ;;  %11035 = vmatmul.mubr.msk.bf16.vlgmr.msra.gmra.mxu0 %vm1600_vm3, %v13332_v25  ;;  %v10881_v49 = vpop.f32.mrf.mxu0  ;;  %v13715_v25 = vld [vmem:[%s12580_s30 + $0x5] ss:$0 sm:$0xff] }
 0x3e9   : > { %11027 = vmatpush3.bf16.xpose.msra.mxu1 %v3320_v5  ;;  %11045 = vmatpush3.bf16.xpose.msra.mxu0 %v3467_v48  ;;  %v3565_v5 = vsel %vm1600_vm3, %v13476_v21, 0  ;;  %v3418_v49 = vsel %vm1600_vm3, %v3413_v15, 0 }
 0x3ea   : > { %v2229_v17 = vpop.f32.mrf.mxu0  ;;  %11028 = vmatprep.mubr.msk.bf16.mxu1 %vm12425_vm2, %v16473_v60  ;;  %11046 = vmatprep.mubr.msk.bf16.mxu0 %vm12425_vm2, %v16473_v60 }
 0x3eb   : > { %v13700_v9 = vadd.f32 %v10316_v39, %v2229_v17  ;;  %11038 = vmatprep.subr.bf16.mxu1 %v16473_v60  ;;  %11056 = vmatprep.subr.bf16.mxu0 %v16473_v60  ;;  %v10318_v17 = vld [vmem:[%s12580_s30 + $0xe] ss:$0 sm:$0xff] }
 0x3ec   : > { %v10892_v31 = vpop.f32.mrf.mxu0 }
 0x3ed   : > { %v4770_v50 = vsel %vm1600_vm3, %v13700_v9, -inf }
 0x3ee   : > { %v2232_v48 = vpop.f32.mrf.mxu0  ;;  %4771 = vmax.xlane.f32.xlu1 %v4770_v50 }
 0x3ef   : > { %v3511_v48 = vpop.permute.xlu0 %3510 }
 0x3f0   : > { %11029 = vmatmul.mubr.msk.bf16.vlgmr.msra.gmra.mxu1 %vm1600_vm3, %v13255_v53  ;;  %11047 = vmatmul.mubr.msk.bf16.vlgmr.msra.gmra.mxu0 %vm1600_vm3, %v13253_v43  ;;  %v10893_v39 = vpop.f32.mrf.mxu0  ;;  %v3663_v53 = vsel %vm1600_vm3, %v13440_v8, 0 }
 0x3f1   : > { %11039 = vmatpush3.bf16.xpose.msra.mxu1 %v3418_v49  ;;  %11057 = vmatpush3.bf16.xpose.msra.mxu0 %v3565_v5 }
 0x3f2   : > { %v2327_v31 = vpop.f32.mrf.mxu0  ;;  %11040 = vmatprep.mubr.msk.bf16.mxu1 %vm12425_vm2, %v16473_v60  ;;  %11058 = vmatprep.mubr.msk.bf16.mxu0 %vm12425_vm2, %v16473_v60 }
 0x3f3   : > { %v13721_v21 = vadd.f32 %v10318_v17, %v2327_v31  ;;  %11050 = vmatprep.subr.bf16.mxu1 %v16473_v60  ;;  %11068 = vmatprep.subr.bf16.mxu0 %v16473_v60  ;;  %v3516_v31 = vsel %vm1600_vm3, %v3511_v48, 0 }
 0x3f4   : > { %v1886_v15 = vpop.f32.mrf.mxu1  ;;  %v10904_v50 = vpop.f32.mrf.mxu0 }
 0x3f5   : > { %v13726_v5 = vadd.f32 %v13715_v25, %v1886_v15  ;;  %v4776_v49 = vsel %vm1600_vm3, %v13721_v21, -inf }
 0x3f6   : > { %v10850_v39 = vpop.f32.mrf.mxu1  ;;  %v2330_v43 = vpop.f32.mrf.mxu0  ;;  %4777 = vmax.xlane.f32.xlu1 %v4776_v49  ;;  %v13740_v49 = vld [vmem:[%s12580_s30 + $0x7] ss:$0 sm:$0xff] }
 0x3f7   : > { %v4749_v17 = vsel %vm1600_vm3, %v13726_v5, -inf }
 0x3f8   : > { %11041 = vmatmul.mubr.msk.bf16.vlgmr.msra.gmra.mxu1 %vm1600_vm3, %v13344_v58  ;;  %11059 = vmatmul.mubr.msk.bf16.vlgmr.msra.gmra.mxu0 %vm1600_vm3, %v13163_v3  ;;  %v1889_v15 = vpop.f32.mrf.mxu1  ;;  %v10905_v50 = vpop.f32.mrf.mxu0 }
 0x3f9   : > { %4750 = vmax.xlane.f32.xlu0 %v4749_v17  ;;  %11051 = vmatpush3.bf16.xpose.msra.mxu1 %v3516_v31  ;;  %v3614_v17 = vsel %vm1600_vm3, %v13474_v44, 0  ;;  %v3761_v15 = vsel %vm1600_vm3, %v13538_v54, 0 }
 0x3fa   : > { %11069 = vmatpush3.bf16.xpose.msra.mxu0 %v3663_v53  ;;  %v10851_v43 = vpop.f32.mrf.mxu1  ;;  %11052 = vmatprep.mubr.msk.bf16.mxu1 %vm12425_vm2, %v16473_v60 }
 0x3fb   : > { %11070 = vmatprep.mubr.msk.bf16.mxu0 %vm12425_vm2, %v16473_v60  ;;  %11062 = vmatprep.subr.bf16.mxu1 %v16473_v60  ;;  %v13762_v43 = vld [vmem:[%s12580_s30 + $0x9] ss:$0 sm:$0xff] }
 0x3fc   : > { %v1984_v48 = vpop.f32.mrf.mxu1  ;;  %11080 = vmatprep.subr.bf16.mxu0 %v16473_v60 }
 0x3fd   : > { %v13749_v8 = vadd.f32 %v13740_v49, %v1984_v48 }
 0x3fe   : > { %v10862_v39 = vpop.f32.mrf.mxu1 }
 0x3ff   : > { %v4755_v53 = vsel %vm1600_vm3, %v13749_v8, -inf }
 0x400   : > { %11053 = vmatmul.mubr.msk.bf16.vlgmr.msra.gmra.mxu1 %vm1600_vm3, %v13402_v30  ;;  %v1987_v31 = vpop.f32.mrf.mxu1  ;;  %4756 = vmax.xlane.f32.xlu0 %v4755_v53  ;;  %v3712_v53 = vsel %vm1600_vm3, %v13512_v14, 0 }
 0x401   : > { %11071 = vmatmul.mubr.msk.bf16.vlgmr.msra.gmra.mxu0 %vm1600_vm3, %v13078_v24  ;;  %11063 = vmatpush3.bf16.xpose.msra.mxu1 %v3614_v17  ;;  %v3859_v31 = vsel %vm1600_vm3, %v13507_v59, 0  ;;  %v3805_v59 = vpop.permute.xlu1 %3804 }
 0x402   : > { %11081 = vmatpush3.bf16.xpose.msra.mxu0 %v3761_v15  ;;  %v10863_v50 = vpop.f32.mrf.mxu1  ;;  %11064 = vmatprep.mubr.msk.bf16.mxu1 %vm12425_vm2, %v16473_v60 }
 0x403   : > { %11082 = vmatprep.mubr.msk.bf16.mxu0 %vm12425_vm2, %v16473_v60  ;;  %11074 = vmatprep.subr.bf16.mxu1 %v16473_v60  ;;  %v13784_v50 = vld [vmem:[%s12580_s30 + $0xb] ss:$0 sm:$0xff] }
 0x404   : > { %v2082_v44 = vpop.f32.mrf.mxu1  ;;  %11092 = vmatprep.subr.bf16.mxu0 %v16473_v60 }
 0x405   : > { %v13771_v54 = vadd.f32 %v13762_v43, %v2082_v44 }
 0x406   : > { %v10874_v48 = vpop.f32.mrf.mxu1 }
 0x407   : > { %v4761_v39 = vsel %vm1600_vm3, %v13771_v54, -inf }
 0x408   : > { %11065 = vmatmul.mubr.msk.bf16.vlgmr.msra.gmra.mxu1 %vm1600_vm3, %v13161_v2  ;;  %v2085_v17 = vpop.f32.mrf.mxu1  ;;  %4762 = vmax.xlane.f32.xlu0 %v4761_v39 }
 0x409   : > { %11083 = vmatmul.mubr.msk.bf16.vlgmr.msra.gmra.mxu0 %vm1600_vm3, %v13349_v34  ;;  %11075 = vmatpush3.bf16.xpose.msra.mxu1 %v3712_v53  ;;  %v3810_v53 = vsel %vm1600_vm3, %v3805_v59, 0 }
 0x40a   : > { %11093 = vmatpush3.bf16.xpose.msra.mxu0 %v3859_v31  ;;  %v10875_v15 = vpop.f32.mrf.mxu1  ;;  %11076 = vmatprep.mubr.msk.bf16.mxu1 %vm12425_vm2, %v16473_v60  ;;  %v3957_v31 = vsel %vm1600_vm3, %v13480_v13, 0  ;;  %v3903_v13 = vpop.permute.xlu0 %3902 }
 0x40b   : > { %11094 = vmatprep.mubr.msk.bf16.mxu0 %vm12425_vm2, %v16473_v60  ;;  %11086 = vmatprep.subr.bf16.mxu1 %v16473_v60 }
 0x40c   : > { %v2180_v14 = vpop.f32.mrf.mxu1  ;;  %11104 = vmatprep.subr.bf16.mxu0 %v16473_v60 }
 0x40d   : > { %v13793_v44 = vadd.f32 %v13784_v50, %v2180_v14  ;;  %v13805_v14 = vld [vmem:[%s12580_s30 + $0xd] ss:$0 sm:$0xff] }
 0x40e   : > { %v10886_v48 = vpop.f32.mrf.mxu1 }
 0x40f   : > { %v4767_v39 = vsel %vm1600_vm3, %v13793_v44, -inf }
 0x410   : > { %11077 = vmatmul.mubr.msk.bf16.vlgmr.msra.gmra.mxu1 %vm1600_vm3, %v13266_v41  ;;  %v2183_v17 = vpop.f32.mrf.mxu1  ;;  %4768 = vmax.xlane.f32.xlu0 %v4767_v39 }
 0x411   : > { %11095 = vmatmul.mubr.msk.bf16.vlgmr.msra.gmra.mxu0 %vm1600_vm3, %v13264_v11  ;;  %11087 = vmatpush3.bf16.xpose.msra.mxu1 %v3810_v53  ;;  %v3908_v17 = vsel %vm1600_vm3, %v3903_v13, 0 }
 0x412   : > { %11105 = vmatpush3.bf16.xpose.msra.mxu0 %v3957_v31  ;;  %v10887_v15 = vpop.f32.mrf.mxu1  ;;  %11088 = vmatprep.mubr.msk.bf16.mxu1 %vm12425_vm2, %v16473_v60 }
 0x413   : > { %11106 = vmatprep.mubr.msk.bf16.mxu0 %vm12425_vm2, %v16473_v60  ;;  %11098 = vmatprep.subr.bf16.mxu1 %v16473_v60  ;;  %v4055_v15 = vsel %vm1600_vm3, %v13446_v55, 0 }
 0x414   : > { %v2278_v59 = vpop.f32.mrf.mxu1  ;;  %11116 = vmatprep.subr.bf16.mxu0 %v16473_v60 }
 0x415   : > { %v13814_v48 = vadd.f32 %v13805_v14, %v2278_v59 }
 0x416   : > { %v10898_v39 = vpop.f32.mrf.mxu1 }
 0x417   : > { %v4773_v53 = vsel %vm1600_vm3, %v13814_v48, -inf  ;;  %v10319_v39 = vld [vmem:[%s12580_s30 + $0xf] ss:$0 sm:$0xff] }
 0x418   : > { %11089 = vmatmul.mubr.msk.bf16.vlgmr.msra.gmra.mxu1 %vm1600_vm3, %v13355_v7  ;;  %v2281_v31 = vpop.f32.mrf.mxu1  ;;  %4774 = vmax.xlane.f32.xlu0 %v4773_v53 }
 0x419   : > { %11107 = vmatmul.mubr.msk.bf16.vlgmr.msra.gmra.mxu0 %vm1600_vm3, %v13183_v46  ;;  %11099 = vmatpush3.bf16.xpose.msra.mxu1 %v3908_v17  ;;  %v4006_v31 = vsel %vm1600_vm3, %v13478_v63, 0  ;;  %v4104_v63 = vsel %vm1600_vm3, %v13444_v16, 0  ;;  %v4197_v16 = vpop.permute.xlu1 %4196 }
 0x41a   : > { %11117 = vmatpush3.bf16.xpose.msra.mxu0 %v4055_v15  ;;  %v10899_v59 = vpop.f32.mrf.mxu1  ;;  %11100 = vmatprep.mubr.msk.bf16.mxu1 %vm12425_vm2, %v16473_v60 }
 0x41b   : > { %11118 = vmatprep.mubr.msk.bf16.mxu0 %vm12425_vm2, %v16473_v60  ;;  %11110 = vmatprep.subr.bf16.mxu1 %v16473_v60  ;;  %v4153_v59 = vsel %vm1600_vm3, %v13544_v6, 0  ;;  %v4251_v6 = vsel %vm1600_vm3, %v13518_v42, 0  ;;  %v16506_v42 = vld [vmem:[#allocation62_spill] sm:$0xff] }
 0x41c   : > { %v2376_v13 = vpop.f32.mrf.mxu1  ;;  %11128 = vmatprep.subr.bf16.mxu0 %v16473_v60 }
 0x41d   : > { %v13832_v53 = vadd.f32 %v10319_v39, %v2376_v13  ;;  %v16504_v13 = vld [vmem:[#allocation49_spill] sm:$0xff] }
 0x41e   : > { %v10910_v55 = vpop.f32.mrf.mxu1 }
 0x41f   : > { %v4779_v17 = vsel %vm1600_vm3, %v13832_v53, -inf  ;;  %v4202_v55 = vsel %vm1600_vm3, %v4197_v16, 0 }
 0x420   : > { %11101 = vmatmul.mubr.msk.bf16.vlgmr.msra.gmra.mxu1 %vm1600_vm3, %v13413_v27  ;;  %v2379_v15 = vpop.f32.mrf.mxu1  ;;  %4780 = vmax.xlane.f32.xlu0 %v4779_v17  ;;  %v16505_v17 = vld [vmem:[#allocation14_spill] sm:$0xff] }
 0x421   : > { %11119 = vmatmul.mubr.msk.bf16.vlgmr.msra.gmra.mxu0 %vm1600_vm3, %v13086_v28  ;;  %11111 = vmatpush3.bf16.xpose.msra.mxu1 %v4006_v31  ;;  %v4349_v31 = vsel %vm1600_vm3, %v16506_v42, 0  ;;  %v16507_v15 = vld [vmem:[#allocation37_spill] sm:$0xff]  ;;  %v16511_v28 = vld [vmem:[#allocation30_spill] sm:$0xff] }
 0x422   : > { %11129 = vmatpush3.bf16.xpose.msra.mxu0 %v4153_v59  ;;  %v10911_v39 = vpop.f32.mrf.mxu1  ;;  %11112 = vmatprep.mubr.msk.bf16.mxu1 %vm12425_vm2, %v16473_v60  ;;  %v13871_v59 = vpop.permute.xlu0 %6095 }
 0x423   : > { %11130 = vmatprep.mubr.msk.bf16.mxu0 %vm12425_vm2, %v16473_v60  ;;  %11122 = vmatprep.subr.bf16.mxu1 %v16473_v60 }
 0x424   : > { %11140 = vmatprep.subr.bf16.mxu0 %v16473_v60 }
 0x426   : > { %v13881_v16 = vpop.permute.xlu0 %6191 }
 0x428   : > { %11113 = vmatmul.mubr.msk.bf16.vlgmr.msra.gmra.mxu1 %vm1600_vm3, %v13175_v19 }
 0x429   : > { %11131 = vmatmul.mubr.msk.bf16.vlgmr.msra.gmra.mxu0 %vm1600_vm3, %v16504_v13  ;;  %11123 = vmatpush3.bf16.xpose.msra.mxu1 %v4104_v63  ;;  %v16510_v13 = vld [vmem:[#allocation60_spill] sm:$0xff] }
 0x42a   : > { %11141 = vmatpush3.bf16.xpose.msra.mxu0 %v4251_v6  ;;  %11124 = vmatprep.mubr.msk.bf16.mxu1 %vm12425_vm2, %v16473_v60  ;;  %v4300_v6 = vsel %vm1600_vm3, %v13520_v12, 0 }
 0x42b   : > { %11142 = vmatprep.mubr.msk.bf16.mxu0 %vm12425_vm2, %v16473_v60  ;;  %11134 = vmatprep.subr.bf16.mxu1 %v16473_v60 }
 0x42c   : > { %11152 = vmatprep.subr.bf16.mxu0 %v16473_v60 }
 0x430   : > { %11125 = vmatmul.mubr.msk.bf16.vlgmr.msra.gmra.mxu1 %vm1600_vm3, %v16505_v17  ;;  %v4447_v17 = vsel %vm1600_vm3, %v16510_v13, 0  ;;  %v4736_v13 = vpop.xlane.xlu0 %4735 }
 0x431   : > { %11143 = vmatmul.mubr.msk.bf16.vlgmr.msra.gmra.mxu0 %vm1600_vm3, %v16507_v15  ;;  %11135 = vmatpush3.bf16.xpose.msra.mxu1 %v4202_v55  ;;  %v16508_v55 = vld [vmem:[#allocation63_spill] sm:$0xff]  ;;  %v16509_v15 = vld [vmem:[#allocation50_spill] sm:$0xff] }
 0x432   : > { %11153 = vmatpush3.bf16.xpose.msra.mxu0 %v4349_v31  ;;  %11136 = vmatprep.mubr.msk.bf16.mxu1 %vm12425_vm2, %v16473_v60 }
 0x433   : > { %11154 = vmatprep.mubr.msk.bf16.mxu0 %vm12425_vm2, %v16473_v60  ;;  %11146 = vmatprep.subr.bf16.mxu1 %v16473_v60 }
 0x434   : > { %11164 = vmatprep.subr.bf16.mxu0 %v16473_v60 }
 0x437   : > { %v2425_v39 = vpop.f32.mrf.mxu0  ;;  %v2474_v63 = vpop.f32.mrf.mxu1 }
 0x438   : > { %v13884_v42 = vadd.f32 %v16508_v55, %v2425_v39  ;;  %v13887_v31 = vadd.f32 %v13565_v22, %v2474_v63  ;;  %11137 = vmatmul.mubr.msk.bf16.vlgmr.msra.gmra.mxu1 %vm1600_vm3, %v16509_v15 }
 0x439   : > { %11155 = vmatmul.mubr.msk.bf16.vlgmr.msra.gmra.mxu0 %vm1600_vm3, %v16511_v28  ;;  %11147 = vmatpush3.bf16.xpose.msra.mxu1 %v4300_v6  ;;  %v10916_v19 = vpop.f32.mrf.mxu0  ;;  %v10922_v12 = vpop.f32.mrf.mxu1  ;;  %v4926_v6 = vsub.f32 %v13510_v37, %v4736_v13  ;;  %v16512_v28 = vld [vmem:[#allocation61_spill] sm:$0xff]  ;;  %v16515_v13 = vld [vmem:[#allocation59_spill] sm:$0xff] }
 0x43a   : > { %11165 = vmatpush3.bf16.xpose.msra.mxu0 %v4447_v17  ;;  %v4782_v39 = vsel %vm1600_vm3, %v13884_v42, -inf  ;;  %v4785_v22 = vsel %vm1600_vm3, %v13887_v31, -inf  ;;  %11148 = vmatprep.mubr.msk.bf16.mxu1 %vm12425_vm2, %v16473_v60  ;;  %v4398_v15 = vsel %vm1600_vm3, %v16512_v28, 0 }
 0x43b   : > { %v2428_v63 = vpop.f32.mrf.mxu0  ;;  %v2477_v55 = vpop.f32.mrf.mxu1  ;;  %4783 = vmax.xlane.f32.xlu1 %v4782_v39  ;;  %4786 = vmax.xlane.f32.xlu0 %v4785_v22  ;;  %v16513_v39 = vld [vmem:[#allocation39_spill] sm:$0xff]  ;;  %v4545_v22 = vsel %vm1600_vm3, %v13553_v61, 0  ;;  %v4990_v28 = vmul.f32 1.442695, %v4926_v6  ;;  %v4643_v6 = vsel %vm1600_vm3, %v13522_v35, 0 }
 0x43c   : > { %11166 = vmatprep.mubr.msk.bf16.mxu0 %vm12425_vm2, %v16473_v60  ;;  %11158 = vmatprep.subr.bf16.mxu1 %v16473_v60  ;;  %v16514_v55 = vld [vmem:[#allocation18_spill] sm:$0xff] }
 0x43d   : > { %v10917_v19 = vpop.f32.mrf.mxu0  ;;  %v10923_v17 = vpop.f32.mrf.mxu1  ;;  %11176 = vmatprep.subr.bf16.mxu0 %v16473_v60  ;;  %11995 = vpow2.f32 %v4990_v28 }
 0x43e   : > { %v4496_v17 = vsel %vm1600_vm3, %v16515_v13, 0  ;;  %v16519_v13 = vld [vmem:[#allocation19_spill] sm:$0xff] }
 0x43f   : > { %v2523_v12 = vpop.f32.mrf.mxu0 }
 0x440   : > { %v13909_v63 = vadd.f32 %v13585_v47, %v2523_v12  ;;  %11149 = vmatmul.mubr.msk.bf16.vlgmr.msra.gmra.mxu1 %vm1600_vm3, %v16513_v39  ;;  %v16516_v12 = vld [vmem:[#allocation29_spill] sm:$0xff] }
 0x441   : > { %11167 = vmatmul.mubr.msk.bf16.vlgmr.msra.gmra.mxu0 %vm1600_vm3, %v16514_v55  ;;  %11159 = vmatpush3.bf16.xpose.msra.mxu1 %v4398_v15  ;;  %v10928_v19 = vpop.f32.mrf.mxu0  ;;  %v4589_v15 = vpop.permute.xlu1 %4588 }
 0x442   : > { %11177 = vmatpush3.bf16.xpose.msra.mxu0 %v4545_v22  ;;  %v4788_v37 = vsel %vm1600_vm3, %v13909_v63, -inf  ;;  %11160 = vmatprep.mubr.msk.bf16.mxu1 %vm12425_vm2, %v16473_v60  ;;  %v16517_v22 = vld [vmem:[#allocation51_spill] sm:$0xff]  ;;  %v4594_v35 = vsel %vm1600_vm3, %v4589_v15, 0 }
 0x443   : > { %v2526_v47 = vpop.f32.mrf.mxu0  ;;  %4789 = vmax.xlane.f32.xlu1 %v4788_v37  ;;  %11178 = vmatprep.mubr.msk.bf16.mxu0 %vm12425_vm2, %v16473_v60 }
 0x444   : > { %11170 = vmatprep.subr.bf16.mxu1 %v16473_v60  ;;  %11188 = vmatprep.subr.bf16.mxu0 %v16473_v60 }
 0x445   : > { %v10929_v61 = vpop.f32.mrf.mxu0 }
 0x446   : > { %v16518_v61 = vld [vmem:[#allocation17_spill] sm:$0xff] }
 0x448   : > { %11161 = vmatmul.mubr.msk.bf16.vlgmr.msra.gmra.mxu1 %vm1600_vm3, %v16516_v12 }
 0x449   : > { %11179 = vmatmul.mubr.msk.bf16.vlgmr.msra.gmra.mxu0 %vm1600_vm3, %v16517_v22  ;;  %11171 = vmatpush3.bf16.xpose.msra.mxu1 %v4496_v17  ;;  %v5381_v17 = vsel %vm5379_vm4, %v16519_v13, 0 }
 0x44a   : > { %11189 = vmatpush3.bf16.xpose.msra.mxu0 %v4643_v6  ;;  %11172 = vmatprep.mubr.msk.bf16.mxu1 %vm12425_vm2, %v16473_v60  ;;  %v16520_v6 = vld [vmem:[#allocation40_spill] sm:$0xff] }
 0x44b   : > { %v4739_v19 = vpop.xlane.xlu1 %4738  ;;  %11190 = vmatprep.mubr.msk.bf16.mxu0 %vm12425_vm2, %v16473_v60  ;;  %11182 = vmatprep.subr.bf16.mxu1 %v16473_v60 }
 0x44c   : > { %11200 = vmatprep.subr.bf16.mxu0 %v16473_v60  ;;  %v4927_v37 = vsub.f32 %v13568_v20, %v4739_v19  ;;  %v13956_v19 = vpop.eup %11995 }
 0x44d   : > { %16521 = vst [vmem:[#allocation62_spill] sm:$0xff] %v13956_v19 }
 0x44e   : > { %v4992_v12 = vmul.f32 1.442695, %v4927_v37 }
 0x44f   : > { %v2572_v28 = vpop.f32.mrf.mxu1 }
 0x450   : > { %v13942_v47 = vadd.f32 %v13613_v0, %v2572_v28  ;;  %11173 = vmatmul.mubr.msk.bf16.vlgmr.msra.gmra.mxu1 %vm1600_vm3, %v16518_v61  ;;  %11997 = vpow2.f32 %v4992_v12 }
 0x451   : > { %11191 = vmatmul.mubr.msk.bf16.vlgmr.msra.gmra.mxu0 %vm1600_vm3, %v16520_v6  ;;  %11183 = vmatpush3.bf16.xpose.msra.mxu1 %v4594_v35  ;;  %v10934_v22 = vpop.f32.mrf.mxu1  ;;  %v5310_v35 = vpack.c.bf16 %v13956_v19, %v13956_v19 }
 0x452   : > { %11201 = vmatpush3.bf16.msra.mxu0 %v5381_v17  ;;  %v4791_v20 = vsel %vm1600_vm3, %v13942_v47, -inf  ;;  %11184 = vmatprep.mubr.msk.bf16.mxu1 %vm12425_vm2, %v16473_v60  ;;  %v4692_v17 = vsel %vm1600_vm3, %v13524_v52, 0 }
 0x453   : > { %4792 = vmax.xlane.f32.xlu0 %v4791_v20  ;;  %v2575_v0 = vpop.f32.mrf.mxu1  ;;  %v4742_v15 = vpop.xlane.xlu0 %4741  ;;  %11202 = vmatprep.mubr.msk.bf16.mxu0 %vm12425_vm2, %v16473_v60 }
 0x454   : > { %v4928_v28 = vsub.f32 %v13589_v62, %v4742_v15  ;;  %11212 = vmatprep.subr.bf16.mxu0 %v16473_v60  ;;  %11194 = vmatprep.subr.bf16.mxu1 %v16473_v60  ;;  %v16522_v0 = vld [vmem:[#allocation52_spill] sm:$0xff]  ;;  %v16523_v62 = vld [vmem:[#allocation9_spill] sm:$0xff] }
 0x455   : > { %v10935_v22 = vpop.f32.mrf.mxu1  ;;  %v5477_v15 = vsel %vm5379_vm4, %v16523_v62, 0 }
 0x456   : > { %v4994_v37 = vmul.f32 1.442695, %v4928_v28 }
 0x457   : > { %v4748_v13 = vpop.xlane.xlu1 %4747 }
 0x458   : > { %11999 = vpow2.f32 %v4994_v37  ;;  %v4930_v20 = vsub.f32 %v13607_v38, %v4748_v13  ;;  %11185 = vmatmul.mubr.msk.bf16.vlgmr.msra.gmra.mxu1 %vm1600_vm3, %v16522_v0  ;;  %v16524_v37 = vld [vmem:[#allocation22_spill] sm:$0xff] }
 0x459   : > { %11203 = vmatmul.mubr.msk.bf16.vlgmr.msra.gmra.mxu0 %vm1600_vm3, %v5310_v35  ;;  %11195 = vmatpush3.bf16.xpose.msra.mxu1 %v4692_v17  ;;  %v5429_v35 = vsel %vm5379_vm4, %v16524_v37, 0  ;;  %v16525_v17 = vld [vmem:[#allocation42_spill] sm:$0xff] }
 0x45a   : > { %v4998_v12 = vmul.f32 1.442695, %v4930_v20  ;;  %11213 = vmatpush3.bf16.msra.mxu0 %v5477_v15  ;;  %11196 = vmatprep.mubr.msk.bf16.mxu1 %vm12425_vm2, %v16473_v60 }
 0x45b   : > { %v4745_v28 = vpop.xlane.xlu0 %4744  ;;  %11206 = vmatprep.subr.bf16.mxu1 %v16473_v60  ;;  %11214 = vmatprep.mubr.msk.bf16.mxu0 %vm12425_vm2, %v16473_v60 }
 0x45c   : > { %v4929_v52 = vsub.f32 %v13619_v57, %v4745_v28  ;;  %11224 = vmatprep.subr.bf16.mxu0 %v16473_v60  ;;  %12001 = vpow2.f32 %v4998_v12  ;;  %v16528_v28 = vld [vmem:[#allocation16_spill] sm:$0xff] }
 0x45d   : > { %v13986_v57 = vpop.eup %11997 }
 0x45e   : > { %v4996_v38 = vmul.f32 1.442695, %v4929_v52  ;;  %16526 = vst [vmem:[#allocation63_spill] sm:$0xff] %v13986_v57  ;;  %v5311_v15 = vpack.c.bf16 %v13986_v57, %v13986_v57  ;;  %v5525_v52 = vsel %vm5379_vm4, %v16528_v28, 0 }
 0x45f   : > { %v4754_v22 = vpop.xlane.xlu1 %4753 }
 0x460   : > { %12003 = vpow2.f32 %v4996_v38  ;;  %v4932_v13 = vsub.f32 %v13636_v4, %v4754_v22  ;;  %11197 = vmatmul.mubr.msk.bf16.vlgmr.msra.gmra.mxu1 %vm1600_vm3, %v16525_v17  ;;  %v16529_v38 = vld [vmem:[#allocation38_spill] sm:$0xff] }
 0x461   : > { %11207 = vmatpush3.bf16.msra.mxu1 %v5429_v35  ;;  %11208 = vmatprep.mubr.msk.bf16.mxu1 %vm12425_vm2, %v16473_v60  ;;  %v5573_v22 = vsel %vm5379_vm4, %v16529_v38, 0 }
 0x462   : > { %v5002_v20 = vmul.f32 1.442695, %v4932_v13  ;;  %11218 = vmatprep.subr.bf16.mxu1 %v16473_v60 }
 0x464   : > { %12005 = vpow2.f32 %v5002_v20 }
 0x465   : > { %v13988_v62 = vpop.eup %11999 }
 0x466   : > { %16527 = vst [vmem:[#allocation60_spill] sm:$0xff] %v13988_v62  ;;  %v5312_v4 = vpack.c.bf16 %v13988_v62, %v13988_v62 }
 0x467   : > { %v4760_v12 = vpop.xlane.xlu1 %4759 }
 0x468   : > { %v4934_v37 = vsub.f32 %v13659_v51, %v4760_v12  ;;  %v2621_v35 = vpop.f32.mrf.mxu0  ;;  %11209 = vmatmul.mubr.msk.bf16.vlgmr.msra.gmra.mxu1 %vm1600_vm3, %v5311_v15  ;;  %11215 = vmatmul.mubr.msk.bf16.vlgmr.msra.gmra.mxu0 %vm1600_vm3, %v5312_v4 }
 0x469   : > { %v14002_v13 = vadd.f32 %v13600_v10, %v2621_v35  ;;  %11219 = vmatpush3.bf16.msra.mxu1 %v5525_v52  ;;  %11225 = vmatpush3.bf16.msra.mxu0 %v5573_v22  ;;  %v14008_v28 = vpop.eup %12001 }
 0x46a   : > { %v5006_v20 = vmul.f32 1.442695, %v4934_v37  ;;  %v10940_v57 = vpop.f32.mrf.mxu0  ;;  %11220 = vmatprep.mubr.msk.bf16.mxu1 %vm12425_vm2, %v16473_v60  ;;  %11226 = vmatprep.mubr.msk.bf16.mxu0 %vm12425_vm2, %v16473_v60  ;;  %16530 = vst [vmem:[#allocation61_spill] sm:$0xff] %v14008_v28  ;;  %v5314_v52 = vpack.c.bf16 %v14008_v28, %v14008_v28 }
 0x46b   : > { %v2670_v51 = vpop.f32.mrf.mxu1  ;;  %v4794_v15 = vsel %vm1600_vm3, %v14002_v13, -inf  ;;  %11230 = vmatprep.subr.bf16.mxu1 %v16473_v60  ;;  %11236 = vmatprep.subr.bf16.mxu0 %v16473_v60 }
 0x46c   : > { %v14015_v10 = vadd.f32 %v13715_v25, %v2670_v51  ;;  %4795 = vmax.xlane.f32.xlu1 %v4794_v15  ;;  %v2624_v57 = vpop.f32.mrf.mxu0  ;;  %12007 = vpow2.f32 %v5006_v20  ;;  %v16532_v51 = vld [vmem:[#allocation26_spill] sm:$0xff] }
 0x46d   : > { %v14017_v4 = vpop.eup %12003  ;;  %v10946_v12 = vpop.f32.mrf.mxu1  ;;  %v5669_v15 = vsel %vm5379_vm4, %v16532_v51, 0  ;;  %v16533_v57 = vld [vmem:[#allocation57_spill] sm:$0xff] }
 0x46e   : > { %16531 = vst [vmem:[#allocation59_spill] sm:$0xff] %v14017_v4  ;;  %v5313_v38 = vpack.c.bf16 %v14017_v4, %v14017_v4  ;;  %v10941_v22 = vpop.f32.mrf.mxu0  ;;  %v4797_v37 = vsel %vm1600_vm3, %v14015_v10, -inf  ;;  %v5621_v12 = vsel %vm5379_vm4, %v16533_v57, 0 }
 0x46f   : > { %v4766_v35 = vpop.xlane.xlu1 %4765  ;;  %4798 = vmax.xlane.f32.xlu0 %v4797_v37  ;;  %v2673_v25 = vpop.f32.mrf.mxu1 }
 0x470   : > { %v4936_v62 = vsub.f32 %v13681_v18, %v4766_v35  ;;  %v2719_v28 = vpop.f32.mrf.mxu0  ;;  %11221 = vmatmul.mubr.msk.bf16.vlgmr.msra.gmra.mxu1 %vm1600_vm3, %v5313_v38  ;;  %11227 = vmatmul.mubr.msk.bf16.vlgmr.msra.gmra.mxu0 %vm1600_vm3, %v5314_v52  ;;  %v16535_v38 = vld [vmem:[#allocation21_spill] sm:$0xff] }
 0x471   : > { %v14033_v20 = vadd.f32 %v13629_v40, %v2719_v28  ;;  %11231 = vmatpush3.bf16.msra.mxu1 %v5621_v12  ;;  %11237 = vmatpush3.bf16.msra.mxu0 %v5669_v15  ;;  %v10947_v22 = vpop.f32.mrf.mxu1  ;;  %v14038_v51 = vpop.eup %12005  ;;  %v5765_v35 = vsel %vm5379_vm4, %v16535_v38, 0 }
 0x472   : > { %v5010_v37 = vmul.f32 1.442695, %v4936_v62  ;;  %v10952_v25 = vpop.f32.mrf.mxu0  ;;  %11238 = vmatprep.mubr.msk.bf16.mxu0 %vm12425_vm2, %v16473_v60  ;;  %11248 = vmatprep.subr.bf16.mxu0 %v16473_v60  ;;  %16534 = vst [vmem:[#allocation19_spill] sm:$0xff] %v14038_v51  ;;  %v5316_v62 = vpack.c.bf16 %v14038_v51, %v14038_v51 }
 0x473   : > { %v4800_v18 = vsel %vm1600_vm3, %v14033_v20, -inf  ;;  %11232 = vmatprep.mubr.msk.bf16.mxu1 %vm12425_vm2, %v16473_v60  ;;  %11242 = vmatprep.subr.bf16.mxu1 %v16473_v60 }
 0x474   : > { %4801 = vmax.xlane.f32.xlu1 %v4800_v18  ;;  %v2722_v40 = vpop.f32.mrf.mxu0  ;;  %12009 = vpow2.f32 %v5010_v37 }
 0x476   : > { %v10953_v28 = vpop.f32.mrf.mxu0 }
 0x477   : > { %v4772_v52 = vpop.xlane.xlu1 %4771  ;;  %v16537_v28 = vld [vmem:[#allocation10_spill] sm:$0xff] }
 0x478   : > { %v4938_v15 = vsub.f32 %v13700_v9, %v4772_v52  ;;  %v2817_v57 = vpop.f32.mrf.mxu0  ;;  %11239 = vmatmul.mubr.msk.bf16.vlgmr.msra.gmra.mxu0 %vm1600_vm3, %v5316_v62  ;;  %v5861_v52 = vsel %vm5379_vm4, %v16537_v28, 0 }
 0x479   : > { %v14052_v12 = vadd.f32 %v13652_v32, %v2817_v57  ;;  %11249 = vmatpush3.bf16.msra.mxu0 %v5765_v35  ;;  %11250 = vmatprep.mubr.msk.bf16.mxu0 %vm12425_vm2, %v16473_v60  ;;  %v14057_v37 = vpop.eup %12007 }
 0x47a   : > { %v5014_v22 = vmul.f32 1.442695, %v4938_v15  ;;  %v10964_v25 = vpop.f32.mrf.mxu0  ;;  %11260 = vmatprep.subr.bf16.mxu0 %v16473_v60  ;;  %16536 = vst [vmem:[#allocation9_spill] sm:$0xff] %v14057_v37  ;;  %v5318_v40 = vpack.c.bf16 %v14057_v37, %v14057_v37 }
 0x47b   : > { %v4806_v18 = vsel %vm1600_vm3, %v14052_v12, -inf }
 0x47c   : > { %4807 = vmax.xlane.f32.xlu1 %v4806_v18  ;;  %v2820_v9 = vpop.f32.mrf.mxu0  ;;  %12011 = vpow2.f32 %v5014_v22 }
 0x47e   : > { %v10965_v32 = vpop.f32.mrf.mxu0 }
 0x47f   : > { %v4778_v62 = vpop.xlane.xlu1 %4777 }
 0x480   : > { %v4940_v38 = vsub.f32 %v13721_v21, %v4778_v62  ;;  %v2768_v35 = vpop.f32.mrf.mxu1  ;;  %v14066_v15 = vpop.f32.mrf.mxu0  ;;  %11251 = vmatmul.mubr.msk.bf16.vlgmr.msra.gmra.mxu0 %vm1600_vm3, %v5318_v40 }
 0x481   : > { %v14070_v57 = vadd.f32 %v13740_v49, %v2768_v35  ;;  %11261 = vmatpush3.bf16.msra.mxu0 %v5861_v52  ;;  %11262 = vmatprep.mubr.msk.bf16.mxu0 %vm12425_vm2, %v16473_v60  ;;  %v14075_v9 = vpop.eup %12009 }
 0x482   : > { %v5018_v22 = vmul.f32 1.442695, %v4940_v38  ;;  %v10958_v25 = vpop.f32.mrf.mxu1  ;;  %v10976_v18 = vpop.f32.mrf.mxu0  ;;  %11272 = vmatprep.subr.bf16.mxu0 %v16473_v60  ;;  %16538 = vst [vmem:[#allocation22_spill] sm:$0xff] %v14075_v9  ;;  %v5320_v28 = vpack.c.bf16 %v14075_v9, %v14075_v9 }
 0x483   : > { %v4751_v21 = vpop.xlane.xlu0 %4750  ;;  %v4803_v32 = vsel %vm1600_vm3, %v14070_v57, -inf  ;;  %v16539_v25 = vld [vmem:[#allocation41_spill] sm:$0xff] }
 0x484   : > { %v4931_v40 = vsub.f32 %v13726_v5, %v4751_v21  ;;  %v2918_v62 = vpop.f32.mrf.mxu0  ;;  %4804 = vmax.xlane.f32.xlu0 %v4803_v32  ;;  %v2771_v49 = vpop.f32.mrf.mxu1  ;;  %12013 = vpow2.f32 %v5018_v22  ;;  %v5957_v18 = vsel %vm5379_vm4, %v16539_v25, 0  ;;  %v16542_v25 = vld [vmem:[#allocation54_spill] sm:$0xff] }
 0x486   : > { %v5000_v52 = vmul.f32 1.442695, %v4931_v40  ;;  %v10959_v38 = vpop.f32.mrf.mxu1  ;;  %v10977_v35 = vpop.f32.mrf.mxu0 }
 0x488   : > { %12015 = vpow2.f32 %v5000_v52  ;;  %v2866_v4 = vpop.f32.mrf.mxu1  ;;  %v14084_v37 = vpop.f32.mrf.mxu0  ;;  %11263 = vmatmul.mubr.msk.bf16.vlgmr.msra.gmra.mxu0 %vm1600_vm3, %v5320_v28 }
 0x489   : > { %v14088_v5 = vadd.f32 %v13762_v43, %v2866_v4  ;;  %11273 = vmatpush3.bf16.msra.mxu0 %v5957_v18  ;;  %v4757_v21 = vpop.xlane.xlu0 %4756  ;;  %11274 = vmatprep.mubr.msk.bf16.mxu0 %vm12425_vm2, %v16473_v60  ;;  %v14094_v62 = vpop.eup %12011  ;;  %v16541_v4 = vld [vmem:[#allocation11_spill] sm:$0xff]  ;;  %v6053_v18 = vsel %vm5379_vm4, %v16542_v25, 0 }
 0x48a   : > { %v10970_v22 = vpop.f32.mrf.mxu1  ;;  %v10988_v32 = vpop.f32.mrf.mxu0  ;;  %v4933_v40 = vsub.f32 %v13749_v8, %v4757_v21  ;;  %11284 = vmatprep.subr.bf16.mxu0 %v16473_v60  ;;  %16540 = vst [vmem:[#allocation16_spill] sm:$0xff] %v14094_v62  ;;  %v5322_v38 = vpack.c.bf16 %v14094_v62, %v14094_v62 }
 0x48b   : > { %v4809_v49 = vsel %vm1600_vm3, %v14088_v5, -inf }
 0x48c   : > { %v5004_v28 = vmul.f32 1.442695, %v4933_v40  ;;  %v3016_v52 = vpop.f32.mrf.mxu0  ;;  %4810 = vmax.xlane.f32.xlu0 %v4809_v49  ;;  %v2869_v43 = vpop.f32.mrf.mxu1 }
 0x48d   : > { %6239 = vrot.lane.b32.xlu1 %v16541_v4, %s12427_s22 }
 0x48e   : > { %12017 = vpow2.f32 %v5004_v28  ;;  %v10971_v35 = vpop.f32.mrf.mxu1  ;;  %v10989_v8 = vpop.f32.mrf.mxu0 }
 0x490   : > { %v14104_v21 = vpop.f32.mrf.mxu1  ;;  %v14106_v22 = vpop.f32.mrf.mxu0  ;;  %11275 = vmatmul.mubr.msk.bf16.vlgmr.msra.gmra.mxu0 %vm1600_vm3, %v5322_v38 }
 0x491   : > { %11285 = vmatpush3.bf16.msra.mxu0 %v6053_v18  ;;  %v4763_v32 = vpop.xlane.xlu0 %4762  ;;  %11286 = vmatprep.mubr.msk.bf16.mxu0 %vm12425_vm2, %v16473_v60  ;;  %v14113_v52 = vpop.eup %12013 }
 0x492   : > { %v10982_v40 = vpop.f32.mrf.mxu1  ;;  %v11000_v49 = vpop.f32.mrf.mxu0  ;;  %v4935_v28 = vsub.f32 %v13771_v54, %v4763_v32  ;;  %11296 = vmatprep.subr.bf16.mxu0 %v16473_v60  ;;  %16543 = vst [vmem:[#allocation38_spill] sm:$0xff] %v14113_v52  ;;  %v5324_v38 = vpack.c.bf16 %v14113_v52, %v14113_v52  ;;  %v16546_v32 = vld [vmem:[#allocation64_spill] sm:$0xff] }
 0x493   : > { %v16545_v49 = vld [vmem:[#allocation56_spill] sm:$0xff]  ;;  %v6149_v62 = vsel %vm5379_vm4, %v16546_v32, 0 }
 0x494   : > { %v5008_v43 = vmul.f32 1.442695, %v4935_v28  ;;  %v2967_v4 = vpop.f32.mrf.mxu1  ;;  %v3114_v35 = vpop.f32.mrf.mxu0  ;;  %v5717_v54 = vsel %vm5379_vm4, %v16545_v49, 0 }
 0x495   : > { %v14115_v8 = vpop.eup %12015 }
 0x496   : > { %16544 = vst [vmem:[#allocation26_spill] sm:$0xff] %v14115_v8  ;;  %v5315_v25 = vpack.c.bf16 %v14115_v8, %v14115_v8  ;;  %12019 = vpow2.f32 %v5008_v43  ;;  %v10983_v18 = vpop.f32.mrf.mxu1  ;;  %v11001_v40 = vpop.f32.mrf.mxu0 }
 0x498   : > { %11233 = vmatmul.mubr.msk.bf16.vlgmr.msra.gmra.mxu1 %vm1600_vm3, %v5315_v25  ;;  %v14126_v28 = vpop.f32.mrf.mxu1  ;;  %v14128_v4 = vpop.f32.mrf.mxu0  ;;  %11287 = vmatmul.mubr.msk.bf16.vlgmr.msra.gmra.mxu0 %vm1600_vm3, %v5324_v38 }
 0x499   : > { %11243 = vmatpush3.bf16.msra.mxu1 %v5717_v54  ;;  %11297 = vmatpush3.bf16.msra.mxu0 %v6149_v62  ;;  %v4769_v35 = vpop.xlane.xlu0 %4768 }
 0x49a   : > { %v10994_v43 = vpop.f32.mrf.mxu1  ;;  %v11012_v18 = vpop.f32.mrf.mxu0  ;;  %v4937_v40 = vsub.f32 %v13793_v44, %v4769_v35  ;;  %11244 = vmatprep.mubr.msk.bf16.mxu1 %vm12425_vm2, %v16473_v60  ;;  %11254 = vmatprep.subr.bf16.mxu1 %v16473_v60  ;;  %v16548_v35 = vld [vmem:[#allocation23_spill] sm:$0xff] }
 0x49b   : > { %v14135_v49 = vpop.eup %12017  ;;  %11298 = vmatprep.mubr.msk.bf16.mxu0 %vm12425_vm2, %v16473_v60  ;;  %11308 = vmatprep.subr.bf16.mxu0 %v16473_v60  ;;  %v5813_v43 = vsel %vm5379_vm4, %v16548_v35, 0 }
 0x49c   : > { %16547 = vst [vmem:[#allocation57_spill] sm:$0xff] %v14135_v49  ;;  %v5317_v62 = vpack.c.bf16 %v14135_v49, %v14135_v49  ;;  %v5012_v38 = vmul.f32 1.442695, %v4937_v40  ;;  %v3065_v25 = vpop.f32.mrf.mxu1  ;;  %v3212_v54 = vpop.f32.mrf.mxu0 }
 0x49d   : > { %v16549_v25 = vld [vmem:[#allocation32_spill] sm:$0xff] }
 0x49e   : > { %12021 = vpow2.f32 %v5012_v38  ;;  %v10995_v44 = vpop.f32.mrf.mxu1  ;;  %v11013_v32 = vpop.f32.mrf.mxu0 }
 0x4a0   : > { %11245 = vmatmul.mubr.msk.bf16.vlgmr.msra.gmra.mxu1 %vm1600_vm3, %v5317_v62  ;;  %v14145_v18 = vpop.f32.mrf.mxu1  ;;  %v14147_v52 = vpop.f32.mrf.mxu0 }
 0x4a1   : > { %11255 = vmatpush3.bf16.msra.mxu1 %v5813_v43  ;;  %v4775_v8 = vpop.xlane.xlu0 %4774  ;;  %11256 = vmatprep.mubr.msk.bf16.mxu1 %vm12425_vm2, %v16473_v60 }
 0x4a2   : > { %v11024_v40 = vpop.f32.mrf.mxu0  ;;  %6287 = vrot.lane.b32.xlu0 %v16549_v25, %s12427_s22  ;;  %v11006_v38 = vpop.f32.mrf.mxu1  ;;  %v4939_v54 = vsub.f32 %v13814_v48, %v4775_v8  ;;  %11266 = vmatprep.subr.bf16.mxu1 %v16473_v60 }
 0x4a3   : > { %v14155_v44 = vpop.eup %12019  ;;  %v16551_v40 = vld [vmem:[#allocation20_spill] sm:$0xff] }
 0x4a4   : > { %16550 = vst [vmem:[#allocation21_spill] sm:$0xff] %v14155_v44  ;;  %v5319_v62 = vpack.c.bf16 %v14155_v44, %v14155_v44  ;;  %v5016_v32 = vmul.f32 1.442695, %v4939_v54  ;;  %v3163_v35 = vpop.f32.mrf.mxu1  ;;  %v3310_v43 = vpop.f32.mrf.mxu0  ;;  %v5909_v51 = vsel %vm5379_vm4, %v16551_v40, 0 }
 0x4a6   : > { %12023 = vpow2.f32 %v5016_v32  ;;  %v11007_v49 = vpop.f32.mrf.mxu1  ;;  %v11025_v9 = vpop.f32.mrf.mxu0 }
 0x4a7   : > { %v14174_v49 = vadd.f32 %v13674_v26, %v14066_v15 }
 0x4a8   : > { %11257 = vmatmul.mubr.msk.bf16.vlgmr.msra.gmra.mxu1 %vm1600_vm3, %v5319_v62  ;;  %v14162_v25 = vpop.f32.mrf.mxu1  ;;  %v14164_v48 = vpop.f32.mrf.mxu0 }
 0x4a9   : > { %11267 = vmatpush3.bf16.msra.mxu1 %v5909_v51  ;;  %v4781_v8 = vpop.xlane.xlu0 %4780  ;;  %11268 = vmatprep.mubr.msk.bf16.mxu1 %vm12425_vm2, %v16473_v60  ;;  %v4812_v26 = vsel %vm1600_vm3, %v14174_v49, -inf }
 0x4aa   : > { %v11018_v38 = vpop.f32.mrf.mxu1  ;;  %v11036_v54 = vpop.f32.mrf.mxu0  ;;  %v4941_v32 = vsub.f32 %v13832_v53, %v4781_v8  ;;  %11278 = vmatprep.subr.bf16.mxu1 %v16473_v60 }
 0x4ab   : > { %v14170_v9 = vpop.eup %12021  ;;  %v16553_v54 = vld [vmem:[#allocation58_spill] sm:$0xff] }
 0x4ac   : > { %16552 = vst [vmem:[#allocation10_spill] sm:$0xff] %v14170_v9  ;;  %v5321_v62 = vpack.c.bf16 %v14170_v9, %v14170_v9  ;;  %v5020_v51 = vmul.f32 1.442695, %v4941_v32  ;;  %v3261_v35 = vpop.f32.mrf.mxu1  ;;  %v3408_v43 = vpop.f32.mrf.mxu0  ;;  %v6005_v53 = vsel %vm5379_vm4, %v16553_v54, 0  ;;  %v6101_v54 = vsel %vm5379_vm4, %v13871_v59, 0 }
 0x4ae   : > { %12025 = vpow2.f32 %v5020_v51  ;;  %v11019_v40 = vpop.f32.mrf.mxu1  ;;  %v11037_v38 = vpop.f32.mrf.mxu0 }
 0x4b0   : > { %11269 = vmatmul.mubr.msk.bf16.vlgmr.msra.gmra.mxu1 %vm1600_vm3, %v5321_v62  ;;  %v14181_v8 = vpop.f32.mrf.mxu1  ;;  %v14183_v44 = vpop.f32.mrf.mxu0 }
 0x4b1   : > { %11279 = vmatpush3.bf16.msra.mxu1 %v6005_v53  ;;  %4813 = vmax.xlane.f32.xlu1 %v4812_v26 }
 0x4b2   : > { %v11030_v15 = vpop.f32.mrf.mxu1  ;;  %v11048_v32 = vpop.f32.mrf.mxu0  ;;  %11280 = vmatprep.mubr.msk.bf16.mxu1 %vm12425_vm2, %v16473_v60  ;;  %11290 = vmatprep.subr.bf16.mxu1 %v16473_v60 }
 0x4b3   : > { %v14190_v51 = vpop.eup %12023 }
 0x4b4   : > { %16554 = vst [vmem:[#allocation41_spill] sm:$0xff] %v14190_v51  ;;  %v5323_v62 = vpack.c.bf16 %v14190_v51, %v14190_v51  ;;  %v3359_v35 = vpop.f32.mrf.mxu1  ;;  %v3506_v43 = vpop.f32.mrf.mxu0  ;;  %v6197_v51 = vsel %vm5379_vm4, %v13881_v16, 0 }
 0x4b5   : > { %v14208_v43 = vadd.f32 %v13784_v50, %v14104_v21  ;;  %v16556_v21 = vld [vmem:[#allocation43_spill] sm:$0xff] }
 0x4b6   : > { %v11031_v40 = vpop.f32.mrf.mxu1  ;;  %v11049_v38 = vpop.f32.mrf.mxu0 }
 0x4b8   : > { %11281 = vmatmul.mubr.msk.bf16.vlgmr.msra.gmra.mxu1 %vm1600_vm3, %v5323_v62  ;;  %v14197_v53 = vpop.f32.mrf.mxu1  ;;  %v14199_v26 = vpop.f32.mrf.mxu0 }
 0x4b9   : > { %11291 = vmatpush3.bf16.msra.mxu1 %v6101_v54  ;;  %11292 = vmatprep.mubr.msk.bf16.mxu1 %vm12425_vm2, %v16473_v60 }
 0x4ba   : > { %v11042_v15 = vpop.f32.mrf.mxu1  ;;  %v11060_v32 = vpop.f32.mrf.mxu0  ;;  %11302 = vmatprep.subr.bf16.mxu1 %v16473_v60 }
 0x4bb   : > { %v14204_v35 = vpop.eup %12025  ;;  %v4815_v32 = vsel %vm1600_vm3, %v14208_v43, -inf }
 0x4bc   : > { %16555 = vst [vmem:[#allocation11_spill] sm:$0xff] %v14204_v35  ;;  %v5325_v59 = vpack.c.bf16 %v14204_v35, %v14204_v35  ;;  %v3457_v62 = vpop.f32.mrf.mxu1  ;;  %v3604_v40 = vpop.f32.mrf.mxu0 }
 0x4be   : > { %v11043_v38 = vpop.f32.mrf.mxu1  ;;  %v11061_v54 = vpop.f32.mrf.mxu0 }
 0x4c0   : > { %11293 = vmatmul.mubr.msk.bf16.vlgmr.msra.gmra.mxu1 %vm1600_vm3, %v5325_v59  ;;  %v14215_v15 = vpop.f32.mrf.mxu1 }
 0x4c1   : > { %11303 = vmatpush3.bf16.msra.mxu1 %v6197_v51  ;;  %v14219_v50 = vpop.f32.mrf.mxu0  ;;  %4816 = vmax.xlane.f32.xlu0 %v4815_v32 }
 0x4c2   : > { %6335 = vrot.lane.b32.xlu1 %v16556_v21, %s12427_s22  ;;  %v11054_v62 = vpop.f32.mrf.mxu1  ;;  %11304 = vmatprep.mubr.msk.bf16.mxu1 %vm12425_vm2, %v16473_v60 }
 0x4c3   : > { %v11072_v40 = vpop.f32.mrf.mxu0  ;;  %11314 = vmatprep.subr.bf16.mxu1 %v16473_v60 }
 0x4c4   : > { %v3555_v16 = vpop.f32.mrf.mxu1  ;;  %v4784_v59 = vpop.xlane.xlu1 %4783 }
 0x4c5   : > { %v3702_v38 = vpop.f32.mrf.mxu0  ;;  %v4942_v54 = vsub.f32 %v13884_v42, %v4784_v59  ;;  %v4787_v35 = vpop.xlane.xlu0 %4786 }
 0x4c6   : > { %v4943_v51 = vsub.f32 %v13887_v31, %v4787_v35  ;;  %v11055_v9 = vpop.f32.mrf.mxu1 }
 0x4c7   : > { %v5022_v32 = vmul.f32 1.442695, %v4942_v54  ;;  %v11073_v19 = vpop.f32.mrf.mxu0 }
 0x4c8   : > { %v5024_v6 = vmul.f32 1.442695, %v4943_v51  ;;  %v14228_v21 = vpop.f32.mrf.mxu1 }
 0x4c9   : > { %12027 = vpow2.f32 %v5022_v32  ;;  %v14230_v62 = vpop.f32.mrf.mxu0 }
 0x4ca   : > { %12029 = vpow2.f32 %v5024_v6  ;;  %v11066_v40 = vpop.f32.mrf.mxu1 }
 0x4cb   : > { %v11084_v17 = vpop.f32.mrf.mxu0 }
 0x4cc   : > { %v3653_v16 = vpop.f32.mrf.mxu1 }
 0x4cd   : > { %v3800_v0 = vpop.f32.mrf.mxu0 }
 0x4ce   : > { %v11067_v38 = vpop.f32.mrf.mxu1  ;;  %v16559_v0 = vld [vmem:[#allocation44_spill] sm:$0xff] }
 0x4cf   : > { %v11085_v61 = vpop.f32.mrf.mxu0 }
 0x4d0   : > { %v14232_v42 = vpop.f32.mrf.mxu1 }
 0x4d1   : > { %v14234_v59 = vpop.f32.mrf.mxu0 }
 0x4d2   : > { %v11078_v31 = vpop.f32.mrf.mxu1 }
 0x4d3   : > { %v11096_v9 = vpop.f32.mrf.mxu0 }
 0x4d4   : > { %v3751_v19 = vpop.f32.mrf.mxu1 }
 0x4d5   : > { %v3898_v35 = vpop.f32.mrf.mxu0 }
 0x4d6   : > { %v14236_v54 = vpop.eup %12027  ;;  %v11079_v51 = vpop.f32.mrf.mxu1 }
 0x4d7   : > { %16557 = vst [vmem:[#allocation54_spill] sm:$0xff] %v14236_v54  ;;  %v14238_v32 = vpop.eup %12029  ;;  %v5326_v6 = vpack.c.bf16 %v14236_v54, %v14236_v54  ;;  %v11097_v17 = vpop.f32.mrf.mxu0  ;;  %6383 = vrot.lane.b32.xlu0 %v16559_v0, %s12427_s22  ;;  %v14259_v0 = vld [vmem:[%s12580_s30 + $0xc] ss:$0 sm:$0xff] }
 0x4d8   : > { %16558 = vst [vmem:[#allocation56_spill] sm:$0xff] %v14238_v32  ;;  %v5327_v61 = vpack.c.bf16 %v14238_v32, %v14238_v32  ;;  %v14246_v40 = vpop.f32.mrf.mxu1 }
 0x4d9   : > { %v14248_v16 = vpop.f32.mrf.mxu0  ;;  %11299 = vmatmul.mubr.msk.bf16.vlgmr.msra.gmra.mxu0 %vm1600_vm3, %v5326_v6  ;;  %v14263_v6 = vadd.f32 %v14259_v0, %v14084_v37 }
 0x4da   : > { %v11090_v38 = vpop.f32.mrf.mxu1  ;;  %11305 = vmatmul.mubr.msk.bf16.vlgmr.msra.gmra.mxu1 %vm1600_vm3, %v5327_v61  ;;  %11310 = vmatprep.mubr.msk.bf16.mxu0 %vm12425_vm2, %v16473_v60 }
 0x4db   : > { %v11108_v31 = vpop.f32.mrf.mxu0  ;;  %11316 = vmatprep.mubr.msk.bf16.mxu1 %vm12425_vm2, %v16473_v60 }
 0x4dc   : > { %v3849_v9 = vpop.f32.mrf.mxu1 }
 0x4dd   : > { %v3996_v19 = vpop.f32.mrf.mxu0  ;;  %v4818_v9 = vsel %vm1600_vm3, %v14263_v6, -inf }
 0x4de   : > { %v11091_v35 = vpop.f32.mrf.mxu1 }
 0x4df   : > { %v11109_v51 = vpop.f32.mrf.mxu0 }
 0x4e0   : > { %v14256_v17 = vpop.f32.mrf.mxu1 }
 0x4e1   : > { %v14265_v61 = vpop.f32.mrf.mxu0 }
 0x4e2   : > { %16560 = vst [vmem:[#allocation64_spill] sm:$0xff] %v14265_v61  ;;  %v11102_v38 = vpop.f32.mrf.mxu1 }
 0x4e3   : > { %v11120_v54 = vpop.f32.mrf.mxu0 }
 0x4e4   : > { %v3947_v31 = vpop.f32.mrf.mxu1  ;;  %v14277_v54 = vadd.f32 %v13805_v14, %v14126_v28 }
 0x4e5   : > { %v4094_v32 = vpop.f32.mrf.mxu0 }
 0x4e6   : > { %4819 = vmax.xlane.f32.xlu1 %v4818_v9  ;;  %v11103_v19 = vpop.f32.mrf.mxu1  ;;  %v4790_v32 = vpop.xlane.xlu1 %4789 }
 0x4e7   : > { %v11121_v35 = vpop.f32.mrf.mxu0 }
 0x4e8   : > { %v14269_v51 = vpop.f32.mrf.mxu1  ;;  %v4944_v35 = vsub.f32 %v13909_v63, %v4790_v32 }
 0x4e9   : > { %16561 = vst [vmem:[#allocation23_spill] sm:$0xff] %v14269_v51  ;;  %v14271_v55 = vpop.f32.mrf.mxu0 }
 0x4ea   : > { %16562 = vst [vmem:[#allocation32_spill] sm:$0xff] %v14271_v55  ;;  %v11114_v39 = vpop.f32.mrf.mxu1  ;;  %v5026_v14 = vmul.f32 1.442695, %v4944_v35 }
 0x4eb   : > { %v11132_v46 = vpop.f32.mrf.mxu0 }
 0x4ec   : > { %v4045_v37 = vpop.f32.mrf.mxu1  ;;  %v4821_v46 = vsel %vm1600_vm3, %v14277_v54, -inf  ;;  %12031 = vpow2.f32 %v5026_v14 }
 0x4ed   : > { %v4192_v27 = vpop.f32.mrf.mxu0 }
 0x4ee   : > { %v11115_v11 = vpop.f32.mrf.mxu1  ;;  %v16565_v27 = vld [vmem:[#allocation31_spill] sm:$0xff] }
 0x4ef   : > { %v11133_v7 = vpop.f32.mrf.mxu0 }
 0x4f0   : > { %v14273_v38 = vpop.f32.mrf.mxu1 }
 0x4f1   : > { %16563 = vst [vmem:[#allocation20_spill] sm:$0xff] %v14273_v38  ;;  %v14279_v31 = vpop.f32.mrf.mxu0 }
 0x4f2   : > { %16564 = vst [vmem:[#allocation58_spill] sm:$0xff] %v14279_v31  ;;  %v11126_v9 = vpop.f32.mrf.mxu1 }
 0x4f3   : > { %v11144_v19 = vpop.f32.mrf.mxu0 }
 0x4f4   : > { %v4143_v55 = vpop.f32.mrf.mxu1 }
 0x4f5   : > { %v4290_v39 = vpop.f32.mrf.mxu0  ;;  %v14290_v55 = vpop.xlane.xlu1 %4795 }
 0x4f6   : > { %4822 = vmax.xlane.f32.xlu0 %v4821_v46  ;;  %v11127_v11 = vpop.f32.mrf.mxu1  ;;  %v4793_v46 = vpop.xlane.xlu0 %4792 }
 0x4f7   : > { %v11145_v7 = vpop.f32.mrf.mxu0  ;;  %6431 = vrot.lane.b32.xlu1 %v16565_v27, %s12427_s22 }
 0x4f8   : > { %v14286_v28 = vpop.f32.mrf.mxu1 }
 0x4f9   : > { %16566 = vst [vmem:[#allocation43_spill] sm:$0xff] %v14286_v28  ;;  %v14288_v37 = vpop.f32.mrf.mxu0 }
 0x4fa   : > { %16567 = vst [vmem:[#allocation44_spill] sm:$0xff] %v14288_v37  ;;  %v11138_v9 = vpop.f32.mrf.mxu1  ;;  %v4945_v37 = vsub.f32 %v13942_v47, %v4793_v46  ;;  %v16573_v46 = vld [vmem:[#allocation53_spill] sm:$0xff] }
 0x4fb   : > { %v11156_v19 = vpop.f32.mrf.mxu0 }
 0x4fc   : > { %v4241_v63 = vpop.f32.mrf.mxu1 }
 0x4fd   : > { %v4388_v32 = vpop.f32.mrf.mxu0  ;;  %v14294_v7 = vpop.xlane.xlu1 %4801 }
 0x4fe   : > { %v11139_v39 = vpop.f32.mrf.mxu1  ;;  %v5028_v32 = vmul.f32 1.442695, %v4945_v37  ;;  %v14313_v37 = vpop.xlane.xlu0 %4798 }
 0x4ff   : > { %v11157_v31 = vpop.f32.mrf.mxu0 }
 0x500   : > { %v14292_v11 = vpop.f32.mrf.mxu1  ;;  %v14303_v31 = vpop.eup %12031  ;;  %12033 = vpow2.f32 %v5028_v32 }
 0x501   : > { %16568 = vst [vmem:[#allocation31_spill] sm:$0xff] %v14292_v11  ;;  %v14296_v27 = vpop.f32.mrf.mxu0  ;;  %16571 = vst [vmem:[#allocation67_spill] sm:$0xff] %v14303_v31  ;;  %v5328_v47 = vpack.c.bf16 %v14303_v31, %v14303_v31 }
 0x502   : > { %16569 = vst [vmem:[#allocation65_spill] sm:$0xff] %v14296_v27  ;;  %v11150_v35 = vpop.f32.mrf.mxu1 }
 0x503   : > { %v11168_v28 = vpop.f32.mrf.mxu0 }
 0x504   : > { %v4339_v9 = vpop.f32.mrf.mxu1 }
 0x505   : > { %v4486_v19 = vpop.f32.mrf.mxu0  ;;  %v14299_v14 = vpop.xlane.xlu1 %4807 }
 0x506   : > { %v11151_v63 = vpop.f32.mrf.mxu1 }
 0x507   : > { %v11169_v34 = vpop.f32.mrf.mxu0 }
 0x508   : > { %v14301_v39 = vpop.f32.mrf.mxu1 }
 0x509   : > { %16570 = vst [vmem:[#allocation66_spill] sm:$0xff] %v14301_v39  ;;  %v14305_v11 = vpop.f32.mrf.mxu0  ;;  %v6240_v38 = vpop.permute.xlu1 %6239 }
 0x50a   : > { %16572 = vst [vmem:[#allocation68_spill] sm:$0xff] %v14305_v11  ;;  %v6245_v27 = vsel %vm5379_vm4, %v6240_v38, 0  ;;  %v11162_v35 = vpop.f32.mrf.mxu1 }
 0x50b   : > { %v11180_v28 = vpop.f32.mrf.mxu0  ;;  %11309 = vmatpush3.bf16.msra.mxu0 %v6245_v27 }
 0x50c   : > { %6479 = vrot.lane.b32.xlu0 %v16573_v46, %s12427_s22  ;;  %v4437_v34 = vpop.f32.mrf.mxu1  ;;  %11320 = vmatprep.subr.bf16.mxu0 %v16473_v60 }
 0x50d   : > { %v4584_v9 = vpop.f32.mrf.mxu0  ;;  %v14320_v63 = vpop.xlane.xlu0 %4804 }
 0x50e   : > { %v11163_v19 = vpop.f32.mrf.mxu1  ;;  %11311 = vmatmul.mubr.msk.bf16.vlgmr.msra.gmra.mxu0 %vm1600_vm3, %v5328_v47  ;;  %v14327_v9 = vld [vmem:[%s12580_s30 + $0xe] ss:$0 sm:$0xff] }
 0x50f   : > { %v11181_v38 = vpop.f32.mrf.mxu0  ;;  %11322 = vmatprep.mubr.msk.bf16.mxu0 %vm12425_vm2, %v16473_v60  ;;  %v14331_v47 = vadd.f32 %v14327_v9, %v14106_v22 }
 0x510   : > { %v14318_v27 = vpop.f32.mrf.mxu1 }
 0x511   : > { %16574 = vst [vmem:[#allocation53_spill] sm:$0xff] %v14318_v27  ;;  %v14322_v32 = vpop.f32.mrf.mxu0  ;;  %v14335_v27 = vpop.eup %12033 }
 0x512   : > { %16575 = vst [vmem:[#allocation69_spill] sm:$0xff] %v14322_v32  ;;  %v11174_v35 = vpop.f32.mrf.mxu1  ;;  %16577 = vst [vmem:[#allocation71_spill] sm:$0xff] %v14335_v27  ;;  %v5329_v22 = vpack.c.bf16 %v14335_v27, %v14335_v27 }
 0x513   : > { %v11192_v28 = vpop.f32.mrf.mxu0 }
 0x514   : > { %v4535_v46 = vpop.f32.mrf.mxu1 }
 0x515   : > { %v4682_v34 = vpop.f32.mrf.mxu0  ;;  %v14324_v31 = vpop.xlane.xlu0 %4810 }
 0x516   : > { %v11175_v19 = vpop.f32.mrf.mxu1  ;;  %v4824_v34 = vsel %vm1600_vm3, %v14331_v47, -inf }
 0x517   : > { %v11193_v38 = vpop.f32.mrf.mxu0 }
 0x518   : > { %v14333_v11 = vpop.f32.mrf.mxu1 }
 0x519   : > { %16576 = vst [vmem:[#allocation70_spill] sm:$0xff] %v14333_v11  ;;  %v14337_v39 = vpop.f32.mrf.mxu0  ;;  %v6288_v35 = vpop.permute.xlu0 %6287 }
 0x51a   : > { %16578 = vst [vmem:[#allocation72_spill] sm:$0xff] %v14337_v39  ;;  %v6293_v28 = vsel %vm5379_vm4, %v6288_v35, 0  ;;  %v11186_v46 = vpop.f32.mrf.mxu1 }
 0x51b   : > { %v11204_v32 = vpop.f32.mrf.mxu0  ;;  %4825 = vmax.xlane.f32.xlu1 %v4824_v34  ;;  %11315 = vmatpush3.bf16.msra.mxu1 %v6293_v28  ;;  %v14351_v34 = vld [vmem:[%s12580_s30 + $0xf] ss:$0 sm:$0xff] }
 0x51c   : > { %v4633_v19 = vpop.f32.mrf.mxu1  ;;  %11326 = vmatprep.subr.bf16.mxu1 %v16473_v60  ;;  %v14355_v28 = vadd.f32 %v14351_v34, %v14145_v18 }
 0x51d   : > { %v5420_v38 = vpop.f32.mrf.mxu0 }
 0x51e   : > { %v11187_v11 = vpop.f32.mrf.mxu1  ;;  %11317 = vmatmul.mubr.msk.bf16.vlgmr.msra.gmra.mxu1 %vm1600_vm3, %v5329_v22  ;;  %v4827_v38 = vsel %vm1600_vm3, %v14355_v28, -inf }
 0x51f   : > { %v11205_v39 = vpop.f32.mrf.mxu0  ;;  %11328 = vmatprep.mubr.msk.bf16.mxu1 %vm12425_vm2, %v16473_v60 }
 0x520   : > { %v14348_v35 = vpop.f32.mrf.mxu1  ;;  %v4946_v39 = vsub.f32 %v14002_v13, %v14290_v55 }
 0x521   : > { %16579 = vst [vmem:[#allocation73_spill] sm:$0xff] %v14348_v35 }
 0x522   : > { %v11198_v46 = vpop.f32.mrf.mxu1  ;;  %v5030_v61 = vmul.f32 1.442695, %v4946_v39 }
 0x524   : > { %v4731_v32 = vpop.f32.mrf.mxu1  ;;  %12035 = vpow2.f32 %v5030_v61 }
 0x525   : > { %v16582_v32 = vld [vmem:[#allocation25_spill] sm:$0xff] }
 0x526   : > { %v11199_v19 = vpop.f32.mrf.mxu1 }
 0x528   : > { %v14357_v27 = vpop.f32.mrf.mxu1  ;;  %v14359_v11 = vpop.f32.mrf.mxu0 }
 0x529   : > { %16580 = vst [vmem:[#allocation74_spill] sm:$0xff] %v14357_v27  ;;  %16581 = vst [vmem:[#allocation75_spill] sm:$0xff] %v14359_v11 }
 0x52a   : > { %v11210_v22 = vpop.f32.mrf.mxu1  ;;  %v11216_v46 = vpop.f32.mrf.mxu0 }
 0x52b   : > { %4828 = vmax.xlane.f32.xlu0 %v4827_v38 }
 0x52c   : > { %6527 = vrot.lane.b32.xlu1 %v16582_v32, %s12427_s22  ;;  %v5468_v35 = vpop.f32.mrf.mxu1  ;;  %v5516_v18 = vpop.f32.mrf.mxu0 }
 0x52d   : > { %v4947_v35 = vsub.f32 %v14015_v10, %v14313_v37  ;;  %v16587_v10 = vld [vmem:[#allocation24_spill] sm:$0xff] }
 0x52e   : > { %v11211_v19 = vpop.f32.mrf.mxu1  ;;  %v11217_v41 = vpop.f32.mrf.mxu0 }
 0x52f   : > { %v5032_v18 = vmul.f32 1.442695, %v4947_v35 }
 0x530   : > { %v14367_v27 = vpop.f32.mrf.mxu1  ;;  %v14369_v11 = vpop.f32.mrf.mxu0 }
 0x531   : > { %16583 = vst [vmem:[#allocation25_spill] sm:$0xff] %v14367_v27  ;;  %16584 = vst [vmem:[#allocation76_spill] sm:$0xff] %v14369_v11  ;;  %v14377_v19 = vpop.eup %12035  ;;  %12037 = vpow2.f32 %v5032_v18 }
 0x532   : > { %v11222_v13 = vpop.f32.mrf.mxu1  ;;  %v11228_v55 = vpop.f32.mrf.mxu0 }
 0x534   : > { %v5564_v22 = vpop.f32.mrf.mxu1  ;;  %v5612_v24 = vpop.f32.mrf.mxu0 }
 0x536   : > { %v11223_v51 = vpop.f32.mrf.mxu1  ;;  %v11229_v46 = vpop.f32.mrf.mxu0 }
 0x537   : > { %v5330_v51 = vpack.c.bf16 %v14377_v19, %v14377_v19 }
 0x538   : > { %v14371_v38 = vpop.f32.mrf.mxu0 }
 0x539   : > { %16585 = vst [vmem:[#allocation77_spill] sm:$0xff] %v14371_v38 }
 0x53a   : > { %v14375_v32 = vpop.xlane.xlu1 %4813  ;;  %v11240_v39 = vpop.f32.mrf.mxu0 }
 0x53b   : > { %v14395_v39 = vld [vmem:[%s12580_s30] ss:$0 sm:$0xff] }
 0x53c   : > { %v5708_v41 = vpop.f32.mrf.mxu0 }
 0x53d   : > { %v14399_v41 = vadd.f32 %v14395_v39, %v14128_v4 }
 0x53e   : > { %v6336_v11 = vpop.permute.xlu1 %6335  ;;  %v11241_v61 = vpop.f32.mrf.mxu0 }
 0x53f   : > { %v6341_v13 = vsel %vm5379_vm4, %v6336_v11, 0  ;;  %v14401_v61 = vpop.eup %12037 }
 0x540   : > { %11321 = vmatpush3.bf16.msra.mxu0 %v6341_v13  ;;  %v14380_v24 = vpop.f32.mrf.mxu0  ;;  %16589 = vst [vmem:[#allocation79_spill] sm:$0xff] %v14401_v61 }
 0x541   : > { %16586 = vst [vmem:[#allocation78_spill] sm:$0xff] %v14380_v24  ;;  %6575 = vrot.lane.b32.xlu0 %v16587_v10, %s12427_s22  ;;  %11332 = vmatprep.subr.bf16.mxu0 %v16473_v60 }
 0x542   : > { %v11252_v37 = vpop.f32.mrf.mxu0 }
 0x543   : > { %11323 = vmatmul.mubr.msk.bf16.vlgmr.msra.gmra.mxu0 %vm1600_vm3, %v5330_v51  ;;  %v4830_v37 = vsel %vm1600_vm3, %v14399_v41, -inf }
 0x544   : > { %v5804_v55 = vpop.f32.mrf.mxu0  ;;  %11334 = vmatprep.mubr.msk.bf16.mxu0 %vm12425_vm2, %v16473_v60 }
 0x546   : > { %v11253_v11 = vpop.f32.mrf.mxu0 }
 0x547   : > { %v5331_v11 = vpack.c.bf16 %v14401_v61, %v14401_v61 }
 0x548   : > { %v14390_v22 = vpop.f32.mrf.mxu0 }
 0x549   : > { %16588 = vst [vmem:[#allocation24_spill] sm:$0xff] %v14390_v22 }
 0x54a   : > { %v14392_v46 = vpop.xlane.xlu0 %4816  ;;  %v11264_v35 = vpop.f32.mrf.mxu0 }
 0x54c   : > { %v5900_v18 = vpop.f32.mrf.mxu0 }
 0x54e   : > { %v6384_v13 = vpop.permute.xlu0 %6383  ;;  %v11265_v51 = vpop.f32.mrf.mxu0 }
 0x54f   : > { %v6389_v10 = vsel %vm5379_vm4, %v6384_v13, 0 }
 0x550   : > { %4831 = vmax.xlane.f32.xlu1 %v4830_v37  ;;  %11327 = vmatpush3.bf16.msra.mxu1 %v6389_v10  ;;  %v14406_v55 = vpop.f32.mrf.mxu0 }
 0x551   : > { %16590 = vst [vmem:[#allocation80_spill] sm:$0xff] %v14406_v55  ;;  %11338 = vmatprep.subr.bf16.mxu1 %v16473_v60  ;;  %v14419_v55 = vld [vmem:[%s12580_s30 + $0x1] ss:$0 sm:$0xff] }
 0x552   : > { %v11276_v4 = vpop.f32.mrf.mxu0  ;;  %v14423_v22 = vadd.f32 %v14419_v55, %v14162_v25 }
 0x553   : > { %11329 = vmatmul.mubr.msk.bf16.vlgmr.msra.gmra.mxu1 %vm1600_vm3, %v5331_v11  ;;  %v4948_v11 = vsub.f32 %v14033_v20, %v14294_v7  ;;  %v4949_v7 = vsub.f32 %v14070_v57, %v14320_v63 }
 0x554   : > { %v5996_v35 = vpop.f32.mrf.mxu0  ;;  %11340 = vmatprep.mubr.msk.bf16.mxu1 %vm12425_vm2, %v16473_v60 }
 0x556   : > { %v11277_v18 = vpop.f32.mrf.mxu0 }
 0x557   : > { %v4833_v18 = vsel %vm1600_vm3, %v14423_v22, -inf }
 0x558   : > { %v14414_v13 = vpop.f32.mrf.mxu1  ;;  %v14416_v51 = vpop.f32.mrf.mxu0 }
 0x559   : > { %16591 = vst [vmem:[#allocation81_spill] sm:$0xff] %v14414_v13  ;;  %16592 = vst [vmem:[#allocation82_spill] sm:$0xff] %v14416_v51 }
 0x55a   : > { %v11234_v10 = vpop.f32.mrf.mxu1  ;;  %v11288_v37 = vpop.f32.mrf.mxu0 }
 0x55b   : > { %v16594_v10 = vld [vmem:[#allocation12_spill] sm:$0xff]  ;;  %v5034_v37 = vmul.f32 1.442695, %v4948_v11 }
 0x55c   : > { %v5660_v4 = vpop.f32.mrf.mxu1  ;;  %v6092_v24 = vpop.f32.mrf.mxu0 }
 0x55d   : > { %12039 = vpow2.f32 %v5034_v37 }
 0x55e   : > { %v11235_v35 = vpop.f32.mrf.mxu1  ;;  %v11289_v38 = vpop.f32.mrf.mxu0 }
 0x560   : > { %v14429_v13 = vpop.f32.mrf.mxu1  ;;  %4834 = vmax.xlane.f32.xlu0 %v4833_v18  ;;  %v5036_v18 = vmul.f32 1.442695, %v4949_v7  ;;  %v14457_v7 = vld [vmem:[%s12580_s30 + $0x2] ss:$0 sm:$0xff] }
 0x561   : > { %16593 = vst [vmem:[#allocation83_spill] sm:$0xff] %v14429_v13  ;;  %6623 = vrot.lane.b32.xlu1 %v16594_v10, %s12427_s22 }
 0x562   : > { %v11246_v51 = vpop.f32.mrf.mxu1  ;;  %12041 = vpow2.f32 %v5036_v18 }
 0x564   : > { %v5756_v25 = vpop.f32.mrf.mxu1 }
 0x566   : > { %v11247_v4 = vpop.f32.mrf.mxu1 }
 0x568   : > { %v14433_v24 = vpop.f32.mrf.mxu1 }
 0x569   : > { %16595 = vst [vmem:[#allocation12_spill] sm:$0xff] %v14433_v24 }
 0x56a   : > { %v11258_v27 = vpop.f32.mrf.mxu1  ;;  %v14441_v10 = vpop.eup %12039 }
 0x56b   : > { %v5332_v27 = vpack.c.bf16 %v14441_v10, %v14441_v10 }
 0x56c   : > { %v5852_v20 = vpop.f32.mrf.mxu1 }
 0x56e   : > { %v11259_v38 = vpop.f32.mrf.mxu1 }
 0x56f   : > { %v14437_v35 = vpop.xlane.xlu1 %4819 }
 0x570   : > { %v14439_v13 = vpop.f32.mrf.mxu1 }
 0x571   : > { %16596 = vst [vmem:[#allocation84_spill] sm:$0xff] %v14439_v13 }
 0x572   : > { %v11270_v61 = vpop.f32.mrf.mxu1 }
 0x573   : > { %v6432_v51 = vpop.permute.xlu1 %6431 }
 0x574   : > { %v6437_v11 = vsel %vm5379_vm4, %v6432_v51, 0  ;;  %v5948_v37 = vpop.f32.mrf.mxu1  ;;  %v14465_v51 = vpop.eup %12041 }
 0x575   : > { %11333 = vmatpush3.bf16.msra.mxu0 %v6437_v11 }
 0x576   : > { %v11271_v57 = vpop.f32.mrf.mxu1  ;;  %6671 = vrot.lane.b32.xlu0 %v13237_v23, %s12427_s22  ;;  %11344 = vmatprep.subr.bf16.mxu0 %v16473_v60  ;;  %v14461_v23 = vadd.f32 %v14457_v7, %v14147_v52  ;;  %v14477_v52 = vld [vmem:[%s12580_s30 + $0x3] ss:$0 sm:$0xff] }
 0x578   : > { %v14449_v63 = vpop.f32.mrf.mxu1  ;;  %11335 = vmatmul.mubr.msk.bf16.vlgmr.msra.gmra.mxu0 %vm1600_vm3, %v5332_v27  ;;  %v4836_v57 = vsel %vm1600_vm3, %v14461_v23, -inf }
 0x579   : > { %16597 = vst [vmem:[#allocation85_spill] sm:$0xff] %v14449_v63  ;;  %11346 = vmatprep.mubr.msk.bf16.mxu0 %vm12425_vm2, %v16473_v60 }
 0x57a   : > { %v11282_v61 = vpop.f32.mrf.mxu1 }
 0x57b   : > { %v5333_v61 = vpack.c.bf16 %v14465_v51, %v14465_v51 }
 0x57c   : > { %v6044_v25 = vpop.f32.mrf.mxu1 }
 0x57e   : > { %v11283_v4 = vpop.f32.mrf.mxu1 }
 0x57f   : > { %v14454_v20 = vpop.xlane.xlu0 %4822  ;;  %v14481_v4 = vadd.f32 %v14477_v52, %v14181_v8 }
 0x580   : > { %v14463_v38 = vpop.f32.mrf.mxu1 }
 0x581   : > { %16598 = vst [vmem:[#allocation86_spill] sm:$0xff] %v14463_v38 }
 0x582   : > { %v11294_v18 = vpop.f32.mrf.mxu1 }
 0x583   : > { %v6480_v11 = vpop.permute.xlu0 %6479  ;;  %v4950_v18 = vsub.f32 %v14052_v12, %v14299_v14  ;;  %v4951_v14 = vsub.f32 %v14088_v5, %v14324_v31  ;;  %v14511_v31 = vld [vmem:[%s12580_s30 + $0x4] ss:$0 sm:$0xff] }
 0x584   : > { %v6140_v37 = vpop.f32.mrf.mxu1  ;;  %v6485_v27 = vsel %vm5379_vm4, %v6480_v11, 0  ;;  %v4839_v11 = vsel %vm1600_vm3, %v14481_v4, -inf }
 0x585   : > { %4837 = vmax.xlane.f32.xlu1 %v4836_v57  ;;  %11339 = vmatpush3.bf16.msra.mxu1 %v6485_v27  ;;  %v16599_v37 = vld [vmem:[#allocation45_spill] sm:$0xff]  ;;  %v5038_v27 = vmul.f32 1.442695, %v4950_v18  ;;  %v5040_v24 = vmul.f32 1.442695, %v4951_v14 }
 0x586   : > { %v11295_v25 = vpop.f32.mrf.mxu1  ;;  %11350 = vmatprep.subr.bf16.mxu1 %v16473_v60 }
 0x587   : > { %12043 = vpow2.f32 %v5038_v27 }
 0x588   : > { %11341 = vmatmul.mubr.msk.bf16.vlgmr.msra.gmra.mxu1 %vm1600_vm3, %v5333_v61  ;;  %12045 = vpow2.f32 %v5040_v24 }
 0x589   : > { %11352 = vmatprep.mubr.msk.bf16.mxu1 %vm12425_vm2, %v16473_v60 }
 0x595   : > { %4840 = vmax.xlane.f32.xlu0 %v4839_v11 }
 0x596   : > { %6719 = vrot.lane.b32.xlu1 %v16599_v37, %s12427_s22  ;;  %v14497_v37 = vpop.eup %12043 }
 0x597   : > { %v14517_v24 = vpop.eup %12045 }
 0x599   : > { %v14489_v57 = vpop.f32.mrf.mxu0 }
 0x59a   : > { %16600 = vst [vmem:[#allocation45_spill] sm:$0xff] %v14489_v57  ;;  %v14491_v61 = vpop.f32.mrf.mxu1 }
 0x59b   : > { %16601 = vst [vmem:[#allocation87_spill] sm:$0xff] %v14491_v61  ;;  %v11300_v25 = vpop.f32.mrf.mxu0 }
 0x59c   : > { %v11306_v38 = vpop.f32.mrf.mxu1 }
 0x59d   : > { %v6188_v8 = vpop.f32.mrf.mxu0  ;;  %v5334_v38 = vpack.c.bf16 %v14497_v37, %v14497_v37 }
 0x59e   : > { %v6236_v63 = vpop.f32.mrf.mxu1  ;;  %v4952_v8 = vsub.f32 %v14174_v49, %v14375_v32 }
 0x59f   : > { %v11301_v13 = vpop.f32.mrf.mxu0 }
 0x5a0   : > { %v11307_v12 = vpop.f32.mrf.mxu1  ;;  %v14515_v13 = vadd.f32 %v14511_v31, %v14164_v48  ;;  %v14529_v48 = vld [vmem:[%s12580_s30 + $0x5] ss:$0 sm:$0xff]  ;;  %v5042_v14 = vmul.f32 1.442695, %v4952_v8 }
 0x5a1   : > { %v14533_v25 = vadd.f32 %v14529_v48, %v14197_v53  ;;  %v4953_v53 = vsub.f32 %v14208_v43, %v14392_v46 }
 0x5a2   : > { %v4842_v27 = vsel %vm1600_vm3, %v14515_v13, -inf  ;;  %12047 = vpow2.f32 %v5042_v14 }
 0x5a3   : > { %v4845_v12 = vsel %vm1600_vm3, %v14533_v25, -inf  ;;  %v5044_v49 = vmul.f32 1.442695, %v4953_v53 }
 0x5a4   : > { %v14495_v11 = vpop.xlane.xlu1 %4825 }
 0x5a5   : > { %12049 = vpow2.f32 %v5044_v49 }
 0x5a8   : > { %v6528_v18 = vpop.permute.xlu1 %6527 }
 0x5a9   : > { %v6533_v57 = vsel %vm5379_vm4, %v6528_v18, 0 }
 0x5aa   : > { %11345 = vmatpush3.bf16.msra.mxu0 %v6533_v57  ;;  %v5335_v57 = vpack.c.bf16 %v14517_v24, %v14517_v24 }
 0x5ab   : > { %6767 = vrot.lane.b32.xlu0 %v13330_v45, %s12427_s22  ;;  %11356 = vmatprep.subr.bf16.mxu0 %v16473_v60 }
 0x5ad   : > { %11347 = vmatmul.mubr.msk.bf16.vlgmr.msra.gmra.mxu0 %vm1600_vm3, %v5334_v38 }
 0x5ae   : > { %11358 = vmatprep.mubr.msk.bf16.mxu0 %vm12425_vm2, %v16473_v60 }
 0x5af   : > { %v14547_v32 = vpop.eup %12047 }
 0x5b0   : > { %v5336_v8 = vpack.c.bf16 %v14547_v32, %v14547_v32 }
 0x5b4   : > { %v14508_v5 = vpop.xlane.xlu0 %4828 }
 0x5b8   : > { %v6576_v63 = vpop.permute.xlu0 %6575 }
 0x5b9   : > { %v6581_v45 = vsel %vm5379_vm4, %v6576_v63, 0 }
 0x5ba   : > { %4843 = vmax.xlane.f32.xlu1 %v4842_v27  ;;  %11351 = vmatpush3.bf16.msra.mxu1 %v6581_v45 }
 0x5bb   : > { %11362 = vmatprep.subr.bf16.mxu1 %v16473_v60 }
 0x5bd   : > { %11353 = vmatmul.mubr.msk.bf16.vlgmr.msra.gmra.mxu1 %vm1600_vm3, %v5335_v57 }
 0x5be   : > { %11364 = vmatprep.mubr.msk.bf16.mxu1 %vm12425_vm2, %v16473_v60 }
 0x5ca   : > { %4846 = vmax.xlane.f32.xlu0 %v4845_v12 }
 0x5cb   : > { %6815 = vrot.lane.b32.xlu1 %v13235_v33, %s12427_s22 }
 0x5ce   : > { %v14541_v18 = vpop.f32.mrf.mxu0 }
 0x5cf   : > { %16602 = vst [vmem:[#allocation88_spill] sm:$0xff] %v14541_v18 }
 0x5d0   : > { %v11312_v38 = vpop.f32.mrf.mxu0 }
 0x5d2   : > { %v6284_v63 = vpop.f32.mrf.mxu0 }
 0x5d3   : > { %v14563_v63 = vld [vmem:[%s12580_s30 + $0x6] ss:$0 sm:$0xff] }
 0x5d4   : > { %v11313_v45 = vpop.f32.mrf.mxu0 }
 0x5d5   : > { %v14567_v45 = vadd.f32 %v14563_v63, %v14183_v44  ;;  %v14581_v44 = vld [vmem:[%s12580_s30 + $0x7] ss:$0 sm:$0xff] }
 0x5d9   : > { %v14545_v27 = vpop.xlane.xlu1 %4831 }
 0x5dd   : > { %v6624_v57 = vpop.permute.xlu1 %6623 }
 0x5de   : > { %v6629_v12 = vsel %vm5379_vm4, %v6624_v57, 0  ;;  %v14550_v33 = vpop.f32.mrf.mxu1  ;;  %v4848_v57 = vsel %vm1600_vm3, %v14567_v45, -inf }
 0x5df   : > { %16603 = vst [vmem:[#allocation89_spill] sm:$0xff] %v14550_v33  ;;  %11357 = vmatpush3.bf16.msra.mxu0 %v6629_v12 }
 0x5e0   : > { %6863 = vrot.lane.b32.xlu0 %v13396_v29, %s12427_s22  ;;  %v11318_v43 = vpop.f32.mrf.mxu1  ;;  %11368 = vmatprep.subr.bf16.mxu0 %v16473_v60  ;;  %v14569_v29 = vpop.eup %12049 }
 0x5e1   : > { %v5337_v12 = vpack.c.bf16 %v14569_v29, %v14569_v29  ;;  %v4954_v43 = vsub.f32 %v14263_v6, %v14437_v35 }
 0x5e2   : > { %v6332_v46 = vpop.f32.mrf.mxu1  ;;  %11359 = vmatmul.mubr.msk.bf16.vlgmr.msra.gmra.mxu0 %vm1600_vm3, %v5336_v8  ;;  %v14585_v8 = vadd.f32 %v14581_v44, %v14215_v15  ;;  %v4955_v15 = vsub.f32 %v14277_v54, %v14454_v20 }
 0x5e3   : > { %11370 = vmatprep.mubr.msk.bf16.mxu0 %vm12425_vm2, %v16473_v60 }
 0x5e4   : > { %v11319_v14 = vpop.f32.mrf.mxu1  ;;  %v4851_v46 = vsel %vm1600_vm3, %v14585_v8, -inf  ;;  %v5048_v6 = vmul.f32 1.442695, %v4955_v15 }
 0x5e5   : > { %v5046_v14 = vmul.f32 1.442695, %v4954_v43 }
 0x5e7   : > { %12051 = vpow2.f32 %v5046_v14 }
 0x5e8   : > { %12053 = vpow2.f32 %v5048_v6 }
 0x5e9   : > { %v14560_v38 = vpop.xlane.xlu0 %4834 }
 0x5ed   : > { %v6672_v53 = vpop.permute.xlu0 %6671 }
 0x5ee   : > { %v6677_v49 = vsel %vm5379_vm4, %v6672_v53, 0 }
 0x5ef   : > { %4849 = vmax.xlane.f32.xlu1 %v4848_v57  ;;  %11363 = vmatpush3.bf16.msra.mxu1 %v6677_v49 }
 0x5f0   : > { %11374 = vmatprep.subr.bf16.mxu1 %v16473_v60 }
 0x5f2   : > { %11365 = vmatmul.mubr.msk.bf16.vlgmr.msra.gmra.mxu1 %vm1600_vm3, %v5337_v12 }
 0x5f3   : > { %11376 = vmatprep.mubr.msk.bf16.mxu1 %vm12425_vm2, %v16473_v60 }
 0x5f4   : > { %v14599_v35 = vpop.eup %12051 }
 0x5f5   : > { %v5338_v43 = vpack.c.bf16 %v14599_v35, %v14599_v35 }
 0x5ff   : > { %4852 = vmax.xlane.f32.xlu0 %v4851_v46 }
 0x600   : > { %6911 = vrot.lane.b32.xlu1 %v13146_v56, %s12427_s22 }
 0x603   : > { %v14593_v53 = vpop.f32.mrf.mxu0 }
 0x604   : > { %16604 = vst [vmem:[#allocation90_spill] sm:$0xff] %v14593_v53 }
 0x605   : > { %v11324_v49 = vpop.f32.mrf.mxu0 }
 0x607   : > { %v6380_v57 = vpop.f32.mrf.mxu0 }
 0x609   : > { %v11325_v12 = vpop.f32.mrf.mxu0 }
 0x60e   : > { %v14597_v33 = vpop.xlane.xlu1 %4837 }
 0x612   : > { %v6720_v46 = vpop.permute.xlu1 %6719 }
 0x613   : > { %v6725_v18 = vsel %vm5379_vm4, %v6720_v46, 0  ;;  %v14602_v56 = vpop.f32.mrf.mxu1 }
 0x614   : > { %16605 = vst [vmem:[#allocation91_spill] sm:$0xff] %v14602_v56  ;;  %11369 = vmatpush3.bf16.msra.mxu0 %v6725_v18  ;;  %v14615_v18 = vld [vmem:[%s12580_s30 + $0x8] ss:$0 sm:$0xff] }
 0x615   : > { %6959 = vrot.lane.b32.xlu0 %v13140_v1, %s12427_s22  ;;  %v11330_v54 = vpop.f32.mrf.mxu1  ;;  %11380 = vmatprep.subr.bf16.mxu0 %v16473_v60  ;;  %v14619_v57 = vadd.f32 %v14615_v18, %v14199_v26  ;;  %v14621_v1 = vpop.eup %12053  ;;  %v14633_v26 = vld [vmem:[%s12580_s30 + $0x9] ss:$0 sm:$0xff] }
 0x616   : > { %16606 = vst [vmem:[#allocation92_spill] sm:$0xff] %v14621_v1  ;;  %v5339_v46 = vpack.c.bf16 %v14621_v1, %v14621_v1  ;;  %v4956_v54 = vsub.f32 %v14331_v47, %v14495_v11 }
 0x617   : > { %v6428_v20 = vpop.f32.mrf.mxu1  ;;  %11371 = vmatmul.mubr.msk.bf16.vlgmr.msra.gmra.mxu0 %vm1600_vm3, %v5338_v43  ;;  %v4854_v6 = vsel %vm1600_vm3, %v14619_v57, -inf  ;;  %v14637_v43 = vadd.f32 %v14633_v26, %v14228_v21  ;;  %v4957_v21 = vsub.f32 %v14355_v28, %v14508_v5 }
 0x618   : > { %11382 = vmatprep.mubr.msk.bf16.mxu0 %vm12425_vm2, %v16473_v60 }
 0x619   : > { %v11331_v14 = vpop.f32.mrf.mxu1  ;;  %v4857_v20 = vsel %vm1600_vm3, %v14637_v43, -inf  ;;  %v5052_v47 = vmul.f32 1.442695, %v4957_v21 }
 0x61a   : > { %v5050_v14 = vmul.f32 1.442695, %v4956_v54 }
 0x61c   : > { %12055 = vpow2.f32 %v5050_v14  ;;  %v16609_v14 = vld [vmem:[#allocation34_spill] sm:$0xff] }
 0x61d   : > { %12057 = vpow2.f32 %v5052_v47 }
 0x61e   : > { %v14612_v49 = vpop.xlane.xlu0 %4840 }
 0x622   : > { %v6768_v12 = vpop.permute.xlu0 %6767 }
 0x623   : > { %v6773_v15 = vsel %vm5379_vm4, %v6768_v12, 0 }
 0x624   : > { %4855 = vmax.xlane.f32.xlu1 %v4854_v6  ;;  %11375 = vmatpush3.bf16.msra.mxu1 %v6773_v15 }
 0x625   : > { %11386 = vmatprep.subr.bf16.mxu1 %v16473_v60 }
 0x627   : > { %11377 = vmatmul.mubr.msk.bf16.vlgmr.msra.gmra.mxu1 %vm1600_vm3, %v5339_v46 }
 0x628   : > { %11388 = vmatprep.mubr.msk.bf16.mxu1 %vm12425_vm2, %v16473_v60 }
 0x629   : > { %v14651_v11 = vpop.eup %12055 }
 0x62a   : > { %v5340_v54 = vpack.c.bf16 %v14651_v11, %v14651_v11  ;;  %v14673_v21 = vpop.eup %12057 }
 0x62b   : > { %16610 = vst [vmem:[#allocation34_spill] sm:$0xff] %v14673_v21 }
 0x634   : > { %4858 = vmax.xlane.f32.xlu0 %v4857_v20 }
 0x635   : > { %7007 = vrot.lane.b32.xlu1 %v13069_v36, %s12427_s22 }
 0x638   : > { %v14645_v12 = vpop.f32.mrf.mxu0 }
 0x639   : > { %16607 = vst [vmem:[#allocation93_spill] sm:$0xff] %v14645_v12 }
 0x63a   : > { %v11336_v15 = vpop.f32.mrf.mxu0 }
 0x63c   : > { %v6476_v6 = vpop.f32.mrf.mxu0 }
 0x63e   : > { %v11337_v46 = vpop.f32.mrf.mxu0 }
 0x643   : > { %v14649_v56 = vpop.xlane.xlu1 %4843 }
 0x647   : > { %v6816_v20 = vpop.permute.xlu1 %6815 }
 0x648   : > { %v6821_v53 = vsel %vm5379_vm4, %v6816_v20, 0  ;;  %v14654_v36 = vpop.f32.mrf.mxu1 }
 0x649   : > { %16608 = vst [vmem:[#allocation94_spill] sm:$0xff] %v14654_v36  ;;  %11381 = vmatpush3.bf16.msra.mxu0 %v6821_v53  ;;  %v14667_v53 = vld [vmem:[%s12580_s30 + $0xa] ss:$0 sm:$0xff] }
 0x64a   : > { %7055 = vrot.lane.b32.xlu0 %v16609_v14, %s12427_s22  ;;  %v11342_v28 = vpop.f32.mrf.mxu1  ;;  %11392 = vmatprep.subr.bf16.mxu0 %v16473_v60  ;;  %v14671_v46 = vadd.f32 %v14667_v53, %v14219_v50  ;;  %v5341_v14 = vpack.c.bf16 %v14673_v21, %v14673_v21  ;;  %v14685_v50 = vld [vmem:[%s12580_s30 + $0xb] ss:$0 sm:$0xff] }
 0x64b   : > { %v14689_v28 = vadd.f32 %v14685_v50, %v14232_v42  ;;  %v4959_v42 = vsub.f32 %v14423_v22, %v14560_v38 }
 0x64c   : > { %v6524_v5 = vpop.f32.mrf.mxu1  ;;  %11383 = vmatmul.mubr.msk.bf16.vlgmr.msra.gmra.mxu0 %vm1600_vm3, %v5340_v54  ;;  %v4860_v54 = vsel %vm1600_vm3, %v14671_v46, -inf }
 0x64d   : > { %11394 = vmatprep.mubr.msk.bf16.mxu0 %vm12425_vm2, %v16473_v60  ;;  %v4958_v5 = vsub.f32 %v14399_v41, %v14545_v27  ;;  %v5056_v41 = vmul.f32 1.442695, %v4959_v42 }
 0x64e   : > { %v11343_v15 = vpop.f32.mrf.mxu1 }
 0x64f   : > { %v4863_v15 = vsel %vm1600_vm3, %v14689_v28, -inf }
 0x653   : > { %v14664_v6 = vpop.xlane.xlu0 %4846 }
 0x657   : > { %v6864_v47 = vpop.permute.xlu0 %6863 }
 0x658   : > { %v6869_v20 = vsel %vm5379_vm4, %v6864_v47, 0  ;;  %v16611_v47 = vld [vmem:[#allocation46_spill] sm:$0xff] }
 0x659   : > { %4861 = vmax.xlane.f32.xlu1 %v4860_v54  ;;  %11387 = vmatpush3.bf16.msra.mxu1 %v6869_v20  ;;  %v5054_v20 = vmul.f32 1.442695, %v4958_v5 }
 0x65a   : > { %11398 = vmatprep.subr.bf16.mxu1 %v16473_v60 }
 0x65b   : > { %12059 = vpow2.f32 %v5054_v20 }
 0x65c   : > { %11389 = vmatmul.mubr.msk.bf16.vlgmr.msra.gmra.mxu1 %vm1600_vm3, %v5341_v14  ;;  %12061 = vpow2.f32 %v5056_v41  ;;  %v4960_v41 = vsub.f32 %v14461_v23, %v14597_v33 }
 0x65d   : > { %11400 = vmatprep.mubr.msk.bf16.mxu1 %vm12425_vm2, %v16473_v60 }
 0x668   : > { %v14703_v27 = vpop.eup %12059 }
 0x669   : > { %4864 = vmax.xlane.f32.xlu0 %v4863_v15  ;;  %v5342_v5 = vpack.c.bf16 %v14703_v27, %v14703_v27 }
 0x66a   : > { %7103 = vrot.lane.b32.xlu1 %v16611_v47, %s12427_s22  ;;  %v14722_v47 = vpop.eup %12061 }
 0x66b   : > { %v5343_v42 = vpack.c.bf16 %v14722_v47, %v14722_v47 }
 0x66d   : > { %v14697_v54 = vpop.f32.mrf.mxu0 }
 0x66e   : > { %16612 = vst [vmem:[#allocation46_spill] sm:$0xff] %v14697_v54 }
 0x66f   : > { %v11348_v14 = vpop.f32.mrf.mxu0 }
 0x671   : > { %v6572_v36 = vpop.f32.mrf.mxu0 }
 0x673   : > { %v11349_v12 = vpop.f32.mrf.mxu0 }
 0x678   : > { %v14701_v61 = vpop.xlane.xlu1 %4849 }
 0x67c   : > { %v6912_v21 = vpop.permute.xlu1 %6911 }
 0x67d   : > { %v6917_v15 = vsel %vm5379_vm4, %v6912_v21, 0  ;;  %v14706_v1 = vpop.f32.mrf.mxu1  ;;  %v14720_v21 = vadd.f32 %v14259_v0, %v14230_v62  ;;  %v14734_v62 = vld [vmem:[%s12580_s30 + $0xd] ss:$0 sm:$0xff] }
 0x67e   : > { %16613 = vst [vmem:[#allocation95_spill] sm:$0xff] %v14706_v1  ;;  %11393 = vmatpush3.bf16.msra.mxu0 %v6917_v15  ;;  %v14738_v0 = vadd.f32 %v14734_v62, %v14246_v40  ;;  %v4961_v40 = vsub.f32 %v14481_v4, %v14612_v49 }
 0x67f   : > { %7151 = vrot.lane.b32.xlu0 %v13344_v58, %s12427_s22  ;;  %v11354_v12 = vpop.f32.mrf.mxu1  ;;  %11404 = vmatprep.subr.bf16.mxu0 %v16473_v60  ;;  %v4866_v14 = vsel %vm1600_vm3, %v14720_v21, -inf }
 0x680   : > { %v4869_v15 = vsel %vm1600_vm3, %v14738_v0, -inf  ;;  %v5058_v12 = vmul.f32 1.442695, %v4960_v41  ;;  %v5060_v23 = vmul.f32 1.442695, %v4961_v40 }
 0x681   : > { %v6620_v22 = vpop.f32.mrf.mxu1  ;;  %11395 = vmatmul.mubr.msk.bf16.vlgmr.msra.gmra.mxu0 %vm1600_vm3, %v5342_v5  ;;  %v16614_v5 = vld [vmem:[#allocation33_spill] sm:$0xff] }
 0x682   : > { %11406 = vmatprep.mubr.msk.bf16.mxu0 %vm12425_vm2, %v16473_v60  ;;  %12063 = vpow2.f32 %v5058_v12 }
 0x683   : > { %v11355_v38 = vpop.f32.mrf.mxu1  ;;  %12065 = vpow2.f32 %v5060_v23 }
 0x688   : > { %v14716_v36 = vpop.xlane.xlu0 %4852 }
 0x68c   : > { %v6960_v58 = vpop.permute.xlu0 %6959 }
 0x68d   : > { %v6965_v20 = vsel %vm5379_vm4, %v6960_v58, 0 }
 0x68e   : > { %4867 = vmax.xlane.f32.xlu1 %v4866_v14  ;;  %11399 = vmatpush3.bf16.msra.mxu1 %v6965_v20 }
 0x68f   : > { %11410 = vmatprep.subr.bf16.mxu1 %v16473_v60  ;;  %v14752_v33 = vpop.eup %12063 }
 0x690   : > { %v5344_v41 = vpack.c.bf16 %v14752_v33, %v14752_v33 }
 0x691   : > { %11401 = vmatmul.mubr.msk.bf16.vlgmr.msra.gmra.mxu1 %vm1600_vm3, %v5343_v42 }
 0x692   : > { %11412 = vmatprep.mubr.msk.bf16.mxu1 %vm12425_vm2, %v16473_v60 }
 0x69e   : > { %4870 = vmax.xlane.f32.xlu0 %v4869_v15 }
 0x69f   : > { %7199 = vrot.lane.b32.xlu1 %v16614_v5, %s12427_s22 }
 0x6a2   : > { %v14746_v22 = vpop.f32.mrf.mxu0 }
 0x6a3   : > { %16615 = vst [vmem:[#allocation33_spill] sm:$0xff] %v14746_v22 }
 0x6a4   : > { %v11360_v38 = vpop.f32.mrf.mxu0 }
 0x6a5   : > { %v14769_v38 = vadd.f32 %v14327_v9, %v14234_v59  ;;  %v14784_v59 = vadd.f32 %v14351_v34, %v14256_v17  ;;  %v4962_v9 = vsub.f32 %v14515_v13, %v14649_v56  ;;  %v4963_v17 = vsub.f32 %v14533_v25, %v14664_v6 }
 0x6a6   : > { %v6668_v58 = vpop.f32.mrf.mxu0 }
 0x6a7   : > { %v14771_v58 = vpop.eup %12065  ;;  %v4872_v40 = vsel %vm1600_vm3, %v14769_v38, -inf  ;;  %v5064_v13 = vmul.f32 1.442695, %v4963_v17  ;;  %v4964_v17 = vsub.f32 %v14567_v45, %v14701_v61 }
 0x6a8   : > { %v11361_v20 = vpop.f32.mrf.mxu0  ;;  %v5345_v23 = vpack.c.bf16 %v14771_v58, %v14771_v58 }
 0x6ad   : > { %v14750_v14 = vpop.xlane.xlu1 %4855 }
 0x6b1   : > { %v7008_v42 = vpop.permute.xlu1 %7007 }
 0x6b2   : > { %v7013_v15 = vsel %vm5379_vm4, %v7008_v42, 0  ;;  %v14755_v1 = vpop.f32.mrf.mxu1  ;;  %v4875_v42 = vsel %vm1600_vm3, %v14784_v59, -inf }
 0x6b3   : > { %16616 = vst [vmem:[#allocation96_spill] sm:$0xff] %v14755_v1  ;;  %11405 = vmatpush3.bf16.msra.mxu0 %v7013_v15  ;;  %v5062_v15 = vmul.f32 1.442695, %v4962_v9 }
 0x6b4   : > { %7247 = vrot.lane.b32.xlu0 %v13402_v30, %s12427_s22  ;;  %v11366_v5 = vpop.f32.mrf.mxu1  ;;  %11416 = vmatprep.subr.bf16.mxu0 %v16473_v60 }
 0x6b5   : > { %12067 = vpow2.f32 %v5062_v15 }
 0x6b6   : > { %v6716_v4 = vpop.f32.mrf.mxu1  ;;  %11407 = vmatmul.mubr.msk.bf16.vlgmr.msra.gmra.mxu0 %vm1600_vm3, %v5344_v41  ;;  %12069 = vpow2.f32 %v5064_v13 }
 0x6b7   : > { %11418 = vmatprep.mubr.msk.bf16.mxu0 %vm12425_vm2, %v16473_v60 }
 0x6b8   : > { %v11367_v49 = vpop.f32.mrf.mxu1 }
 0x6bd   : > { %v14765_v12 = vpop.xlane.xlu0 %4858 }
 0x6c1   : > { %v7056_v20 = vpop.permute.xlu0 %7055 }
 0x6c2   : > { %v7061_v30 = vsel %vm5379_vm4, %v7056_v20, 0  ;;  %v14798_v56 = vpop.eup %12067 }
 0x6c3   : > { %4873 = vmax.xlane.f32.xlu1 %v4872_v40  ;;  %11411 = vmatpush3.bf16.msra.mxu1 %v7061_v30  ;;  %v14817_v15 = vpop.eup %12069 }
 0x6c4   : > { %11422 = vmatprep.subr.bf16.mxu1 %v16473_v60 }
 0x6c6   : > { %11413 = vmatmul.mubr.msk.bf16.vlgmr.msra.gmra.mxu1 %vm1600_vm3, %v5345_v23 }
 0x6c7   : > { %11424 = vmatprep.mubr.msk.bf16.mxu1 %vm12425_vm2, %v16473_v60 }
 0x6d3   : > { %4876 = vmax.xlane.f32.xlu0 %v4875_v42  ;;  %v14815_v42 = vadd.f32 %v14395_v39, %v14248_v16  ;;  %v16619_v16 = vld [vmem:[#allocation23_spill] sm:$0xff] }
 0x6d4   : > { %7295 = vrot.lane.b32.xlu1 %v13163_v3, %s12427_s22  ;;  %v5346_v3 = vpack.c.bf16 %v14798_v56, %v14798_v56  ;;  %v14830_v39 = vadd.f32 %v14419_v55, %v16619_v16  ;;  %v4965_v55 = vsub.f32 %v14585_v8, %v14716_v36 }
 0x6d6   : > { %v4881_v13 = vsel %vm1600_vm3, %v14830_v39, -inf  ;;  %v5068_v61 = vmul.f32 1.442695, %v4965_v55 }
 0x6d7   : > { %v14792_v41 = vpop.f32.mrf.mxu0 }
 0x6d8   : > { %16617 = vst [vmem:[#allocation97_spill] sm:$0xff] %v14792_v41 }
 0x6d9   : > { %v11372_v5 = vpop.f32.mrf.mxu0 }
 0x6db   : > { %v6764_v4 = vpop.f32.mrf.mxu0 }
 0x6dc   : > { %v4878_v4 = vsel %vm1600_vm3, %v14815_v42, -inf }
 0x6dd   : > { %v11373_v49 = vpop.f32.mrf.mxu0 }
 0x6de   : > { %v5347_v49 = vpack.c.bf16 %v14817_v15, %v14817_v15 }
 0x6e2   : > { %v14796_v34 = vpop.xlane.xlu1 %4861 }
 0x6e6   : > { %v7104_v20 = vpop.permute.xlu1 %7103 }
 0x6e7   : > { %v7109_v30 = vsel %vm5379_vm4, %v7104_v20, 0  ;;  %v14801_v40 = vpop.f32.mrf.mxu1  ;;  %v16620_v20 = vld [vmem:[#allocation13_spill] sm:$0xff] }
 0x6e8   : > { %16618 = vst [vmem:[#allocation98_spill] sm:$0xff] %v14801_v40  ;;  %11417 = vmatpush3.bf16.msra.mxu0 %v7109_v30  ;;  %v5066_v30 = vmul.f32 1.442695, %v4964_v17  ;;  %v16623_v17 = vld [vmem:[#allocation36_spill] sm:$0xff] }
 0x6e9   : > { %7343 = vrot.lane.b32.xlu0 %v13161_v2, %s12427_s22  ;;  %v11378_v23 = vpop.f32.mrf.mxu1  ;;  %11428 = vmatprep.subr.bf16.mxu0 %v16473_v60 }
 0x6ea   : > { %12071 = vpow2.f32 %v5066_v30  ;;  %v16624_v30 = vld [vmem:[#allocation64_spill] sm:$0xff] }
 0x6eb   : > { %v6812_v25 = vpop.f32.mrf.mxu1  ;;  %11419 = vmatmul.mubr.msk.bf16.vlgmr.msra.gmra.mxu0 %vm1600_vm3, %v5346_v3  ;;  %12073 = vpow2.f32 %v5068_v61 }
 0x6ec   : > { %11430 = vmatprep.mubr.msk.bf16.mxu0 %vm12425_vm2, %v16473_v60 }
 0x6ed   : > { %v11379_v6 = vpop.f32.mrf.mxu1 }
 0x6f2   : > { %v14811_v9 = vpop.xlane.xlu0 %4864 }
 0x6f6   : > { %v7152_v5 = vpop.permute.xlu0 %7151 }
 0x6f7   : > { %v7157_v2 = vsel %vm5379_vm4, %v7152_v5, 0  ;;  %v14844_v45 = vpop.eup %12071 }
 0x6f8   : > { %4879 = vmax.xlane.f32.xlu1 %v4878_v4  ;;  %11423 = vmatpush3.bf16.msra.mxu1 %v7157_v2  ;;  %v5348_v16 = vpack.c.bf16 %v14844_v45, %v14844_v45 }
 0x6f9   : > { %11434 = vmatprep.subr.bf16.mxu1 %v16473_v60 }
 0x6fb   : > { %11425 = vmatmul.mubr.msk.bf16.vlgmr.msra.gmra.mxu1 %vm1600_vm3, %v5347_v49 }
 0x6fc   : > { %11436 = vmatprep.mubr.msk.bf16.mxu1 %vm12425_vm2, %v16473_v60 }
 0x708   : > { %4882 = vmax.xlane.f32.xlu0 %v4881_v13 }
 0x709   : > { %7391 = vrot.lane.b32.xlu1 %v16620_v20, %s12427_s22 }
 0x70c   : > { %v14838_v3 = vpop.f32.mrf.mxu0 }
 0x70d   : > { %16621 = vst [vmem:[#allocation23_spill] sm:$0xff] %v14838_v3 }
 0x70e   : > { %v11384_v23 = vpop.f32.mrf.mxu0 }
 0x70f   : > { %v14861_v23 = vadd.f32 %v14457_v7, %v16624_v30  ;;  %v16625_v7 = vld [vmem:[#allocation20_spill] sm:$0xff] }
 0x710   : > { %v6860_v25 = vpop.f32.mrf.mxu0 }
 0x711   : > { %v14863_v25 = vpop.eup %12073  ;;  %v4884_v61 = vsel %vm1600_vm3, %v14861_v23, -inf }
 0x712   : > { %v11385_v6 = vpop.f32.mrf.mxu0 }
 0x717   : > { %v14842_v5 = vpop.xlane.xlu1 %4867 }
 0x71b   : > { %v7200_v2 = vpop.permute.xlu1 %7199 }
 0x71c   : > { %v7205_v4 = vsel %vm5379_vm4, %v7200_v2, 0  ;;  %v14847_v49 = vpop.f32.mrf.mxu1  ;;  %v5349_v2 = vpack.c.bf16 %v14863_v25, %v14863_v25 }
 0x71d   : > { %16622 = vst [vmem:[#allocation13_spill] sm:$0xff] %v14847_v49  ;;  %11429 = vmatpush3.bf16.msra.mxu0 %v7205_v4  ;;  %v14876_v4 = vadd.f32 %v14477_v52, %v16625_v7  ;;  %v4967_v52 = vsub.f32 %v14637_v43, %v14765_v12 }
 0x71e   : > { %7439 = vrot.lane.b32.xlu0 %v16623_v17, %s12427_s22  ;;  %v11390_v13 = vpop.f32.mrf.mxu1  ;;  %11440 = vmatprep.subr.bf16.mxu0 %v16473_v60 }
 0x71f   : > { %v4887_v17 = vsel %vm1600_vm3, %v14876_v4, -inf  ;;  %v16626_v13 = vld [vmem:[#allocation47_spill] sm:$0xff] }
 0x720   : > { %v6908_v8 = vpop.f32.mrf.mxu1  ;;  %11431 = vmatmul.mubr.msk.bf16.vlgmr.msra.gmra.mxu0 %vm1600_vm3, %v5348_v16  ;;  %v4966_v16 = vsub.f32 %v14619_v57, %v14750_v14  ;;  %v5072_v57 = vmul.f32 1.442695, %v4967_v52 }
 0x721   : > { %11442 = vmatprep.mubr.msk.bf16.mxu0 %vm12425_vm2, %v16473_v60 }
 0x722   : > { %v11391_v36 = vpop.f32.mrf.mxu1  ;;  %v5070_v8 = vmul.f32 1.442695, %v4966_v16 }
 0x724   : > { %12075 = vpow2.f32 %v5070_v8 }
 0x725   : > { %12077 = vpow2.f32 %v5072_v57 }
 0x727   : > { %v14857_v20 = vpop.xlane.xlu0 %4870 }
 0x72b   : > { %v7248_v6 = vpop.permute.xlu0 %7247 }
 0x72c   : > { %v7253_v55 = vsel %vm5379_vm4, %v7248_v6, 0 }
 0x72d   : > { %4885 = vmax.xlane.f32.xlu1 %v4884_v61  ;;  %11435 = vmatpush3.bf16.msra.mxu1 %v7253_v55 }
 0x72e   : > { %11446 = vmatprep.subr.bf16.mxu1 %v16473_v60 }
 0x730   : > { %11437 = vmatmul.mubr.msk.bf16.vlgmr.msra.gmra.mxu1 %vm1600_vm3, %v5349_v2 }
 0x731   : > { %11448 = vmatprep.mubr.msk.bf16.mxu1 %vm12425_vm2, %v16473_v60  ;;  %v14890_v14 = vpop.eup %12075 }
 0x732   : > { %v5350_v16 = vpack.c.bf16 %v14890_v14, %v14890_v14  ;;  %v14909_v52 = vpop.eup %12077 }
 0x73d   : > { %4888 = vmax.xlane.f32.xlu0 %v4887_v17 }
 0x73e   : > { %7487 = vrot.lane.b32.xlu1 %v16626_v13, %s12427_s22  ;;  %v16627_v13 = vld [vmem:[#allocation48_spill] sm:$0xff] }
 0x741   : > { %v14884_v36 = vpop.f32.mrf.mxu0 }
 0x743   : > { %v11396_v30 = vpop.f32.mrf.mxu0 }
 0x745   : > { %v6956_v6 = vpop.f32.mrf.mxu0 }
 0x746   : > { %v16628_v6 = vld [vmem:[#allocation32_spill] sm:$0xff] }
 0x747   : > { %v11397_v55 = vpop.f32.mrf.mxu0 }
 0x748   : > { %v14907_v55 = vadd.f32 %v14511_v31, %v16628_v6  ;;  %v16629_v31 = vld [vmem:[#allocation43_spill] sm:$0xff] }
 0x74c   : > { %v14888_v61 = vpop.xlane.xlu1 %4873 }
 0x750   : > { %v7296_v2 = vpop.permute.xlu1 %7295 }
 0x751   : > { %v7301_v7 = vsel %vm5379_vm4, %v7296_v2, 0  ;;  %v14893_v17 = vpop.f32.mrf.mxu1 }
 0x752   : > { %11441 = vmatpush3.bf16.msra.mxu0 %v7301_v7  ;;  %v4890_v7 = vsel %vm1600_vm3, %v14907_v55, -inf }
 0x753   : > { %7535 = vrot.lane.b32.xlu0 %v16627_v13, %s12427_s22  ;;  %v11402_v8 = vpop.f32.mrf.mxu1  ;;  %11452 = vmatprep.subr.bf16.mxu0 %v16473_v60  ;;  %v14922_v13 = vadd.f32 %v14529_v48, %v16629_v31  ;;  %v4969_v48 = vsub.f32 %v14689_v28, %v14811_v9 }
 0x754   : > { %v4968_v8 = vsub.f32 %v14671_v46, %v14796_v34 }
 0x755   : > { %v7004_v43 = vpop.f32.mrf.mxu1  ;;  %11443 = vmatmul.mubr.msk.bf16.vlgmr.msra.gmra.mxu0 %vm1600_vm3, %v5350_v16  ;;  %v5351_v16 = vpack.c.bf16 %v14909_v52, %v14909_v52  ;;  %v5076_v46 = vmul.f32 1.442695, %v4969_v48 }
 0x756   : > { %11454 = vmatprep.mubr.msk.bf16.mxu0 %vm12425_vm2, %v16473_v60  ;;  %v4893_v43 = vsel %vm1600_vm3, %v14922_v13, -inf  ;;  %v5074_v6 = vmul.f32 1.442695, %v4968_v8 }
 0x757   : > { %v11403_v12 = vpop.f32.mrf.mxu1 }
 0x758   : > { %v16630_v12 = vld [vmem:[#allocation35_spill] sm:$0xff]  ;;  %12079 = vpow2.f32 %v5074_v6 }
 0x759   : > { %12081 = vpow2.f32 %v5076_v46 }
 0x75c   : > { %v14903_v30 = vpop.xlane.xlu0 %4876 }
 0x760   : > { %v7344_v57 = vpop.permute.xlu0 %7343 }
 0x761   : > { %v7349_v2 = vsel %vm5379_vm4, %v7344_v57, 0 }
 0x762   : > { %4891 = vmax.xlane.f32.xlu1 %v4890_v7  ;;  %11447 = vmatpush3.bf16.msra.mxu1 %v7349_v2 }
 0x763   : > { %11458 = vmatprep.subr.bf16.mxu1 %v16473_v60 }
 0x765   : > { %11449 = vmatmul.mubr.msk.bf16.vlgmr.msra.gmra.mxu1 %vm1600_vm3, %v5351_v16  ;;  %v14936_v34 = vpop.eup %12079 }
 0x766   : > { %11460 = vmatprep.mubr.msk.bf16.mxu1 %vm12425_vm2, %v16473_v60  ;;  %v5352_v8 = vpack.c.bf16 %v14936_v34, %v14936_v34 }
 0x772   : > { %4894 = vmax.xlane.f32.xlu0 %v4893_v43 }
 0x773   : > { %7583 = vrot.lane.b32.xlu1 %v16630_v12, %s12427_s22  ;;  %v16631_v12 = vld [vmem:[#allocation55_spill] sm:$0xff] }
 0x776   : > { %v14930_v57 = vpop.f32.mrf.mxu0 }
 0x778   : > { %v11408_v2 = vpop.f32.mrf.mxu0 }
 0x779   : > { %v16632_v2 = vld [vmem:[#allocation58_spill] sm:$0xff] }
 0x77a   : > { %v7052_v7 = vpop.f32.mrf.mxu0 }
 0x77b   : > { %v14953_v7 = vadd.f32 %v14563_v63, %v16632_v2  ;;  %v16633_v63 = vld [vmem:[#allocation31_spill] sm:$0xff] }
 0x77c   : > { %v11409_v16 = vpop.f32.mrf.mxu0 }
 0x77d   : > { %v14955_v16 = vpop.eup %12081 }
 0x781   : > { %v14934_v31 = vpop.xlane.xlu1 %4879 }
 0x785   : > { %v7392_v3 = vpop.permute.xlu1 %7391 }
 0x786   : > { %v7397_v43 = vsel %vm5379_vm4, %v7392_v3, 0  ;;  %v14939_v49 = vpop.f32.mrf.mxu1 }
 0x787   : > { %11453 = vmatpush3.bf16.msra.mxu0 %v7397_v43  ;;  %v4896_v43 = vsel %vm1600_vm3, %v14953_v7, -inf }
 0x788   : > { %7631 = vrot.lane.b32.xlu0 %v16631_v12, %s12427_s22  ;;  %v11414_v6 = vpop.f32.mrf.mxu1  ;;  %11464 = vmatprep.subr.bf16.mxu0 %v16473_v60  ;;  %v14968_v12 = vadd.f32 %v14581_v44, %v16633_v63  ;;  %v4971_v44 = vsub.f32 %v14738_v0, %v14857_v20 }
 0x789   : > { %v4970_v6 = vsub.f32 %v14720_v21, %v14842_v5 }
 0x78a   : > { %v7100_v28 = vpop.f32.mrf.mxu1  ;;  %11455 = vmatmul.mubr.msk.bf16.vlgmr.msra.gmra.mxu0 %vm1600_vm3, %v5352_v8  ;;  %v5353_v8 = vpack.c.bf16 %v14955_v16, %v14955_v16  ;;  %v5080_v21 = vmul.f32 1.442695, %v4971_v44 }
 0x78b   : > { %11466 = vmatprep.mubr.msk.bf16.mxu0 %vm12425_vm2, %v16473_v60  ;;  %v4899_v28 = vsel %vm1600_vm3, %v14968_v12, -inf  ;;  %v5078_v2 = vmul.f32 1.442695, %v4970_v6 }
 0x78c   : > { %v11415_v9 = vpop.f32.mrf.mxu1 }
 0x78d   : > { %v16634_v9 = vld [vmem:[#allocation28_spill] sm:$0xff]  ;;  %12083 = vpow2.f32 %v5078_v2 }
 0x78e   : > { %12085 = vpow2.f32 %v5080_v21 }
 0x791   : > { %v14949_v3 = vpop.xlane.xlu0 %4882 }
 0x795   : > { %v7440_v48 = vpop.permute.xlu0 %7439 }
 0x796   : > { %v7445_v46 = vsel %vm5379_vm4, %v7440_v48, 0 }
 0x797   : > { %4897 = vmax.xlane.f32.xlu1 %v4896_v43  ;;  %11459 = vmatpush3.bf16.msra.mxu1 %v7445_v46 }
 0x798   : > { %11470 = vmatprep.subr.bf16.mxu1 %v16473_v60 }
 0x79a   : > { %11461 = vmatmul.mubr.msk.bf16.vlgmr.msra.gmra.mxu1 %vm1600_vm3, %v5353_v8  ;;  %v14982_v5 = vpop.eup %12083 }
 0x79b   : > { %11472 = vmatprep.mubr.msk.bf16.mxu1 %vm12425_vm2, %v16473_v60  ;;  %v5354_v6 = vpack.c.bf16 %v14982_v5, %v14982_v5 }
 0x7a7   : > { %4900 = vmax.xlane.f32.xlu0 %v4899_v28 }
 0x7a8   : > { %7679 = vrot.lane.b32.xlu1 %v16634_v9, %s12427_s22  ;;  %v16635_v9 = vld [vmem:[#allocation27_spill] sm:$0xff] }
 0x7ab   : > { %v14976_v48 = vpop.f32.mrf.mxu0 }
 0x7ad   : > { %v11420_v46 = vpop.f32.mrf.mxu0 }
 0x7ae   : > { %v16636_v46 = vld [vmem:[#allocation44_spill] sm:$0xff] }
 0x7af   : > { %v7148_v43 = vpop.f32.mrf.mxu0 }
 0x7b0   : > { %v14999_v43 = vadd.f32 %v14615_v18, %v16636_v46  ;;  %v16637_v18 = vld [vmem:[#allocation66_spill] sm:$0xff] }
 0x7b1   : > { %v11421_v8 = vpop.f32.mrf.mxu0 }
 0x7b2   : > { %v15001_v8 = vpop.eup %12085 }
 0x7b6   : > { %v14980_v63 = vpop.xlane.xlu1 %4885 }
 0x7ba   : > { %v7488_v41 = vpop.permute.xlu1 %7487 }
 0x7bb   : > { %v7493_v28 = vsel %vm5379_vm4, %v7488_v41, 0  ;;  %v14985_v40 = vpop.f32.mrf.mxu1 }
 0x7bc   : > { %11465 = vmatpush3.bf16.msra.mxu0 %v7493_v28  ;;  %v4902_v28 = vsel %vm1600_vm3, %v14999_v43, -inf }
 0x7bd   : > { %7727 = vrot.lane.b32.xlu0 %v16635_v9, %s12427_s22  ;;  %v11426_v2 = vpop.f32.mrf.mxu1  ;;  %11476 = vmatprep.subr.bf16.mxu0 %v16473_v60  ;;  %v15014_v9 = vadd.f32 %v14633_v26, %v16637_v18  ;;  %v4973_v26 = vsub.f32 %v14784_v59, %v14903_v30 }
 0x7be   : > { %v4972_v2 = vsub.f32 %v14769_v38, %v14888_v61 }
 0x7bf   : > { %v7196_v0 = vpop.f32.mrf.mxu1  ;;  %11467 = vmatmul.mubr.msk.bf16.vlgmr.msra.gmra.mxu0 %vm1600_vm3, %v5354_v6  ;;  %v5355_v6 = vpack.c.bf16 %v15001_v8, %v15001_v8  ;;  %v5084_v38 = vmul.f32 1.442695, %v4973_v26 }
 0x7c0   : > { %11478 = vmatprep.mubr.msk.bf16.mxu0 %vm12425_vm2, %v16473_v60  ;;  %v4905_v0 = vsel %vm1600_vm3, %v15014_v9, -inf  ;;  %v5082_v46 = vmul.f32 1.442695, %v4972_v2 }
 0x7c1   : > { %v11427_v41 = vpop.f32.mrf.mxu1 }
 0x7c2   : > { %v16638_v41 = vld [vmem:[#allocation15_spill] sm:$0xff]  ;;  %12087 = vpow2.f32 %v5082_v46 }
 0x7c3   : > { %12089 = vpow2.f32 %v5084_v38 }
 0x7c6   : > { %v14995_v20 = vpop.xlane.xlu0 %4888 }
 0x7ca   : > { %v7536_v44 = vpop.permute.xlu0 %7535 }
 0x7cb   : > { %v7541_v21 = vsel %vm5379_vm4, %v7536_v44, 0 }
 0x7cc   : > { %4903 = vmax.xlane.f32.xlu1 %v4902_v28  ;;  %11471 = vmatpush3.bf16.msra.mxu1 %v7541_v21 }
 0x7cd   : > { %11482 = vmatprep.subr.bf16.mxu1 %v16473_v60 }
 0x7cf   : > { %11473 = vmatmul.mubr.msk.bf16.vlgmr.msra.gmra.mxu1 %vm1600_vm3, %v5355_v6  ;;  %v15028_v61 = vpop.eup %12087 }
 0x7d0   : > { %11484 = vmatprep.mubr.msk.bf16.mxu1 %vm12425_vm2, %v16473_v60  ;;  %v5356_v2 = vpack.c.bf16 %v15028_v61, %v15028_v61 }
 0x7dc   : > { %4906 = vmax.xlane.f32.xlu0 %v4905_v0 }
 0x7dd   : > { %7775 = vrot.lane.b32.xlu1 %v16638_v41, %s12427_s22  ;;  %v16641_v41 = vld [vmem:[#allocation14_spill] sm:$0xff] }
 0x7e0   : > { %v15022_v44 = vpop.f32.mrf.mxu0 }
 0x7e1   : > { %16639 = vst [vmem:[#allocation36_spill] sm:$0xff] %v15022_v44  ;;  %v5220_v44 = vsel %vm1600_vm3, %v14752_v33, 0.0 }
 0x7e2   : > { %v11432_v21 = vpop.f32.mrf.mxu0 }
 0x7e3   : > { %v16642_v21 = vld [vmem:[#allocation65_spill] sm:$0xff] }
 0x7e4   : > { %v7244_v28 = vpop.f32.mrf.mxu0 }
 0x7e5   : > { %v15045_v28 = vadd.f32 %v14667_v53, %v16642_v21  ;;  %v16643_v53 = vld [vmem:[#allocation53_spill] sm:$0xff] }
 0x7e6   : > { %v11433_v6 = vpop.f32.mrf.mxu0 }
 0x7e7   : > { %v15047_v6 = vpop.eup %12089 }
 0x7eb   : > { %v15026_v18 = vpop.xlane.xlu1 %4891 }
 0x7ef   : > { %v7584_v22 = vpop.permute.xlu1 %7583 }
 0x7f0   : > { %v7589_v0 = vsel %vm5379_vm4, %v7584_v22, 0  ;;  %v15031_v1 = vpop.f32.mrf.mxu1 }
 0x7f1   : > { %16640 = vst [vmem:[#allocation64_spill] sm:$0xff] %v15031_v1  ;;  %11477 = vmatpush3.bf16.msra.mxu0 %v7589_v0  ;;  %v4908_v0 = vsel %vm1600_vm3, %v15045_v28, -inf }
 0x7f2   : > { %7823 = vrot.lane.b32.xlu0 %v16641_v41, %s12427_s22  ;;  %v11438_v46 = vpop.f32.mrf.mxu1  ;;  %11488 = vmatprep.subr.bf16.mxu0 %v16473_v60  ;;  %v15060_v41 = vadd.f32 %v14685_v50, %v16643_v53  ;;  %v4975_v50 = vsub.f32 %v14830_v39, %v14949_v3 }
 0x7f3   : > { %v4974_v46 = vsub.f32 %v14815_v42, %v14934_v31 }
 0x7f4   : > { %v7292_v59 = vpop.f32.mrf.mxu1  ;;  %11479 = vmatmul.mubr.msk.bf16.vlgmr.msra.gmra.mxu0 %vm1600_vm3, %v5356_v2  ;;  %v5357_v2 = vpack.c.bf16 %v15047_v6, %v15047_v6  ;;  %v5088_v42 = vmul.f32 1.442695, %v4975_v50 }
 0x7f5   : > { %11490 = vmatprep.mubr.msk.bf16.mxu0 %vm12425_vm2, %v16473_v60  ;;  %v4911_v59 = vsel %vm1600_vm3, %v15060_v41, -inf  ;;  %v5086_v21 = vmul.f32 1.442695, %v4974_v46 }
 0x7f6   : > { %v11439_v22 = vpop.f32.mrf.mxu1 }
 0x7f7   : > { %v16644_v22 = vld [vmem:[#allocation49_spill] sm:$0xff]  ;;  %12091 = vpow2.f32 %v5086_v21  ;;  %v16647_v21 = vld [vmem:[#allocation50_spill] sm:$0xff] }
 0x7f8   : > { %12093 = vpow2.f32 %v5088_v42 }
 0x7fb   : > { %v15041_v30 = vpop.xlane.xlu0 %4894 }
 0x7ff   : > { %v7632_v26 = vpop.permute.xlu0 %7631 }
 0x800   : > { %v7637_v38 = vsel %vm5379_vm4, %v7632_v26, 0 }
 0x801   : > { %4909 = vmax.xlane.f32.xlu1 %v4908_v0  ;;  %11483 = vmatpush3.bf16.msra.mxu1 %v7637_v38 }
 0x802   : > { %11494 = vmatprep.subr.bf16.mxu1 %v16473_v60 }
 0x804   : > { %11485 = vmatmul.mubr.msk.bf16.vlgmr.msra.gmra.mxu1 %vm1600_vm3, %v5357_v2  ;;  %v15074_v31 = vpop.eup %12091 }
 0x805   : > { %11496 = vmatprep.mubr.msk.bf16.mxu1 %vm12425_vm2, %v16473_v60  ;;  %v5358_v46 = vpack.c.bf16 %v15074_v31, %v15074_v31  ;;  %v15093_v42 = vpop.eup %12093 }
 0x811   : > { %4912 = vmax.xlane.f32.xlu0 %v4911_v59 }
 0x812   : > { %7871 = vrot.lane.b32.xlu1 %v16644_v22, %s12427_s22 }
 0x815   : > { %v15068_v26 = vpop.f32.mrf.mxu0 }
 0x816   : > { %16645 = vst [vmem:[#allocation20_spill] sm:$0xff] %v15068_v26 }
 0x817   : > { %v11444_v38 = vpop.f32.mrf.mxu0 }
 0x819   : > { %v7340_v0 = vpop.f32.mrf.mxu0 }
 0x81b   : > { %v11445_v2 = vpop.f32.mrf.mxu0 }
 0x81c   : > { %v16648_v2 = vld [vmem:[#allocation68_spill] sm:$0xff] }
 0x820   : > { %v15072_v53 = vpop.xlane.xlu1 %4897 }
 0x824   : > { %v7680_v59 = vpop.permute.xlu1 %7679 }
 0x825   : > { %v7685_v54 = vsel %vm5379_vm4, %v7680_v59, 0  ;;  %v15077_v22 = vpop.f32.mrf.mxu1 }
 0x826   : > { %16646 = vst [vmem:[#allocation47_spill] sm:$0xff] %v15077_v22  ;;  %11489 = vmatpush3.bf16.msra.mxu0 %v7685_v54  ;;  %v12363_v54 = vld [vmem:[%s12580_s30 + $0xc] ss:$0 sm:$0xff] }
 0x827   : > { %7919 = vrot.lane.b32.xlu0 %v16647_v21, %s12427_s22  ;;  %v11450_v39 = vpop.f32.mrf.mxu1  ;;  %11500 = vmatprep.subr.bf16.mxu0 %v16473_v60  ;;  %v15091_v50 = vadd.f32 %v12363_v54, %v16648_v2  ;;  %v4976_v54 = vsub.f32 %v14861_v23, %v14980_v63 }
 0x829   : > { %v7388_v3 = vpop.f32.mrf.mxu1  ;;  %11491 = vmatmul.mubr.msk.bf16.vlgmr.msra.gmra.mxu0 %vm1600_vm3, %v5358_v46  ;;  %v4914_v39 = vsel %vm1600_vm3, %v15091_v50, -inf  ;;  %v5359_v46 = vpack.c.bf16 %v15093_v42, %v15093_v42 }
 0x82a   : > { %11502 = vmatprep.mubr.msk.bf16.mxu0 %vm12425_vm2, %v16473_v60  ;;  %v16649_v3 = vld [vmem:[#allocation70_spill] sm:$0xff] }
 0x82b   : > { %v11451_v38 = vpop.f32.mrf.mxu1 }
 0x82c   : > { %v15106_v38 = vadd.f32 %v14734_v62, %v16649_v3  ;;  %v4977_v62 = vsub.f32 %v14876_v4, %v14995_v20 }
 0x82e   : > { %v4917_v2 = vsel %vm1600_vm3, %v15106_v38, -inf  ;;  %v5092_v23 = vmul.f32 1.442695, %v4977_v62 }
 0x830   : > { %v15087_v0 = vpop.xlane.xlu0 %4900 }
 0x834   : > { %v7728_v59 = vpop.permute.xlu0 %7727 }
 0x835   : > { %v7733_v21 = vsel %vm5379_vm4, %v7728_v59, 0  ;;  %v16650_v59 = vld [vmem:[#allocation37_spill] sm:$0xff] }
 0x836   : > { %4915 = vmax.xlane.f32.xlu1 %v4914_v39  ;;  %11495 = vmatpush3.bf16.msra.mxu1 %v7733_v21  ;;  %v5090_v21 = vmul.f32 1.442695, %v4976_v54 }
 0x837   : > { %11506 = vmatprep.subr.bf16.mxu1 %v16473_v60 }
 0x838   : > { %12095 = vpow2.f32 %v5090_v21 }
 0x839   : > { %11497 = vmatmul.mubr.msk.bf16.vlgmr.msra.gmra.mxu1 %vm1600_vm3, %v5359_v46  ;;  %12097 = vpow2.f32 %v5092_v23 }
 0x83a   : > { %11508 = vmatprep.mubr.msk.bf16.mxu1 %vm12425_vm2, %v16473_v60 }
 0x845   : > { %v15120_v63 = vpop.eup %12095 }
 0x846   : > { %4918 = vmax.xlane.f32.xlu0 %v4917_v2  ;;  %v5360_v54 = vpack.c.bf16 %v15120_v63, %v15120_v63  ;;  %v15139_v23 = vpop.eup %12097  ;;  %v5268_v33 = vsel %vm1600_vm3, %v15120_v63, 0.0 }
 0x847   : > { %7967 = vrot.lane.b32.xlu1 %v16650_v59, %s12427_s22 }
 0x84a   : > { %v15114_v39 = vpop.f32.mrf.mxu0 }
 0x84b   : > { %16651 = vst [vmem:[#allocation48_spill] sm:$0xff] %v15114_v39 }
 0x84c   : > { %v11456_v46 = vpop.f32.mrf.mxu0 }
 0x84d   : > { %v16654_v46 = vld [vmem:[#allocation69_spill] sm:$0xff] }
 0x84e   : > { %v7436_v22 = vpop.f32.mrf.mxu0 }
 0x850   : > { %v11457_v26 = vpop.f32.mrf.mxu0 }
 0x851   : > { %v16653_v26 = vld [vmem:[#allocation39_spill] sm:$0xff] }
 0x855   : > { %v15118_v3 = vpop.xlane.xlu1 %4903 }
 0x859   : > { %v7776_v2 = vpop.permute.xlu1 %7775 }
 0x85a   : > { %v7781_v1 = vsel %vm5379_vm4, %v7776_v2, 0  ;;  %v15123_v59 = vpop.f32.mrf.mxu1 }
 0x85b   : > { %16652 = vst [vmem:[#allocation32_spill] sm:$0xff] %v15123_v59  ;;  %11501 = vmatpush3.bf16.msra.mxu0 %v7781_v1  ;;  %v12364_v1 = vld [vmem:[%s12580_s30 + $0xe] ss:$0 sm:$0xff] }
 0x85c   : > { %8015 = vrot.lane.b32.xlu0 %v16653_v26, %s12427_s22  ;;  %v11462_v4 = vpop.f32.mrf.mxu1  ;;  %11512 = vmatprep.subr.bf16.mxu0 %v16473_v60  ;;  %v15137_v62 = vadd.f32 %v12364_v1, %v16654_v46  ;;  %v4978_v46 = vsub.f32 %v14907_v55, %v15026_v18  ;;  %v16660_v18 = vld [vmem:[#allocation52_spill] sm:$0xff] }
 0x85e   : > { %v7484_v20 = vpop.f32.mrf.mxu1  ;;  %11503 = vmatmul.mubr.msk.bf16.vlgmr.msra.gmra.mxu0 %vm1600_vm3, %v5360_v54  ;;  %v4920_v4 = vsel %vm1600_vm3, %v15137_v62, -inf  ;;  %v5361_v54 = vpack.c.bf16 %v15139_v23, %v15139_v23 }
 0x85f   : > { %11514 = vmatprep.mubr.msk.bf16.mxu0 %vm12425_vm2, %v16473_v60  ;;  %v12365_v20 = vld [vmem:[%s12580_s30 + $0xf] ss:$0 sm:$0xff]  ;;  %s12431_s30 = smov 8  }
 0x860   : > { %v11463_v22 = vpop.f32.mrf.mxu1 }
 0x861   : > { %v16655_v22 = vld [vmem:[#allocation73_spill] sm:$0xff] }
 0x862   : > { %v15152_v1 = vadd.f32 %v12365_v20, %v16655_v22  ;;  %v16659_v22 = vld [vmem:[#allocation17_spill] sm:$0xff] }
 0x865   : > { %v15133_v21 = vpop.xlane.xlu0 %4906 }
 0x869   : > { %v7824_v2 = vpop.permute.xlu0 %7823 }
 0x86a   : > { %v7829_v26 = vsel %vm5379_vm4, %v7824_v2, 0  ;;  %v4923_v2 = vsel %vm1600_vm3, %v15152_v1, -inf }
 0x86b   : > { %4921 = vmax.xlane.f32.xlu1 %v4920_v4  ;;  %11507 = vmatpush3.bf16.msra.mxu1 %v7829_v26  ;;  %v16656_v26 = vld [vmem:[#allocation30_spill] sm:$0xff]  ;;  %v5094_v4 = vmul.f32 1.442695, %v4978_v46 }
 0x86c   : > { %11518 = vmatprep.subr.bf16.mxu1 %v16473_v60  ;;  %v16661_v46 = vld [vmem:[#allocation42_spill] sm:$0xff] }
 0x86d   : > { %12099 = vpow2.f32 %v5094_v4 }
 0x86e   : > { %11509 = vmatmul.mubr.msk.bf16.vlgmr.msra.gmra.mxu1 %vm1600_vm3, %v5361_v54  ;;  %v16658_v54 = vld [vmem:[#allocation18_spill] sm:$0xff] }
 0x86f   : > { %11520 = vmatprep.mubr.msk.bf16.mxu1 %vm12425_vm2, %v16473_v60 }
 0x87b   : > { %4924 = vmax.xlane.f32.xlu0 %v4923_v2  ;;  %v4979_v2 = vsub.f32 %v14922_v13, %v15041_v30  ;;  %v16663_v13 = vld [vmem:[#allocation29_spill] sm:$0xff] }
 0x87c   : > { %8063 = vrot.lane.b32.xlu1 %v16656_v26, %s12427_s22 }
 0x87f   : > { %v15160_v39 = vpop.f32.mrf.mxu0 }
 0x880   : > { %16657 = vst [vmem:[#allocation43_spill] sm:$0xff] %v15160_v39  ;;  %8159 = vrot.lane.b32.xlu1 %v16658_v54, %s12427_s22  ;;  %v5096_v39 = vmul.f32 1.442695, %v4979_v2  ;;  %v15174_v54 = vpop.eup %12099 }
 0x881   : > { %v11468_v59 = vpop.f32.mrf.mxu0 }
 0x882   : > { %12101 = vpow2.f32 %v5096_v39 }
 0x883   : > { %v7532_v20 = vpop.f32.mrf.mxu0 }
 0x884   : > { %8207 = vrot.lane.b32.xlu1 %v16659_v22, %s12427_s22  ;;  %v5362_v22 = vpack.c.bf16 %v15174_v54, %v15174_v54 }
 0x885   : > { %v11469_v55 = vpop.f32.mrf.mxu0 }
 0x888   : > { %8303 = vrot.lane.b32.xlu1 %v16660_v18, %s12427_s22  ;;  %v16664_v18 = vld [vmem:[#allocation51_spill] sm:$0xff] }
 0x88a   : > { %v15170_v26 = vpop.xlane.xlu1 %4909 }
 0x88c   : > { %8399 = vrot.lane.b32.xlu1 %v16661_v46, %s12427_s22  ;;  %v16665_v46 = vld [vmem:[#allocation40_spill] sm:$0xff] }
 0x88e   : > { %v7872_v59 = vpop.permute.xlu1 %7871 }
 0x88f   : > { %v7877_v4 = vsel %vm5379_vm4, %v7872_v59, 0  ;;  %v15177_v20 = vpop.f32.mrf.mxu1  ;;  %v15193_v59 = vpop.eup %12101 }
 0x890   : > { %16662 = vst [vmem:[#allocation35_spill] sm:$0xff] %v15177_v20  ;;  %11513 = vmatpush3.bf16.msra.mxu0 %v7877_v4 }
 0x891   : > { %8111 = vrot.lane.b32.xlu0 %v16663_v13, %s12427_s22  ;;  %v11474_v30 = vpop.f32.mrf.mxu1  ;;  %11524 = vmatprep.subr.bf16.mxu0 %v16473_v60 }
 0x892   : > { %v4980_v30 = vsub.f32 %v14953_v7, %v15072_v53 }
 0x893   : > { %v7580_v55 = vpop.f32.mrf.mxu1  ;;  %11515 = vmatmul.mubr.msk.bf16.vlgmr.msra.gmra.mxu0 %vm1600_vm3, %v5362_v22  ;;  %v5363_v22 = vpack.c.bf16 %v15193_v59, %v15193_v59 }
 0x894   : > { %11526 = vmatprep.mubr.msk.bf16.mxu0 %vm12425_vm2, %v16473_v60  ;;  %v16666_v55 = vld [vmem:[#allocation56_spill] sm:$0xff] }
 0x895   : > { %8255 = vrot.lane.b32.xlu0 %v16664_v18, %s12427_s22  ;;  %v11475_v2 = vpop.f32.mrf.mxu1  ;;  %v5169_v18 = vsel %vm1600_vm3, %v16666_v55, 0.0  ;;  %v16668_v55 = vld [vmem:[#allocation67_spill] sm:$0xff] }
 0x896   : > { %v5098_v2 = vmul.f32 1.442695, %v4980_v30  ;;  %v5172_v30 = vsel %vm1600_vm3, %v16668_v55, 0.0  ;;  %v5184_v55 = vsel %vm1600_vm3, %v14441_v10, 0.0 }
 0x898   : > { %12103 = vpow2.f32 %v5098_v2 }
 0x899   : > { %8351 = vrot.lane.b32.xlu0 %v16665_v46, %s12427_s22  ;;  %v5214_v46 = vsel %vm1600_vm3, %v14703_v27, 0.0  ;;  %v5262_v27 = vsel %vm1600_vm3, %v15074_v31, 0.0  ;;  %v5178_v31 = vsel %vm1600_vm3, %v14377_v19, 0.0  ;;  %v5223_v19 = vsel %vm1600_vm3, %v14771_v58, 0.0 }
 0x89a   : > { %v15191_v39 = vpop.xlane.xlu0 %4912  ;;  %v5271_v58 = vsel %vm1600_vm3, %v15139_v23, 0.0 }
 0x89e   : > { %v7920_v4 = vpop.permute.xlu0 %7919 }
 0x89f   : > { %v7925_v13 = vsel %vm5379_vm4, %v7920_v4, 0 }
 0x8a0   : > { %11519 = vmatpush3.bf16.msra.mxu1 %v7925_v13 }
 0x8a1   : > { %11530 = vmatprep.subr.bf16.mxu1 %v16473_v60 }
 0x8a3   : > { %11521 = vmatmul.mubr.msk.bf16.vlgmr.msra.gmra.mxu1 %vm1600_vm3, %v5363_v22  ;;  %v16667_v22 = vld [vmem:[#allocation54_spill] sm:$0xff] }
 0x8a4   : > { %11532 = vmatprep.mubr.msk.bf16.mxu1 %vm12425_vm2, %v16473_v60  ;;  %v5166_v20 = vsel %vm1600_vm3, %v16667_v22, 0.0 }
 0x8b0   : > { %5170 = vadd.xlane.f32.xlu1 %v5169_v18  ;;  %v4981_v18 = vsub.f32 %v14968_v12, %v15087_v0 }
 0x8b4   : > { %v15208_v4 = vpop.f32.mrf.mxu0  ;;  %5215 = vadd.xlane.f32.xlu1 %v5214_v46  ;;  %v16669_v46 = vld [vmem:[#allocation71_spill] sm:$0xff] }
 0x8b6   : > { %v11480_v13 = vpop.f32.mrf.mxu0 }
 0x8b7   : > { %v12104_v13 = vpop.eup %12103 }
 0x8b8   : > { %v7628_v7 = vpop.f32.mrf.mxu0  ;;  %5167 = vadd.xlane.f32.xlu0 %v5166_v20  ;;  %5221 = vadd.xlane.f32.xlu1 %v5220_v44  ;;  %v5175_v44 = vsel %vm1600_vm3, %v16669_v46, 0.0  ;;  %v5100_v20 = vmul.f32 1.442695, %v4981_v18  ;;  %v5364_v63 = vpack.c.bf16 %v12104_v13, %v12104_v13  ;;  %v5265_v18 = vsel %vm1600_vm3, %v15093_v42, 0.0 }
 0x8b9   : > { %v5217_v7 = vsel %vm1600_vm3, %v14722_v47, 0.0 }
 0x8ba   : > { %v11481_v53 = vpop.f32.mrf.mxu0  ;;  %12105 = vpow2.f32 %v5100_v20  ;;  %v5274_v20 = vsel %vm1600_vm3, %v15174_v54, 0.0 }
 0x8bc   : > { %5173 = vadd.xlane.f32.xlu0 %v5172_v30  ;;  %5263 = vadd.xlane.f32.xlu1 %v5262_v27  ;;  %v5226_v27 = vsel %vm1600_vm3, %v14798_v56, 0.0 }
 0x8bf   : > { %v15220_v2 = vpop.xlane.xlu1 %4915 }
 0x8c0   : > { %5269 = vadd.xlane.f32.xlu1 %v5268_v33  ;;  %5176 = vadd.xlane.f32.xlu0 %v5175_v44  ;;  %v5232_v33 = vsel %vm1600_vm3, %v14844_v45, 0.0  ;;  %v4982_v44 = vsub.f32 %v14999_v43, %v15118_v3  ;;  %v5280_v43 = vsel %vm1600_vm3, %v12104_v13, 0.0  ;;  %v5187_v3 = vsel %vm1600_vm3, %v14465_v51, 0.0 }
 0x8c1   : > { %v5196_v51 = vsel %vm1600_vm3, %v14547_v32, 0.0  ;;  %v5238_v13 = vsel %vm1600_vm3, %v14890_v14, 0.0 }
 0x8c2   : > { %v5102_v23 = vmul.f32 1.442695, %v4982_v44 }
 0x8c3   : > { %v7968_v22 = vpop.permute.xlu1 %7967 }
 0x8c4   : > { %v7973_v12 = vsel %vm5379_vm4, %v7968_v22, 0  ;;  %5179 = vadd.xlane.f32.xlu1 %v5178_v31  ;;  %5218 = vadd.xlane.f32.xlu0 %v5217_v7  ;;  %v15231_v0 = vpop.f32.mrf.mxu1  ;;  %v16670_v22 = vld [vmem:[#allocation79_spill] sm:$0xff]  ;;  %v4984_v7 = vsub.f32 %v15045_v28, %v15170_v26  ;;  %12107 = vpow2.f32 %v5102_v23  ;;  %v5229_v28 = vsel %vm1600_vm3, %v14817_v15, 0.0 }
 0x8c5   : > { %11525 = vmatpush3.bf16.msra.mxu0 %v7973_v12  ;;  %v5181_v31 = vsel %vm1600_vm3, %v16670_v22, 0.0  ;;  %v5190_v12 = vsel %vm1600_vm3, %v14497_v37, 0.0  ;;  %v5235_v26 = vsel %vm1600_vm3, %v14863_v25, 0.0  ;;  %v4983_v37 = vsub.f32 %v15014_v9, %v15133_v21 }
 0x8c6   : > { %v11486_v53 = vpop.f32.mrf.mxu1  ;;  %11536 = vmatprep.subr.bf16.mxu0 %v16473_v60  ;;  %v5106_v54 = vmul.f32 1.442695, %v4984_v7  ;;  %v5277_v15 = vsel %vm1600_vm3, %v15193_v59, 0.0  ;;  %v4985_v25 = vsub.f32 %v15060_v41, %v15191_v39  ;;  %v4986_v9 = vsub.f32 %v15091_v50, %v15220_v2 }
 0x8c7   : > { %v12106_v46 = vpop.eup %12105  ;;  %v5104_v53 = vmul.f32 1.442695, %v4983_v37  ;;  %v5193_v41 = vsel %vm1600_vm3, %v14517_v24, 0.0  ;;  %v5199_v50 = vsel %vm1600_vm3, %v14569_v29, 0.0  ;;  %v5202_v2 = vsel %vm1600_vm3, %v14599_v35, 0.0 }
 0x8c8   : > { %11527 = vmatmul.mubr.msk.bf16.vlgmr.msra.gmra.mxu0 %vm1600_vm3, %v5364_v63  ;;  %5185 = vadd.xlane.f32.xlu1 %v5184_v55  ;;  %v7676_v47 = vpop.f32.mrf.mxu1  ;;  %v5365_v45 = vpack.c.bf16 %v12106_v46, %v12106_v46  ;;  %12109 = vpow2.f32 %v5106_v54  ;;  %v5244_v63 = vsel %vm1600_vm3, %v14936_v34, 0.0  ;;  %v5283_v55 = vsel %vm1600_vm3, %v12106_v46, 0.0 }
 0x8c9   : > { %5224 = vadd.xlane.f32.xlu0 %v5223_v19  ;;  %11538 = vmatprep.mubr.msk.bf16.mxu0 %vm12425_vm2, %v16473_v60  ;;  %12111 = vpow2.f32 %v5104_v53  ;;  %v5108_v34 = vmul.f32 1.442695, %v4985_v25  ;;  %v5110_v47 = vmul.f32 1.442695, %v4986_v9  ;;  %v5241_v24 = vsel %vm1600_vm3, %v14909_v52, 0.0 }
 0x8ca   : > { %v11487_v30 = vpop.f32.mrf.mxu1  ;;  %v5208_v46 = vsel %vm1600_vm3, %v14651_v11, 0.0  ;;  %v5247_v29 = vsel %vm1600_vm3, %v14955_v16, 0.0 }
 0x8cb   : > { %12113 = vpow2.f32 %v5108_v34 }
 0x8cc   : > { %5227 = vadd.xlane.f32.xlu1 %v5226_v27  ;;  %12115 = vpow2.f32 %v5110_v47 }
 0x8cd   : > { %5266 = vadd.xlane.f32.xlu0 %v5265_v18 }
 0x8cf   : > { %v15245_v10 = vpop.xlane.xlu0 %4918 }
 0x8d0   : > { %5233 = vadd.xlane.f32.xlu1 %v5232_v33  ;;  %v4987_v11 = vsub.f32 %v15106_v38, %v15245_v10  ;;  %v5256_v38 = vsel %vm1600_vm3, %v15028_v61, 0.0 }
 0x8d1   : > { %5272 = vadd.xlane.f32.xlu0 %v5271_v58  ;;  %v12108_v32 = vpop.eup %12107 }
 0x8d2   : > { %v5286_v59 = vsel %vm1600_vm3, %v12108_v32, 0.0  ;;  %v5366_v52 = vpack.c.bf16 %v12108_v32, %v12108_v32  ;;  %v5112_v7 = vmul.f32 1.442695, %v4987_v11 }
 0x8d3   : > { %v8016_v56 = vpop.permute.xlu0 %8015 }
 0x8d4   : > { %v8021_v42 = vsel %vm5379_vm4, %v8016_v56, 0  ;;  %5275 = vadd.xlane.f32.xlu1 %v5274_v20 }
 0x8d5   : > { %5182 = vadd.xlane.f32.xlu0 %v5181_v31  ;;  %11531 = vmatpush3.bf16.msra.mxu1 %v8021_v42  ;;  %v15291_v19 = vpop.eup %12109  ;;  %v5250_v42 = vsel %vm1600_vm3, %v14982_v5, 0.0 }
 0x8d6   : > { %11542 = vmatprep.subr.bf16.mxu1 %v16473_v60  ;;  %v5292_v27 = vsel %vm1600_vm3, %v15291_v19, 0.0  ;;  %v12112_v56 = vpop.eup %12111 }
 0x8d7   : > { %v5289_v16 = vsel %vm1600_vm3, %v12112_v56, 0.0 }
 0x8d8   : > { %5281 = vadd.xlane.f32.xlu1 %v5280_v43  ;;  %11533 = vmatmul.mubr.msk.bf16.vlgmr.msra.gmra.mxu1 %vm1600_vm3, %v5365_v45  ;;  %v15317_v31 = vpop.eup %12113 }
 0x8d9   : > { %5188 = vadd.xlane.f32.xlu0 %v5187_v3  ;;  %11544 = vmatprep.mubr.msk.bf16.mxu1 %vm12425_vm2, %v16473_v60  ;;  %v12116_v10 = vpop.eup %12115  ;;  %v5295_v43 = vsel %vm1600_vm3, %v15317_v31, 0.0  ;;  %v5368_v3 = vpack.c.bf16 %v15291_v19, %v15291_v19 }
 0x8da   : > { %v5298_v54 = vsel %vm1600_vm3, %v12116_v10, 0.0 }
 0x8dc   : > { %5191 = vadd.xlane.f32.xlu1 %v5190_v12  ;;  %v16671_v12 = vld [vmem:[#allocation92_spill] sm:$0xff] }
 0x8dd   : > { %5230 = vadd.xlane.f32.xlu0 %v5229_v28  ;;  %v5205_v28 = vsel %vm1600_vm3, %v16671_v12, 0.0 }
 0x8e0   : > { %5197 = vadd.xlane.f32.xlu1 %v5196_v51 }
 0x8e1   : > { %5236 = vadd.xlane.f32.xlu0 %v5235_v26 }
 0x8e4   : > { %5239 = vadd.xlane.f32.xlu1 %v5238_v13 }
 0x8e5   : > { %5278 = vadd.xlane.f32.xlu0 %v5277_v15  ;;  %v16672_v15 = vld [vmem:[#allocation34_spill] sm:$0xff] }
 0x8e8   : > { %5245 = vadd.xlane.f32.xlu1 %v5244_v63  ;;  %v5211_v63 = vsel %vm1600_vm3, %v16672_v15, 0.0  ;;  %v16685_v15 = vld [vmem:[#allocation21_spill] sm:$0xff] }
 0x8e9   : > { %5284 = vadd.xlane.f32.xlu0 %v5283_v55  ;;  %v15286_v14 = vpop.f32.mrf.mxu0  ;;  %v16673_v55 = vld [vmem:[#allocation62_spill] sm:$0xff] }
 0x8ea   : > { %v5118_v9 = vsel %vm1600_vm3, %v16673_v55, 0.0 }
 0x8eb   : > { %v11492_v21 = vpop.f32.mrf.mxu0 }
 0x8ec   : > { %5287 = vadd.xlane.f32.xlu1 %v5286_v59  ;;  %v5253_v21 = vsel %vm1600_vm3, %v15001_v8, 0.0  ;;  %v5259_v8 = vsel %vm1600_vm3, %v15047_v6, 0.0 }
 0x8ed   : > { %5194 = vadd.xlane.f32.xlu0 %v5193_v41  ;;  %v7724_v39 = vpop.f32.mrf.mxu0  ;;  %v5370_v41 = vpack.c.bf16 %v12116_v10, %v12116_v10  ;;  %v16680_v10 = vld [vmem:[#allocation59_spill] sm:$0xff] }
 0x8ee   : > { %v16674_v39 = vld [vmem:[#allocation60_spill] sm:$0xff] }
 0x8ef   : > { %v11493_v30 = vpop.f32.mrf.mxu0  ;;  %v5124_v47 = vsel %vm1600_vm3, %v16674_v39, 0.0 }
 0x8f0   : > { %5293 = vadd.xlane.f32.xlu1 %v5292_v27 }
 0x8f1   : > { %5200 = vadd.xlane.f32.xlu0 %v5199_v50 }
 0x8f4   : > { %v4922_v18 = vpop.xlane.xlu1 %4921  ;;  %5203 = vadd.xlane.f32.xlu1 %v5202_v2 }
 0x8f5   : > { %v4988_v33 = vsub.f32 %v15137_v62, %v4922_v18  ;;  %5242 = vadd.xlane.f32.xlu0 %v5241_v24  ;;  %v5369_v18 = vpack.c.bf16 %v15317_v31, %v15317_v31  ;;  %v16675_v24 = vld [vmem:[#allocation61_spill] sm:$0xff] }
 0x8f6   : > { %v5130_v6 = vsel %vm1600_vm3, %v16675_v24, 0.0 }
 0x8f7   : > { %v5114_v58 = vmul.f32 1.442695, %v4988_v33 }
 0x8f8   : > { %v8064_v44 = vpop.permute.xlu1 %8063  ;;  %5209 = vadd.xlane.f32.xlu1 %v5208_v46 }
 0x8f9   : > { %12117 = vpow2.f32 %v5114_v58  ;;  %v8069_v35 = vsel %vm5379_vm4, %v8064_v44, 0  ;;  %5248 = vadd.xlane.f32.xlu0 %v5247_v29  ;;  %v15309_v20 = vpop.f32.mrf.mxu1  ;;  %v16676_v29 = vld [vmem:[#allocation19_spill] sm:$0xff] }
 0x8fa   : > { %11537 = vmatpush3.bf16.msra.mxu0 %v8069_v35  ;;  %12119 = vpow2.f32 %v5112_v7  ;;  %v5127_v7 = vsel %vm1600_vm3, %v16680_v10, 0.0  ;;  %v16691_v10 = vld [vmem:[#allocation88_spill] sm:$0xff] }
 0x8fb   : > { %v11498_v62 = vpop.f32.mrf.mxu1  ;;  %11548 = vmatprep.subr.bf16.mxu0 %v16473_v60 }
 0x8fc   : > { %v8160_v22 = vpop.permute.xlu1 %8159  ;;  %5251 = vadd.xlane.f32.xlu1 %v5250_v42  ;;  %v16677_v42 = vld [vmem:[#allocation9_spill] sm:$0xff] }
 0x8fd   : > { %v8165_v45 = vsel %vm5379_vm4, %v8160_v22, 0  ;;  %5290 = vadd.xlane.f32.xlu0 %v5289_v16  ;;  %v7772_v23 = vpop.f32.mrf.mxu1  ;;  %11539 = vmatmul.mubr.msk.bf16.vlgmr.msra.gmra.mxu0 %vm1600_vm3, %v5366_v52  ;;  %v5142_v11 = vsel %vm1600_vm3, %v16677_v42, 0.0  ;;  %v16678_v22 = vld [vmem:[#allocation63_spill] sm:$0xff] }
 0x8fe   : > { %11549 = vmatpush3.bf16.msra.mxu0 %v8165_v45  ;;  %11550 = vmatprep.mubr.msk.bf16.mxu0 %vm12425_vm2, %v16473_v60  ;;  %v5121_v16 = vsel %vm1600_vm3, %v16678_v22, 0.0  ;;  %v16679_v23 = vld [vmem:[#allocation22_spill] sm:$0xff] }
 0x8ff   : > { %v11499_v5 = vpop.f32.mrf.mxu1  ;;  %11560 = vmatprep.subr.bf16.mxu0 %v16473_v60 }
 0x900   : > { %5257 = vadd.xlane.f32.xlu1 %v5256_v38  ;;  %v8208_v25 = vpop.permute.xlu1 %8207  ;;  %v5148_v5 = vsel %vm1600_vm3, %v16679_v23, 0.0 }
 0x901   : > { %5296 = vadd.xlane.f32.xlu0 %v5295_v43  ;;  %v8213_v19 = vsel %vm5379_vm4, %v8208_v25, 0  ;;  %v16686_v25 = vld [vmem:[#allocation10_spill] sm:$0xff] }
 0x904   : > { %5299 = vadd.xlane.f32.xlu1 %v5298_v54  ;;  %v4925_v61 = vpop.xlane.xlu0 %4924  ;;  %v8304_v2 = vpop.permute.xlu1 %8303  ;;  %v16681_v54 = vld [vmem:[#allocation16_spill] sm:$0xff] }
 0x905   : > { %5206 = vadd.xlane.f32.xlu0 %v5205_v28  ;;  %v4989_v51 = vsub.f32 %v15152_v1, %v4925_v61  ;;  %11551 = vmatmul.mubr.msk.bf16.vlgmr.msra.gmra.mxu0 %vm1600_vm3, %v5368_v3  ;;  %v5367_v1 = vpack.c.bf16 %v12112_v56, %v12112_v56  ;;  %v8309_v58 = vsel %vm5379_vm4, %v8304_v2, 0  ;;  %v5136_v56 = vsel %vm1600_vm3, %v16676_v29, 0.0  ;;  %v16682_v61 = vld [vmem:[#allocation26_spill] sm:$0xff]  ;;  %v16690_v29 = vld [vmem:[#allocation87_spill] sm:$0xff] }
 0x906   : > { %v12118_v26 = vpop.eup %12117  ;;  %11562 = vmatprep.mubr.msk.bf16.mxu0 %vm12425_vm2, %v16473_v60  ;;  %v5154_v12 = vsel %vm1600_vm3, %v16681_v54, 0.0 }
 0x907   : > { %v5116_v13 = vmul.f32 1.442695, %v4989_v51  ;;  %v5304_v37 = vsel %vm1600_vm3, %v12118_v26, 0.0  ;;  %v12120_v27 = vpop.eup %12119  ;;  %v5372_v44 = vpack.c.bf16 %v12118_v26, %v12118_v26  ;;  %v5133_v51 = vsel %vm1600_vm3, %v16682_v61, 0.0 }
 0x908   : > { %5305 = vadd.xlane.f32.xlu1 %v5304_v37  ;;  %v8112_v32 = vpop.permute.xlu0 %8111  ;;  %v5301_v33 = vsel %vm1600_vm3, %v12120_v27, 0.0  ;;  %v8400_v52 = vpop.permute.xlu1 %8399  ;;  %v5371_v62 = vpack.c.bf16 %v12120_v27, %v12120_v27 }
 0x909   : > { %12121 = vpow2.f32 %v5116_v13  ;;  %5212 = vadd.xlane.f32.xlu0 %v5211_v63  ;;  %v8117_v53 = vsel %vm5379_vm4, %v8112_v32, 0  ;;  %v8405_v31 = vsel %vm5379_vm4, %v8400_v52, 0  ;;  %v16684_v13 = vld [vmem:[#allocation57_spill] sm:$0xff]  ;;  %v5145_v63 = vsel %vm1600_vm3, %v16685_v15, 0.0 }
 0x90a   : > { %11543 = vmatpush3.bf16.msra.mxu1 %v8117_v53  ;;  %v5139_v37 = vsel %vm1600_vm3, %v16684_v13, 0.0 }
 0x90b   : > { %11554 = vmatprep.subr.bf16.mxu1 %v16473_v60 }
 0x90c   : > { %5119 = vadd.xlane.f32.xlu1 %v5118_v9  ;;  %v8256_v59 = vpop.permute.xlu0 %8255 }
 0x90d   : > { %5254 = vadd.xlane.f32.xlu0 %v5253_v21  ;;  %v8261_v34 = vsel %vm5379_vm4, %v8256_v59, 0  ;;  %11545 = vmatmul.mubr.msk.bf16.vlgmr.msra.gmra.mxu1 %vm1600_vm3, %v5367_v1  ;;  %v5151_v1 = vsel %vm1600_vm3, %v16686_v25, 0.0  ;;  %v16687_v21 = vld [vmem:[#allocation41_spill] sm:$0xff] }
 0x90e   : > { %11555 = vmatpush3.bf16.msra.mxu1 %v8213_v19  ;;  %11561 = vmatpush3.bf16.msra.mxu0 %v8261_v34  ;;  %v5157_v59 = vsel %vm1600_vm3, %v16687_v21, 0.0  ;;  %v16688_v19 = vld [vmem:[#allocation11_spill] sm:$0xff]  ;;  %v11988_v25 = vld [vmem:[%s12595_s24] sm:$0xff]  }
 0x90f   : > { %11572 = vmatprep.subr.bf16.mxu0 %v16473_v60  ;;  %11556 = vmatprep.mubr.msk.bf16.mxu1 %vm12425_vm2, %v16473_v60  ;;  %v5163_v34 = vsel %vm1600_vm3, %v16688_v19, 0.0 }
 0x910   : > { %5125 = vadd.xlane.f32.xlu1 %v5124_v47  ;;  %v8352_v30 = vpop.permute.xlu0 %8351  ;;  %11566 = vmatprep.subr.bf16.mxu1 %v16473_v60 }
 0x911   : > { %5260 = vadd.xlane.f32.xlu0 %v5259_v8  ;;  %v8357_v50 = vsel %vm5379_vm4, %v8352_v30, 0  ;;  %11563 = vmatmul.mubr.msk.bf16.vlgmr.msra.gmra.mxu0 %vm1600_vm3, %v5370_v41 }
 0x912   : > { %11573 = vmatpush3.bf16.msra.mxu0 %v8357_v50  ;;  %11574 = vmatprep.mubr.msk.bf16.mxu0 %vm12425_vm2, %v16473_v60 }
 0x914   : > { %5131 = vadd.xlane.f32.xlu1 %v5130_v6 }
 0x915   : > { %5302 = vadd.xlane.f32.xlu0 %v5301_v33  ;;  %11557 = vmatmul.mubr.msk.bf16.vlgmr.msra.gmra.mxu1 %vm1600_vm3, %v5369_v18 }
 0x916   : > { %v12122_v46 = vpop.eup %12121  ;;  %11567 = vmatpush3.bf16.msra.mxu1 %v8309_v58  ;;  %11568 = vmatprep.mubr.msk.bf16.mxu1 %vm12425_vm2, %v16473_v60 }
 0x917   : > { %v5307_v35 = vsel %vm1600_vm3, %v12122_v46, 0.0  ;;  %11578 = vmatprep.subr.bf16.mxu1 %v16473_v60  ;;  %v5373_v3 = vpack.c.bf16 %v12122_v46, %v12122_v46  ;;  %v16689_v46 = vld [vmem:[#allocation45_spill] sm:$0xff] }
 0x918   : > { %5137 = vadd.xlane.f32.xlu1 %v5136_v56 }
 0x919   : > { %5308 = vadd.xlane.f32.xlu0 %v5307_v35  ;;  %11575 = vmatmul.mubr.msk.bf16.vlgmr.msra.gmra.mxu0 %vm1600_vm3, %v5372_v44 }
 0x91c   : > { %5143 = vadd.xlane.f32.xlu1 %v5142_v11 }
 0x91d   : > { %5122 = vadd.xlane.f32.xlu0 %v5121_v16  ;;  %11569 = vmatmul.mubr.msk.bf16.vlgmr.msra.gmra.mxu1 %vm1600_vm3, %v5371_v62 }
 0x91e   : > { %11579 = vmatpush3.bf16.msra.mxu1 %v8405_v31  ;;  %v15381_v45 = vpop.f32.mrf.mxu0  ;;  %11580 = vmatprep.mubr.msk.bf16.mxu1 %vm12425_vm2, %v16473_v60  ;;  %v16683_v60 = vld [vmem:[#allocation38_spill] sm:$0xff] }
 0x91f   : > { %v5160_v26 = vsel %vm1600_vm3, %v16683_v60, 0.0 }
 0x920   : > { %v11504_v38 = vpop.f32.mrf.mxu0  ;;  %5149 = vadd.xlane.f32.xlu1 %v5148_v5 }
 0x921   : > { %5128 = vadd.xlane.f32.xlu0 %v5127_v7 }
 0x922   : > { %v7820_v43 = vpop.f32.mrf.mxu0 }
 0x923   : > { %v16692_v43 = vld [vmem:[#allocation89_spill] sm:$0xff] }
 0x924   : > { %v11505_v28 = vpop.f32.mrf.mxu0  ;;  %5155 = vadd.xlane.f32.xlu1 %v5154_v12 }
 0x925   : > { %5134 = vadd.xlane.f32.xlu0 %v5133_v51  ;;  %11581 = vmatmul.mubr.msk.bf16.vlgmr.msra.gmra.mxu1 %vm1600_vm3, %v5373_v3  ;;  %v11987_v51 = vld [vmem:[%s12595_s24 + $0x8] sm:$0xff]   ;;  %s12433_s24 = smov 24  }
 0x926   : > { %11584 = vmatprep.subr.bf16.mxu0 %v11987_v51 }
 0x927   : > { %11585 = vmatpush3.bf16.msra.mxu0 %v11987_v51 }
 0x928   : > { %5161 = vadd.xlane.f32.xlu1 %v5160_v26  ;;  %11586 = vmatprep.subr.bf16.mxu0 %v11988_v25 }
 0x929   : > { %5140 = vadd.xlane.f32.xlu0 %v5139_v37 }
 0x92b   : > { %11587 = vmatpush3.bf16.msra.mxu0 %v11988_v25 }
 0x92d   : > { %5146 = vadd.xlane.f32.xlu0 %v5145_v63 }
 0x92e   : > { %v15400_v32 = vpop.f32.mrf.mxu1 }
 0x930   : > { %v11510_v53 = vpop.f32.mrf.mxu1 }
 0x931   : > { %5152 = vadd.xlane.f32.xlu0 %v5151_v1 }
 0x932   : > { %v7868_v55 = vpop.f32.mrf.mxu1 }
 0x934   : > { %v11511_v9 = vpop.f32.mrf.mxu1 }
 0x935   : > { %5158 = vadd.xlane.f32.xlu0 %v5157_v59 }
 0x939   : > { %5164 = vadd.xlane.f32.xlu0 %v5163_v34  ;;  %v5171_v41 = vpop.xlane.xlu1 %5170 }
 0x93a   : > { %12123 = vrcp.f32 %v5171_v41 }
 0x93d   : > { %v5216_v39 = vpop.xlane.xlu1 %5215 }
 0x941   : > { %v5222_v47 = vpop.xlane.xlu1 %5221  ;;  %v5168_v8 = vpop.xlane.xlu0 %5167 }
 0x942   : > { %12125 = vrcp.f32 %v5168_v8 }
 0x945   : > { %v5264_v30 = vpop.xlane.xlu1 %5263  ;;  %v5174_v27 = vpop.xlane.xlu0 %5173 }
 0x946   : > { %12127 = vrcp.f32 %v5174_v27 }
 0x947   : > { %v12124_v6 = vpop.eup %12123 }
 0x948   : > { %v8528_v56 = vmul.f32 %v12124_v6, %v16690_v29  ;;  %v16694_v29 = vld [vmem:[#allocation91_spill] sm:$0xff] }
 0x949   : > { %v5270_v50 = vpop.xlane.xlu1 %5269  ;;  %v5177_v2 = vpop.xlane.xlu0 %5176 }
 0x94a   : > { %12129 = vrcp.f32 %v5177_v2 }
 0x94b   : > { %12131 = vrcp.f32 %v5216_v39 }
 0x94d   : > { %v5180_v18 = vpop.xlane.xlu1 %5179  ;;  %v5219_v24 = vpop.xlane.xlu0 %5218 }
 0x94e   : > { %12133 = vrcp.f32 %v5219_v24 }
 0x94f   : > { %v12126_v33 = vpop.eup %12125  ;;  %12135 = vrcp.f32 %v5222_v47 }
 0x950   : > { %v8527_v44 = vmul.f32 %v12126_v33, %v16689_v46  ;;  %v16693_v46 = vld [vmem:[#allocation90_spill] sm:$0xff] }
 0x951   : > { %v5186_v58 = vpop.xlane.xlu1 %5185 }
 0x952   : > { %v5225_v35 = vpop.xlane.xlu0 %5224  ;;  %v11865_v62 = vpack.i.bf16 %v8528_v56, %v8527_v44 }
 0x953   : > { %12137 = vrcp.f32 %v5225_v35  ;;  %v15410_v52 = vpop.f32.mrf.mxu0  ;;  %v12128_v22 = vpop.eup %12127 }
 0x954   : > { %12139 = vrcp.f32 %v5264_v30  ;;  %11866 = vrot.lane.b32.xlu1 %v11865_v62, %s12431_s30  ;;  %v8529_v7 = vmul.f32 %v12128_v22, %v16691_v10 }
 0x955   : > { %v11516_v42 = vpop.f32.mrf.mxu0  ;;  %v5228_v11 = vpop.xlane.xlu1 %5227 }
 0x956   : > { %v5267_v16 = vpop.xlane.xlu0 %5266 }
 0x957   : > { %12141 = vrcp.f32 %v5267_v16  ;;  %v7916_v31 = vpop.f32.mrf.mxu0  ;;  %v12130_v23 = vpop.eup %12129  ;;  %v16696_v16 = vld [vmem:[#allocation94_spill] sm:$0xff] }
 0x958   : > { %12143 = vrcp.f32 %v5270_v50  ;;  %v8530_v3 = vmul.f32 %v12130_v23, %v16692_v43  ;;  %v12132_v54 = vpop.eup %12131 }
 0x959   : > { %v11517_v5 = vpop.f32.mrf.mxu0  ;;  %v5234_v38 = vpop.xlane.xlu1 %5233  ;;  %v8543_v26 = vmul.f32 %v12132_v54, %v14884_v36 }
 0x95a   : > { %v5273_v12 = vpop.xlane.xlu0 %5272  ;;  %v11870_v28 = vpack.i.bf16 %v8530_v3, %v8529_v7 }
 0x95b   : > { %12145 = vrcp.f32 %v5273_v12  ;;  %v12134_v61 = vpop.eup %12133 }
 0x95c   : > { %12147 = vrcp.f32 %v5180_v18  ;;  %11871 = vrot.lane.b32.xlu0 %v11870_v28, %s12431_s30  ;;  %v8544_v13 = vmul.f32 %v12134_v61, %v14893_v17  ;;  %v12136_v37 = vpop.eup %12135 }
 0x95d   : > { %v5276_v60 = vpop.xlane.xlu1 %5275  ;;  %v8545_v55 = vmul.f32 %v12136_v37, %v14930_v57 }
 0x95e   : > { %v5183_v15 = vpop.xlane.xlu0 %5182  ;;  %v11875_v63 = vpack.i.bf16 %v8544_v13, %v8543_v26  ;;  %v16698_v13 = vld [vmem:[#allocation64_spill] sm:$0xff] }
 0x95f   : > { %12149 = vrcp.f32 %v5183_v15 }
 0x960   : > { %v12138_v53 = vpop.eup %12137  ;;  %12151 = vrcp.f32 %v5186_v58  ;;  %11876 = vrot.lane.b32.xlu1 %v11875_v63, %s12432_s5 }
 0x961   : > { %v15421_v1 = vpop.xlane.xlu1 %5281  ;;  %v8546_v36 = vmul.f32 %v12138_v53, %v14939_v49  ;;  %v12140_v9 = vpop.eup %12139 }
 0x962   : > { %v5189_v17 = vpop.xlane.xlu0 %5188  ;;  %v8559_v39 = vmul.f32 %v12140_v9, %v15286_v14 }
 0x963   : > { %12153 = vrcp.f32 %v5189_v17  ;;  %v15425_v21 = vpop.f32.mrf.mxu1  ;;  %v11880_v59 = vpack.i.bf16 %v8546_v36, %v8545_v55 }
 0x964   : > { %v12142_v19 = vpop.eup %12141  ;;  %12155 = vrcp.f32 %v5228_v11  ;;  %v16695_v11 = vld [vmem:[#allocation93_spill] sm:$0xff] }
 0x965   : > { %11881 = vrot.lane.b32.xlu1 %v11880_v59, %s12432_s5  ;;  %v5192_v34 = vpop.xlane.xlu1 %5191  ;;  %v11522_v41 = vpop.f32.mrf.mxu1  ;;  %v8560_v57 = vmul.f32 %v12142_v19, %v15309_v20 }
 0x966   : > { %v12144_v47 = vpop.eup %12143  ;;  %v5231_v49 = vpop.xlane.xlu0 %5230  ;;  %v16699_v41 = vld [vmem:[#allocation46_spill] sm:$0xff] }
 0x967   : > { %12157 = vrcp.f32 %v5231_v49  ;;  %v7964_v8 = vpop.f32.mrf.mxu1  ;;  %v11885_v30 = vpack.i.bf16 %v8560_v57, %v8559_v39  ;;  %v8561_v18 = vmul.f32 %v12144_v47, %v15381_v45  ;;  %v16700_v57 = vld [vmem:[#allocation95_spill] sm:$0xff] }
 0x968   : > { %v12146_v27 = vpop.eup %12145  ;;  %12159 = vrcp.f32 %v5234_v38 }
 0x969   : > { %11886 = vrot.lane.b32.xlu0 %v11885_v30, %s12433_s24  ;;  %v15431_v50 = vpop.xlane.xlu1 %5197  ;;  %v11523_v2 = vpop.f32.mrf.mxu1  ;;  %v8562_v24 = vmul.f32 %v12146_v27, %v15400_v32 }
 0x96a   : > { %v12148_v14 = vpop.eup %12147  ;;  %v5237_v6 = vpop.xlane.xlu0 %5236 }
 0x96b   : > { %12161 = vrcp.f32 %v5237_v6  ;;  %v11890_v20 = vpack.i.bf16 %v8562_v24, %v8561_v18  ;;  %v8531_v44 = vmul.f32 %v12148_v14, %v16693_v46  ;;  %v16701_v14 = vld [vmem:[#allocation20_spill] sm:$0xff] }
 0x96c   : > { %v12150_v33 = vpop.eup %12149  ;;  %12163 = vrcp.f32 %v5276_v60  ;;  %v16697_v60 = vld [vmem:[#allocation36_spill] sm:$0xff] }
 0x96d   : > { %11891 = vrot.lane.b32.xlu1 %v11890_v20, %s12433_s24  ;;  %v5240_v58 = vpop.xlane.xlu1 %5239  ;;  %v8532_v56 = vmul.f32 %v12150_v33, %v16694_v29  ;;  %v12152_v35 = vpop.eup %12151  ;;  %v16702_v20 = vld [vmem:[#allocation47_spill] sm:$0xff] }
 0x96e   : > { %v5279_v62 = vpop.xlane.xlu0 %5278  ;;  %v8533_v22 = vmul.f32 %v12152_v35, %v16695_v11 }
 0x96f   : > { %12165 = vrcp.f32 %v5279_v62  ;;  %v11895_v42 = vpack.i.bf16 %v8532_v56, %v8531_v44 }
 0x970   : > { %v12154_v45 = vpop.eup %12153  ;;  %12167 = vrcp.f32 %v5192_v34 }
 0x971   : > { %11896 = vrot.lane.b32.xlu0 %v11895_v42, %s12431_s30  ;;  %v5246_v32 = vpop.xlane.xlu1 %5245  ;;  %v8534_v31 = vmul.f32 %v12154_v45, %v16696_v16  ;;  %v12156_v23 = vpop.eup %12155 }
 0x972   : > { %v5285_v5 = vpop.xlane.xlu0 %5284  ;;  %v8547_v43 = vmul.f32 %v12156_v23, %v14976_v48 }
 0x973   : > { %v11900_v38 = vpack.i.bf16 %v8534_v31, %v8533_v22 }
 0x974   : > { %v12158_v10 = vpop.eup %12157 }
 0x975   : > { %11901 = vrot.lane.b32.xlu1 %v11900_v38, %s12431_s30  ;;  %v15442_v7 = vpop.xlane.xlu1 %5287  ;;  %v8548_v3 = vmul.f32 %v12158_v10, %v14985_v40  ;;  %v12160_v54 = vpop.eup %12159  ;;  %v16703_v38 = vld [vmem:[#allocation96_spill] sm:$0xff] }
 0x976   : > { %v5195_v12 = vpop.xlane.xlu0 %5194  ;;  %v8549_v26 = vmul.f32 %v12160_v54, %v16697_v60  ;;  %v16704_v54 = vld [vmem:[#allocation33_spill] sm:$0xff] }
 0x977   : > { %12169 = vrcp.f32 %v5195_v12  ;;  %v11905_v28 = vpack.i.bf16 %v8548_v3, %v8547_v43 }
 0x978   : > { %v12162_v61 = vpop.eup %12161  ;;  %12171 = vrcp.f32 %v5240_v58 }
 0x979   : > { %11906 = vrot.lane.b32.xlu0 %v11905_v28, %s12432_s5  ;;  %v15447_v51 = vpop.xlane.xlu1 %5293  ;;  %v8550_v37 = vmul.f32 %v12162_v61, %v16698_v13  ;;  %v12164_v15 = vpop.eup %12163  ;;  %v16705_v13 = vld [vmem:[#allocation32_spill] sm:$0xff] }
 0x97a   : > { %v5201_v63 = vpop.xlane.xlu0 %5200  ;;  %v8563_v48 = vmul.f32 %v12164_v15, %v15410_v52  ;;  %v16706_v15 = vld [vmem:[#allocation48_spill] sm:$0xff] }
 0x97b   : > { %v11910_v53 = vpack.i.bf16 %v8550_v37, %v8549_v26 }
 0x97c   : > { %v12166_v25 = vpop.eup %12165 }
 0x97d   : > { %11911 = vrot.lane.b32.xlu1 %v11910_v53, %s12432_s5  ;;  %v15452_v40 = vpop.xlane.xlu1 %5203  ;;  %v8564_v55 = vmul.f32 %v12166_v25, %v15425_v21  ;;  %v12168_v17 = vpop.eup %12167 }
 0x97e   : > { %v5243_v36 = vpop.xlane.xlu0 %5242  ;;  %v8535_v39 = vmul.f32 %v12168_v17, %v16699_v41 }
 0x97f   : > { %12173 = vrcp.f32 %v5243_v36  ;;  %v11915_v9 = vpack.i.bf16 %v8564_v55, %v8563_v48 }
 0x980   : > { %12175 = vrcp.f32 %v15421_v1 }
 0x981   : > { %11916 = vrot.lane.b32.xlu0 %v11915_v9, %s12433_s24  ;;  %v15457_v19 = vpop.xlane.xlu1 %5209  ;;  %12177 = vrcp.f32 %v5285_v5 }
 0x982   : > { %v5249_v59 = vpop.xlane.xlu0 %5248  ;;  %12179 = vrcp.f32 %v5201_v63 }
 0x983   : > { %12181 = vrcp.f32 %v15431_v50 }
 0x984   : > { %v12170_v34 = vpop.eup %12169  ;;  %12183 = vrcp.f32 %v5249_v59 }
 0x985   : > { %v8536_v47 = vmul.f32 %v12170_v34, %v16700_v57  ;;  %v15464_v21 = vpop.xlane.xlu1 %5251  ;;  %v12172_v30 = vpop.eup %12171  ;;  %12185 = vrcp.f32 %v5246_v32 }
 0x986   : > { %v15461_v49 = vpop.xlane.xlu0 %5290  ;;  %v8551_v6 = vmul.f32 %v12172_v30, %v16701_v14  ;;  %12187 = vrcp.f32 %v15442_v7 }
 0x987   : > { %v11925_v8 = vpack.i.bf16 %v8536_v47, %v8535_v39  ;;  %12189 = vrcp.f32 %v15447_v51 }
 0x988   : > { %v8009_v52 = vpop.f32.mrf.mxu0  ;;  %12191 = vrcp.f32 %v15452_v40 }
 0x989   : > { %11926 = vrot.lane.b32.xlu0 %v11925_v8, %s12431_s30  ;;  %v5258_v44 = vpop.xlane.xlu1 %5257  ;;  %12193 = vrcp.f32 %v15461_v49 }
 0x98a   : > { %v15467_v27 = vpop.xlane.xlu0 %5296  ;;  %v11528_v2 = vpop.f32.mrf.mxu0 }
 0x98c   : > { %v12174_v18 = vpop.eup %12173  ;;  %v8012_v24 = vpop.f32.mrf.mxu0 }
 0x98d   : > { %v8552_v33 = vmul.f32 %v12174_v18, %v16702_v20  ;;  %v12176_v56 = vpop.eup %12175  ;;  %v15473_v35 = vpop.xlane.xlu1 %5299 }
 0x98e   : > { %v5207_v58 = vpop.xlane.xlu0 %5206  ;;  %v11529_v1 = vpop.f32.mrf.mxu0  ;;  %v8565_v11 = vmul.f32 %v12176_v56, %v8009_v52 }
 0x98f   : > { %v11935_v46 = vpack.i.bf16 %v8552_v33, %v8551_v6  ;;  %v12178_v42 = vpop.eup %12177  ;;  %12195 = vrcp.f32 %v5207_v58 }
 0x990   : > { %v12180_v45 = vpop.eup %12179  ;;  %12197 = vrcp.f32 %v15457_v19 }
 0x991   : > { %11936 = vrot.lane.b32.xlu0 %v11935_v46, %s12432_s5  ;;  %v12182_v16 = vpop.eup %12181  ;;  %v8538_v10 = vmul.f32 %v12180_v45, %v16703_v38  ;;  %v15476_v32 = vpop.xlane.xlu1 %5305  ;;  %12199 = vrcp.f32 %v15464_v21 }
 0x992   : > { %v5213_v29 = vpop.xlane.xlu0 %5212  ;;  %v12184_v43 = vpop.eup %12183  ;;  %v8537_v12 = vmul.f32 %v12182_v16, %v16704_v54  ;;  %12201 = vrcp.f32 %v5258_v44 }
 0x993   : > { %v12186_v28 = vpop.eup %12185  ;;  %v8554_v37 = vmul.f32 %v12184_v43, %v16705_v13 }
 0x994   : > { %v11930_v26 = vpack.i.bf16 %v8538_v10, %v8537_v12  ;;  %v8553_v63 = vmul.f32 %v12186_v28, %v16706_v15  ;;  %v12188_v19 = vpop.eup %12187 }
 0x995   : > { %v5120_v53 = vpop.xlane.xlu1 %5119  ;;  %v12190_v24 = vpop.eup %12189 }
 0x996   : > { %v5255_v62 = vpop.xlane.xlu0 %5254  ;;  %v11940_v48 = vpack.i.bf16 %v8554_v37, %v8553_v63  ;;  %v12192_v21 = vpop.eup %12191 }
 0x997   : > { %12203 = vrcp.f32 %v5255_v62  ;;  %v12194_v6 = vpop.eup %12193 }
 0x998   : > { %v8057_v50 = vpop.f32.mrf.mxu1  ;;  %12205 = vrcp.f32 %v15467_v27 }
 0x999   : > { %v8566_v22 = vmul.f32 %v12178_v42, %v8057_v50  ;;  %v5126_v55 = vpop.xlane.xlu1 %5125  ;;  %12207 = vrcp.f32 %v5213_v29  ;;  %v16707_v50 = vld [vmem:[#allocation98_spill] sm:$0xff] }
 0x99a   : > { %v5261_v31 = vpop.xlane.xlu0 %5260  ;;  %v11534_v23 = vpop.f32.mrf.mxu1  ;;  %12209 = vrcp.f32 %v5120_v53 }
 0x99b   : > { %v11920_v5 = vpack.i.bf16 %v8566_v22, %v8565_v11  ;;  %12211 = vrcp.f32 %v5126_v55 }
 0x99c   : > { %v8060_v3 = vpop.f32.mrf.mxu1  ;;  %12213 = vrcp.f32 %v5261_v31  ;;  %v12196_v27 = vpop.eup %12195 }
 0x99d   : > { %11921 = vrot.lane.b32.xlu1 %v11920_v5, %s12433_s24  ;;  %v15486_v9 = vpop.xlane.xlu1 %5131  ;;  %v12198_v1 = vpop.eup %12197  ;;  %v8540_v11 = vmul.f32 %v12196_v27, %v16707_v50  ;;  %v16708_v5 = vld [vmem:[#allocation97_spill] sm:$0xff] }
 0x99e   : > { %v5303_v61 = vpop.xlane.xlu0 %5302  ;;  %v11535_v60 = vpop.f32.mrf.mxu1  ;;  %v8539_v38 = vmul.f32 %v12192_v21, %v16708_v5 }
 0x99f   : > { %v12200_v29 = vpop.eup %12199 }
 0x9a0   : > { %v12202_v62 = vpop.eup %12201  ;;  %v11955_v28 = vpack.i.bf16 %v8540_v11, %v8539_v38 }
 0x9a1   : > { %11931 = vrot.lane.b32.xlu1 %v11930_v26, %s12431_s30  ;;  %v15488_v59 = vpop.xlane.xlu1 %5137 }
 0x9a2   : > { %v15483_v25 = vpop.xlane.xlu0 %5308 }
 0x9a4   : > { %v12204_v22 = vpop.eup %12203 }
 0x9a5   : > { %11941 = vrot.lane.b32.xlu1 %v11940_v48, %s12432_s5  ;;  %v15492_v41 = vpop.xlane.xlu1 %5143  ;;  %v12206_v23 = vpop.eup %12205  ;;  %v16710_v48 = vld [vmem:[#allocation43_spill] sm:$0xff] }
 0x9a6   : > { %v5123_v36 = vpop.xlane.xlu0 %5122  ;;  %v12208_v10 = vpop.eup %12207  ;;  %v8555_v55 = vmul.f32 %v12200_v29, %v16710_v48  ;;  %v16714_v29 = vld [vmem:[#allocation74_spill] sm:$0xff] }
 0x9a7   : > { %12215 = vrcp.f32 %v5123_v36  ;;  %v12210_v3 = vpop.eup %12209  ;;  %v16711_v36 = vld [vmem:[#allocation13_spill] sm:$0xff] }
 0x9a8   : > { %v12212_v26 = vpop.eup %12211 }
 0x9a9   : > { %v15500_v8 = vpop.xlane.xlu1 %5149  ;;  %v12214_v37 = vpop.eup %12213 }
 0x9aa   : > { %v5129_v17 = vpop.xlane.xlu0 %5128 }
 0x9ab   : > { %12217 = vrcp.f32 %v5129_v17  ;;  %v8542_v17 = vmul.f32 %v12208_v10, %v16711_v36 }
 0x9ac   : > { %12219 = vrcp.f32 %v15473_v35 }
 0x9ad   : > { %v15507_v40 = vpop.xlane.xlu1 %5155  ;;  %12221 = vrcp.f32 %v5303_v61  ;;  %v16709_v61 = vld [vmem:[#allocation35_spill] sm:$0xff] }
 0x9ae   : > { %v15490_v34 = vpop.xlane.xlu0 %5134  ;;  %v8556_v60 = vmul.f32 %v12204_v22, %v16709_v61  ;;  %12223 = vrcp.f32 %v15476_v32  ;;  %v8557_v32 = vmul.f32 %v12202_v62, %v15208_v4  ;;  %v16716_v22 = vld [vmem:[#allocation25_spill] sm:$0xff]  ;;  %v8558_v4 = vmul.f32 %v12214_v37, %v15231_v0 }
 0x9af   : > { %12225 = vrcp.f32 %v15483_v25 }
 0x9b0   : > { %12227 = vrcp.f32 %v15486_v9 }
 0x9b1   : > { %v15511_v20 = vpop.xlane.xlu1 %5161  ;;  %12229 = vrcp.f32 %v15490_v34 }
 0x9b2   : > { %v15494_v39 = vpop.xlane.xlu0 %5140  ;;  %12231 = vrcp.f32 %v15488_v59 }
 0x9b3   : > { %12233 = vrcp.f32 %v15494_v39 }
 0x9b4   : > { %12235 = vrcp.f32 %v15492_v41  ;;  %v16721_v41 = vld [vmem:[#allocation78_spill] sm:$0xff] }
 0x9b6   : > { %v15503_v52 = vpop.xlane.xlu0 %5146 }
 0x9b7   : > { %12237 = vrcp.f32 %v15503_v52  ;;  %v16722_v52 = vld [vmem:[#allocation12_spill] sm:$0xff] }
 0x9b8   : > { %12239 = vrcp.f32 %v15500_v8 }
 0x9ba   : > { %v15509_v49 = vpop.xlane.xlu0 %5152 }
 0x9bb   : > { %12241 = vrcp.f32 %v15509_v49 }
 0x9bc   : > { %12243 = vrcp.f32 %v15507_v40 }
 0x9bd   : > { %v8105_v57 = vpop.f32.mrf.mxu0 }
 0x9be   : > { %v15513_v33 = vpop.xlane.xlu0 %5158  ;;  %v8567_v46 = vmul.f32 %v12188_v19, %v8105_v57  ;;  %v12216_v57 = vpop.eup %12215 }
 0x9bf   : > { %v11540_v47 = vpop.f32.mrf.mxu0  ;;  %12245 = vrcp.f32 %v15513_v33 }
 0x9c0   : > { %12247 = vrcp.f32 %v15511_v20 }
 0x9c1   : > { %v8108_v30 = vpop.f32.mrf.mxu0 }
 0x9c2   : > { %v15521_v43 = vpop.xlane.xlu0 %5164 }
 0x9c3   : > { %v11541_v7 = vpop.f32.mrf.mxu0 }
 0x9c5   : > { %v8201_v51 = vpop.f32.mrf.mxu0 }
 0x9c6   : > { %v11867_v42 = vpop.permute.xlu1 %11866  ;;  %v8569_v15 = vmul.f32 %v12190_v24, %v8201_v51 }
 0x9c7   : > { %v11552_v2 = vpop.f32.mrf.mxu0  ;;  %v11868_v47 = vunpack.i.l.bf16 %v11867_v42  ;;  %v11869_v51 = vunpack.i.h.bf16 %v11867_v42 }
 0x9c8   : > { %v16712_v2 = vld [vmem:[#allocation23_spill] sm:$0xff] }
 0x9c9   : > { %v8204_v18 = vpop.f32.mrf.mxu0  ;;  %v8541_v19 = vmul.f32 %v12198_v1, %v16712_v2 }
 0x9ca   : > { %v12218_v18 = vpop.eup %12217  ;;  %12249 = vrcp.f32 %v15521_v43 }
 0x9cb   : > { %v11553_v14 = vpop.f32.mrf.mxu0  ;;  %v11960_v25 = vpack.i.bf16 %v8542_v17, %v8541_v19  ;;  %v12220_v62 = vpop.eup %12219 }
 0x9cc   : > { %v11965_v14 = vpack.i.bf16 %v8556_v60, %v8555_v55 }
 0x9cd   : > { %v8153_v58 = vpop.f32.mrf.mxu1 }
 0x9ce   : > { %v8568_v44 = vmul.f32 %v12194_v6, %v8153_v58  ;;  %v11872_v30 = vpop.permute.xlu0 %11871  ;;  %v16713_v6 = vld [vmem:[#allocation72_spill] sm:$0xff] }
 0x9cf   : > { %v11546_v56 = vpop.f32.mrf.mxu1  ;;  %v8511_v27 = vmul.f32 %v12210_v3, %v16713_v6 }
 0x9d0   : > { %v11945_v45 = vpack.i.bf16 %v8568_v44, %v8567_v46  ;;  %v8512_v56 = vmul.f32 %v12216_v57, %v16714_v29 }
 0x9d1   : > { %v8156_v16 = vpop.f32.mrf.mxu1  ;;  %v15517_v31 = vpop.f32.mrf.mxu0  ;;  %v8767_v42 = vsel %vm1600_vm3, %v8511_v27, %v11868_v47  ;;  %v11970_v47 = vpack.i.bf16 %v8558_v4, %v8557_v32 }
 0x9d2   : > { %11946 = vrot.lane.b32.xlu0 %v11945_v45, %s12433_s24  ;;  %v11877_v54 = vpop.permute.xlu1 %11876  ;;  %v16715_v45 = vld [vmem:[#allocation75_spill] sm:$0xff]  ;;  %v8514_v16 = vmul.f32 %v12218_v18, %v16716_v22  ;;  %v8768_v10 = vsel %vm1600_vm3, %v8512_v56, %v11869_v51 }
 0x9d3   : > { %v11547_v35 = vpop.f32.mrf.mxu1  ;;  %v11564_v12 = vpop.f32.mrf.mxu0  ;;  %v11879_v58 = vunpack.i.h.bf16 %v11877_v54  ;;  %v11878_v46 = vunpack.i.l.bf16 %v11877_v54  ;;  %v8513_v50 = vmul.f32 %v12212_v26, %v16715_v45 }
 0x9d4   : > { %v11873_v35 = vunpack.i.l.bf16 %v11872_v30 }
 0x9d5   : > { %v8249_v13 = vpop.f32.mrf.mxu1  ;;  %v8300_v53 = vpop.f32.mrf.mxu0  ;;  %v8784_v61 = vsel %vm8783_vm5, %v8767_v42, %v11878_v46  ;;  %v8785_v60 = vsel %vm8783_vm5, %v8768_v10, %v11879_v58 }
 0x9d6   : > { %v8570_v63 = vmul.f32 %v12206_v23, %v8249_v13  ;;  %11956 = vrot.lane.b32.xlu0 %v11955_v28, %s12431_s30  ;;  %v11874_v23 = vunpack.i.h.bf16 %v11872_v30  ;;  %v12222_v28 = vpop.eup %12221  ;;  %v8769_v30 = vsel %vm1600_vm3, %v8513_v50, %v11873_v35 }
 0x9d7   : > { %v11558_v7 = vpop.f32.mrf.mxu1  ;;  %v11565_v21 = vpop.f32.mrf.mxu0 }
 0x9d8   : > { %v11950_v24 = vpack.i.bf16 %v8570_v63, %v8569_v15  ;;  %v11882_v11 = vpop.permute.xlu1 %11881  ;;  %v8571_v63 = vmul.f32 %v12220_v62, %v15517_v31  ;;  %v8770_v55 = vsel %vm1600_vm3, %v8514_v16, %v11874_v23  ;;  %v12224_v9 = vpop.eup %12223  ;;  %v16718_v62 = vld [vmem:[#allocation81_spill] sm:$0xff] }
 0x9d9   : > { %v8252_v44 = vpop.f32.mrf.mxu1  ;;  %v8393_v1 = vpop.f32.mrf.mxu0  ;;  %v11884_v26 = vunpack.i.h.bf16 %v11882_v11  ;;  %v11883_v13 = vunpack.i.l.bf16 %v11882_v11 }
 0x9da   : > { %11951 = vrot.lane.b32.xlu1 %v11950_v24, %s12433_s24  ;;  %11966 = vrot.lane.b32.xlu0 %v11965_v14, %s12432_s5  ;;  %v12226_v58 = vpop.eup %12225  ;;  %v8573_v44 = vmul.f32 %v12224_v9, %v8393_v1 }
 0x9db   : > { %v11887_v5 = vpop.permute.xlu0 %11886  ;;  %v11559_v38 = vpop.f32.mrf.mxu1  ;;  %v8786_v18 = vsel %vm8783_vm5, %v8769_v30, %v11883_v13  ;;  %v8787_v51 = vsel %vm8783_vm5, %v8770_v55, %v11884_v26 }
 0x9dc   : > { %v11889_v3 = vunpack.i.h.bf16 %v11887_v5  ;;  %v11888_v54 = vunpack.i.l.bf16 %v11887_v5  ;;  %v11576_v12 = vpop.f32.mrf.mxu0  ;;  %v12228_v11 = vpop.eup %12227  ;;  %v16717_v38 = vld [vmem:[#allocation76_spill] sm:$0xff] }
 0x9dd   : > { %v8345_v15 = vpop.f32.mrf.mxu1  ;;  %v12230_v42 = vpop.eup %12229  ;;  %v8515_v4 = vmul.f32 %v12228_v11, %v16717_v38 }
 0x9de   : > { %v8802_v53 = vsel %vm8800_vm6, %v8785_v60, %v11889_v3  ;;  %v8801_v0 = vsel %vm8800_vm6, %v8784_v61, %v11888_v54  ;;  %v8572_v37 = vmul.f32 %v12222_v28, %v8345_v15  ;;  %v8396_v48 = vpop.f32.mrf.mxu0  ;;  %11961 = vrot.lane.b32.xlu1 %v11960_v25, %s12431_s30  ;;  %v8516_v10 = vmul.f32 %v12230_v42, %v16718_v62 }
 0x9df   : > { %v8821_v36 = vpack.c.bf16 %v8802_v53, %v8801_v0  ;;  %v11892_v17 = vpop.permute.xlu1 %11891  ;;  %v11570_v57 = vpop.f32.mrf.mxu1 }
 0x9e0   : > { %v11975_v7 = vpack.i.bf16 %v8572_v37, %v8571_v63  ;;  %v11894_v2 = vunpack.i.h.bf16 %v11892_v17  ;;  %v11893_v19 = vunpack.i.l.bf16 %v11892_v17  ;;  %v11577_v31 = vpop.f32.mrf.mxu0  ;;  %v12232_v63 = vpop.eup %12231  ;;  %v16719_v17 = vld [vmem:[#allocation77_spill] sm:$0xff] }
 0x9e1   : > { %11588 = vmatprep.mubr.msk.bf16.mxu0 %vm1139_vm1, %v8821_v36  ;;  %v8348_v24 = vpop.f32.mrf.mxu1  ;;  %v12234_v0 = vpop.eup %12233  ;;  %v8517_v57 = vmul.f32 %v12232_v63, %v16719_v17 }
 0x9e2   : > { %v8803_v21 = vsel %vm8800_vm6, %v8786_v18, %v11893_v19  ;;  %v8804_v14 = vsel %vm8800_vm6, %v8787_v51, %v11894_v2  ;;  %11971 = vrot.lane.b32.xlu1 %v11970_v47, %s12432_s5  ;;  %11976 = vrot.lane.b32.xlu0 %v11975_v7, %s12433_s24  ;;  %v16720_v47 = vld [vmem:[#allocation83_spill] sm:$0xff] }
 0x9e3   : > { %v8822_v6 = vpack.c.bf16 %v8804_v14, %v8803_v21  ;;  %v11571_v27 = vpop.f32.mrf.mxu1  ;;  %v11897_v45 = vpop.permute.xlu0 %11896  ;;  %v8518_v30 = vmul.f32 %v12234_v0, %v16720_v47 }
 0x9e4   : > { %v11899_v22 = vunpack.i.h.bf16 %v11897_v45  ;;  %v11898_v16 = vunpack.i.l.bf16 %v11897_v45 }
 0x9e5   : > { %11589 = vmatmul.mubr.msk.bf16.vlgmr.msra.gmra.mxu0 %vm1139_vm1, %v8822_v6  ;;  %v8441_v46 = vpop.f32.mrf.mxu1  ;;  %v12236_v6 = vpop.eup %12235 }
 0x9e6   : > { %v8574_v32 = vmul.f32 %v12226_v58, %v8441_v46  ;;  %v8772_v35 = vsel %vm1600_vm3, %v8516_v10, %v11899_v22  ;;  %v8771_v3 = vsel %vm1600_vm3, %v8515_v4, %v11898_v16  ;;  %v12238_v9 = vpop.eup %12237 }
 0x9e7   : > { %v11582_v29 = vpop.f32.mrf.mxu1  ;;  %v11902_v15 = vpop.permute.xlu1 %11901 }
 0x9e8   : > { %v11980_v56 = vpack.i.bf16 %v8574_v32, %v8573_v44  ;;  %v11904_v37 = vunpack.i.h.bf16 %v11902_v15  ;;  %v11903_v48 = vunpack.i.l.bf16 %v11902_v15  ;;  %v12240_v40 = vpop.eup %12239 }
 0x9e9   : > { %v8444_v34 = vpop.f32.mrf.mxu1 }
 0x9ea   : > { %11981 = vrot.lane.b32.xlu1 %v11980_v56, %s12433_s24  ;;  %v8773_v2 = vsel %vm1600_vm3, %v8517_v57, %v11903_v48  ;;  %v8774_v19 = vsel %vm1600_vm3, %v8518_v30, %v11904_v37  ;;  %v8519_v56 = vmul.f32 %v12236_v6, %v16721_v41  ;;  %v8520_v34 = vmul.f32 %v12238_v9, %v16722_v52  ;;  %v16725_v30 = vld [vmem:[#allocation80_spill] sm:$0xff] }
 0x9eb   : > { %v11583_v50 = vpop.f32.mrf.mxu1  ;;  %v11907_v25 = vpop.permute.xlu0 %11906 }
 0x9ec   : > { %v11909_v23 = vunpack.i.h.bf16 %v11907_v25  ;;  %v11908_v5 = vunpack.i.l.bf16 %v11907_v25 }
 0x9ee   : > { %v8788_v28 = vsel %vm8783_vm5, %v8771_v3, %v11908_v5  ;;  %v8789_v61 = vsel %vm8783_vm5, %v8772_v35, %v11909_v23  ;;  %v12242_v23 = vpop.eup %12241  ;;  %v16723_v35 = vld [vmem:[#allocation24_spill] sm:$0xff] }
 0x9ef   : > { %v11912_v53 = vpop.permute.xlu1 %11911  ;;  %v8521_v3 = vmul.f32 %v12240_v40, %v16723_v35  ;;  %v12244_v63 = vpop.eup %12243 }
 0x9f0   : > { %v11914_v55 = vunpack.i.h.bf16 %v11912_v53  ;;  %v11913_v36 = vunpack.i.l.bf16 %v11912_v53  ;;  %v12246_v37 = vpop.eup %12245 }
 0x9f2   : > { %v8790_v39 = vsel %vm8783_vm5, %v8773_v2, %v11913_v36  ;;  %v8791_v18 = vsel %vm8783_vm5, %v8774_v19, %v11914_v55  ;;  %v16726_v2 = vld [vmem:[#allocation85_spill] sm:$0xff] }
 0x9f3   : > { %v11917_v1 = vpop.permute.xlu0 %11916  ;;  %v8524_v19 = vmul.f32 %v12246_v37, %v16726_v2 }
 0x9f4   : > { %v11919_v54 = vunpack.i.h.bf16 %v11917_v1  ;;  %v11918_v12 = vunpack.i.l.bf16 %v11917_v1 }
 0x9f6   : > { %v8805_v60 = vsel %vm8800_vm6, %v8788_v28, %v11918_v12  ;;  %v8806_v26 = vsel %vm8800_vm6, %v8789_v61, %v11919_v54  ;;  %v16724_v54 = vld [vmem:[#allocation84_spill] sm:$0xff] }
 0x9f7   : > { %v8823_v13 = vpack.c.bf16 %v8806_v26, %v8805_v60  ;;  %v8522_v12 = vmul.f32 %v12242_v23, %v16724_v54  ;;  %v12367_v54 = vld [vmem:[#allocation2 + $0x10] sm:$0xff] }
 0x9f9   : > { %11592 = vmatprep.mubr.msk.bf16.mxu0 %vm1139_vm1, %v8823_v13 }
 0x9fb   : > { %v11927_v14 = vpop.permute.xlu0 %11926 }
 0x9fc   : > { %v11929_v58 = vunpack.i.h.bf16 %v11927_v14  ;;  %v11928_v46 = vunpack.i.l.bf16 %v11927_v14  ;;  %v12248_v14 = vpop.eup %12247 }
 0x9fe   : > { %v8776_v49 = vsel %vm1600_vm3, %v8520_v34, %v11929_v58  ;;  %v8775_v45 = vsel %vm1600_vm3, %v8519_v56, %v11928_v46  ;;  %v12250_v58 = vpop.eup %12249  ;;  %v16727_v56 = vld [vmem:[#allocation82_spill] sm:$0xff] }
 0x9ff   : > { %v8525_v52 = vmul.f32 %v12248_v14, %v16727_v56  ;;  %v16728_v34 = vld [vmem:[#allocation86_spill] sm:$0xff] }
 0xa03   : > { %v11937_v27 = vpop.permute.xlu0 %11936 }
 0xa04   : > { %v11939_v32 = vunpack.i.h.bf16 %v11937_v27  ;;  %v11938_v29 = vunpack.i.l.bf16 %v11937_v27 }
 0xa06   : > { %v8792_v25 = vsel %vm8783_vm5, %v8775_v45, %v11938_v29  ;;  %v8793_v42 = vsel %vm8783_vm5, %v8776_v49, %v11939_v32 }
 0xa0f   : > { %v11922_v7 = vpop.permute.xlu1 %11921 }
 0xa10   : > { %v11924_v59 = vunpack.i.h.bf16 %v11922_v7  ;;  %v11923_v31 = vunpack.i.l.bf16 %v11922_v7  ;;  %v8523_v7 = vmul.f32 %v12244_v63, %v16725_v30  ;;  %v12371_v30 = vld [vmem:[#allocation2 + $0x30] sm:$0xff] }
 0xa12   : > { %v8807_v51 = vsel %vm8800_vm6, %v8790_v39, %v11923_v31  ;;  %v8808_v24 = vsel %vm8800_vm6, %v8791_v18, %v11924_v59 }
 0xa13   : > { %v8824_v21 = vpack.c.bf16 %v8808_v24, %v8807_v51  ;;  %v11932_v44 = vpop.permute.xlu1 %11931 }
 0xa14   : > { %v11934_v38 = vunpack.i.h.bf16 %v11932_v44  ;;  %v11933_v4 = vunpack.i.l.bf16 %v11932_v44 }
 0xa15   : > { %11593 = vmatmul.mubr.msk.bf16.gmra.mxu0 %vm1139_vm1, %v8824_v21 }
 0xa16   : > { %v8777_v61 = vsel %vm1600_vm3, %v8521_v3, %v11933_v4  ;;  %v8778_v60 = vsel %vm1600_vm3, %v8522_v12, %v11934_v38 }
 0xa17   : > { %v11942_v22 = vpop.permute.xlu1 %11941 }
 0xa18   : > { %v11944_v10 = vunpack.i.h.bf16 %v11942_v22  ;;  %v11943_v1 = vunpack.i.l.bf16 %v11942_v22 }
 0xa1a   : > { %v8794_v15 = vsel %vm8783_vm5, %v8777_v61, %v11943_v1  ;;  %v8795_v20 = vsel %vm8783_vm5, %v8778_v60, %v11944_v10  ;;  %v12366_v1 = vld [vmem:[#allocation2] sm:$0xff] }
 0xa44   : > { %v11947_v8 = vpop.permute.xlu0 %11946 }
 0xa45   : > { %v11949_v50 = vunpack.i.h.bf16 %v11947_v8  ;;  %v11948_v11 = vunpack.i.l.bf16 %v11947_v8  ;;  %v8526_v8 = vmul.f32 %v12250_v58, %v16728_v34 }
 0xa47   : > { %v8809_v16 = vsel %vm8800_vm6, %v8792_v25, %v11948_v11  ;;  %v8810_v33 = vsel %vm8800_vm6, %v8793_v42, %v11949_v50 }
 0xa48   : > { %v8825_v5 = vpack.c.bf16 %v8810_v33, %v8809_v16  ;;  %v11957_v62 = vpop.permute.xlu0 %11956 }
 0xa49   : > { %v11959_v55 = vunpack.i.h.bf16 %v11957_v62  ;;  %v11958_v36 = vunpack.i.l.bf16 %v11957_v62 }
 0xa4a   : > { %11596 = vmatprep.mubr.msk.bf16.mxu0 %vm1139_vm1, %v8825_v5  ;;  %v15628_v5 = vld [vmem:[%s16729_s17] ss:$0 sm:$0xff] }
 0xa4b   : > { %v8780_v31 = vsel %vm1600_vm3, %v8524_v19, %v11959_v55  ;;  %v8779_v39 = vsel %vm1600_vm3, %v8523_v7, %v11958_v36 }
 0xa4c   : > { %v11952_v28 = vpop.permute.xlu1 %11951  ;;  %v11967_v0 = vpop.permute.xlu0 %11966 }
 0xa4d   : > { %v11954_v26 = vunpack.i.h.bf16 %v11952_v28  ;;  %v11953_v13 = vunpack.i.l.bf16 %v11952_v28  ;;  %v11969_v57 = vunpack.i.h.bf16 %v11967_v0  ;;  %v11968_v47 = vunpack.i.l.bf16 %v11967_v0 }
 0xa4f   : > { %v8811_v53 = vsel %vm8800_vm6, %v8794_v15, %v11953_v13  ;;  %v8812_v43 = vsel %vm8800_vm6, %v8795_v20, %v11954_v26  ;;  %v8796_v24 = vsel %vm8783_vm5, %v8779_v39, %v11968_v47  ;;  %v8797_v21 = vsel %vm8783_vm5, %v8780_v31, %v11969_v57  ;;  %v12368_v26 = vld [vmem:[#allocation2 + $0x8] sm:$0xff]  ;;  %v12369_v15 = vld [vmem:[#allocation2 + $0x18] sm:$0xff] }
 0xa50   : > { %v8826_v48 = vpack.c.bf16 %v8812_v43, %v8811_v53  ;;  %v11962_v17 = vpop.permute.xlu1 %11961  ;;  %v12372_v31 = vld [vmem:[#allocation2 + $0x28] sm:$0xff] }
 0xa51   : > { %v11964_v44 = vunpack.i.h.bf16 %v11962_v17  ;;  %v11963_v32 = vunpack.i.l.bf16 %v11962_v17  ;;  %v12370_v17 = vld [vmem:[#allocation2 + $0x20] sm:$0xff] }
 0xa52   : > { %11597 = vmatmul.mubr.msk.bf16.gmra.mxu0 %vm1139_vm1, %v8826_v48 }
 0xa53   : > { %v8781_v45 = vsel %vm1600_vm3, %v8525_v52, %v11963_v32  ;;  %v8782_v50 = vsel %vm1600_vm3, %v8526_v8, %v11964_v44  ;;  %v12374_v44 = vld [vmem:[#allocation2 + $0x40] sm:$0xff] }
 0xa54   : > { %v11977_v59 = vpop.permute.xlu0 %11976  ;;  %v11972_v6 = vpop.permute.xlu1 %11971 }
 0xa55   : > { %v11979_v18 = vunpack.i.h.bf16 %v11977_v59  ;;  %v11978_v51 = vunpack.i.l.bf16 %v11977_v59  ;;  %v11974_v29 = vunpack.i.h.bf16 %v11972_v6  ;;  %v11973_v41 = vunpack.i.l.bf16 %v11972_v6 }
 0xa57   : > { %v8813_v27 = vsel %vm8800_vm6, %v8796_v24, %v11978_v51  ;;  %v8814_v9 = vsel %vm8800_vm6, %v8797_v21, %v11979_v18  ;;  %v8798_v42 = vsel %vm8783_vm5, %v8781_v45, %v11973_v41  ;;  %v8799_v40 = vsel %vm8783_vm5, %v8782_v50, %v11974_v29  ;;  %v12373_v18 = vld [vmem:[#allocation2 + $0x38] sm:$0xff]  ;;  %v12375_v41 = vld [vmem:[#allocation2 + $0x50] sm:$0xff] }
 0xa58   : > { %v8827_v46 = vpack.c.bf16 %v8814_v9, %v8813_v27  ;;  %v12377_v50 = vld [vmem:[#allocation2 + $0x58] sm:$0xff] }
 0xa5a   : > { %11600 = vmatprep.mubr.msk.bf16.mxu0 %vm1139_vm1, %v8827_v46 }
 0xa5c   : > { %v11982_v49 = vpop.permute.xlu1 %11981 }
 0xa5d   : > { %v11984_v11 = vunpack.i.h.bf16 %v11982_v49  ;;  %v11983_v25 = vunpack.i.l.bf16 %v11982_v49  ;;  %v12376_v49 = vld [vmem:[#allocation2 + $0x48] sm:$0xff] }
 0xa5f   : > { %v8815_v22 = vsel %vm8800_vm6, %v8798_v42, %v11983_v25  ;;  %v8816_v16 = vsel %vm8800_vm6, %v8799_v40, %v11984_v11 }
 0xa60   : > { %v8828_v33 = vpack.c.bf16 %v8816_v16, %v8815_v22 }
 0xa62   : > { %11601 = vmatmul.mubr.msk.bf16.gmra.mxu0 %vm1139_vm1, %v8828_v33 }
 0xaa5   : > { %v11590_v23 = vpop.f32.mrf.mxu0 }
 0xaa6   : > { %v8915_v4 = vadd.f32 %v11590_v23, %v15628_v5 }
 0xaa7   : > { %v8906_v38 = vpop.f32.mrf.mxu0 }
 0xaa8   : > { %v8907_v62 = vadd.f32 %v15628_v5, %v8906_v38  ;;  %v15634_v12 = vadd.f32 %v12367_v54, %v8915_v4  ;;  %v12378_v4 = vld [vmem:[#allocation2 + $0x60] sm:$0xff] }
 0xaa9   : > { %v11591_v10 = vpop.f32.mrf.mxu0 }
 0xaaa   : > { %v15632_v35 = vadd.f32 %v12366_v1, %v8907_v62  ;;  %v8918_v28 = vadd.f32 %v11591_v10, %v15628_v5  ;;  %v8993_v53 = vsel %vm1139_vm1, %v15634_v12, 0.0  ;;  %v12379_v1 = vld [vmem:[#allocation2 + $0x70] sm:$0xff] }
 0xaab   : > { %v8909_v3 = vpop.f32.mrf.mxu0 }
 0xaac   : > { %v8910_v61 = vadd.f32 %v15628_v5, %v8909_v3  ;;  %v8987_v60 = vsel %vm1139_vm1, %v15632_v35, 0.0  ;;  %v15642_v20 = vadd.f32 %v12369_v15, %v8918_v28  ;;  %v12381_v15 = vld [vmem:[#allocation2 + $0x78] sm:$0xff] }
 0xaad   : > { %8988 = vadd.xlane.f32.xlu0 %v8987_v60  ;;  %v12380_v60 = vld [vmem:[#allocation2 + $0x68] sm:$0xff] }
 0xaae   : > { %v15640_v13 = vadd.f32 %v12368_v26, %v8910_v61  ;;  %v8996_v43 = vsel %vm1139_vm1, %v15642_v20, 0.0 }
 0xab0   : > { %v8990_v63 = vsel %vm1139_vm1, %v15640_v13, 0.0 }
 0xab1   : > { %8991 = vadd.xlane.f32.xlu1 %v8990_v63  ;;  %8994 = vadd.xlane.f32.xlu0 %v8993_v53 }
 0xab5   : > { %8997 = vadd.xlane.f32.xlu0 %v8996_v43 }
 0xad5   : > { %v11594_v0 = vpop.f32.mrf.mxu0 }
 0xad6   : > { %v8931_v48 = vadd.f32 %v11594_v0, %v15628_v5 }
 0xad7   : > { %v8922_v37 = vpop.f32.mrf.mxu0 }
 0xad8   : > { %v8923_v55 = vadd.f32 %v15628_v5, %v8922_v37  ;;  %v15654_v7 = vadd.f32 %v12371_v30, %v8931_v48 }
 0xad9   : > { %v11595_v36 = vpop.f32.mrf.mxu0 }
 0xada   : > { %v15652_v57 = vadd.f32 %v12370_v17, %v8923_v55  ;;  %v8934_v2 = vadd.f32 %v11595_v36, %v15628_v5  ;;  %v9005_v24 = vsel %vm1139_vm1, %v15654_v7, 0.0 }
 0xadb   : > { %v8925_v47 = vpop.f32.mrf.mxu0 }
 0xadc   : > { %v8926_v19 = vadd.f32 %v15628_v5, %v8925_v47  ;;  %v8999_v59 = vsel %vm1139_vm1, %v15652_v57, 0.0  ;;  %v15662_v51 = vadd.f32 %v12373_v18, %v8934_v2 }
 0xadd   : > { %9000 = vadd.xlane.f32.xlu1 %v8999_v59 }
 0xade   : > { %v15660_v39 = vadd.f32 %v12372_v31, %v8926_v19  ;;  %v9008_v14 = vsel %vm1139_vm1, %v15662_v51, 0.0 }
 0xae0   : > { %v9002_v21 = vsel %vm1139_vm1, %v15660_v39, 0.0 }
 0xae1   : > { %9006 = vadd.xlane.f32.xlu1 %v9005_v24  ;;  %9003 = vadd.xlane.f32.xlu0 %v9002_v21 }
 0xae5   : > { %9009 = vadd.xlane.f32.xlu0 %v9008_v14 }
 0xb12   : > { %v11598_v6 = vpop.f32.mrf.mxu0 }
 0xb13   : > { %v8947_v9 = vadd.f32 %v11598_v6, %v15628_v5 }
 0xb14   : > { %v8938_v27 = vpop.f32.mrf.mxu0 }
 0xb15   : > { %v8939_v58 = vadd.f32 %v15628_v5, %v8938_v27  ;;  %v15674_v56 = vadd.f32 %v12375_v41, %v8947_v9  ;;  %v11989_v27 = vld [vmem:[%s12612_s26 + $0x8] sm:$0xff]   ;;  %v11990_v9 = vld [vmem:[%s12612_s26] sm:$0xff]  }
 0xb16   : > { %v11599_v46 = vpop.f32.mrf.mxu0  ;;  %11604 = vmatprep.subr.bf16.mxu1 %v11989_v27 }
 0xb17   : > { %v15672_v32 = vadd.f32 %v12374_v44, %v8939_v58  ;;  %v8950_v52 = vadd.f32 %v11599_v46, %v15628_v5  ;;  %v9017_v25 = vsel %vm1139_vm1, %v15674_v56, 0.0  ;;  %11605 = vmatpush3.bf16.msra.mxu1 %v11989_v27 }
 0xb18   : > { %v8941_v29 = vpop.f32.mrf.mxu0  ;;  %11606 = vmatprep.subr.bf16.mxu1 %v11990_v9 }
 0xb19   : > { %v8942_v34 = vadd.f32 %v15628_v5, %v8941_v29  ;;  %v9011_v8 = vsel %vm1139_vm1, %v15672_v32, 0.0  ;;  %v15682_v11 = vadd.f32 %v12377_v50, %v8950_v52 }
 0xb1a   : > { %9012 = vadd.xlane.f32.xlu1 %v9011_v8 }
 0xb1b   : > { %v15680_v45 = vadd.f32 %v12376_v49, %v8942_v34  ;;  %v9020_v40 = vsel %vm1139_vm1, %v15682_v11, 0.0  ;;  %11607 = vmatpush3.bf16.msra.mxu1 %v11990_v9 }
 0xb1d   : > { %v9014_v42 = vsel %vm1139_vm1, %v15680_v45, 0.0 }
 0xb1e   : > { %9018 = vadd.xlane.f32.xlu1 %v9017_v25  ;;  %9015 = vadd.xlane.f32.xlu0 %v9014_v42 }
 0xb22   : > { %v11602_v22 = vpop.f32.mrf.mxu0  ;;  %9021 = vadd.xlane.f32.xlu0 %v9020_v40 }
 0xb23   : > { %v8963_v33 = vadd.f32 %v11602_v22, %v15628_v5 }
 0xb24   : > { %v8954_v16 = vpop.f32.mrf.mxu0 }
 0xb25   : > { %v8955_v23 = vadd.f32 %v15628_v5, %v8954_v16  ;;  %v15694_v3 = vadd.f32 %v12379_v1, %v8963_v33 }
 0xb26   : > { %v11603_v38 = vpop.f32.mrf.mxu0 }
 0xb27   : > { %v15692_v62 = vadd.f32 %v12378_v4, %v8955_v23  ;;  %v8966_v54 = vadd.f32 %v11603_v38, %v15628_v5  ;;  %v9029_v53 = vsel %vm1139_vm1, %v15694_v3, 0.0 }
 0xb28   : > { %v8957_v10 = vpop.f32.mrf.mxu0 }
 0xb29   : > { %v8958_v28 = vadd.f32 %v15628_v5, %v8957_v10  ;;  %v9023_v61 = vsel %vm1139_vm1, %v15692_v62, 0.0  ;;  %v15702_v63 = vadd.f32 %v12381_v15, %v8966_v54 }
 0xb2a   : > { %9024 = vadd.xlane.f32.xlu1 %v9023_v61 }
 0xb2b   : > { %v15700_v26 = vadd.f32 %v12380_v60, %v8958_v28  ;;  %v9032_v5 = vsel %vm1139_vm1, %v15702_v63, 0.0 }
 0xb2d   : > { %v9026_v43 = vsel %vm1139_vm1, %v15700_v26, 0.0 }
 0xb2e   : > { %9030 = vadd.xlane.f32.xlu1 %v9029_v53  ;;  %9027 = vadd.xlane.f32.xlu0 %v9026_v43 }
 0xb32   : > { %9033 = vadd.xlane.f32.xlu0 %v9032_v5 }
 0xb36   : > { %v8989_v0 = vpop.xlane.xlu0 %8988 }
 0xb37   : > { %v9036_v37 = vmul.f32 0.03125, %v8989_v0 }
 0xb39   : > { %v15711_v48 = vsub.f32 %v15632_v35, %v9036_v37 }
 0xb3a   : > { %v8992_v55 = vpop.xlane.xlu1 %8991  ;;  %v8995_v36 = vpop.xlane.xlu0 %8994 }
 0xb3b   : > { %v9037_v17 = vmul.f32 0.03125, %v8992_v55  ;;  %v9038_v47 = vmul.f32 0.03125, %v8995_v36  ;;  %v9068_v30 = vmul.f32 %v15711_v48, %v15711_v48 }
 0xb3d   : > { %v15716_v2 = vsub.f32 %v15640_v13, %v9037_v17  ;;  %v15719_v19 = vsub.f32 %v15634_v12, %v9038_v47  ;;  %v9084_v59 = vsel %vm1139_vm1, %v9068_v30, 0.0 }
 0xb3e   : > { %9085 = vadd.xlane.f32.xlu1 %v9084_v59  ;;  %v8998_v35 = vpop.xlane.xlu0 %8997 }
 0xb3f   : > { %v9039_v31 = vmul.f32 0.03125, %v8998_v35  ;;  %v9069_v18 = vmul.f32 %v15716_v2, %v15716_v2  ;;  %v9070_v24 = vmul.f32 %v15719_v19, %v15719_v19 }
 0xb41   : > { %v15727_v21 = vsub.f32 %v15642_v20, %v9039_v31  ;;  %v9087_v13 = vsel %vm1139_vm1, %v9069_v18, 0.0  ;;  %v9090_v12 = vsel %vm1139_vm1, %v9070_v24, 0.0 }
 0xb42   : > { %9088 = vadd.xlane.f32.xlu0 %v9087_v13  ;;  %9091 = vadd.xlane.f32.xlu1 %v9090_v12 }
 0xb43   : > { %v9071_v14 = vmul.f32 %v15727_v21, %v15727_v21 }
 0xb45   : > { %v9093_v6 = vsel %vm1139_vm1, %v9071_v14, 0.0 }
 0xb46   : > { %9094 = vadd.xlane.f32.xlu0 %v9093_v6 }
 0xb66   : > { %v9001_v58 = vpop.xlane.xlu1 %9000 }
 0xb67   : > { %v9040_v20 = vmul.f32 0.03125, %v9001_v58 }
 0xb69   : > { %v15737_v46 = vsub.f32 %v15652_v57, %v9040_v20 }
 0xb6a   : > { %v9007_v44 = vpop.xlane.xlu1 %9006  ;;  %v9004_v29 = vpop.xlane.xlu0 %9003 }
 0xb6b   : > { %v9042_v41 = vmul.f32 0.03125, %v9007_v44  ;;  %v9041_v52 = vmul.f32 0.03125, %v9004_v29  ;;  %v9072_v34 = vmul.f32 %v15737_v46, %v15737_v46 }
 0xb6d   : > { %v15742_v8 = vsub.f32 %v15654_v7, %v9042_v41  ;;  %v15745_v49 = vsub.f32 %v15660_v39, %v9041_v52  ;;  %v9096_v50 = vsel %vm1139_vm1, %v9072_v34, 0.0 }
 0xb6e   : > { %9097 = vadd.xlane.f32.xlu1 %v9096_v50  ;;  %v9010_v25 = vpop.xlane.xlu0 %9009 }
 0xb6f   : > { %v9043_v42 = vmul.f32 0.03125, %v9010_v25  ;;  %v9074_v57 = vmul.f32 %v15742_v8, %v15742_v8  ;;  %v9073_v40 = vmul.f32 %v15745_v49, %v15745_v49 }
 0xb71   : > { %v15753_v22 = vsub.f32 %v15662_v51, %v9043_v42  ;;  %v9102_v7 = vsel %vm1139_vm1, %v9074_v57, 0.0  ;;  %v9099_v16 = vsel %vm1139_vm1, %v9073_v40, 0.0 }
 0xb72   : > { %9103 = vadd.xlane.f32.xlu1 %v9102_v7  ;;  %9100 = vadd.xlane.f32.xlu0 %v9099_v16 }
 0xb73   : > { %v9075_v39 = vmul.f32 %v15753_v22, %v15753_v22 }
 0xb75   : > { %v9105_v33 = vsel %vm1139_vm1, %v9075_v39, 0.0  ;;  %v15814_v39 = vld [vmem:[%s16730_s19] ss:$0 sm:$0xff] }
 0xb76   : > { %9106 = vadd.xlane.f32.xlu0 %v9105_v33 }
 0xba3   : > { %v9013_v23 = vpop.xlane.xlu1 %9012 }
 0xba4   : > { %v9044_v38 = vmul.f32 0.03125, %v9013_v23 }
 0xba6   : > { %v15761_v4 = vsub.f32 %v15672_v32, %v9044_v38 }
 0xba7   : > { %v9019_v10 = vpop.xlane.xlu1 %9018  ;;  %v9016_v51 = vpop.xlane.xlu0 %9015 }
 0xba8   : > { %v9046_v1 = vmul.f32 0.03125, %v9019_v10  ;;  %v9045_v54 = vmul.f32 0.03125, %v9016_v51  ;;  %v9076_v28 = vmul.f32 %v15761_v4, %v15761_v4 }
 0xbaa   : > { %v15766_v61 = vsub.f32 %v15674_v56, %v9046_v1  ;;  %v15769_v60 = vsub.f32 %v15680_v45, %v9045_v54  ;;  %v9108_v15 = vsel %vm1139_vm1, %v9076_v28, 0.0  ;;  %v15824_v1 = vld [vmem:[%s16731_s1] ss:$0 sm:$0xff] }
 0xbab   : > { %9109 = vadd.xlane.f32.xlu1 %v9108_v15  ;;  %v9022_v53 = vpop.xlane.xlu0 %9021 }
 0xbac   : > { %v9047_v43 = vmul.f32 0.03125, %v9022_v53  ;;  %v9078_v32 = vmul.f32 %v15766_v61, %v15766_v61  ;;  %v9077_v5 = vmul.f32 %v15769_v60, %v15769_v60 }
 0xbae   : > { %v15777_v0 = vsub.f32 %v15682_v11, %v9047_v43  ;;  %v9114_v56 = vsel %vm1139_vm1, %v9078_v32, 0.0  ;;  %v9111_v37 = vsel %vm1139_vm1, %v9077_v5, 0.0 }
 0xbaf   : > { %9115 = vadd.xlane.f32.xlu1 %v9114_v56  ;;  %9112 = vadd.xlane.f32.xlu0 %v9111_v37 }
 0xbb0   : > { %v9079_v45 = vmul.f32 %v15777_v0, %v15777_v0 }
 0xbb2   : > { %v9117_v55 = vsel %vm1139_vm1, %v9079_v45, 0.0 }
 0xbb3   : > { %v9025_v36 = vpop.xlane.xlu1 %9024  ;;  %9118 = vadd.xlane.f32.xlu0 %v9117_v55 }
 0xbb4   : > { %v9048_v17 = vmul.f32 0.03125, %v9025_v36 }
 0xbb6   : > { %v15785_v47 = vsub.f32 %v15692_v62, %v9048_v17 }
 0xbb7   : > { %v9031_v30 = vpop.xlane.xlu1 %9030  ;;  %v9028_v11 = vpop.xlane.xlu0 %9027 }
 0xbb8   : > { %v9050_v59 = vmul.f32 0.03125, %v9031_v30  ;;  %v9049_v35 = vmul.f32 0.03125, %v9028_v11  ;;  %v9080_v31 = vmul.f32 %v15785_v47, %v15785_v47 }
 0xbba   : > { %v15790_v18 = vsub.f32 %v15694_v3, %v9050_v59  ;;  %v15793_v24 = vsub.f32 %v15700_v26, %v9049_v35  ;;  %v9120_v13 = vsel %vm1139_vm1, %v9080_v31, 0.0 }
 0xbbb   : > { %9121 = vadd.xlane.f32.xlu1 %v9120_v13  ;;  %v9034_v12 = vpop.xlane.xlu0 %9033 }
 0xbbc   : > { %v9051_v14 = vmul.f32 0.03125, %v9034_v12  ;;  %v9082_v62 = vmul.f32 %v15790_v18, %v15790_v18  ;;  %v9081_v6 = vmul.f32 %v15793_v24, %v15793_v24 }
 0xbbe   : > { %v15801_v27 = vsub.f32 %v15702_v63, %v9051_v14  ;;  %v9126_v3 = vsel %vm1139_vm1, %v9082_v62, 0.0  ;;  %v9123_v9 = vsel %vm1139_vm1, %v9081_v6, 0.0 }
 0xbbf   : > { %9127 = vadd.xlane.f32.xlu1 %v9126_v3  ;;  %9124 = vadd.xlane.f32.xlu0 %v9123_v9 }
 0xbc0   : > { %v9083_v26 = vmul.f32 %v15801_v27, %v15801_v27 }
 0xbc2   : > { %v9129_v58 = vsel %vm1139_vm1, %v9083_v26, 0.0 }
 0xbc3   : > { %9130 = vadd.xlane.f32.xlu0 %v9129_v58 }
 0xbc7   : > { %v9086_v20 = vpop.xlane.xlu1 %9085 }
 0xbc8   : > { %v9132_v44 = vmul.f32 0.03125, %v9086_v20 }
 0xbca   : > { %v9148_v29 = vadd.f32 1e-12, %v9132_v44 }
 0xbcb   : > { %v9092_v41 = vpop.xlane.xlu1 %9091  ;;  %v9089_v52 = vpop.xlane.xlu0 %9088 }
 0xbcc   : > { %12251 = vrsqrt.f32 %v9148_v29  ;;  %v9134_v63 = vmul.f32 0.03125, %v9092_v41  ;;  %v9133_v34 = vmul.f32 0.03125, %v9089_v52 }
 0xbce   : > { %v9150_v50 = vadd.f32 1e-12, %v9134_v63  ;;  %v9149_v25 = vadd.f32 1e-12, %v9133_v34 }
 0xbcf   : > { %v9095_v42 = vpop.xlane.xlu0 %9094 }
 0xbd0   : > { %12253 = vrsqrt.f32 %v9150_v50  ;;  %v9135_v57 = vmul.f32 0.03125, %v9095_v42 }
 0xbd1   : > { %12255 = vrsqrt.f32 %v9149_v25 }
 0xbd2   : > { %v9151_v40 = vadd.f32 1e-12, %v9135_v57 }
 0xbd4   : > { %12257 = vrsqrt.f32 %v9151_v40 }
 0xbd9   : > { %v12252_v7 = vpop.eup %12251 }
 0xbda   : > { %v9180_v16 = vmul.f32 %v12252_v7, %v15711_v48 }
 0xbdc   : > { %v9202_v51 = vmul.f32 %v15814_v39, %v9180_v16 }
 0xbdd   : > { %v12254_v33 = vpop.eup %12253 }
 0xbde   : > { %v12256_v23 = vpop.eup %12255  ;;  %v9182_v38 = vmul.f32 %v12254_v33, %v15719_v19  ;;  %v15830_v53 = vadd.f32 %v15824_v1, %v9202_v51  ;;  %v11991_v51 = vld [vmem:[%s12626_s29 + $0x18] sm:$0xff]  }
 0xbdf   : > { %v9181_v10 = vmul.f32 %v12256_v23, %v15716_v2  ;;  %11624 = vmatprep.subr.bf16.mxu0 %v11991_v51 }
 0xbe0   : > { %v9204_v28 = vmul.f32 %v15814_v39, %v9182_v38  ;;  %11625 = vmatpush3.bf16.msra.mxu0 %v11991_v51 }
 0xbe1   : > { %v12258_v48 = vpop.eup %12257  ;;  %v9203_v54 = vmul.f32 %v15814_v39, %v9181_v10 }
 0xbe2   : > { %v9183_v15 = vmul.f32 %v12258_v48, %v15727_v21  ;;  %v15839_v32 = vadd.f32 %v15824_v1, %v9204_v28  ;;  %v11992_v28 = vld [vmem:[%s12626_s29 + $0x10] sm:$0xff]  }
 0xbe3   : > { %v15833_v2 = vadd.f32 %v15824_v1, %v9203_v54  ;;  %11626 = vmatprep.subr.bf16.mxu0 %v11992_v28 }
 0xbe4   : > { %v9205_v19 = vmul.f32 %v15814_v39, %v9183_v15  ;;  %11627 = vmatpush3.bf16.msra.mxu0 %v11992_v28 }
 0xbe5   : > { %v9244_v43 = vpack.c.bf16 %v15833_v2, %v15830_v53 }
 0xbe6   : > { %v15842_v5 = vadd.f32 %v15824_v1, %v9205_v19 }
 0xbe7   : > { %11608 = vmatprep.mubr.msk.bf16.mxu1 %vm1139_vm1, %v9244_v43 }
 0xbe8   : > { %v9245_v21 = vpack.c.bf16 %v15842_v5, %v15839_v32 }
 0xbea   : > { %11609 = vmatmul.mubr.msk.bf16.vlgmr.msra.gmra.mxu1 %vm1139_vm1, %v9245_v21 }
 0xbf7   : > { %v9098_v56 = vpop.xlane.xlu1 %9097 }
 0xbf8   : > { %v9136_v37 = vmul.f32 0.03125, %v9098_v56 }
 0xbfa   : > { %v9152_v45 = vadd.f32 1e-12, %v9136_v37 }
 0xbfb   : > { %v9104_v55 = vpop.xlane.xlu1 %9103  ;;  %v9101_v36 = vpop.xlane.xlu0 %9100 }
 0xbfc   : > { %12259 = vrsqrt.f32 %v9152_v45  ;;  %v9138_v17 = vmul.f32 0.03125, %v9104_v55  ;;  %v9137_v30 = vmul.f32 0.03125, %v9101_v36  ;;  %v11993_v55 = vld [vmem:[%s12626_s29 + $0x8] sm:$0xff]  }
 0xbfd   : > { %11628 = vmatprep.subr.bf16.mxu0 %v11993_v55 }
 0xbfe   : > { %v9154_v11 = vadd.f32 1e-12, %v9138_v17  ;;  %v9153_v59 = vadd.f32 1e-12, %v9137_v30  ;;  %11629 = vmatpush3.bf16.msra.mxu0 %v11993_v55 }
 0xbff   : > { %v9107_v35 = vpop.xlane.xlu0 %9106 }
 0xc00   : > { %12261 = vrsqrt.f32 %v9154_v11  ;;  %v9139_v31 = vmul.f32 0.03125, %v9107_v35 }
 0xc01   : > { %12263 = vrsqrt.f32 %v9153_v59 }
 0xc02   : > { %v9155_v13 = vadd.f32 1e-12, %v9139_v31 }
 0xc04   : > { %12265 = vrsqrt.f32 %v9155_v13 }
 0xc09   : > { %v12260_v12 = vpop.eup %12259 }
 0xc0a   : > { %v9184_v14 = vmul.f32 %v12260_v12, %v15737_v46  ;;  %v11994_v12 = vld [vmem:[%s12626_s29] sm:$0xff]  }
 0xc0b   : > { %11630 = vmatprep.subr.bf16.mxu0 %v11994_v12 }
 0xc0c   : > { %v9206_v26 = vmul.f32 %v15814_v39, %v9184_v14  ;;  %11631 = vmatpush3.bf16.msra.mxu0 %v11994_v12 }
 0xc0d   : > { %v12262_v62 = vpop.eup %12261 }
 0xc0e   : > { %v12264_v6 = vpop.eup %12263  ;;  %v9186_v3 = vmul.f32 %v12262_v62, %v15742_v8  ;;  %v15856_v41 = vadd.f32 %v15824_v1, %v9206_v26 }
 0xc0f   : > { %v9185_v9 = vmul.f32 %v12264_v6, %v15745_v49 }
 0xc10   : > { %v9208_v29 = vmul.f32 %v15814_v39, %v9186_v3 }
 0xc11   : > { %v12266_v58 = vpop.eup %12265  ;;  %v9207_v20 = vmul.f32 %v15814_v39, %v9185_v9 }
 0xc12   : > { %v9187_v44 = vmul.f32 %v12266_v58, %v15753_v22  ;;  %v15865_v49 = vadd.f32 %v15824_v1, %v9208_v29 }
 0xc13   : > { %v15859_v46 = vadd.f32 %v15824_v1, %v9207_v20 }
 0xc14   : > { %v9209_v52 = vmul.f32 %v15814_v39, %v9187_v44 }
 0xc15   : > { %v9246_v8 = vpack.c.bf16 %v15859_v46, %v15856_v41 }
 0xc16   : > { %v15868_v63 = vadd.f32 %v15824_v1, %v9209_v52 }
 0xc17   : > { %11612 = vmatprep.mubr.msk.bf16.mxu1 %vm1139_vm1, %v9246_v8 }
 0xc18   : > { %v9247_v22 = vpack.c.bf16 %v15868_v63, %v15865_v49 }
 0xc1a   : > { %11613 = vmatmul.mubr.msk.bf16.gmra.mxu1 %vm1139_vm1, %v9247_v22 }
 0xc34   : > { %v9110_v34 = vpop.xlane.xlu1 %9109 }
 0xc35   : > { %v9140_v50 = vmul.f32 0.03125, %v9110_v34 }
 0xc37   : > { %v9156_v25 = vadd.f32 1e-12, %v9140_v50 }
 0xc38   : > { %v9116_v42 = vpop.xlane.xlu1 %9115  ;;  %v9113_v57 = vpop.xlane.xlu0 %9112 }
 0xc39   : > { %12267 = vrsqrt.f32 %v9156_v25  ;;  %v9142_v40 = vmul.f32 0.03125, %v9116_v42  ;;  %v9141_v7 = vmul.f32 0.03125, %v9113_v57 }
 0xc3b   : > { %v9158_v16 = vadd.f32 1e-12, %v9142_v40  ;;  %v9157_v33 = vadd.f32 1e-12, %v9141_v7 }
 0xc3c   : > { %v9119_v23 = vpop.xlane.xlu0 %9118 }
 0xc3d   : > { %12269 = vrsqrt.f32 %v9158_v16  ;;  %v9143_v38 = vmul.f32 0.03125, %v9119_v23 }
 0xc3e   : > { %12271 = vrsqrt.f32 %v9157_v33 }
 0xc3f   : > { %v9159_v10 = vadd.f32 1e-12, %v9143_v38 }
 0xc41   : > { %12273 = vrsqrt.f32 %v9159_v10 }
 0xc44   : > { %v9122_v48 = vpop.xlane.xlu1 %9121 }
 0xc45   : > { %v9144_v54 = vmul.f32 0.03125, %v9122_v48 }
 0xc46   : > { %v12268_v15 = vpop.eup %12267 }
 0xc47   : > { %v9160_v19 = vadd.f32 1e-12, %v9144_v54  ;;  %v9188_v56 = vmul.f32 %v12268_v15, %v15761_v4 }
 0xc48   : > { %v9128_v43 = vpop.xlane.xlu1 %9127  ;;  %v9125_v21 = vpop.xlane.xlu0 %9124 }
 0xc49   : > { %12275 = vrsqrt.f32 %v9160_v19  ;;  %v9146_v37 = vmul.f32 0.03125, %v9128_v43  ;;  %v9145_v45 = vmul.f32 0.03125, %v9125_v21  ;;  %v9210_v13 = vmul.f32 %v15814_v39, %v9188_v56 }
 0xc4a   : > { %v12270_v36 = vpop.eup %12269 }
 0xc4b   : > { %v12272_v17 = vpop.eup %12271  ;;  %v9190_v30 = vmul.f32 %v12270_v36, %v15766_v61  ;;  %v9162_v11 = vadd.f32 1e-12, %v9146_v37  ;;  %v9161_v59 = vadd.f32 1e-12, %v9145_v45  ;;  %v15886_v9 = vadd.f32 %v15824_v1, %v9210_v13 }
 0xc4c   : > { %v9131_v35 = vpop.xlane.xlu0 %9130  ;;  %v9189_v31 = vmul.f32 %v12272_v17, %v15769_v60 }
 0xc4d   : > { %12277 = vrsqrt.f32 %v9162_v11  ;;  %v9147_v4 = vmul.f32 0.03125, %v9131_v35  ;;  %v9212_v61 = vmul.f32 %v15814_v39, %v9190_v30 }
 0xc4e   : > { %v12274_v14 = vpop.eup %12273  ;;  %12279 = vrsqrt.f32 %v9161_v59  ;;  %v9211_v62 = vmul.f32 %v15814_v39, %v9189_v31 }
 0xc4f   : > { %v9191_v6 = vmul.f32 %v12274_v14, %v15777_v0  ;;  %v9163_v3 = vadd.f32 1e-12, %v9147_v4  ;;  %v15895_v20 = vadd.f32 %v15824_v1, %v9212_v61 }
 0xc50   : > { %v15889_v60 = vadd.f32 %v15824_v1, %v9211_v62 }
 0xc51   : > { %12281 = vrsqrt.f32 %v9163_v3  ;;  %v9213_v26 = vmul.f32 %v15814_v39, %v9191_v6 }
 0xc52   : > { %v9248_v58 = vpack.c.bf16 %v15889_v60, %v15886_v9 }
 0xc53   : > { %v15898_v0 = vadd.f32 %v15824_v1, %v9213_v26 }
 0xc54   : > { %11616 = vmatprep.mubr.msk.bf16.mxu1 %vm1139_vm1, %v9248_v58 }
 0xc55   : > { %v9249_v44 = vpack.c.bf16 %v15898_v0, %v15895_v20 }
 0xc56   : > { %v12276_v29 = vpop.eup %12275 }
 0xc57   : > { %11617 = vmatmul.mubr.msk.bf16.gmra.mxu1 %vm1139_vm1, %v9249_v44  ;;  %v9192_v52 = vmul.f32 %v12276_v29, %v15785_v47 }
 0xc59   : > { %v9214_v25 = vmul.f32 %v15814_v39, %v9192_v52 }
 0xc5a   : > { %v12278_v8 = vpop.eup %12277 }
 0xc5b   : > { %v12280_v22 = vpop.eup %12279  ;;  %v9194_v34 = vmul.f32 %v12278_v8, %v15790_v18  ;;  %v15912_v16 = vadd.f32 %v15824_v1, %v9214_v25 }
 0xc5c   : > { %v9193_v50 = vmul.f32 %v12280_v22, %v15793_v24 }
 0xc5d   : > { %v9216_v7 = vmul.f32 %v15814_v39, %v9194_v34 }
 0xc5e   : > { %v12282_v42 = vpop.eup %12281  ;;  %v9215_v57 = vmul.f32 %v15814_v39, %v9193_v50 }
 0xc5f   : > { %v9195_v40 = vmul.f32 %v12282_v42, %v15801_v27  ;;  %v15921_v33 = vadd.f32 %v15824_v1, %v9216_v7 }
 0xc60   : > { %v15915_v47 = vadd.f32 %v15824_v1, %v9215_v57 }
 0xc61   : > { %v9217_v18 = vmul.f32 %v15814_v39, %v9195_v40  ;;  %v15935_v39 = vld [vmem:[%s16732_s16] ss:$0 sm:$0xff] }
 0xc62   : > { %v9250_v24 = vpack.c.bf16 %v15915_v47, %v15912_v16 }
 0xc63   : > { %v15924_v23 = vadd.f32 %v15824_v1, %v9217_v18 }
 0xc64   : > { %11620 = vmatprep.mubr.msk.bf16.mxu1 %vm1139_vm1, %v9250_v24 }
 0xc65   : > { %v9251_v27 = vpack.c.bf16 %v15924_v23, %v15921_v33 }
 0xc67   : > { %11621 = vmatmul.mubr.msk.bf16.gmra.mxu1 %vm1139_vm1, %v9251_v27 }
 0xcaa   : > { %v11610_v38 = vpop.f32.mrf.mxu1 }
 0xcab   : > { %v9338_v10 = vadd.f32 %v11610_v38, %v15935_v39 }
 0xcac   : > { %v9329_v51 = vpop.f32.mrf.mxu1 }
 0xcad   : > { %v9410_v48 = vmul.f32 0.044715, %v9338_v10  ;;  %v9330_v1 = vadd.f32 %v15935_v39, %v9329_v51  ;;  %v9394_v25 = vmul.f32 0.5, %v9338_v10 }
 0xcae   : > { %v11611_v54 = vpop.f32.mrf.mxu1 }
 0xcaf   : > { %v9426_v28 = vmul.f32 %v9410_v48, %v9338_v10  ;;  %v9408_v15 = vmul.f32 0.044715, %v9330_v1  ;;  %v9341_v19 = vadd.f32 %v11611_v54, %v15935_v39  ;;  %v9392_v22 = vmul.f32 0.5, %v9330_v1 }
 0xcb0   : > { %v9332_v43 = vpop.f32.mrf.mxu1 }
 0xcb1   : > { %v9442_v21 = vmul.f32 %v9426_v28, %v9338_v10  ;;  %v9424_v56 = vmul.f32 %v9408_v15, %v9330_v1  ;;  %v9411_v37 = vmul.f32 0.044715, %v9341_v19  ;;  %v9333_v45 = vadd.f32 %v15935_v39, %v9332_v43 }
 0xcb2   : > { %v9395_v8 = vmul.f32 0.5, %v9341_v19 }
 0xcb3   : > { %v9458_v55 = vadd.f32 %v9442_v21, %v9338_v10  ;;  %v9440_v36 = vmul.f32 %v9424_v56, %v9330_v1  ;;  %v9427_v17 = vmul.f32 %v9411_v37, %v9341_v19  ;;  %v9409_v30 = vmul.f32 0.044715, %v9333_v45 }
 0xcb4   : > { %v9393_v34 = vmul.f32 0.5, %v9333_v45 }
 0xcb5   : > { %v9474_v11 = vmul.f32 0.7978846, %v9458_v55  ;;  %v9456_v59 = vadd.f32 %v9440_v36, %v9330_v1  ;;  %v9443_v35 = vmul.f32 %v9427_v17, %v9341_v19  ;;  %v9425_v31 = vmul.f32 %v9409_v30, %v9333_v45 }
 0xcb7   : > { %v9472_v13 = vmul.f32 0.7978846, %v9456_v59  ;;  %v9459_v4 = vadd.f32 %v9443_v35, %v9341_v19  ;;  %v9441_v12 = vmul.f32 %v9425_v31, %v9333_v45  ;;  %12283 = vtanh.f32 %v9474_v11 }
 0xcb9   : > { %v9475_v14 = vmul.f32 0.7978846, %v9459_v4  ;;  %12285 = vtanh.f32 %v9472_v13  ;;  %v9457_v62 = vadd.f32 %v9441_v12, %v9333_v45 }
 0xcbb   : > { %12287 = vtanh.f32 %v9475_v14  ;;  %v9473_v6 = vmul.f32 0.7978846, %v9457_v62 }
 0xcbd   : > { %12289 = vtanh.f32 %v9473_v6 }
 0xcc4   : > { %v12284_v3 = vpop.eup %12283 }
 0xcc5   : > { %v9506_v52 = vadd.f32 1.0, %v12284_v3 }
 0xcc6   : > { %v12286_v61 = vpop.eup %12285 }
 0xcc7   : > { %v9504_v44 = vadd.f32 1.0, %v12286_v61  ;;  %v9522_v7 = vmul.f32 %v9506_v52, %v9394_v25 }
 0xcc8   : > { %v12288_v26 = vpop.eup %12287 }
 0xcc9   : > { %v9507_v58 = vadd.f32 1.0, %v12288_v26  ;;  %v9520_v57 = vmul.f32 %v9504_v44, %v9392_v22 }
 0xcca   : > { %v12290_v29 = vpop.eup %12289 }
 0xccb   : > { %v9505_v50 = vadd.f32 1.0, %v12290_v29  ;;  %v9523_v42 = vmul.f32 %v9507_v58, %v9395_v8 }
 0xccd   : > { %v9521_v40 = vmul.f32 %v9505_v50, %v9393_v34  ;;  %v9545_v24 = vpack.c.bf16 %v9523_v42, %v9522_v7 }
 0xccf   : > { %v9544_v18 = vpack.c.bf16 %v9521_v40, %v9520_v57 }
 0xcd1   : > { %11632 = vmatprep.mubr.msk.bf16.mxu0 %vm9583_vm7, %v9544_v18 }
 0xcd2   : > { %11633 = vmatmul.mubr.msk.bf16.vlgmr.msra.gmra.mxu0 %vm9583_vm7, %v9545_v24 }
 0xcda   : > { %v11614_v27 = vpop.f32.mrf.mxu1 }
 0xcdb   : > { %v9354_v38 = vadd.f32 %v11614_v27, %v15935_v39 }
 0xcdc   : > { %v9345_v51 = vpop.f32.mrf.mxu1 }
 0xcdd   : > { %v9414_v48 = vmul.f32 0.044715, %v9354_v38  ;;  %v9346_v1 = vadd.f32 %v15935_v39, %v9345_v51  ;;  %v9398_v50 = vmul.f32 0.5, %v9354_v38 }
 0xcde   : > { %v11615_v54 = vpop.f32.mrf.mxu1 }
 0xcdf   : > { %v9430_v10 = vmul.f32 %v9414_v48, %v9354_v38  ;;  %v9412_v28 = vmul.f32 0.044715, %v9346_v1  ;;  %v9357_v15 = vadd.f32 %v11615_v54, %v15935_v39  ;;  %v9396_v8 = vmul.f32 0.5, %v9346_v1 }
 0xce0   : > { %v9348_v19 = vpop.f32.mrf.mxu1 }
 0xce1   : > { %v9446_v43 = vmul.f32 %v9430_v10, %v9354_v38  ;;  %v9428_v21 = vmul.f32 %v9412_v28, %v9346_v1  ;;  %v9415_v56 = vmul.f32 0.044715, %v9357_v15  ;;  %v9349_v37 = vadd.f32 %v15935_v39, %v9348_v19 }
 0xce2   : > { %v9399_v29 = vmul.f32 0.5, %v9357_v15 }
 0xce3   : > { %v9462_v45 = vadd.f32 %v9446_v43, %v9354_v38  ;;  %v9444_v55 = vmul.f32 %v9428_v21, %v9346_v1  ;;  %v9431_v36 = vmul.f32 %v9415_v56, %v9357_v15  ;;  %v9413_v17 = vmul.f32 0.044715, %v9349_v37 }
 0xce4   : > { %v9397_v22 = vmul.f32 0.5, %v9349_v37 }
 0xce5   : > { %v9478_v30 = vmul.f32 0.7978846, %v9462_v45  ;;  %v9460_v11 = vadd.f32 %v9444_v55, %v9346_v1  ;;  %v9447_v59 = vmul.f32 %v9431_v36, %v9357_v15  ;;  %v9429_v35 = vmul.f32 %v9413_v17, %v9349_v37 }
 0xce7   : > { %v9476_v31 = vmul.f32 0.7978846, %v9460_v11  ;;  %v9463_v13 = vadd.f32 %v9447_v59, %v9357_v15  ;;  %v9445_v4 = vmul.f32 %v9429_v35, %v9349_v37  ;;  %12291 = vtanh.f32 %v9478_v30 }
 0xce9   : > { %v9479_v12 = vmul.f32 0.7978846, %v9463_v13  ;;  %12293 = vtanh.f32 %v9476_v31  ;;  %v9461_v14 = vadd.f32 %v9445_v4, %v9349_v37 }
 0xceb   : > { %12295 = vtanh.f32 %v9479_v12  ;;  %v9477_v62 = vmul.f32 0.7978846, %v9461_v14 }
 0xced   : > { %12297 = vtanh.f32 %v9477_v62 }
 0xcf4   : > { %v12292_v6 = vpop.eup %12291 }
 0xcf5   : > { %v9510_v52 = vadd.f32 1.0, %v12292_v6 }
 0xcf6   : > { %v12294_v3 = vpop.eup %12293 }
 0xcf7   : > { %v9508_v58 = vadd.f32 1.0, %v12294_v3  ;;  %v9526_v40 = vmul.f32 %v9510_v52, %v9398_v50 }
 0xcf8   : > { %v12296_v61 = vpop.eup %12295 }
 0xcf9   : > { %v9511_v26 = vadd.f32 1.0, %v12296_v61  ;;  %v9524_v42 = vmul.f32 %v9508_v58, %v9396_v8 }
 0xcfa   : > { %v12298_v44 = vpop.eup %12297 }
 0xcfb   : > { %v9509_v34 = vadd.f32 1.0, %v12298_v44  ;;  %v9527_v25 = vmul.f32 %v9511_v26, %v9399_v29 }
 0xcfd   : > { %v9525_v57 = vmul.f32 %v9509_v34, %v9397_v22  ;;  %v9547_v18 = vpack.c.bf16 %v9527_v25, %v9526_v40 }
 0xcff   : > { %v9546_v7 = vpack.c.bf16 %v9525_v57, %v9524_v42 }
 0xd01   : > { %11636 = vmatprep.mubr.msk.bf16.mxu0 %vm9583_vm7, %v9546_v7 }
 0xd02   : > { %11637 = vmatmul.mubr.msk.bf16.gmra.mxu0 %vm9583_vm7, %v9547_v18 }
 0xd17   : > { %v11618_v24 = vpop.f32.mrf.mxu1 }
 0xd18   : > { %v15950_v27 = vadd.f32 %v11618_v24, %v15935_v39 }
 0xd19   : > { %v9361_v51 = vpop.f32.mrf.mxu1 }
 0xd1a   : > { %v9418_v48 = vmul.f32 0.044715, %v15950_v27  ;;  %v15954_v1 = vadd.f32 %v15935_v39, %v9361_v51 }
 0xd1b   : > { %v11619_v38 = vpop.f32.mrf.mxu1 }
 0xd1c   : > { %v9434_v54 = vmul.f32 %v9418_v48, %v15950_v27  ;;  %v9416_v10 = vmul.f32 0.044715, %v15954_v1  ;;  %v9373_v28 = vadd.f32 %v11619_v38, %v15935_v39 }
 0xd1d   : > { %v9364_v15 = vpop.f32.mrf.mxu1 }
 0xd1e   : > { %v9450_v19 = vmul.f32 %v9434_v54, %v15950_v27  ;;  %v9432_v43 = vmul.f32 %v9416_v10, %v15954_v1  ;;  %v9419_v21 = vmul.f32 0.044715, %v9373_v28  ;;  %v9365_v56 = vadd.f32 %v15935_v39, %v9364_v15 }
 0xd20   : > { %v9466_v37 = vadd.f32 %v9450_v19, %v15950_v27  ;;  %v9448_v45 = vmul.f32 %v9432_v43, %v15954_v1  ;;  %v9435_v55 = vmul.f32 %v9419_v21, %v9373_v28  ;;  %v9417_v36 = vmul.f32 0.044715, %v9365_v56 }
 0xd22   : > { %v9482_v17 = vmul.f32 0.7978846, %v9466_v37  ;;  %v9464_v30 = vadd.f32 %v9448_v45, %v15954_v1  ;;  %v9451_v11 = vmul.f32 %v9435_v55, %v9373_v28  ;;  %v9433_v59 = vmul.f32 %v9417_v36, %v9365_v56 }
 0xd23   : > { %v9403_v36 = vmul.f32 0.5, %v9373_v28 }
 0xd24   : > { %v9480_v35 = vmul.f32 0.7978846, %v9464_v30  ;;  %v9467_v31 = vadd.f32 %v9451_v11, %v9373_v28  ;;  %v9449_v13 = vmul.f32 %v9433_v59, %v9365_v56  ;;  %12299 = vtanh.f32 %v9482_v17 }
 0xd25   : > { %v9400_v11 = vmul.f32 0.5, %v15954_v1  ;;  %v9401_v59 = vmul.f32 0.5, %v9365_v56 }
 0xd26   : > { %v9483_v4 = vmul.f32 0.7978846, %v9467_v31  ;;  %12301 = vtanh.f32 %v9480_v35  ;;  %v9465_v12 = vadd.f32 %v9449_v13, %v9365_v56  ;;  %v9402_v31 = vmul.f32 0.5, %v15950_v27 }
 0xd27   : > { %v11622_v14 = vpop.f32.mrf.mxu1 }
 0xd28   : > { %12303 = vtanh.f32 %v9483_v4  ;;  %v15966_v62 = vadd.f32 %v11622_v14, %v15935_v39  ;;  %v9481_v6 = vmul.f32 0.7978846, %v9465_v12 }
 0xd29   : > { %v9377_v3 = vpop.f32.mrf.mxu1 }
 0xd2a   : > { %v9422_v61 = vmul.f32 0.044715, %v15966_v62  ;;  %v9378_v26 = vadd.f32 %v15935_v39, %v9377_v3  ;;  %12305 = vtanh.f32 %v9481_v6 }
 0xd2b   : > { %v11623_v58 = vpop.f32.mrf.mxu1 }
 0xd2c   : > { %v9438_v44 = vmul.f32 %v9422_v61, %v15966_v62  ;;  %v9420_v29 = vmul.f32 0.044715, %v9378_v26  ;;  %v9389_v52 = vadd.f32 %v11623_v58, %v15935_v39 }
 0xd2d   : > { %v9380_v8 = vpop.f32.mrf.mxu1 }
 0xd2e   : > { %v9454_v22 = vmul.f32 %v9438_v44, %v15966_v62  ;;  %v9436_v34 = vmul.f32 %v9420_v29, %v9378_v26  ;;  %v9423_v50 = vmul.f32 0.044715, %v9389_v52  ;;  %v9381_v25 = vadd.f32 %v15935_v39, %v9380_v8 }
 0xd2f   : > { %v9407_v29 = vmul.f32 0.5, %v9389_v52  ;;  %v9404_v8 = vmul.f32 0.5, %v9378_v26 }
 0xd30   : > { %v9470_v42 = vadd.f32 %v9454_v22, %v15966_v62  ;;  %v9452_v57 = vmul.f32 %v9436_v34, %v9378_v26  ;;  %v9439_v40 = vmul.f32 %v9423_v50, %v9389_v52  ;;  %v9421_v7 = vmul.f32 0.044715, %v9381_v25 }
 0xd31   : > { %v12300_v48 = vpop.eup %12299  ;;  %v9405_v22 = vmul.f32 0.5, %v9381_v25  ;;  %v9406_v50 = vmul.f32 0.5, %v15966_v62 }
 0xd32   : > { %v9486_v18 = vmul.f32 0.7978846, %v9470_v42  ;;  %v9468_v24 = vadd.f32 %v9452_v57, %v9378_v26  ;;  %v9455_v51 = vmul.f32 %v9439_v40, %v9389_v52  ;;  %v9437_v38 = vmul.f32 %v9421_v7, %v9381_v25 }
 0xd33   : > { %v12302_v54 = vpop.eup %12301  ;;  %v9514_v17 = vadd.f32 1.0, %v12300_v48 }
 0xd34   : > { %v9484_v10 = vmul.f32 0.7978846, %v9468_v24  ;;  %v9471_v15 = vadd.f32 %v9455_v51, %v9389_v52  ;;  %v9453_v43 = vmul.f32 %v9437_v38, %v9381_v25  ;;  %12307 = vtanh.f32 %v9486_v18  ;;  %v15987_v52 = vld [vmem:[%s16733_s27] ss:$0 sm:$0xff] }
 0xd35   : > { %v12304_v19 = vpop.eup %12303  ;;  %v9512_v45 = vadd.f32 1.0, %v12302_v54  ;;  %v9530_v14 = vmul.f32 %v9514_v17, %v9402_v31 }
 0xd36   : > { %v9487_v21 = vmul.f32 0.7978846, %v9471_v15  ;;  %v9515_v37 = vadd.f32 1.0, %v12304_v19  ;;  %12309 = vtanh.f32 %v9484_v10  ;;  %v9469_v39 = vadd.f32 %v9453_v43, %v9381_v25 }
 0xd37   : > { %v12306_v55 = vpop.eup %12305  ;;  %v9528_v4 = vmul.f32 %v9512_v45, %v9400_v11 }
 0xd38   : > { %12311 = vtanh.f32 %v9487_v21  ;;  %v9485_v30 = vmul.f32 0.7978846, %v9469_v39  ;;  %v9513_v35 = vadd.f32 1.0, %v12306_v55  ;;  %v9531_v13 = vmul.f32 %v9515_v37, %v9403_v36 }
 0xd3a   : > { %12313 = vtanh.f32 %v9485_v30  ;;  %v9529_v12 = vmul.f32 %v9513_v35, %v9401_v59  ;;  %v9549_v3 = vpack.c.bf16 %v9531_v13, %v9530_v14 }
 0xd3c   : > { %v9548_v6 = vpack.c.bf16 %v9529_v12, %v9528_v4 }
 0xd3e   : > { %11640 = vmatprep.mubr.msk.bf16.mxu0 %vm9583_vm7, %v9548_v6 }
 0xd3f   : > { %11641 = vmatmul.mubr.msk.bf16.gmra.mxu0 %vm9583_vm7, %v9549_v3 }
 0xd41   : > { %v12308_v28 = vpop.eup %12307 }
 0xd42   : > { %v9518_v27 = vadd.f32 1.0, %v12308_v28 }
 0xd43   : > { %v12310_v61 = vpop.eup %12309 }
 0xd44   : > { %v9516_v1 = vadd.f32 1.0, %v12310_v61  ;;  %v9534_v7 = vmul.f32 %v9518_v27, %v9406_v50 }
 0xd45   : > { %v12312_v58 = vpop.eup %12311 }
 0xd46   : > { %v9519_v44 = vadd.f32 1.0, %v12312_v58  ;;  %v9532_v57 = vmul.f32 %v9516_v1, %v9404_v8 }
 0xd47   : > { %v12314_v56 = vpop.eup %12313 }
 0xd48   : > { %v9517_v34 = vadd.f32 1.0, %v12314_v56  ;;  %v9535_v42 = vmul.f32 %v9519_v44, %v9407_v29 }
 0xd4a   : > { %v9533_v40 = vmul.f32 %v9517_v34, %v9405_v22  ;;  %v9551_v24 = vpack.c.bf16 %v9535_v42, %v9534_v7 }
 0xd4c   : > { %v9550_v18 = vpack.c.bf16 %v9533_v40, %v9532_v57 }
 0xd4e   : > { %11644 = vmatprep.mubr.msk.bf16.mxu0 %vm9583_vm7, %v9550_v18 }
 0xd4f   : > { %11645 = vmatmul.mubr.msk.bf16.gmra.mxu0 %vm9583_vm7, %v9551_v24 }
 0xd92   : > { %v11634_v26 = vpop.f32.mrf.mxu0 }
 0xd93   : > { %v9651_v25 = vadd.f32 %v11634_v26, %v15987_v52 }
 0xd94   : > { %v9642_v62 = vpop.f32.mrf.mxu0 }
 0xd95   : > { %v15991_v51 = vadd.f32 %v9651_v25, %v15839_v32  ;;  %v9643_v48 = vadd.f32 %v15987_v52, %v9642_v62 }
 0xd96   : > { %v11635_v38 = vpop.f32.mrf.mxu0 }
 0xd97   : > { %v15995_v54 = vadd.f32 %v9643_v48, %v15830_v53  ;;  %v9654_v10 = vadd.f32 %v11635_v38, %v15987_v52  ;;  %v9729_v15 = vsel %vm1139_vm1, %v15991_v51, 0.0 }
 0xd98   : > { %9730 = vadd.xlane.f32.xlu1 %v9729_v15  ;;  %v9645_v19 = vpop.f32.mrf.mxu0 }
 0xd99   : > { %v16001_v43 = vadd.f32 %v9654_v10, %v15842_v5  ;;  %v9646_v21 = vadd.f32 %v15987_v52, %v9645_v19  ;;  %v9723_v53 = vsel %vm1139_vm1, %v15995_v54, 0.0 }
 0xd9b   : > { %v16005_v32 = vadd.f32 %v9646_v21, %v15833_v2  ;;  %v9732_v37 = vsel %vm1139_vm1, %v16001_v43, 0.0 }
 0xd9c   : > { %9733 = vadd.xlane.f32.xlu0 %v9732_v37  ;;  %9724 = vadd.xlane.f32.xlu1 %v9723_v53 }
 0xd9d   : > { %v9726_v39 = vsel %vm1139_vm1, %v16005_v32, 0.0 }
 0xda0   : > { %9727 = vadd.xlane.f32.xlu0 %v9726_v39 }
 0xdc2   : > { %v11638_v45 = vpop.f32.mrf.mxu0 }
 0xdc3   : > { %v9667_v5 = vadd.f32 %v11638_v45, %v15987_v52 }
 0xdc4   : > { %v9658_v55 = vpop.f32.mrf.mxu0 }
 0xdc5   : > { %v16015_v36 = vadd.f32 %v9667_v5, %v15865_v49  ;;  %v9659_v2 = vadd.f32 %v15987_v52, %v9658_v55 }
 0xdc6   : > { %v11639_v17 = vpop.f32.mrf.mxu0 }
 0xdc7   : > { %v16019_v30 = vadd.f32 %v9659_v2, %v15856_v41  ;;  %v9670_v11 = vadd.f32 %v11639_v17, %v15987_v52  ;;  %v9741_v59 = vsel %vm1139_vm1, %v16015_v36, 0.0 }
 0xdc8   : > { %9742 = vadd.xlane.f32.xlu1 %v9741_v59  ;;  %v9661_v35 = vpop.f32.mrf.mxu0 }
 0xdc9   : > { %v16025_v31 = vadd.f32 %v9670_v11, %v15868_v63  ;;  %v9662_v13 = vadd.f32 %v15987_v52, %v9661_v35  ;;  %v9735_v41 = vsel %vm1139_vm1, %v16019_v30, 0.0 }
 0xdcb   : > { %v16029_v49 = vadd.f32 %v9662_v13, %v15859_v46  ;;  %v9744_v4 = vsel %vm1139_vm1, %v16025_v31, 0.0 }
 0xdcc   : > { %9745 = vadd.xlane.f32.xlu0 %v9744_v4  ;;  %9736 = vadd.xlane.f32.xlu1 %v9735_v41 }
 0xdcd   : > { %v9738_v12 = vsel %vm1139_vm1, %v16029_v49, 0.0 }
 0xdd0   : > { %9739 = vadd.xlane.f32.xlu0 %v9738_v12 }
 0xdff   : > { %v11642_v14 = vpop.f32.mrf.mxu0 }
 0xe00   : > { %v9683_v63 = vadd.f32 %v11642_v14, %v15987_v52 }
 0xe01   : > { %v9674_v6 = vpop.f32.mrf.mxu0 }
 0xe02   : > { %v16039_v3 = vadd.f32 %v9683_v63, %v15895_v20  ;;  %v9675_v46 = vadd.f32 %v15987_v52, %v9674_v6 }
 0xe03   : > { %v11643_v28 = vpop.f32.mrf.mxu0 }
 0xe04   : > { %v16043_v61 = vadd.f32 %v9675_v46, %v15886_v9  ;;  %v9686_v58 = vadd.f32 %v11643_v28, %v15987_v52  ;;  %v9753_v44 = vsel %vm1139_vm1, %v16039_v3, 0.0 }
 0xe05   : > { %9754 = vadd.xlane.f32.xlu1 %v9753_v44  ;;  %v9677_v1 = vpop.f32.mrf.mxu0 }
 0xe06   : > { %v16049_v56 = vadd.f32 %v9686_v58, %v15898_v0  ;;  %v9678_v29 = vadd.f32 %v15987_v52, %v9677_v1  ;;  %v9747_v9 = vsel %vm1139_vm1, %v16043_v61, 0.0 }
 0xe08   : > { %v16053_v20 = vadd.f32 %v9678_v29, %v15889_v60  ;;  %v9756_v27 = vsel %vm1139_vm1, %v16049_v56, 0.0 }
 0xe09   : > { %9757 = vadd.xlane.f32.xlu0 %v9756_v27  ;;  %9748 = vadd.xlane.f32.xlu1 %v9747_v9 }
 0xe0a   : > { %v9750_v8 = vsel %vm1139_vm1, %v16053_v20, 0.0 }
 0xe0d   : > { %9751 = vadd.xlane.f32.xlu0 %v9750_v8 }
 0xe0f   : > { %v11646_v22 = vpop.f32.mrf.mxu0 }
 0xe10   : > { %v9699_v34 = vadd.f32 %v11646_v22, %v15987_v52 }
 0xe11   : > { %v9690_v0 = vpop.f32.mrf.mxu0 }
 0xe12   : > { %v9691_v50 = vadd.f32 %v15987_v52, %v9690_v0  ;;  %v16067_v40 = vadd.f32 %v9699_v34, %v15921_v33 }
 0xe13   : > { %v11647_v60 = vpop.f32.mrf.mxu0 }
 0xe14   : > { %v16064_v42 = vadd.f32 %v9691_v50, %v15912_v16  ;;  %v9702_v7 = vadd.f32 %v11647_v60, %v15987_v52  ;;  %v9765_v33 = vsel %vm1139_vm1, %v16067_v40, 0.0 }
 0xe15   : > { %v9693_v57 = vpop.f32.mrf.mxu0 }
 0xe16   : > { %v9694_v18 = vadd.f32 %v15987_v52, %v9693_v57  ;;  %v9759_v24 = vsel %vm1139_vm1, %v16064_v42, 0.0  ;;  %v16077_v25 = vadd.f32 %v9702_v7, %v15924_v23 }
 0xe17   : > { %9760 = vadd.xlane.f32.xlu1 %v9759_v24 }
 0xe18   : > { %v16074_v26 = vadd.f32 %v9694_v18, %v15915_v47  ;;  %v9768_v52 = vsel %vm1139_vm1, %v16077_v25, 0.0 }
 0xe1a   : > { %v9762_v16 = vsel %vm1139_vm1, %v16074_v26, 0.0 }
 0xe1b   : > { %9763 = vadd.xlane.f32.xlu0 %v9762_v16  ;;  %9766 = vadd.xlane.f32.xlu1 %v9765_v33 }
 0xe1f   : > { %9769 = vadd.xlane.f32.xlu0 %v9768_v52 }
 0xe21   : > { %v9731_v62 = vpop.xlane.xlu1 %9730 }
 0xe22   : > { %v9773_v48 = vmul.f32 0.03125, %v9731_v62 }
 0xe24   : > { %v16086_v47 = vsub.f32 %v15991_v51, %v9773_v48 }
 0xe25   : > { %v9725_v38 = vpop.xlane.xlu1 %9724  ;;  %v9734_v23 = vpop.xlane.xlu0 %9733 }
 0xe26   : > { %v9771_v10 = vmul.f32 0.03125, %v9725_v38  ;;  %v9774_v15 = vmul.f32 0.03125, %v9734_v23  ;;  %v9805_v19 = vmul.f32 %v16086_v47, %v16086_v47 }
 0xe28   : > { %v16091_v21 = vsub.f32 %v15995_v54, %v9771_v10  ;;  %v16094_v37 = vsub.f32 %v16001_v43, %v9774_v15  ;;  %v9825_v53 = vsel %vm1139_vm1, %v9805_v19, 0.0 }
 0xe29   : > { %9826 = vadd.xlane.f32.xlu1 %v9825_v53  ;;  %v9728_v39 = vpop.xlane.xlu0 %9727 }
 0xe2a   : > { %v9772_v45 = vmul.f32 0.03125, %v9728_v39  ;;  %v9803_v51 = vmul.f32 %v16091_v21, %v16091_v21  ;;  %v9806_v5 = vmul.f32 %v16094_v37, %v16094_v37 }
 0xe2c   : > { %v16102_v55 = vsub.f32 %v16005_v32, %v9772_v45  ;;  %v9819_v54 = vsel %vm1139_vm1, %v9803_v51, 0.0  ;;  %v9828_v2 = vsel %vm1139_vm1, %v9806_v5, 0.0 }
 0xe2d   : > { %9820 = vadd.xlane.f32.xlu1 %v9819_v54  ;;  %9829 = vadd.xlane.f32.xlu0 %v9828_v2 }
 0xe2e   : > { %v9804_v43 = vmul.f32 %v16102_v55, %v16102_v55 }
 0xe30   : > { %v9822_v17 = vsel %vm1139_vm1, %v9804_v43, 0.0 }
 0xe31   : > { %9823 = vadd.xlane.f32.xlu0 %v9822_v17 }
 0xe51   : > { %v9743_v11 = vpop.xlane.xlu1 %9742 }
 0xe52   : > { %v9777_v59 = vmul.f32 0.03125, %v9743_v11 }
 0xe54   : > { %v16110_v35 = vsub.f32 %v16015_v36, %v9777_v59 }
 0xe55   : > { %v9737_v13 = vpop.xlane.xlu1 %9736  ;;  %v9746_v32 = vpop.xlane.xlu0 %9745 }
 0xe56   : > { %v9775_v4 = vmul.f32 0.03125, %v9737_v13  ;;  %v9778_v41 = vmul.f32 0.03125, %v9746_v32  ;;  %v9809_v12 = vmul.f32 %v16110_v35, %v16110_v35 }
 0xe58   : > { %v16115_v14 = vsub.f32 %v16019_v30, %v9775_v4  ;;  %v16118_v63 = vsub.f32 %v16025_v31, %v9778_v41  ;;  %v9837_v6 = vsel %vm1139_vm1, %v9809_v12, 0.0 }
 0xe59   : > { %9838 = vadd.xlane.f32.xlu1 %v9837_v6  ;;  %v9740_v46 = vpop.xlane.xlu0 %9739 }
 0xe5a   : > { %v9776_v28 = vmul.f32 0.03125, %v9740_v46  ;;  %v9807_v36 = vmul.f32 %v16115_v14, %v16115_v14  ;;  %v9810_v58 = vmul.f32 %v16118_v63, %v16118_v63 }
 0xe5c   : > { %v16126_v44 = vsub.f32 %v16029_v49, %v9776_v28  ;;  %v9831_v30 = vsel %vm1139_vm1, %v9807_v36, 0.0  ;;  %v9840_v1 = vsel %vm1139_vm1, %v9810_v58, 0.0 }
 0xe5d   : > { %9832 = vadd.xlane.f32.xlu1 %v9831_v30  ;;  %9841 = vadd.xlane.f32.xlu0 %v9840_v1  ;;  %v16186_v1 = vld [vmem:[%s791_s3] ss:$0 sm:$0xff] }
 0xe5e   : > { %v9808_v31 = vmul.f32 %v16126_v44, %v16126_v44 }
 0xe60   : > { %v9834_v29 = vsel %vm1139_vm1, %v9808_v31, 0.0 }
 0xe61   : > { %9835 = vadd.xlane.f32.xlu0 %v9834_v29  ;;  %v16194_v29 = vld [vmem:[%s794_s10] ss:$0 sm:$0xff]  ;;  %s16735_s10 = sld [smem:[#allocation3_spill]] }
 0xe67   : > { %p10487_p9 = scmp.ne.s32.totalorder %s16735_s10, 1 }
 0xe68   : > { %s16736_s4 = sld [smem:[#allocation109_spill]] (!%p10487_p9) }
 0xe69   : > { %s16737_s26 = sld [smem:[#allocation108_spill]] (!%p10487_p9) }
 0xe8e   : > { %v9755_v27 = vpop.xlane.xlu1 %9754 }
 0xe8f   : > { %v9781_v9 = vmul.f32 0.03125, %v9755_v27 }
 0xe91   : > { %v16134_v8 = vsub.f32 %v16039_v3, %v9781_v9 }
 0xe92   : > { %v9749_v22 = vpop.xlane.xlu1 %9748  ;;  %v9758_v49 = vpop.xlane.xlu0 %9757 }
 0xe93   : > { %v9779_v0 = vmul.f32 0.03125, %v9749_v22  ;;  %v9782_v34 = vmul.f32 0.03125, %v9758_v49  ;;  %v9813_v50 = vmul.f32 %v16134_v8, %v16134_v8 }
 0xe95   : > { %v16139_v60 = vsub.f32 %v16043_v61, %v9779_v0  ;;  %v16142_v57 = vsub.f32 %v16049_v56, %v9782_v34  ;;  %v9849_v7 = vsel %vm1139_vm1, %v9813_v50, 0.0 }
 0xe96   : > { %9850 = vadd.xlane.f32.xlu1 %v9849_v7  ;;  %v9752_v18 = vpop.xlane.xlu0 %9751 }
 0xe97   : > { %v9780_v24 = vmul.f32 0.03125, %v9752_v18  ;;  %v9811_v3 = vmul.f32 %v16139_v60, %v16139_v60  ;;  %v9814_v16 = vmul.f32 %v16142_v57, %v16142_v57 }
 0xe99   : > { %v16150_v33 = vsub.f32 %v16053_v20, %v9780_v24  ;;  %v9843_v61 = vsel %vm1139_vm1, %v9811_v3, 0.0  ;;  %v9852_v52 = vsel %vm1139_vm1, %v9814_v16, 0.0 }
 0xe9a   : > { %9844 = vadd.xlane.f32.xlu1 %v9843_v61  ;;  %9853 = vadd.xlane.f32.xlu0 %v9852_v52 }
 0xe9b   : > { %v9812_v56 = vmul.f32 %v16150_v33, %v16150_v33 }
 0xe9d   : > { %v9846_v62 = vsel %vm1139_vm1, %v9812_v56, 0.0 }
 0xe9e   : > { %9847 = vadd.xlane.f32.xlu0 %v9846_v62 }
 0xea0   : > { %v9761_v48 = vpop.xlane.xlu1 %9760 }
 0xea1   : > { %v9783_v38 = vmul.f32 0.03125, %v9761_v48 }
 0xea3   : > { %v16158_v23 = vsub.f32 %v16064_v42, %v9783_v38 }
 0xea4   : > { %v9767_v10 = vpop.xlane.xlu1 %9766  ;;  %v9764_v20 = vpop.xlane.xlu0 %9763 }
 0xea5   : > { %v9785_v15 = vmul.f32 0.03125, %v9767_v10  ;;  %v9784_v19 = vmul.f32 0.03125, %v9764_v20  ;;  %v9815_v53 = vmul.f32 %v16158_v23, %v16158_v23 }
 0xea7   : > { %v16163_v39 = vsub.f32 %v16067_v40, %v9785_v15  ;;  %v16166_v45 = vsub.f32 %v16074_v26, %v9784_v19  ;;  %v9855_v51 = vsel %vm1139_vm1, %v9815_v53, 0.0 }
 0xea8   : > { %9856 = vadd.xlane.f32.xlu1 %v9855_v51  ;;  %v9770_v5 = vpop.xlane.xlu0 %9769 }
 0xea9   : > { %v9786_v54 = vmul.f32 0.03125, %v9770_v5  ;;  %v9817_v42 = vmul.f32 %v16163_v39, %v16163_v39  ;;  %v9816_v2 = vmul.f32 %v16166_v45, %v16166_v45 }
 0xeab   : > { %v16174_v43 = vsub.f32 %v16077_v25, %v9786_v54  ;;  %v9861_v40 = vsel %vm1139_vm1, %v9817_v42, 0.0  ;;  %v9858_v17 = vsel %vm1139_vm1, %v9816_v2, 0.0 }
 0xeac   : > { %9862 = vadd.xlane.f32.xlu1 %v9861_v40  ;;  %9859 = vadd.xlane.f32.xlu0 %v9858_v17 }
 0xead   : > { %v9818_v26 = vmul.f32 %v16174_v43, %v16174_v43 }
 0xeaf   : > { %v9864_v11 = vsel %vm1139_vm1, %v9818_v26, 0.0 }
 0xeb0   : > { %9865 = vadd.xlane.f32.xlu0 %v9864_v11 }
 0xeb2   : > { %v9827_v59 = vpop.xlane.xlu1 %9826 }
 0xeb3   : > { %v9869_v13 = vmul.f32 0.03125, %v9827_v59 }
 0xeb5   : > { %v9885_v32 = vadd.f32 1e-12, %v9869_v13 }
 0xeb6   : > { %v9821_v4 = vpop.xlane.xlu1 %9820  ;;  %v9830_v25 = vpop.xlane.xlu0 %9829 }
 0xeb7   : > { %12315 = vrsqrt.f32 %v9885_v32  ;;  %v9867_v41 = vmul.f32 0.03125, %v9821_v4  ;;  %v9870_v12 = vmul.f32 0.03125, %v9830_v25 }
 0xeb9   : > { %v9883_v6 = vadd.f32 1e-12, %v9867_v41  ;;  %v9886_v46 = vadd.f32 1e-12, %v9870_v12 }
 0xeba   : > { %v9824_v28 = vpop.xlane.xlu0 %9823 }
 0xebb   : > { %12317 = vrsqrt.f32 %v9883_v6  ;;  %v9868_v36 = vmul.f32 0.03125, %v9824_v28 }
 0xebc   : > { %12319 = vrsqrt.f32 %v9886_v46 }
 0xebd   : > { %v9884_v58 = vadd.f32 1e-12, %v9868_v36 }
 0xebf   : > { %12321 = vrsqrt.f32 %v9884_v58 }
 0xec4   : > { %v12316_v30 = vpop.eup %12315 }
 0xec5   : > { %v9917_v31 = vmul.f32 %v12316_v30, %v16086_v47 }
 0xec7   : > { %v9939_v27 = vmul.f32 %v16186_v1, %v9917_v31 }
 0xec8   : > { %v12318_v9 = vpop.eup %12317 }
 0xec9   : > { %v12320_v22 = vpop.eup %12319  ;;  %v16198_v49 = vadd.f32 %v16194_v29, %v9939_v27  ;;  %v9915_v0 = vmul.f32 %v12318_v9, %v16091_v21 }
 0xeca   : > { %v9918_v34 = vmul.f32 %v12320_v22, %v16094_v37 }
 0xecb   : > { %9977 = vst.msk [vmem:[#allocation2 + $0x10] sm:$0xff] %vm1139_vm1, %v16198_v49  ;;  %v9937_v47 = vmul.f32 %v16186_v1, %v9915_v0 }
 0xecc   : > { %v12322_v50 = vpop.eup %12321  ;;  %v9940_v7 = vmul.f32 %v16186_v1, %v9918_v34 }
 0xecd   : > { %v16207_v18 = vadd.f32 %v16194_v29, %v9937_v47  ;;  %v9916_v24 = vmul.f32 %v12322_v50, %v16102_v55 }
 0xece   : > { %v16211_v3 = vadd.f32 %v16194_v29, %v9940_v7 }
 0xecf   : > { %9975 = vst.msk [vmem:[#allocation2] sm:$0xff] %vm1139_vm1, %v16207_v18  ;;  %v9938_v21 = vmul.f32 %v16186_v1, %v9916_v24 }
 0xed0   : > { %9978 = vst.msk [vmem:[#allocation2 + $0x18] sm:$0xff] %vm1139_vm1, %v16211_v3 }
 0xed1   : > { %v16219_v37 = vadd.f32 %v16194_v29, %v9938_v21 }
 0xed3   : > { %9976 = vst.msk [vmem:[#allocation2 + $0x8] sm:$0xff] %vm1139_vm1, %v16219_v37 }
 0xee2   : > { %v9839_v16 = vpop.xlane.xlu1 %9838 }
 0xee3   : > { %v9873_v61 = vmul.f32 0.03125, %v9839_v16 }
 0xee5   : > { %v9889_v55 = vadd.f32 1e-12, %v9873_v61 }
 0xee6   : > { %v9833_v52 = vpop.xlane.xlu1 %9832  ;;  %v9842_v56 = vpop.xlane.xlu0 %9841 }
 0xee7   : > { %12323 = vrsqrt.f32 %v9889_v55  ;;  %v9871_v62 = vmul.f32 0.03125, %v9833_v52  ;;  %v9874_v48 = vmul.f32 0.03125, %v9842_v56 }
 0xee9   : > { %v9887_v38 = vadd.f32 1e-12, %v9871_v62  ;;  %v9890_v10 = vadd.f32 1e-12, %v9874_v48 }
 0xeea   : > { %v9836_v20 = vpop.xlane.xlu0 %9835 }
 0xeeb   : > { %12325 = vrsqrt.f32 %v9887_v38  ;;  %v9872_v15 = vmul.f32 0.03125, %v9836_v20 }
 0xeec   : > { %12327 = vrsqrt.f32 %v9890_v10 }
 0xeed   : > { %v9888_v19 = vadd.f32 1e-12, %v9872_v15 }
 0xeef   : > { %12329 = vrsqrt.f32 %v9888_v19 }
 0xef4   : > { %v12324_v53 = vpop.eup %12323 }
 0xef5   : > { %v9921_v51 = vmul.f32 %v12324_v53, %v16110_v35 }
 0xef7   : > { %v9943_v5 = vmul.f32 %v16186_v1, %v9921_v51 }
 0xef8   : > { %v12326_v54 = vpop.eup %12325 }
 0xef9   : > { %v12328_v42 = vpop.eup %12327  ;;  %v16226_v2 = vadd.f32 %v16194_v29, %v9943_v5  ;;  %v9919_v40 = vmul.f32 %v12326_v54, %v16115_v14 }
 0xefa   : > { %v9922_v17 = vmul.f32 %v12328_v42, %v16118_v63 }
 0xefb   : > { %9981 = vst.msk [vmem:[#allocation2 + $0x30] sm:$0xff] %vm1139_vm1, %v16226_v2  ;;  %v9941_v26 = vmul.f32 %v16186_v1, %v9919_v40 }
 0xefc   : > { %v12330_v11 = vpop.eup %12329  ;;  %v9944_v59 = vmul.f32 %v16186_v1, %v9922_v17 }
 0xefd   : > { %v16235_v35 = vadd.f32 %v16194_v29, %v9941_v26  ;;  %v9920_v13 = vmul.f32 %v12330_v11, %v16126_v44 }
 0xefe   : > { %v16239_v32 = vadd.f32 %v16194_v29, %v9944_v59 }
 0xeff   : > { %9979 = vst.msk [vmem:[#allocation2 + $0x20] sm:$0xff] %vm1139_vm1, %v16235_v35  ;;  %v9942_v14 = vmul.f32 %v16186_v1, %v9920_v13 }
 0xf00   : > { %9982 = vst.msk [vmem:[#allocation2 + $0x38] sm:$0xff] %vm1139_vm1, %v16239_v32 }
 0xf01   : > { %v16247_v63 = vadd.f32 %v16194_v29, %v9942_v14 }
 0xf03   : > { %9980 = vst.msk [vmem:[#allocation2 + $0x28] sm:$0xff] %vm1139_vm1, %v16247_v63 }
 0xf1f   : > { %v9851_v4 = vpop.xlane.xlu1 %9850 }
 0xf20   : > { %v9877_v25 = vmul.f32 0.03125, %v9851_v4 }
 0xf22   : > { %v9893_v44 = vadd.f32 1e-12, %v9877_v25 }
 0xf23   : > { %v9845_v41 = vpop.xlane.xlu1 %9844  ;;  %v9854_v12 = vpop.xlane.xlu0 %9853 }
 0xf24   : > { %12331 = vrsqrt.f32 %v9893_v44  ;;  %v9875_v6 = vmul.f32 0.03125, %v9845_v41  ;;  %v9878_v46 = vmul.f32 0.03125, %v9854_v12 }
 0xf26   : > { %v9891_v28 = vadd.f32 1e-12, %v9875_v6  ;;  %v9894_v36 = vadd.f32 1e-12, %v9878_v46 }
 0xf27   : > { %v9848_v58 = vpop.xlane.xlu0 %9847 }
 0xf28   : > { %12333 = vrsqrt.f32 %v9891_v28  ;;  %v9876_v30 = vmul.f32 0.03125, %v9848_v58 }
 0xf29   : > { %12335 = vrsqrt.f32 %v9894_v36 }
 0xf2a   : > { %v9892_v31 = vadd.f32 1e-12, %v9876_v30 }
 0xf2c   : > { %12337 = vrsqrt.f32 %v9892_v31 }
 0xf31   : > { %v12332_v27 = vpop.eup %12331  ;;  %v9857_v9 = vpop.xlane.xlu1 %9856 }
 0xf32   : > { %v9925_v22 = vmul.f32 %v12332_v27, %v16134_v8  ;;  %v9879_v0 = vmul.f32 0.03125, %v9857_v9 }
 0xf34   : > { %v9947_v34 = vmul.f32 %v16186_v1, %v9925_v22  ;;  %v9895_v47 = vadd.f32 1e-12, %v9879_v0 }
 0xf35   : > { %v12334_v50 = vpop.eup %12333  ;;  %v9863_v7 = vpop.xlane.xlu1 %9862 }
 0xf36   : > { %v9860_v24 = vpop.xlane.xlu0 %9859  ;;  %v12336_v21 = vpop.eup %12335  ;;  %v16254_v16 = vadd.f32 %v16194_v29, %v9947_v34  ;;  %v9923_v61 = vmul.f32 %v12334_v50, %v16139_v60  ;;  %12339 = vrsqrt.f32 %v9895_v47  ;;  %v9881_v55 = vmul.f32 0.03125, %v9863_v7 }
 0xf37   : > { %v9926_v52 = vmul.f32 %v12336_v21, %v16142_v57  ;;  %v9880_v56 = vmul.f32 0.03125, %v9860_v24 }
 0xf38   : > { %9985 = vst.msk [vmem:[#allocation2 + $0x50] sm:$0xff] %vm1139_vm1, %v16254_v16  ;;  %v9945_v8 = vmul.f32 %v16186_v1, %v9923_v61  ;;  %v9897_v62 = vadd.f32 1e-12, %v9881_v55 }
 0xf39   : > { %v12338_v48 = vpop.eup %12337  ;;  %v9948_v38 = vmul.f32 %v16186_v1, %v9926_v52  ;;  %v9896_v10 = vadd.f32 1e-12, %v9880_v56 }
 0xf3a   : > { %v9866_v20 = vpop.xlane.xlu0 %9865  ;;  %v9967_v15 = vadd.f32 %v16194_v29, %v9945_v8  ;;  %v9924_v60 = vmul.f32 %v12338_v48, %v16150_v33  ;;  %12341 = vrsqrt.f32 %v9897_v62 }
 0xf3b   : > { %v9882_v19 = vmul.f32 0.03125, %v9866_v20  ;;  %v9970_v57 = vadd.f32 %v16194_v29, %v9948_v38  ;;  %12343 = vrsqrt.f32 %v9896_v10 }
 0xf3c   : > { %9983 = vst.msk [vmem:[#allocation2 + $0x40] sm:$0xff] %vm1139_vm1, %v9967_v15  ;;  %v9946_v53 = vmul.f32 %v16186_v1, %v9924_v60 }
 0xf3d   : > { %v9898_v51 = vadd.f32 1e-12, %v9882_v19  ;;  %9986 = vst.msk [vmem:[#allocation2 + $0x58] sm:$0xff] %vm1139_vm1, %v9970_v57 }
 0xf3e   : > { %v9968_v5 = vadd.f32 %v16194_v29, %v9946_v53 }
 0xf3f   : > { %12345 = vrsqrt.f32 %v9898_v51 }
 0xf40   : > { %9984 = vst.msk [vmem:[#allocation2 + $0x48] sm:$0xff] %vm1139_vm1, %v9968_v5 }
 0xf43   : > { %v12340_v54 = vpop.eup %12339 }
 0xf44   : > { %v9927_v33 = vmul.f32 %v12340_v54, %v16158_v23 }
 0xf46   : > { %v9949_v42 = vmul.f32 %v16186_v1, %v9927_v33 }
 0xf47   : > { %v12342_v40 = vpop.eup %12341 }
 0xf48   : > { %v12344_v17 = vpop.eup %12343  ;;  %v9971_v26 = vadd.f32 %v16194_v29, %v9949_v42  ;;  %v9929_v11 = vmul.f32 %v12342_v40, %v16163_v39 }
 0xf49   : > { %v9928_v59 = vmul.f32 %v12344_v17, %v16166_v45 }
 0xf4a   : > { %9987 = vst.msk [vmem:[#allocation2 + $0x60] sm:$0xff] %vm1139_vm1, %v9971_v26  ;;  %v9951_v13 = vmul.f32 %v16186_v1, %v9929_v11 }
 0xf4b   : > { %v9950_v4 = vmul.f32 %v16186_v1, %v9928_v59 }
 0xf4c   : > { %v12346_v14 = vpop.eup %12345  ;;  %v9973_v25 = vadd.f32 %v16194_v29, %v9951_v13 }
 0xf4d   : > { %v9930_v23 = vmul.f32 %v12346_v14, %v16174_v43  ;;  %v9972_v44 = vadd.f32 %v16194_v29, %v9950_v4 }
 0xf4e   : > { %9989 = vst.msk [vmem:[#allocation2 + $0x70] sm:$0xff] %vm1139_vm1, %v9973_v25 }
 0xf4f   : > { %v9952_v41 = vmul.f32 %v16186_v1, %v9930_v23  ;;  %9988 = vst.msk [vmem:[#allocation2 + $0x68] sm:$0xff] %vm1139_vm1, %v9972_v44  ;;  %9994 = sbr.rel (%p10487_p9) target bundleno = 4269 (0x10ad), region = 100 }
 0xf51   : > { %v9974_v39 = vadd.f32 %v16194_v29, %v9952_v41 }
 0xf53   : > { %9990 = vst.msk [vmem:[#allocation2 + $0x78] sm:$0xff] %vm1139_vm1, %v9974_v39 }
 0xf54   : > { %9996 = vxpose.xlu0.b32.start [1/16] (narrow) %v16207_v18, 32  ;;  %v12434_v45 = vmov 0.0   ;;  %vm12435_vm8 = vmmov 0   ;;  %v10030_v43 = vld [vmem:[%s16736_s4] sm:$0xff]  ;;  %v12436_v1 = vmov 0  }
 0xf55   : > { %11648 = vmatprep.subr.bf16.mxu0 %v12434_v45  ;;  %11652 = vmatprep.mubr.msk.bf16.mxu0 %vm12435_vm8, %v12434_v45 }
 0xf56   : > { %12382 = vset.pattern.permute.xlu1 %v12436_v1 }
 0xf57   : > { %10033 = vperm.xlu1 %12382, %v10030_v43  }
 0xf58   : > { %9997 = vxpose.xlu0.b32.cont [2/16] (narrow) %v16219_v37, 32 }
 0xf5c   : > { %9998 = vxpose.xlu0.b32.cont [3/16] (narrow) %v16198_v49, 32 }
 0xf60   : > { %9999 = vxpose.xlu0.b32.cont [4/16] (narrow) %v16211_v3, 32 }
 0xf64   : > { %10000 = vxpose.xlu0.b32.cont [5/16] (narrow) %v16235_v35, 32  ;;  %v9995_v35 = vld [vmem:[%s16737_s26] sm:$0xf] }
 0xf68   : > { %10001 = vxpose.xlu0.b32.cont [6/16] (narrow) %v16247_v63, 32 }
 0xf6c   : > { %10002 = vxpose.xlu0.b32.cont [7/16] (narrow) %v16226_v2, 32 }
 0xf70   : > { %10003 = vxpose.xlu0.b32.cont [8/16] (narrow) %v16239_v32, 32 }
 0xf74   : > { %10004 = vxpose.xlu0.b32.cont [9/16] (narrow) %v9967_v15, 32 }
 0xf78   : > { %10005 = vxpose.xlu0.b32.cont [10/16] (narrow) %v9968_v5, 32 }
 0xf7c   : > { %10006 = vxpose.xlu0.b32.cont [11/16] (narrow) %v16254_v16, 32 }
 0xf80   : > { %10007 = vxpose.xlu0.b32.cont [12/16] (narrow) %v9970_v57, 32 }
 0xf84   : > { %10008 = vxpose.xlu0.b32.cont [13/16] (narrow) %v9971_v26, 32 }
 0xf88   : > { %10009 = vxpose.xlu0.b32.cont [14/16] (narrow) %v9972_v44, 32 }
 0xf8c   : > { %10010 = vxpose.xlu0.b32.cont [15/16] (narrow) %v9973_v25, 32 }
 0xf90   : > { %10011 = vxpose.xlu0.b32.end [16/16] (narrow) %v9974_v39, 32 }
 0xfb9   : > { %12383 = vset.pattern.permute.xlu0 %v12436_v1 }
 0xfd0   : > { %v10012_v29 = vpop.trf.xlu0 }
 0xfd2   : > { %v10034_v32 = vpop.permute.xlu1 %10033 }
 0xfd4   : > { %v10013_v49 = vpop.trf.xlu0 }
 0xfd5   : > { %v10028_v2 = vpack.c.bf16 %v10013_v49, %v10012_v29 }
 0xfd8   : > { %v10014_v18 = vpop.trf.xlu0 }
 0xfdc   : > { %v10015_v3 = vpop.trf.xlu0 }
 0xfdd   : > { %v10029_v37 = vpack.c.bf16 %v10015_v3, %v10014_v18 }
 0xfdf   : > { %11649 = vmatpush3.bf16.msra.mxu0 %v10029_v37 }
 0xfe0   : > { %11650 = vmatprep.subr.bf16.mxu0 %v12434_v45 }
 0xfe3   : > { %11651 = vmatpush3.bf16.msra.mxu0 %v10028_v2 }
 0xfe6   : > { %11653 = vmatmul.mubr.msk.bf16.vlgmr.msra.gmra.mxu0 %vm1139_vm1, %v9995_v35 }
0x10a6   : > { %v10073_v63 = vpop.f32.mrf.mxu0 }
0x10a7   : > { %v10074_v12 = vadd.f32 %v10073_v63, %v10034_v32 }
0x10a8   : > { %v11654_v6 = vpop.f32.mrf.mxu0 }
0x10a9   : > { %10079 = vst [vmem:[%s12642_s15] sm:$0xff] %v10074_v12 }
0x10aa   : > { %v10076_v46 = vpop.f32.mrf.mxu0 }
0x10ac   : > { %v11655_v28 = vpop.f32.mrf.mxu0 }
0x10ad PF: > { %s16738_s28 = sld [smem:[#allocation6_spill]] }
0x10ae   : > { %s16739_s27 = sld [smem:[#allocation4_spill]] }
0x10af   : > { %s16741_s29 = sld [smem:[#allocation7_spill]] }
0x10b0   : > { %s16742_s30 = sld [smem:[#allocation8_spill]] }
0x10b3   : > { %s28_s0 = sadd.s32 1, %s16738_s28   ;;  %s16740_s28 = sld [smem:[#allocation5_spill]] }
0x10b4   : > { %p25_p10 = scmp.ge.s32.totalorder %s28_s0, 6  }
0x10b6   :  { %27 = sbr.rel (!%p25_p10) target bundleno = 13 (0xd), region = 169 }

</bundles_post_ra>
